<compile_context>
chip_gen: v7x
topology: tpu7x:2x2x1
jax: 0.10.0
libtpu: 0.0.40
codegen_flags: <defaults>
</compile_context>

<pallas_src>
import jax
import jax.numpy as jnp
from jax import lax
from jax.experimental import pallas as pl
from jax.experimental.pallas import tpu as pltpu

_EPS = 1e-5
_L1, _OFF1, _PAD1 = 28 * 28, 128, 1024   # flat 28x28 image staged at lane offset 128
_L2, _OFF2, _PAD2 = 14 * 14, 128, 384    # flat 14x14 activations staged at lane offset 128

_VMEM = pl.BlockSpec(memory_space=pltpu.MemorySpace.VMEM)
_SMEM = pl.BlockSpec(memory_space=pltpu.MemorySpace.SMEM)


# ------------------------------ wrapper helpers ------------------------------ #

def _pool_matrix(h, w):
    """(h*w, (h//2)*(w//2)) matrix implementing AvgPool2d(2,2) on row-major flat pixels."""
    k = jnp.arange(h * w)
    dst = ((k // w) // 2) * (w // 2) + (k % w) // 2
    j = jnp.arange((h // 2) * (w // 2))
    return jnp.where(dst[:, None] == j[None, :], 0.25, 0.0).astype(jnp.bfloat16)


def _border_masks(h, w):
    """(2, h*w) f32 validity masks for the dx=0 (needs col-1) / dx=2 (needs col+1) taps."""
    wk = jnp.arange(h * w) % w
    return jnp.stack([wk >= 1, wk <= w - 2]).astype(jnp.float32)


# ------------------------------- kernel helpers ------------------------------ #

def _bn_relu(acc, gamma, beta):
    """Train-mode BatchNorm (stats over N*H*W, biased variance) + affine + ReLU.

    The conv bias is omitted upstream because the mean subtraction here cancels
    any per-channel constant exactly.
    """
    m = jnp.mean(acc)
    v = jnp.mean((acc - m) * (acc - m))
    return jnp.maximum((acc - m) * lax.rsqrt(v + _EPS) * gamma + beta, 0.0)


def _conv_taps(read, width, n_lanes, off, m_left, m_right):
    """9 flat conv taps: tap(dy,dx)[n, k] = act[n, k + (dy-1)*width + (dx-1)], zero-padded.

    `read(a)` returns the (N, n_lanes) lane window starting at absolute offset `a`
    of a zero-padded staging ref whose real data starts at `off`.  Row wrap-around
    along the lane axis is killed by the column-border masks; the top/bottom rows
    fall into the zeroed pad region of the staging buffer.
    """
    taps = []
    for dy in range(3):
        for dx in range(3):
            t = read(off + (dy - 1) * width + (dx - 1))
            if dx == 0:
                t = t * m_left
            elif dx == 2:
                t = t * m_right
            taps.append(t)
    return taps


# ----------------------------------- kernel ---------------------------------- #

def _convnet_kernel(xp_ref, w1_ref, g1_ref, b1_ref, w2_ref, g2_ref, b2_ref,
                    wm1_ref, wm2_ref, p1_ref, p2_ref,
                    fc1w_ref, fc1b_ref, fc2w_ref, fc2b_ref,
                    o_ref, xs2_ref):
    """Whole ConvNeuralNetwork forward for a small batch, fully resident in VMEM.

    xp_ref:   (N, 1024)      VMEM  zero-padded flat 28x28 images (data at lanes 128:912)
    w1_ref:   (3, 9)         SMEM  conv1 weights, tap order ky*3 + kx
    g1/b1:    (3,)           SMEM  BN1 gamma / beta
    w2_ref:   (6, 27)        SMEM  conv2 weights, tap order ci*9 + ky*3 + kx
    g2/b2:    (6,)           SMEM  BN2 gamma / beta
    wm1_ref:  (2, 784)       VMEM  column-border masks for the 28-wide grid
    wm2_ref:  (2, 196)       VMEM  column-border masks for the 14-wide grid
    p1_ref:   (784, 196)     VMEM  bf16 AvgPool2d(2) matrix for 28x28 -> 14x14
    p2_ref:   (196, 49)      VMEM  bf16 AvgPool2d(2) matrix for 14x14 -> 7x7
    fc1w_ref: (6, 49, 100)   VMEM  bf16, slab co = rows co*49:(co+1)*49 of the (294,100) matrix
    fc1b_ref: (1, 100)       VMEM  f32
    fc2w_ref: (100, 10)      VMEM  bf16
    fc2b_ref: (1, 10)        VMEM  f32
    o_ref:    (N, 10)        VMEM  log-softmax output (single full-block store)
    xs2_ref:  (3, N, 384)    VMEM scratch, zero-padded flat block-1 activations
    """
    m_l1, m_r1 = wm1_ref[0:1, :], wm1_ref[1:2, :]
    m_l2, m_r2 = wm2_ref[0:1, :], wm2_ref[1:2, :]
    p1 = p1_ref[...]
    p2 = p2_ref[...]

    # -------- block 1: conv(1->3) + BN + ReLU + avgpool(2), flat 28x28 lanes -------- #
    taps1 = _conv_taps(lambda a: xp_ref[:, a:a + _L1], 28, _L1, _OFF1, m_l1, m_r1)

    pooled1 = []                                           # 3 x (N, 196)
    for c in range(3):
        acc = taps1[0] * w1_ref[c, 0]
        for t in range(1, 9):
            acc = acc + taps1[t] * w1_ref[c, t]
        act = _bn_relu(acc, g1_ref[c], b1_ref[c])          # (N, 784)
        pooled1.append(jnp.dot(act.astype(jnp.bfloat16), p1,
                               preferred_element_type=jnp.float32))

    # Stage pooled block-1 activations at a lane-ALIGNED offset in zeroed scratch.
    xs2_ref[...] = jnp.zeros(xs2_ref.shape, xs2_ref.dtype)
    for c in range(3):
        xs2_ref[c, :, _OFF2:_OFF2 + _L2] = pooled1[c]

    # -------- block 2: conv(3->6) + BN + ReLU + avgpool(2), flat 14x14 lanes -------- #
    taps2 = []                                             # index ci*9 + ky*3 + kx
    for ci in range(3):
        taps2.extend(_conv_taps(lambda a, ci=ci: xs2_ref[ci, :, a:a + _L2],
                                14, _L2, _OFF2, m_l2, m_r2))

    pooled2 = []                                           # 6 x (N, 49), flat index h*7 + w
    for co in range(6):
        acc = taps2[0] * w2_ref[co, 0]
        for t in range(1, 27):
            acc = acc + taps2[t] * w2_ref[co, t]
        act = _bn_relu(acc, g2_ref[co], b2_ref[co])        # (N, 196)
        pooled2.append(jnp.dot(act.astype(jnp.bfloat16), p2,
                               preferred_element_type=jnp.float32))

    # -------- flatten (torch NCHW order) + Linear + Linear + log_softmax ------------ #
    # FC1 as 6 accumulated (N,49)x(49,100) matmuls: slab co corresponds to flatten
    # indices co*49 + h*7 + w, i.e. exactly torch's x.view(N, -1) ordering.
    hidden = fc1b_ref[...]                                 # (1,100) broadcasts over N
    for co in range(6):
        hidden = hidden + jnp.dot(pooled2[co].astype(jnp.bfloat16), fc1w_ref[co],
                                  preferred_element_type=jnp.float32)

    logits = jnp.dot(hidden.astype(jnp.bfloat16), fc2w_ref[...],
                     preferred_element_type=jnp.float32) + fc2b_ref[...]   # (N, 10)
    logits = logits - jnp.max(logits, axis=-1, keepdims=True)
    o_ref[...] = logits - jnp.log(jnp.sum(jnp.exp(logits), axis=-1, keepdims=True))


# -------------------------------- JAX wrapper -------------------------------- #

def init_params(key):
    ks = jax.random.split(key, 8)
    p = {}
    p["conv1_w"] = 0.1 * jax.random.normal(ks[0], (3, 1, 3, 3), jnp.float32)
    p["conv1_b"] = 0.1 * jax.random.normal(ks[1], (3,), jnp.float32)   # cancelled by train-mode BN
    p["bn1_g"] = jnp.ones((3,), jnp.float32)
    p["bn1_b"] = jnp.zeros((3,), jnp.float32)
    p["conv2_w"] = 0.1 * jax.random.normal(ks[2], (6, 3, 3, 3), jnp.float32)
    p["conv2_b"] = 0.1 * jax.random.normal(ks[3], (6,), jnp.float32)   # cancelled by train-mode BN
    p["bn2_g"] = jnp.ones((6,), jnp.float32)
    p["bn2_b"] = jnp.zeros((6,), jnp.float32)
    # Linear weights stored already-transposed: (in, out); y = x @ W + b.
    p["fc1_w"] = 0.05 * jax.random.normal(ks[4], (294, 100), jnp.float32)
    p["fc1_b"] = 0.05 * jax.random.normal(ks[5], (100,), jnp.float32)
    p["fc2_w"] = 0.05 * jax.random.normal(ks[6], (100, 10), jnp.float32)
    p["fc2_b"] = 0.05 * jax.random.normal(ks[7], (10,), jnp.float32)
    return p


def forward(params, x_nchw):
    n, cin, h, w = x_nchw.shape
    assert (cin, h, w) == (1, 28, 28), "Linear(294, 100) implies 1x28x28 inputs"

    # Flatten H*W onto the lane axis and zero-pad to a lane-aligned staging slab.
    x_flat = x_nchw[:, 0, :, :].reshape(n, _L1).astype(jnp.float32)
    xp = jnp.pad(x_flat, ((0, 0), (_OFF1, _PAD1 - _OFF1 - _L1)))

    wm1 = _border_masks(28, 28)            # (2, 784) f32
    wm2 = _border_masks(14, 14)            # (2, 196) f32
    pool1 = _pool_matrix(28, 28)           # (784, 196) bf16
    pool2 = _pool_matrix(14, 14)           # (196, 49)  bf16

    # Conv biases are NOT passed: under train-mode BatchNorm they are exactly
    # cancelled by the per-channel mean subtraction.
    return pl.pallas_call(
        _convnet_kernel,
        out_shape=jax.ShapeDtypeStruct((n, 10), jnp.float32),
        in_specs=[
            _VMEM,                       # padded flat input
            _SMEM, _SMEM, _SMEM,         # conv1 weights, bn1 gamma, bn1 beta
            _SMEM, _SMEM, _SMEM,         # conv2 weights, bn2 gamma, bn2 beta
            _VMEM, _VMEM,                # border masks
            _VMEM, _VMEM,                # pooling matrices (bf16)
            _VMEM, _VMEM, _VMEM, _VMEM,  # fc1_w, fc1_b, fc2_w, fc2_b
        ],
        out_specs=_VMEM,
        scratch_shapes=[
            pltpu.VMEM((3, n, _PAD2), jnp.float32),   # padded flat block-1 activations
        ],
    )(xp,
      params["conv1_w"].reshape(3, 9), params["bn1_g"], params["bn1_b"],
      params["conv2_w"].reshape(6, 27), params["bn2_g"], params["bn2_b"],
      wm1, wm2, pool1, pool2,
      params["fc1_w"].reshape(6, 49, 100).astype(jnp.bfloat16),
      params["fc1_b"].reshape(1, 100),
      params["fc2_w"].astype(jnp.bfloat16),
      params["fc2_b"].reshape(1, 10))


if __name__ == "__main__":
    key = jax.random.PRNGKey(0)
    pkey, xkey = jax.random.split(key)
    params = init_params(pkey)
    # Input implied by Linear(294, 100): 1x28x28 images. Small batch of 2.
    x = jax.random.normal(xkey, (2, 1, 28, 28), jnp.float32)
    out = jax.jit(forward)(params, x)
    jax.block_until_ready(out)
    assert out.shape == (2, 10)
    # log-softmax rows should sum to ~1 in probability space
    assert bool(jnp.all(jnp.abs(jnp.sum(jnp.exp(out), axis=-1) - 1.0) < 1e-4))
    print("KERNEL_OK")
</pallas_src>

<mosaic_0001>
module attributes {stable_mosaic.version = 11 : i64} {
  func.func @_convnet_kernel(%arg0: memref<2x1024xf32, #tpu.memory_space<vmem>>, %arg1: memref<3x9xf32, #tpu.memory_space<smem>>, %arg2: memref<3xf32, #tpu.memory_space<smem>>, %arg3: memref<3xf32, #tpu.memory_space<smem>>, %arg4: memref<6x27xf32, #tpu.memory_space<smem>>, %arg5: memref<6xf32, #tpu.memory_space<smem>>, %arg6: memref<6xf32, #tpu.memory_space<smem>>, %arg7: memref<2x784xf32, #tpu.memory_space<vmem>>, %arg8: memref<2x196xf32, #tpu.memory_space<vmem>>, %arg9: memref<784x196xbf16, #tpu.memory_space<vmem>>, %arg10: memref<196x49xbf16, #tpu.memory_space<vmem>>, %arg11: memref<6x49x100xbf16, #tpu.memory_space<vmem>>, %arg12: memref<1x100xf32, #tpu.memory_space<vmem>>, %arg13: memref<100x10xbf16, #tpu.memory_space<vmem>>, %arg14: memref<1x10xf32, #tpu.memory_space<vmem>>, %arg15: memref<2x10xf32, #tpu.memory_space<vmem>>, %arg16: memref<3x2x384xf32, #tpu.memory_space<vmem>>) attributes {dimension_semantics = [], scalar_prefetch = 0 : i64, scratch_operands = 1 : i64, tpu.core_type = #tpu.core_type<tc>} {
    %c0 = arith.constant 0 : index
    %c0_0 = arith.constant 0 : index
    %0 = vector.load %arg7[%c0, %c0_0] : memref<2x784xf32, #tpu.memory_space<vmem>>, vector<1x784xf32>
    %c1 = arith.constant 1 : index
    %c0_1 = arith.constant 0 : index
    %1 = vector.load %arg7[%c1, %c0_1] : memref<2x784xf32, #tpu.memory_space<vmem>>, vector<1x784xf32>
    %c0_2 = arith.constant 0 : index
    %c0_3 = arith.constant 0 : index
    %2 = vector.load %arg8[%c0_2, %c0_3] : memref<2x196xf32, #tpu.memory_space<vmem>>, vector<1x196xf32>
    %c1_4 = arith.constant 1 : index
    %c0_5 = arith.constant 0 : index
    %3 = vector.load %arg8[%c1_4, %c0_5] : memref<2x196xf32, #tpu.memory_space<vmem>>, vector<1x196xf32>
    %c0_6 = arith.constant 0 : index
    %c0_7 = arith.constant 0 : index
    %4 = vector.load %arg9[%c0_6, %c0_7] : memref<784x196xbf16, #tpu.memory_space<vmem>>, vector<784x196xbf16>
    %c0_8 = arith.constant 0 : index
    %c0_9 = arith.constant 0 : index
    %5 = vector.load %arg10[%c0_8, %c0_9] : memref<196x49xbf16, #tpu.memory_space<vmem>>, vector<196x49xbf16>
    %c0_10 = arith.constant 0 : index
    %c99 = arith.constant 99 : index
    %6 = vector.load %arg0[%c0_10, %c99] : memref<2x1024xf32, #tpu.memory_space<vmem>>, vector<2x784xf32>
    %7 = vector.broadcast %0 : vector<1x784xf32> to vector<2x784xf32>
    %8 = arith.mulf %6, %7 : vector<2x784xf32>
    %c0_11 = arith.constant 0 : index
    %c100 = arith.constant 100 : index
    %9 = vector.load %arg0[%c0_11, %c100] : memref<2x1024xf32, #tpu.memory_space<vmem>>, vector<2x784xf32>
    %c0_12 = arith.constant 0 : index
    %c101 = arith.constant 101 : index
    %10 = vector.load %arg0[%c0_12, %c101] : memref<2x1024xf32, #tpu.memory_space<vmem>>, vector<2x784xf32>
    %11 = vector.broadcast %1 : vector<1x784xf32> to vector<2x784xf32>
    %12 = arith.mulf %10, %11 : vector<2x784xf32>
    %c0_13 = arith.constant 0 : index
    %c127 = arith.constant 127 : index
    %13 = vector.load %arg0[%c0_13, %c127] : memref<2x1024xf32, #tpu.memory_space<vmem>>, vector<2x784xf32>
    %14 = vector.broadcast %0 : vector<1x784xf32> to vector<2x784xf32>
    %15 = arith.mulf %13, %14 : vector<2x784xf32>
    %c0_14 = arith.constant 0 : index
    %c128 = arith.constant 128 : index
    %16 = vector.load %arg0[%c0_14, %c128] : memref<2x1024xf32, #tpu.memory_space<vmem>>, vector<2x784xf32>
    %c0_15 = arith.constant 0 : index
    %c129 = arith.constant 129 : index
    %17 = vector.load %arg0[%c0_15, %c129] : memref<2x1024xf32, #tpu.memory_space<vmem>>, vector<2x784xf32>
    %18 = vector.broadcast %1 : vector<1x784xf32> to vector<2x784xf32>
    %19 = arith.mulf %17, %18 : vector<2x784xf32>
    %c0_16 = arith.constant 0 : index
    %c155 = arith.constant 155 : index
    %20 = vector.load %arg0[%c0_16, %c155] : memref<2x1024xf32, #tpu.memory_space<vmem>>, vector<2x784xf32>
    %21 = vector.broadcast %0 : vector<1x784xf32> to vector<2x784xf32>
    %22 = arith.mulf %20, %21 : vector<2x784xf32>
    %c0_17 = arith.constant 0 : index
    %c156 = arith.constant 156 : index
    %23 = vector.load %arg0[%c0_17, %c156] : memref<2x1024xf32, #tpu.memory_space<vmem>>, vector<2x784xf32>
    %c0_18 = arith.constant 0 : index
    %c157 = arith.constant 157 : index
    %24 = vector.load %arg0[%c0_18, %c157] : memref<2x1024xf32, #tpu.memory_space<vmem>>, vector<2x784xf32>
    %25 = vector.broadcast %1 : vector<1x784xf32> to vector<2x784xf32>
    %26 = arith.mulf %24, %25 : vector<2x784xf32>
    %c0_19 = arith.constant 0 : index
    %c0_20 = arith.constant 0 : index
    %27 = memref.load %arg1[%c0_19, %c0_20] : memref<3x9xf32, #tpu.memory_space<smem>>
    %28 = vector.broadcast %27 : f32 to vector<2x784xf32>
    %29 = arith.mulf %8, %28 : vector<2x784xf32>
    %c0_21 = arith.constant 0 : index
    %c1_22 = arith.constant 1 : index
    %30 = memref.load %arg1[%c0_21, %c1_22] : memref<3x9xf32, #tpu.memory_space<smem>>
    %31 = vector.broadcast %30 : f32 to vector<2x784xf32>
    %32 = arith.mulf %9, %31 : vector<2x784xf32>
    %33 = arith.addf %29, %32 : vector<2x784xf32>
    %c0_23 = arith.constant 0 : index
    %c2 = arith.constant 2 : index
    %34 = memref.load %arg1[%c0_23, %c2] : memref<3x9xf32, #tpu.memory_space<smem>>
    %35 = vector.broadcast %34 : f32 to vector<2x784xf32>
    %36 = arith.mulf %12, %35 : vector<2x784xf32>
    %37 = arith.addf %33, %36 : vector<2x784xf32>
    %c0_24 = arith.constant 0 : index
    %c3 = arith.constant 3 : index
    %38 = memref.load %arg1[%c0_24, %c3] : memref<3x9xf32, #tpu.memory_space<smem>>
    %39 = vector.broadcast %38 : f32 to vector<2x784xf32>
    %40 = arith.mulf %15, %39 : vector<2x784xf32>
    %41 = arith.addf %37, %40 : vector<2x784xf32>
    %c0_25 = arith.constant 0 : index
    %c4 = arith.constant 4 : index
    %42 = memref.load %arg1[%c0_25, %c4] : memref<3x9xf32, #tpu.memory_space<smem>>
    %43 = vector.broadcast %42 : f32 to vector<2x784xf32>
    %44 = arith.mulf %16, %43 : vector<2x784xf32>
    %45 = arith.addf %41, %44 : vector<2x784xf32>
    %c0_26 = arith.constant 0 : index
    %c5 = arith.constant 5 : index
    %46 = memref.load %arg1[%c0_26, %c5] : memref<3x9xf32, #tpu.memory_space<smem>>
    %47 = vector.broadcast %46 : f32 to vector<2x784xf32>
    %48 = arith.mulf %19, %47 : vector<2x784xf32>
    %49 = arith.addf %45, %48 : vector<2x784xf32>
    %c0_27 = arith.constant 0 : index
    %c6 = arith.constant 6 : index
    %50 = memref.load %arg1[%c0_27, %c6] : memref<3x9xf32, #tpu.memory_space<smem>>
    %51 = vector.broadcast %50 : f32 to vector<2x784xf32>
    %52 = arith.mulf %22, %51 : vector<2x784xf32>
    %53 = arith.addf %49, %52 : vector<2x784xf32>
    %c0_28 = arith.constant 0 : index
    %c7 = arith.constant 7 : index
    %54 = memref.load %arg1[%c0_28, %c7] : memref<3x9xf32, #tpu.memory_space<smem>>
    %55 = vector.broadcast %54 : f32 to vector<2x784xf32>
    %56 = arith.mulf %23, %55 : vector<2x784xf32>
    %57 = arith.addf %53, %56 : vector<2x784xf32>
    %c0_29 = arith.constant 0 : index
    %c8 = arith.constant 8 : index
    %58 = memref.load %arg1[%c0_29, %c8] : memref<3x9xf32, #tpu.memory_space<smem>>
    %59 = vector.broadcast %58 : f32 to vector<2x784xf32>
    %60 = arith.mulf %26, %59 : vector<2x784xf32>
    %61 = arith.addf %57, %60 : vector<2x784xf32>
    %c0_30 = arith.constant 0 : index
    %62 = memref.load %arg2[%c0_30] : memref<3xf32, #tpu.memory_space<smem>>
    %c0_31 = arith.constant 0 : index
    %63 = memref.load %arg3[%c0_31] : memref<3xf32, #tpu.memory_space<smem>>
    %64 = vector.shape_cast %61 : vector<2x784xf32> to vector<1x2x784xf32>
    %cst = arith.constant dense<0.000000e+00> : vector<1xf32>
    %65 = vector.multi_reduction <add>, %64, %cst [1, 2] : vector<1x2x784xf32> to vector<1xf32>
    %66 = vector.shape_cast %65 : vector<1xf32> to vector<1x1x1xf32>
    %67 = vector.extract %66[0, 0, 0] : f32 from vector<1x1x1xf32>
    %cst_32 = arith.constant 1.568000e+03 : f32
    %68 = arith.divf %67, %cst_32 : f32
    %69 = vector.broadcast %68 : f32 to vector<2x784xf32>
    %70 = arith.subf %61, %69 : vector<2x784xf32>
    %71 = vector.broadcast %68 : f32 to vector<2x784xf32>
    %72 = arith.subf %61, %71 : vector<2x784xf32>
    %73 = arith.mulf %70, %72 : vector<2x784xf32>
    %74 = vector.shape_cast %73 : vector<2x784xf32> to vector<1x2x784xf32>
    %cst_33 = arith.constant dense<0.000000e+00> : vector<1xf32>
    %75 = vector.multi_reduction <add>, %74, %cst_33 [1, 2] : vector<1x2x784xf32> to vector<1xf32>
    %76 = vector.shape_cast %75 : vector<1xf32> to vector<1x1x1xf32>
    %77 = vector.extract %76[0, 0, 0] : f32 from vector<1x1x1xf32>
    %cst_34 = arith.constant 1.568000e+03 : f32
    %78 = arith.divf %77, %cst_34 : f32
    %79 = vector.broadcast %68 : f32 to vector<2x784xf32>
    %80 = arith.subf %61, %79 : vector<2x784xf32>
    %cst_35 = arith.constant 9.99999974E-6 : f32
    %81 = arith.addf %78, %cst_35 : f32
    %82 = math.rsqrt %81 : f32
    %83 = vector.broadcast %82 : f32 to vector<2x784xf32>
    %84 = arith.mulf %80, %83 : vector<2x784xf32>
    %85 = vector.broadcast %62 : f32 to vector<2x784xf32>
    %86 = arith.mulf %84, %85 : vector<2x784xf32>
    %87 = vector.broadcast %63 : f32 to vector<2x784xf32>
    %88 = arith.addf %86, %87 : vector<2x784xf32>
    %cst_36 = arith.constant 0.000000e+00 : f32
    %89 = vector.broadcast %cst_36 : f32 to vector<2x784xf32>
    %90 = arith.maximumf %88, %89 : vector<2x784xf32>
    %91 = arith.truncf %90 : vector<2x784xf32> to vector<2x784xbf16>
    %cst_37 = arith.constant dense<0.000000e+00> : vector<2x196xf32>
    %92 = tpu.matmul %91, %4, %cst_37 {dimension_numbers = #tpu.dot_dimension_numbers<[1], [0], [0], [1], [0, 0, 1, 1], [], []>} : vector<2x784xbf16>, vector<784x196xbf16>, vector<2x196xf32> -> vector<2x196xf32>
    %c1_38 = arith.constant 1 : index
    %c0_39 = arith.constant 0 : index
    %93 = memref.load %arg1[%c1_38, %c0_39] : memref<3x9xf32, #tpu.memory_space<smem>>
    %94 = vector.broadcast %93 : f32 to vector<2x784xf32>
    %95 = arith.mulf %8, %94 : vector<2x784xf32>
    %c1_40 = arith.constant 1 : index
    %c1_41 = arith.constant 1 : index
    %96 = memref.load %arg1[%c1_40, %c1_41] : memref<3x9xf32, #tpu.memory_space<smem>>
    %97 = vector.broadcast %96 : f32 to vector<2x784xf32>
    %98 = arith.mulf %9, %97 : vector<2x784xf32>
    %99 = arith.addf %95, %98 : vector<2x784xf32>
    %c1_42 = arith.constant 1 : index
    %c2_43 = arith.constant 2 : index
    %100 = memref.load %arg1[%c1_42, %c2_43] : memref<3x9xf32, #tpu.memory_space<smem>>
    %101 = vector.broadcast %100 : f32 to vector<2x784xf32>
    %102 = arith.mulf %12, %101 : vector<2x784xf32>
    %103 = arith.addf %99, %102 : vector<2x784xf32>
    %c1_44 = arith.constant 1 : index
    %c3_45 = arith.constant 3 : index
    %104 = memref.load %arg1[%c1_44, %c3_45] : memref<3x9xf32, #tpu.memory_space<smem>>
    %105 = vector.broadcast %104 : f32 to vector<2x784xf32>
    %106 = arith.mulf %15, %105 : vector<2x784xf32>
    %107 = arith.addf %103, %106 : vector<2x784xf32>
    %c1_46 = arith.constant 1 : index
    %c4_47 = arith.constant 4 : index
    %108 = memref.load %arg1[%c1_46, %c4_47] : memref<3x9xf32, #tpu.memory_space<smem>>
    %109 = vector.broadcast %108 : f32 to vector<2x784xf32>
    %110 = arith.mulf %16, %109 : vector<2x784xf32>
    %111 = arith.addf %107, %110 : vector<2x784xf32>
    %c1_48 = arith.constant 1 : index
    %c5_49 = arith.constant 5 : index
    %112 = memref.load %arg1[%c1_48, %c5_49] : memref<3x9xf32, #tpu.memory_space<smem>>
    %113 = vector.broadcast %112 : f32 to vector<2x784xf32>
    %114 = arith.mulf %19, %113 : vector<2x784xf32>
    %115 = arith.addf %111, %114 : vector<2x784xf32>
    %c1_50 = arith.constant 1 : index
    %c6_51 = arith.constant 6 : index
    %116 = memref.load %arg1[%c1_50, %c6_51] : memref<3x9xf32, #tpu.memory_space<smem>>
    %117 = vector.broadcast %116 : f32 to vector<2x784xf32>
    %118 = arith.mulf %22, %117 : vector<2x784xf32>
    %119 = arith.addf %115, %118 : vector<2x784xf32>
    %c1_52 = arith.constant 1 : index
    %c7_53 = arith.constant 7 : index
    %120 = memref.load %arg1[%c1_52, %c7_53] : memref<3x9xf32, #tpu.memory_space<smem>>
    %121 = vector.broadcast %120 : f32 to vector<2x784xf32>
    %122 = arith.mulf %23, %121 : vector<2x784xf32>
    %123 = arith.addf %119, %122 : vector<2x784xf32>
    %c1_54 = arith.constant 1 : index
    %c8_55 = arith.constant 8 : index
    %124 = memref.load %arg1[%c1_54, %c8_55] : memref<3x9xf32, #tpu.memory_space<smem>>
    %125 = vector.broadcast %124 : f32 to vector<2x784xf32>
    %126 = arith.mulf %26, %125 : vector<2x784xf32>
    %127 = arith.addf %123, %126 : vector<2x784xf32>
    %c1_56 = arith.constant 1 : index
    %128 = memref.load %arg2[%c1_56] : memref<3xf32, #tpu.memory_space<smem>>
    %c1_57 = arith.constant 1 : index
    %129 = memref.load %arg3[%c1_57] : memref<3xf32, #tpu.memory_space<smem>>
    %130 = vector.shape_cast %127 : vector<2x784xf32> to vector<1x2x784xf32>
    %cst_58 = arith.constant dense<0.000000e+00> : vector<1xf32>
    %131 = vector.multi_reduction <add>, %130, %cst_58 [1, 2] : vector<1x2x784xf32> to vector<1xf32>
    %132 = vector.shape_cast %131 : vector<1xf32> to vector<1x1x1xf32>
    %133 = vector.extract %132[0, 0, 0] : f32 from vector<1x1x1xf32>
    %cst_59 = arith.constant 1.568000e+03 : f32
    %134 = arith.divf %133, %cst_59 : f32
    %135 = vector.broadcast %134 : f32 to vector<2x784xf32>
    %136 = arith.subf %127, %135 : vector<2x784xf32>
    %137 = vector.broadcast %134 : f32 to vector<2x784xf32>
    %138 = arith.subf %127, %137 : vector<2x784xf32>
    %139 = arith.mulf %136, %138 : vector<2x784xf32>
    %140 = vector.shape_cast %139 : vector<2x784xf32> to vector<1x2x784xf32>
    %cst_60 = arith.constant dense<0.000000e+00> : vector<1xf32>
    %141 = vector.multi_reduction <add>, %140, %cst_60 [1, 2] : vector<1x2x784xf32> to vector<1xf32>
    %142 = vector.shape_cast %141 : vector<1xf32> to vector<1x1x1xf32>
    %143 = vector.extract %142[0, 0, 0] : f32 from vector<1x1x1xf32>
    %cst_61 = arith.constant 1.568000e+03 : f32
    %144 = arith.divf %143, %cst_61 : f32
    %145 = vector.broadcast %134 : f32 to vector<2x784xf32>
    %146 = arith.subf %127, %145 : vector<2x784xf32>
    %cst_62 = arith.constant 9.99999974E-6 : f32
    %147 = arith.addf %144, %cst_62 : f32
    %148 = math.rsqrt %147 : f32
    %149 = vector.broadcast %148 : f32 to vector<2x784xf32>
    %150 = arith.mulf %146, %149 : vector<2x784xf32>
    %151 = vector.broadcast %128 : f32 to vector<2x784xf32>
    %152 = arith.mulf %150, %151 : vector<2x784xf32>
    %153 = vector.broadcast %129 : f32 to vector<2x784xf32>
    %154 = arith.addf %152, %153 : vector<2x784xf32>
    %cst_63 = arith.constant 0.000000e+00 : f32
    %155 = vector.broadcast %cst_63 : f32 to vector<2x784xf32>
    %156 = arith.maximumf %154, %155 : vector<2x784xf32>
    %157 = arith.truncf %156 : vector<2x784xf32> to vector<2x784xbf16>
    %cst_64 = arith.constant dense<0.000000e+00> : vector<2x196xf32>
    %158 = tpu.matmul %157, %4, %cst_64 {dimension_numbers = #tpu.dot_dimension_numbers<[1], [0], [0], [1], [0, 0, 1, 1], [], []>} : vector<2x784xbf16>, vector<784x196xbf16>, vector<2x196xf32> -> vector<2x196xf32>
    %c2_65 = arith.constant 2 : index
    %c0_66 = arith.constant 0 : index
    %159 = memref.load %arg1[%c2_65, %c0_66] : memref<3x9xf32, #tpu.memory_space<smem>>
    %160 = vector.broadcast %159 : f32 to vector<2x784xf32>
    %161 = arith.mulf %8, %160 : vector<2x784xf32>
    %c2_67 = arith.constant 2 : index
    %c1_68 = arith.constant 1 : index
    %162 = memref.load %arg1[%c2_67, %c1_68] : memref<3x9xf32, #tpu.memory_space<smem>>
    %163 = vector.broadcast %162 : f32 to vector<2x784xf32>
    %164 = arith.mulf %9, %163 : vector<2x784xf32>
    %165 = arith.addf %161, %164 : vector<2x784xf32>
    %c2_69 = arith.constant 2 : index
    %c2_70 = arith.constant 2 : index
    %166 = memref.load %arg1[%c2_69, %c2_70] : memref<3x9xf32, #tpu.memory_space<smem>>
    %167 = vector.broadcast %166 : f32 to vector<2x784xf32>
    %168 = arith.mulf %12, %167 : vector<2x784xf32>
    %169 = arith.addf %165, %168 : vector<2x784xf32>
    %c2_71 = arith.constant 2 : index
    %c3_72 = arith.constant 3 : index
    %170 = memref.load %arg1[%c2_71, %c3_72] : memref<3x9xf32, #tpu.memory_space<smem>>
    %171 = vector.broadcast %170 : f32 to vector<2x784xf32>
    %172 = arith.mulf %15, %171 : vector<2x784xf32>
    %173 = arith.addf %169, %172 : vector<2x784xf32>
    %c2_73 = arith.constant 2 : index
    %c4_74 = arith.constant 4 : index
    %174 = memref.load %arg1[%c2_73, %c4_74] : memref<3x9xf32, #tpu.memory_space<smem>>
    %175 = vector.broadcast %174 : f32 to vector<2x784xf32>
    %176 = arith.mulf %16, %175 : vector<2x784xf32>
    %177 = arith.addf %173, %176 : vector<2x784xf32>
    %c2_75 = arith.constant 2 : index
    %c5_76 = arith.constant 5 : index
    %178 = memref.load %arg1[%c2_75, %c5_76] : memref<3x9xf32, #tpu.memory_space<smem>>
    %179 = vector.broadcast %178 : f32 to vector<2x784xf32>
    %180 = arith.mulf %19, %179 : vector<2x784xf32>
    %181 = arith.addf %177, %180 : vector<2x784xf32>
    %c2_77 = arith.constant 2 : index
    %c6_78 = arith.constant 6 : index
    %182 = memref.load %arg1[%c2_77, %c6_78] : memref<3x9xf32, #tpu.memory_space<smem>>
    %183 = vector.broadcast %182 : f32 to vector<2x784xf32>
    %184 = arith.mulf %22, %183 : vector<2x784xf32>
    %185 = arith.addf %181, %184 : vector<2x784xf32>
    %c2_79 = arith.constant 2 : index
    %c7_80 = arith.constant 7 : index
    %186 = memref.load %arg1[%c2_79, %c7_80] : memref<3x9xf32, #tpu.memory_space<smem>>
    %187 = vector.broadcast %186 : f32 to vector<2x784xf32>
    %188 = arith.mulf %23, %187 : vector<2x784xf32>
    %189 = arith.addf %185, %188 : vector<2x784xf32>
    %c2_81 = arith.constant 2 : index
    %c8_82 = arith.constant 8 : index
    %190 = memref.load %arg1[%c2_81, %c8_82] : memref<3x9xf32, #tpu.memory_space<smem>>
    %191 = vector.broadcast %190 : f32 to vector<2x784xf32>
    %192 = arith.mulf %26, %191 : vector<2x784xf32>
    %193 = arith.addf %189, %192 : vector<2x784xf32>
    %c2_83 = arith.constant 2 : index
    %194 = memref.load %arg2[%c2_83] : memref<3xf32, #tpu.memory_space<smem>>
    %c2_84 = arith.constant 2 : index
    %195 = memref.load %arg3[%c2_84] : memref<3xf32, #tpu.memory_space<smem>>
    %196 = vector.shape_cast %193 : vector<2x784xf32> to vector<1x2x784xf32>
    %cst_85 = arith.constant dense<0.000000e+00> : vector<1xf32>
    %197 = vector.multi_reduction <add>, %196, %cst_85 [1, 2] : vector<1x2x784xf32> to vector<1xf32>
    %198 = vector.shape_cast %197 : vector<1xf32> to vector<1x1x1xf32>
    %199 = vector.extract %198[0, 0, 0] : f32 from vector<1x1x1xf32>
    %cst_86 = arith.constant 1.568000e+03 : f32
    %200 = arith.divf %199, %cst_86 : f32
    %201 = vector.broadcast %200 : f32 to vector<2x784xf32>
    %202 = arith.subf %193, %201 : vector<2x784xf32>
    %203 = vector.broadcast %200 : f32 to vector<2x784xf32>
    %204 = arith.subf %193, %203 : vector<2x784xf32>
    %205 = arith.mulf %202, %204 : vector<2x784xf32>
    %206 = vector.shape_cast %205 : vector<2x784xf32> to vector<1x2x784xf32>
    %cst_87 = arith.constant dense<0.000000e+00> : vector<1xf32>
    %207 = vector.multi_reduction <add>, %206, %cst_87 [1, 2] : vector<1x2x784xf32> to vector<1xf32>
    %208 = vector.shape_cast %207 : vector<1xf32> to vector<1x1x1xf32>
    %209 = vector.extract %208[0, 0, 0] : f32 from vector<1x1x1xf32>
    %cst_88 = arith.constant 1.568000e+03 : f32
    %210 = arith.divf %209, %cst_88 : f32
    %211 = vector.broadcast %200 : f32 to vector<2x784xf32>
    %212 = arith.subf %193, %211 : vector<2x784xf32>
    %cst_89 = arith.constant 9.99999974E-6 : f32
    %213 = arith.addf %210, %cst_89 : f32
    %214 = math.rsqrt %213 : f32
    %215 = vector.broadcast %214 : f32 to vector<2x784xf32>
    %216 = arith.mulf %212, %215 : vector<2x784xf32>
    %217 = vector.broadcast %194 : f32 to vector<2x784xf32>
    %218 = arith.mulf %216, %217 : vector<2x784xf32>
    %219 = vector.broadcast %195 : f32 to vector<2x784xf32>
    %220 = arith.addf %218, %219 : vector<2x784xf32>
    %cst_90 = arith.constant 0.000000e+00 : f32
    %221 = vector.broadcast %cst_90 : f32 to vector<2x784xf32>
    %222 = arith.maximumf %220, %221 : vector<2x784xf32>
    %223 = arith.truncf %222 : vector<2x784xf32> to vector<2x784xbf16>
    %cst_91 = arith.constant dense<0.000000e+00> : vector<2x196xf32>
    %224 = tpu.matmul %223, %4, %cst_91 {dimension_numbers = #tpu.dot_dimension_numbers<[1], [0], [0], [1], [0, 0, 1, 1], [], []>} : vector<2x784xbf16>, vector<784x196xbf16>, vector<2x196xf32> -> vector<2x196xf32>
    %cst_92 = arith.constant 0.000000e+00 : f32
    %225 = vector.broadcast %cst_92 : f32 to vector<3x2x384xf32>
    %c0_93 = arith.constant 0 : index
    %c0_94 = arith.constant 0 : index
    %c0_95 = arith.constant 0 : index
    %226 = vector.load %arg16[%c0_93, %c0_94, %c0_95] : memref<3x2x384xf32, #tpu.memory_space<vmem>>, vector<3x2x384xf32>
    tpu.vector_store %arg16[%c0_93, %c0_94, %c0_95], %225 {strides = array<i32>} : memref<3x2x384xf32, #tpu.memory_space<vmem>>, vector<3x2x384xf32>,
    %c0_96 = arith.constant 0 : index
    %c0_97 = arith.constant 0 : index
    %c128_98 = arith.constant 128 : index
    %227 = vector.load %arg16[%c0_96, %c0_97, %c128_98] : memref<3x2x384xf32, #tpu.memory_space<vmem>>, vector<1x2x196xf32>
    %228 = vector.shape_cast %227 : vector<1x2x196xf32> to vector<2x196xf32>
    %229 = vector.shape_cast %92 : vector<2x196xf32> to vector<1x2x196xf32>
    tpu.vector_store %arg16[%c0_96, %c0_97, %c128_98], %229 {strides = array<i32>} : memref<3x2x384xf32, #tpu.memory_space<vmem>>, vector<1x2x196xf32>,
    %c1_99 = arith.constant 1 : index
    %c0_100 = arith.constant 0 : index
    %c128_101 = arith.constant 128 : index
    %230 = vector.load %arg16[%c1_99, %c0_100, %c128_101] : memref<3x2x384xf32, #tpu.memory_space<vmem>>, vector<1x2x196xf32>
    %231 = vector.shape_cast %230 : vector<1x2x196xf32> to vector<2x196xf32>
    %232 = vector.shape_cast %158 : vector<2x196xf32> to vector<1x2x196xf32>
    tpu.vector_store %arg16[%c1_99, %c0_100, %c128_101], %232 {strides = array<i32>} : memref<3x2x384xf32, #tpu.memory_space<vmem>>, vector<1x2x196xf32>,
    %c2_102 = arith.constant 2 : index
    %c0_103 = arith.constant 0 : index
    %c128_104 = arith.constant 128 : index
    %233 = vector.load %arg16[%c2_102, %c0_103, %c128_104] : memref<3x2x384xf32, #tpu.memory_space<vmem>>, vector<1x2x196xf32>
    %234 = vector.shape_cast %233 : vector<1x2x196xf32> to vector<2x196xf32>
    %235 = vector.shape_cast %224 : vector<2x196xf32> to vector<1x2x196xf32>
    tpu.vector_store %arg16[%c2_102, %c0_103, %c128_104], %235 {strides = array<i32>} : memref<3x2x384xf32, #tpu.memory_space<vmem>>, vector<1x2x196xf32>,
    %c0_105 = arith.constant 0 : index
    %c0_106 = arith.constant 0 : index
    %c113 = arith.constant 113 : index
    %236 = vector.load %arg16[%c0_105, %c0_106, %c113] : memref<3x2x384xf32, #tpu.memory_space<vmem>>, vector<1x2x196xf32>
    %237 = vector.shape_cast %236 : vector<1x2x196xf32> to vector<2x196xf32>
    %238 = vector.broadcast %2 : vector<1x196xf32> to vector<2x196xf32>
    %239 = arith.mulf %237, %238 : vector<2x196xf32>
    %c0_107 = arith.constant 0 : index
    %c0_108 = arith.constant 0 : index
    %c114 = arith.constant 114 : index
    %240 = vector.load %arg16[%c0_107, %c0_108, %c114] : memref<3x2x384xf32, #tpu.memory_space<vmem>>, vector<1x2x196xf32>
    %241 = vector.shape_cast %240 : vector<1x2x196xf32> to vector<2x196xf32>
    %c0_109 = arith.constant 0 : index
    %c0_110 = arith.constant 0 : index
    %c115 = arith.constant 115 : index
    %242 = vector.load %arg16[%c0_109, %c0_110, %c115] : memref<3x2x384xf32, #tpu.memory_space<vmem>>, vector<1x2x196xf32>
    %243 = vector.shape_cast %242 : vector<1x2x196xf32> to vector<2x196xf32>
    %244 = vector.broadcast %3 : vector<1x196xf32> to vector<2x196xf32>
    %245 = arith.mulf %243, %244 : vector<2x196xf32>
    %c0_111 = arith.constant 0 : index
    %c0_112 = arith.constant 0 : index
    %c127_113 = arith.constant 127 : index
    %246 = vector.load %arg16[%c0_111, %c0_112, %c127_113] : memref<3x2x384xf32, #tpu.memory_space<vmem>>, vector<1x2x196xf32>
    %247 = vector.shape_cast %246 : vector<1x2x196xf32> to vector<2x196xf32>
    %248 = vector.broadcast %2 : vector<1x196xf32> to vector<2x196xf32>
    %249 = arith.mulf %247, %248 : vector<2x196xf32>
    %c0_114 = arith.constant 0 : index
    %c0_115 = arith.constant 0 : index
    %c128_116 = arith.constant 128 : index
    %250 = vector.load %arg16[%c0_114, %c0_115, %c128_116] : memref<3x2x384xf32, #tpu.memory_space<vmem>>, vector<1x2x196xf32>
    %251 = vector.shape_cast %250 : vector<1x2x196xf32> to vector<2x196xf32>
    %c0_117 = arith.constant 0 : index
    %c0_118 = arith.constant 0 : index
    %c129_119 = arith.constant 129 : index
    %252 = vector.load %arg16[%c0_117, %c0_118, %c129_119] : memref<3x2x384xf32, #tpu.memory_space<vmem>>, vector<1x2x196xf32>
    %253 = vector.shape_cast %252 : vector<1x2x196xf32> to vector<2x196xf32>
    %254 = vector.broadcast %3 : vector<1x196xf32> to vector<2x196xf32>
    %255 = arith.mulf %253, %254 : vector<2x196xf32>
    %c0_120 = arith.constant 0 : index
    %c0_121 = arith.constant 0 : index
    %c141 = arith.constant 141 : index
    %256 = vector.load %arg16[%c0_120, %c0_121, %c141] : memref<3x2x384xf32, #tpu.memory_space<vmem>>, vector<1x2x196xf32>
    %257 = vector.shape_cast %256 : vector<1x2x196xf32> to vector<2x196xf32>
    %258 = vector.broadcast %2 : vector<1x196xf32> to vector<2x196xf32>
    %259 = arith.mulf %257, %258 : vector<2x196xf32>
    %c0_122 = arith.constant 0 : index
    %c0_123 = arith.constant 0 : index
    %c142 = arith.constant 142 : index
    %260 = vector.load %arg16[%c0_122, %c0_123, %c142] : memref<3x2x384xf32, #tpu.memory_space<vmem>>, vector<1x2x196xf32>
    %261 = vector.shape_cast %260 : vector<1x2x196xf32> to vector<2x196xf32>
    %c0_124 = arith.constant 0 : index
    %c0_125 = arith.constant 0 : index
    %c143 = arith.constant 143 : index
    %262 = vector.load %arg16[%c0_124, %c0_125, %c143] : memref<3x2x384xf32, #tpu.memory_space<vmem>>, vector<1x2x196xf32>
    %263 = vector.shape_cast %262 : vector<1x2x196xf32> to vector<2x196xf32>
    %264 = vector.broadcast %3 : vector<1x196xf32> to vector<2x196xf32>
    %265 = arith.mulf %263, %264 : vector<2x196xf32>
    %c1_126 = arith.constant 1 : index
    %c0_127 = arith.constant 0 : index
    %c113_128 = arith.constant 113 : index
    %266 = vector.load %arg16[%c1_126, %c0_127, %c113_128] : memref<3x2x384xf32, #tpu.memory_space<vmem>>, vector<1x2x196xf32>
    %267 = vector.shape_cast %266 : vector<1x2x196xf32> to vector<2x196xf32>
    %268 = vector.broadcast %2 : vector<1x196xf32> to vector<2x196xf32>
    %269 = arith.mulf %267, %268 : vector<2x196xf32>
    %c1_129 = arith.constant 1 : index
    %c0_130 = arith.constant 0 : index
    %c114_131 = arith.constant 114 : index
    %270 = vector.load %arg16[%c1_129, %c0_130, %c114_131] : memref<3x2x384xf32, #tpu.memory_space<vmem>>, vector<1x2x196xf32>
    %271 = vector.shape_cast %270 : vector<1x2x196xf32> to vector<2x196xf32>
    %c1_132 = arith.constant 1 : index
    %c0_133 = arith.constant 0 : index
    %c115_134 = arith.constant 115 : index
    %272 = vector.load %arg16[%c1_132, %c0_133, %c115_134] : memref<3x2x384xf32, #tpu.memory_space<vmem>>, vector<1x2x196xf32>
    %273 = vector.shape_cast %272 : vector<1x2x196xf32> to vector<2x196xf32>
    %274 = vector.broadcast %3 : vector<1x196xf32> to vector<2x196xf32>
    %275 = arith.mulf %273, %274 : vector<2x196xf32>
    %c1_135 = arith.constant 1 : index
    %c0_136 = arith.constant 0 : index
    %c127_137 = arith.constant 127 : index
    %276 = vector.load %arg16[%c1_135, %c0_136, %c127_137] : memref<3x2x384xf32, #tpu.memory_space<vmem>>, vector<1x2x196xf32>
    %277 = vector.shape_cast %276 : vector<1x2x196xf32> to vector<2x196xf32>
    %278 = vector.broadcast %2 : vector<1x196xf32> to vector<2x196xf32>
    %279 = arith.mulf %277, %278 : vector<2x196xf32>
    %c1_138 = arith.constant 1 : index
    %c0_139 = arith.constant 0 : index
    %c128_140 = arith.constant 128 : index
    %280 = vector.load %arg16[%c1_138, %c0_139, %c128_140] : memref<3x2x384xf32, #tpu.memory_space<vmem>>, vector<1x2x196xf32>
    %281 = vector.shape_cast %280 : vector<1x2x196xf32> to vector<2x196xf32>
    %c1_141 = arith.constant 1 : index
    %c0_142 = arith.constant 0 : index
    %c129_143 = arith.constant 129 : index
    %282 = vector.load %arg16[%c1_141, %c0_142, %c129_143] : memref<3x2x384xf32, #tpu.memory_space<vmem>>, vector<1x2x196xf32>
    %283 = vector.shape_cast %282 : vector<1x2x196xf32> to vector<2x196xf32>
    %284 = vector.broadcast %3 : vector<1x196xf32> to vector<2x196xf32>
    %285 = arith.mulf %283, %284 : vector<2x196xf32>
    %c1_144 = arith.constant 1 : index
    %c0_145 = arith.constant 0 : index
    %c141_146 = arith.constant 141 : index
    %286 = vector.load %arg16[%c1_144, %c0_145, %c141_146] : memref<3x2x384xf32, #tpu.memory_space<vmem>>, vector<1x2x196xf32>
    %287 = vector.shape_cast %286 : vector<1x2x196xf32> to vector<2x196xf32>
    %288 = vector.broadcast %2 : vector<1x196xf32> to vector<2x196xf32>
    %289 = arith.mulf %287, %288 : vector<2x196xf32>
    %c1_147 = arith.constant 1 : index
    %c0_148 = arith.constant 0 : index
    %c142_149 = arith.constant 142 : index
    %290 = vector.load %arg16[%c1_147, %c0_148, %c142_149] : memref<3x2x384xf32, #tpu.memory_space<vmem>>, vector<1x2x196xf32>
    %291 = vector.shape_cast %290 : vector<1x2x196xf32> to vector<2x196xf32>
    %c1_150 = arith.constant 1 : index
    %c0_151 = arith.constant 0 : index
    %c143_152 = arith.constant 143 : index
    %292 = vector.load %arg16[%c1_150, %c0_151, %c143_152] : memref<3x2x384xf32, #tpu.memory_space<vmem>>, vector<1x2x196xf32>
    %293 = vector.shape_cast %292 : vector<1x2x196xf32> to vector<2x196xf32>
    %294 = vector.broadcast %3 : vector<1x196xf32> to vector<2x196xf32>
    %295 = arith.mulf %293, %294 : vector<2x196xf32>
    %c2_153 = arith.constant 2 : index
    %c0_154 = arith.constant 0 : index
    %c113_155 = arith.constant 113 : index
    %296 = vector.load %arg16[%c2_153, %c0_154, %c113_155] : memref<3x2x384xf32, #tpu.memory_space<vmem>>, vector<1x2x196xf32>
    %297 = vector.shape_cast %296 : vector<1x2x196xf32> to vector<2x196xf32>
    %298 = vector.broadcast %2 : vector<1x196xf32> to vector<2x196xf32>
    %299 = arith.mulf %297, %298 : vector<2x196xf32>
    %c2_156 = arith.constant 2 : index
    %c0_157 = arith.constant 0 : index
    %c114_158 = arith.constant 114 : index
    %300 = vector.load %arg16[%c2_156, %c0_157, %c114_158] : memref<3x2x384xf32, #tpu.memory_space<vmem>>, vector<1x2x196xf32>
    %301 = vector.shape_cast %300 : vector<1x2x196xf32> to vector<2x196xf32>
    %c2_159 = arith.constant 2 : index
    %c0_160 = arith.constant 0 : index
    %c115_161 = arith.constant 115 : index
    %302 = vector.load %arg16[%c2_159, %c0_160, %c115_161] : memref<3x2x384xf32, #tpu.memory_space<vmem>>, vector<1x2x196xf32>
    %303 = vector.shape_cast %302 : vector<1x2x196xf32> to vector<2x196xf32>
    %304 = vector.broadcast %3 : vector<1x196xf32> to vector<2x196xf32>
    %305 = arith.mulf %303, %304 : vector<2x196xf32>
    %c2_162 = arith.constant 2 : index
    %c0_163 = arith.constant 0 : index
    %c127_164 = arith.constant 127 : index
    %306 = vector.load %arg16[%c2_162, %c0_163, %c127_164] : memref<3x2x384xf32, #tpu.memory_space<vmem>>, vector<1x2x196xf32>
    %307 = vector.shape_cast %306 : vector<1x2x196xf32> to vector<2x196xf32>
    %308 = vector.broadcast %2 : vector<1x196xf32> to vector<2x196xf32>
    %309 = arith.mulf %307, %308 : vector<2x196xf32>
    %c2_165 = arith.constant 2 : index
    %c0_166 = arith.constant 0 : index
    %c128_167 = arith.constant 128 : index
    %310 = vector.load %arg16[%c2_165, %c0_166, %c128_167] : memref<3x2x384xf32, #tpu.memory_space<vmem>>, vector<1x2x196xf32>
    %311 = vector.shape_cast %310 : vector<1x2x196xf32> to vector<2x196xf32>
    %c2_168 = arith.constant 2 : index
    %c0_169 = arith.constant 0 : index
    %c129_170 = arith.constant 129 : index
    %312 = vector.load %arg16[%c2_168, %c0_169, %c129_170] : memref<3x2x384xf32, #tpu.memory_space<vmem>>, vector<1x2x196xf32>
    %313 = vector.shape_cast %312 : vector<1x2x196xf32> to vector<2x196xf32>
    %314 = vector.broadcast %3 : vector<1x196xf32> to vector<2x196xf32>
    %315 = arith.mulf %313, %314 : vector<2x196xf32>
    %c2_171 = arith.constant 2 : index
    %c0_172 = arith.constant 0 : index
    %c141_173 = arith.constant 141 : index
    %316 = vector.load %arg16[%c2_171, %c0_172, %c141_173] : memref<3x2x384xf32, #tpu.memory_space<vmem>>, vector<1x2x196xf32>
    %317 = vector.shape_cast %316 : vector<1x2x196xf32> to vector<2x196xf32>
    %318 = vector.broadcast %2 : vector<1x196xf32> to vector<2x196xf32>
    %319 = arith.mulf %317, %318 : vector<2x196xf32>
    %c2_174 = arith.constant 2 : index
    %c0_175 = arith.constant 0 : index
    %c142_176 = arith.constant 142 : index
    %320 = vector.load %arg16[%c2_174, %c0_175, %c142_176] : memref<3x2x384xf32, #tpu.memory_space<vmem>>, vector<1x2x196xf32>
    %321 = vector.shape_cast %320 : vector<1x2x196xf32> to vector<2x196xf32>
    %c2_177 = arith.constant 2 : index
    %c0_178 = arith.constant 0 : index
    %c143_179 = arith.constant 143 : index
    %322 = vector.load %arg16[%c2_177, %c0_178, %c143_179] : memref<3x2x384xf32, #tpu.memory_space<vmem>>, vector<1x2x196xf32>
    %323 = vector.shape_cast %322 : vector<1x2x196xf32> to vector<2x196xf32>
    %324 = vector.broadcast %3 : vector<1x196xf32> to vector<2x196xf32>
    %325 = arith.mulf %323, %324 : vector<2x196xf32>
    %c0_180 = arith.constant 0 : index
    %c0_181 = arith.constant 0 : index
    %326 = memref.load %arg4[%c0_180, %c0_181] : memref<6x27xf32, #tpu.memory_space<smem>>
    %327 = vector.broadcast %326 : f32 to vector<2x196xf32>
    %328 = arith.mulf %239, %327 : vector<2x196xf32>
    %c0_182 = arith.constant 0 : index
    %c1_183 = arith.constant 1 : index
    %329 = memref.load %arg4[%c0_182, %c1_183] : memref<6x27xf32, #tpu.memory_space<smem>>
    %330 = vector.broadcast %329 : f32 to vector<2x196xf32>
    %331 = arith.mulf %241, %330 : vector<2x196xf32>
    %332 = arith.addf %328, %331 : vector<2x196xf32>
    %c0_184 = arith.constant 0 : index
    %c2_185 = arith.constant 2 : index
    %333 = memref.load %arg4[%c0_184, %c2_185] : memref<6x27xf32, #tpu.memory_space<smem>>
    %334 = vector.broadcast %333 : f32 to vector<2x196xf32>
    %335 = arith.mulf %245, %334 : vector<2x196xf32>
    %336 = arith.addf %332, %335 : vector<2x196xf32>
    %c0_186 = arith.constant 0 : index
    %c3_187 = arith.constant 3 : index
    %337 = memref.load %arg4[%c0_186, %c3_187] : memref<6x27xf32, #tpu.memory_space<smem>>
    %338 = vector.broadcast %337 : f32 to vector<2x196xf32>
    %339 = arith.mulf %249, %338 : vector<2x196xf32>
    %340 = arith.addf %336, %339 : vector<2x196xf32>
    %c0_188 = arith.constant 0 : index
    %c4_189 = arith.constant 4 : index
    %341 = memref.load %arg4[%c0_188, %c4_189] : memref<6x27xf32, #tpu.memory_space<smem>>
    %342 = vector.broadcast %341 : f32 to vector<2x196xf32>
    %343 = arith.mulf %251, %342 : vector<2x196xf32>
    %344 = arith.addf %340, %343 : vector<2x196xf32>
    %c0_190 = arith.constant 0 : index
    %c5_191 = arith.constant 5 : index
    %345 = memref.load %arg4[%c0_190, %c5_191] : memref<6x27xf32, #tpu.memory_space<smem>>
    %346 = vector.broadcast %345 : f32 to vector<2x196xf32>
    %347 = arith.mulf %255, %346 : vector<2x196xf32>
    %348 = arith.addf %344, %347 : vector<2x196xf32>
    %c0_192 = arith.constant 0 : index
    %c6_193 = arith.constant 6 : index
    %349 = memref.load %arg4[%c0_192, %c6_193] : memref<6x27xf32, #tpu.memory_space<smem>>
    %350 = vector.broadcast %349 : f32 to vector<2x196xf32>
    %351 = arith.mulf %259, %350 : vector<2x196xf32>
    %352 = arith.addf %348, %351 : vector<2x196xf32>
    %c0_194 = arith.constant 0 : index
    %c7_195 = arith.constant 7 : index
    %353 = memref.load %arg4[%c0_194, %c7_195] : memref<6x27xf32, #tpu.memory_space<smem>>
    %354 = vector.broadcast %353 : f32 to vector<2x196xf32>
    %355 = arith.mulf %261, %354 : vector<2x196xf32>
    %356 = arith.addf %352, %355 : vector<2x196xf32>
    %c0_196 = arith.constant 0 : index
    %c8_197 = arith.constant 8 : index
    %357 = memref.load %arg4[%c0_196, %c8_197] : memref<6x27xf32, #tpu.memory_space<smem>>
    %358 = vector.broadcast %357 : f32 to vector<2x196xf32>
    %359 = arith.mulf %265, %358 : vector<2x196xf32>
    %360 = arith.addf %356, %359 : vector<2x196xf32>
    %c0_198 = arith.constant 0 : index
    %c9 = arith.constant 9 : index
    %361 = memref.load %arg4[%c0_198, %c9] : memref<6x27xf32, #tpu.memory_space<smem>>
    %362 = vector.broadcast %361 : f32 to vector<2x196xf32>
    %363 = arith.mulf %269, %362 : vector<2x196xf32>
    %364 = arith.addf %360, %363 : vector<2x196xf32>
    %c0_199 = arith.constant 0 : index
    %c10 = arith.constant 10 : index
    %365 = memref.load %arg4[%c0_199, %c10] : memref<6x27xf32, #tpu.memory_space<smem>>
    %366 = vector.broadcast %365 : f32 to vector<2x196xf32>
    %367 = arith.mulf %271, %366 : vector<2x196xf32>
    %368 = arith.addf %364, %367 : vector<2x196xf32>
    %c0_200 = arith.constant 0 : index
    %c11 = arith.constant 11 : index
    %369 = memref.load %arg4[%c0_200, %c11] : memref<6x27xf32, #tpu.memory_space<smem>>
    %370 = vector.broadcast %369 : f32 to vector<2x196xf32>
    %371 = arith.mulf %275, %370 : vector<2x196xf32>
    %372 = arith.addf %368, %371 : vector<2x196xf32>
    %c0_201 = arith.constant 0 : index
    %c12 = arith.constant 12 : index
    %373 = memref.load %arg4[%c0_201, %c12] : memref<6x27xf32, #tpu.memory_space<smem>>
    %374 = vector.broadcast %373 : f32 to vector<2x196xf32>
    %375 = arith.mulf %279, %374 : vector<2x196xf32>
    %376 = arith.addf %372, %375 : vector<2x196xf32>
    %c0_202 = arith.constant 0 : index
    %c13 = arith.constant 13 : index
    %377 = memref.load %arg4[%c0_202, %c13] : memref<6x27xf32, #tpu.memory_space<smem>>
    %378 = vector.broadcast %377 : f32 to vector<2x196xf32>
    %379 = arith.mulf %281, %378 : vector<2x196xf32>
    %380 = arith.addf %376, %379 : vector<2x196xf32>
    %c0_203 = arith.constant 0 : index
    %c14 = arith.constant 14 : index
    %381 = memref.load %arg4[%c0_203, %c14] : memref<6x27xf32, #tpu.memory_space<smem>>
    %382 = vector.broadcast %381 : f32 to vector<2x196xf32>
    %383 = arith.mulf %285, %382 : vector<2x196xf32>
    %384 = arith.addf %380, %383 : vector<2x196xf32>
    %c0_204 = arith.constant 0 : index
    %c15 = arith.constant 15 : index
    %385 = memref.load %arg4[%c0_204, %c15] : memref<6x27xf32, #tpu.memory_space<smem>>
    %386 = vector.broadcast %385 : f32 to vector<2x196xf32>
    %387 = arith.mulf %289, %386 : vector<2x196xf32>
    %388 = arith.addf %384, %387 : vector<2x196xf32>
    %c0_205 = arith.constant 0 : index
    %c16 = arith.constant 16 : index
    %389 = memref.load %arg4[%c0_205, %c16] : memref<6x27xf32, #tpu.memory_space<smem>>
    %390 = vector.broadcast %389 : f32 to vector<2x196xf32>
    %391 = arith.mulf %291, %390 : vector<2x196xf32>
    %392 = arith.addf %388, %391 : vector<2x196xf32>
    %c0_206 = arith.constant 0 : index
    %c17 = arith.constant 17 : index
    %393 = memref.load %arg4[%c0_206, %c17] : memref<6x27xf32, #tpu.memory_space<smem>>
    %394 = vector.broadcast %393 : f32 to vector<2x196xf32>
    %395 = arith.mulf %295, %394 : vector<2x196xf32>
    %396 = arith.addf %392, %395 : vector<2x196xf32>
    %c0_207 = arith.constant 0 : index
    %c18 = arith.constant 18 : index
    %397 = memref.load %arg4[%c0_207, %c18] : memref<6x27xf32, #tpu.memory_space<smem>>
    %398 = vector.broadcast %397 : f32 to vector<2x196xf32>
    %399 = arith.mulf %299, %398 : vector<2x196xf32>
    %400 = arith.addf %396, %399 : vector<2x196xf32>
    %c0_208 = arith.constant 0 : index
    %c19 = arith.constant 19 : index
    %401 = memref.load %arg4[%c0_208, %c19] : memref<6x27xf32, #tpu.memory_space<smem>>
    %402 = vector.broadcast %401 : f32 to vector<2x196xf32>
    %403 = arith.mulf %301, %402 : vector<2x196xf32>
    %404 = arith.addf %400, %403 : vector<2x196xf32>
    %c0_209 = arith.constant 0 : index
    %c20 = arith.constant 20 : index
    %405 = memref.load %arg4[%c0_209, %c20] : memref<6x27xf32, #tpu.memory_space<smem>>
    %406 = vector.broadcast %405 : f32 to vector<2x196xf32>
    %407 = arith.mulf %305, %406 : vector<2x196xf32>
    %408 = arith.addf %404, %407 : vector<2x196xf32>
    %c0_210 = arith.constant 0 : index
    %c21 = arith.constant 21 : index
    %409 = memref.load %arg4[%c0_210, %c21] : memref<6x27xf32, #tpu.memory_space<smem>>
    %410 = vector.broadcast %409 : f32 to vector<2x196xf32>
    %411 = arith.mulf %309, %410 : vector<2x196xf32>
    %412 = arith.addf %408, %411 : vector<2x196xf32>
    %c0_211 = arith.constant 0 : index
    %c22 = arith.constant 22 : index
    %413 = memref.load %arg4[%c0_211, %c22] : memref<6x27xf32, #tpu.memory_space<smem>>
    %414 = vector.broadcast %413 : f32 to vector<2x196xf32>
    %415 = arith.mulf %311, %414 : vector<2x196xf32>
    %416 = arith.addf %412, %415 : vector<2x196xf32>
    %c0_212 = arith.constant 0 : index
    %c23 = arith.constant 23 : index
    %417 = memref.load %arg4[%c0_212, %c23] : memref<6x27xf32, #tpu.memory_space<smem>>
    %418 = vector.broadcast %417 : f32 to vector<2x196xf32>
    %419 = arith.mulf %315, %418 : vector<2x196xf32>
    %420 = arith.addf %416, %419 : vector<2x196xf32>
    %c0_213 = arith.constant 0 : index
    %c24 = arith.constant 24 : index
    %421 = memref.load %arg4[%c0_213, %c24] : memref<6x27xf32, #tpu.memory_space<smem>>
    %422 = vector.broadcast %421 : f32 to vector<2x196xf32>
    %423 = arith.mulf %319, %422 : vector<2x196xf32>
    %424 = arith.addf %420, %423 : vector<2x196xf32>
    %c0_214 = arith.constant 0 : index
    %c25 = arith.constant 25 : index
    %425 = memref.load %arg4[%c0_214, %c25] : memref<6x27xf32, #tpu.memory_space<smem>>
    %426 = vector.broadcast %425 : f32 to vector<2x196xf32>
    %427 = arith.mulf %321, %426 : vector<2x196xf32>
    %428 = arith.addf %424, %427 : vector<2x196xf32>
    %c0_215 = arith.constant 0 : index
    %c26 = arith.constant 26 : index
    %429 = memref.load %arg4[%c0_215, %c26] : memref<6x27xf32, #tpu.memory_space<smem>>
    %430 = vector.broadcast %429 : f32 to vector<2x196xf32>
    %431 = arith.mulf %325, %430 : vector<2x196xf32>
    %432 = arith.addf %428, %431 : vector<2x196xf32>
    %c0_216 = arith.constant 0 : index
    %433 = memref.load %arg5[%c0_216] : memref<6xf32, #tpu.memory_space<smem>>
    %c0_217 = arith.constant 0 : index
    %434 = memref.load %arg6[%c0_217] : memref<6xf32, #tpu.memory_space<smem>>
    %435 = vector.shape_cast %432 : vector<2x196xf32> to vector<1x2x196xf32>
    %cst_218 = arith.constant dense<0.000000e+00> : vector<1xf32>
    %436 = vector.multi_reduction <add>, %435, %cst_218 [1, 2] : vector<1x2x196xf32> to vector<1xf32>
    %437 = vector.shape_cast %436 : vector<1xf32> to vector<1x1x1xf32>
    %438 = vector.extract %437[0, 0, 0] : f32 from vector<1x1x1xf32>
    %cst_219 = arith.constant 3.920000e+02 : f32
    %439 = arith.divf %438, %cst_219 : f32
    %440 = vector.broadcast %439 : f32 to vector<2x196xf32>
    %441 = arith.subf %432, %440 : vector<2x196xf32>
    %442 = vector.broadcast %439 : f32 to vector<2x196xf32>
    %443 = arith.subf %432, %442 : vector<2x196xf32>
    %444 = arith.mulf %441, %443 : vector<2x196xf32>
    %445 = vector.shape_cast %444 : vector<2x196xf32> to vector<1x2x196xf32>
    %cst_220 = arith.constant dense<0.000000e+00> : vector<1xf32>
    %446 = vector.multi_reduction <add>, %445, %cst_220 [1, 2] : vector<1x2x196xf32> to vector<1xf32>
    %447 = vector.shape_cast %446 : vector<1xf32> to vector<1x1x1xf32>
    %448 = vector.extract %447[0, 0, 0] : f32 from vector<1x1x1xf32>
    %cst_221 = arith.constant 3.920000e+02 : f32
    %449 = arith.divf %448, %cst_221 : f32
    %450 = vector.broadcast %439 : f32 to vector<2x196xf32>
    %451 = arith.subf %432, %450 : vector<2x196xf32>
    %cst_222 = arith.constant 9.99999974E-6 : f32
    %452 = arith.addf %449, %cst_222 : f32
    %453 = math.rsqrt %452 : f32
    %454 = vector.broadcast %453 : f32 to vector<2x196xf32>
    %455 = arith.mulf %451, %454 : vector<2x196xf32>
    %456 = vector.broadcast %433 : f32 to vector<2x196xf32>
    %457 = arith.mulf %455, %456 : vector<2x196xf32>
    %458 = vector.broadcast %434 : f32 to vector<2x196xf32>
    %459 = arith.addf %457, %458 : vector<2x196xf32>
    %cst_223 = arith.constant 0.000000e+00 : f32
    %460 = vector.broadcast %cst_223 : f32 to vector<2x196xf32>
    %461 = arith.maximumf %459, %460 : vector<2x196xf32>
    %462 = arith.truncf %461 : vector<2x196xf32> to vector<2x196xbf16>
    %cst_224 = arith.constant dense<0.000000e+00> : vector<2x49xf32>
    %463 = tpu.matmul %462, %5, %cst_224 {dimension_numbers = #tpu.dot_dimension_numbers<[1], [0], [0], [1], [0, 0, 1, 1], [], []>} : vector<2x196xbf16>, vector<196x49xbf16>, vector<2x49xf32> -> vector<2x49xf32>
    %c1_225 = arith.constant 1 : index
    %c0_226 = arith.constant 0 : index
    %464 = memref.load %arg4[%c1_225, %c0_226] : memref<6x27xf32, #tpu.memory_space<smem>>
    %465 = vector.broadcast %464 : f32 to vector<2x196xf32>
    %466 = arith.mulf %239, %465 : vector<2x196xf32>
    %c1_227 = arith.constant 1 : index
    %c1_228 = arith.constant 1 : index
    %467 = memref.load %arg4[%c1_227, %c1_228] : memref<6x27xf32, #tpu.memory_space<smem>>
    %468 = vector.broadcast %467 : f32 to vector<2x196xf32>
    %469 = arith.mulf %241, %468 : vector<2x196xf32>
    %470 = arith.addf %466, %469 : vector<2x196xf32>
    %c1_229 = arith.constant 1 : index
    %c2_230 = arith.constant 2 : index
    %471 = memref.load %arg4[%c1_229, %c2_230] : memref<6x27xf32, #tpu.memory_space<smem>>
    %472 = vector.broadcast %471 : f32 to vector<2x196xf32>
    %473 = arith.mulf %245, %472 : vector<2x196xf32>
    %474 = arith.addf %470, %473 : vector<2x196xf32>
    %c1_231 = arith.constant 1 : index
    %c3_232 = arith.constant 3 : index
    %475 = memref.load %arg4[%c1_231, %c3_232] : memref<6x27xf32, #tpu.memory_space<smem>>
    %476 = vector.broadcast %475 : f32 to vector<2x196xf32>
    %477 = arith.mulf %249, %476 : vector<2x196xf32>
    %478 = arith.addf %474, %477 : vector<2x196xf32>
    %c1_233 = arith.constant 1 : index
    %c4_234 = arith.constant 4 : index
    %479 = memref.load %arg4[%c1_233, %c4_234] : memref<6x27xf32, #tpu.memory_space<smem>>
    %480 = vector.broadcast %479 : f32 to vector<2x196xf32>
    %481 = arith.mulf %251, %480 : vector<2x196xf32>
    %482 = arith.addf %478, %481 : vector<2x196xf32>
    %c1_235 = arith.constant 1 : index
    %c5_236 = arith.constant 5 : index
    %483 = memref.load %arg4[%c1_235, %c5_236] : memref<6x27xf32, #tpu.memory_space<smem>>
    %484 = vector.broadcast %483 : f32 to vector<2x196xf32>
    %485 = arith.mulf %255, %484 : vector<2x196xf32>
    %486 = arith.addf %482, %485 : vector<2x196xf32>
    %c1_237 = arith.constant 1 : index
    %c6_238 = arith.constant 6 : index
    %487 = memref.load %arg4[%c1_237, %c6_238] : memref<6x27xf32, #tpu.memory_space<smem>>
    %488 = vector.broadcast %487 : f32 to vector<2x196xf32>
    %489 = arith.mulf %259, %488 : vector<2x196xf32>
    %490 = arith.addf %486, %489 : vector<2x196xf32>
    %c1_239 = arith.constant 1 : index
    %c7_240 = arith.constant 7 : index
    %491 = memref.load %arg4[%c1_239, %c7_240] : memref<6x27xf32, #tpu.memory_space<smem>>
    %492 = vector.broadcast %491 : f32 to vector<2x196xf32>
    %493 = arith.mulf %261, %492 : vector<2x196xf32>
    %494 = arith.addf %490, %493 : vector<2x196xf32>
    %c1_241 = arith.constant 1 : index
    %c8_242 = arith.constant 8 : index
    %495 = memref.load %arg4[%c1_241, %c8_242] : memref<6x27xf32, #tpu.memory_space<smem>>
    %496 = vector.broadcast %495 : f32 to vector<2x196xf32>
    %497 = arith.mulf %265, %496 : vector<2x196xf32>
    %498 = arith.addf %494, %497 : vector<2x196xf32>
    %c1_243 = arith.constant 1 : index
    %c9_244 = arith.constant 9 : index
    %499 = memref.load %arg4[%c1_243, %c9_244] : memref<6x27xf32, #tpu.memory_space<smem>>
    %500 = vector.broadcast %499 : f32 to vector<2x196xf32>
    %501 = arith.mulf %269, %500 : vector<2x196xf32>
    %502 = arith.addf %498, %501 : vector<2x196xf32>
    %c1_245 = arith.constant 1 : index
    %c10_246 = arith.constant 10 : index
    %503 = memref.load %arg4[%c1_245, %c10_246] : memref<6x27xf32, #tpu.memory_space<smem>>
    %504 = vector.broadcast %503 : f32 to vector<2x196xf32>
    %505 = arith.mulf %271, %504 : vector<2x196xf32>
    %506 = arith.addf %502, %505 : vector<2x196xf32>
    %c1_247 = arith.constant 1 : index
    %c11_248 = arith.constant 11 : index
    %507 = memref.load %arg4[%c1_247, %c11_248] : memref<6x27xf32, #tpu.memory_space<smem>>
    %508 = vector.broadcast %507 : f32 to vector<2x196xf32>
    %509 = arith.mulf %275, %508 : vector<2x196xf32>
    %510 = arith.addf %506, %509 : vector<2x196xf32>
    %c1_249 = arith.constant 1 : index
    %c12_250 = arith.constant 12 : index
    %511 = memref.load %arg4[%c1_249, %c12_250] : memref<6x27xf32, #tpu.memory_space<smem>>
    %512 = vector.broadcast %511 : f32 to vector<2x196xf32>
    %513 = arith.mulf %279, %512 : vector<2x196xf32>
    %514 = arith.addf %510, %513 : vector<2x196xf32>
    %c1_251 = arith.constant 1 : index
    %c13_252 = arith.constant 13 : index
    %515 = memref.load %arg4[%c1_251, %c13_252] : memref<6x27xf32, #tpu.memory_space<smem>>
    %516 = vector.broadcast %515 : f32 to vector<2x196xf32>
    %517 = arith.mulf %281, %516 : vector<2x196xf32>
    %518 = arith.addf %514, %517 : vector<2x196xf32>
    %c1_253 = arith.constant 1 : index
    %c14_254 = arith.constant 14 : index
    %519 = memref.load %arg4[%c1_253, %c14_254] : memref<6x27xf32, #tpu.memory_space<smem>>
    %520 = vector.broadcast %519 : f32 to vector<2x196xf32>
    %521 = arith.mulf %285, %520 : vector<2x196xf32>
    %522 = arith.addf %518, %521 : vector<2x196xf32>
    %c1_255 = arith.constant 1 : index
    %c15_256 = arith.constant 15 : index
    %523 = memref.load %arg4[%c1_255, %c15_256] : memref<6x27xf32, #tpu.memory_space<smem>>
    %524 = vector.broadcast %523 : f32 to vector<2x196xf32>
    %525 = arith.mulf %289, %524 : vector<2x196xf32>
    %526 = arith.addf %522, %525 : vector<2x196xf32>
    %c1_257 = arith.constant 1 : index
    %c16_258 = arith.constant 16 : index
    %527 = memref.load %arg4[%c1_257, %c16_258] : memref<6x27xf32, #tpu.memory_space<smem>>
    %528 = vector.broadcast %527 : f32 to vector<2x196xf32>
    %529 = arith.mulf %291, %528 : vector<2x196xf32>
    %530 = arith.addf %526, %529 : vector<2x196xf32>
    %c1_259 = arith.constant 1 : index
    %c17_260 = arith.constant 17 : index
    %531 = memref.load %arg4[%c1_259, %c17_260] : memref<6x27xf32, #tpu.memory_space<smem>>
    %532 = vector.broadcast %531 : f32 to vector<2x196xf32>
    %533 = arith.mulf %295, %532 : vector<2x196xf32>
    %534 = arith.addf %530, %533 : vector<2x196xf32>
    %c1_261 = arith.constant 1 : index
    %c18_262 = arith.constant 18 : index
    %535 = memref.load %arg4[%c1_261, %c18_262] : memref<6x27xf32, #tpu.memory_space<smem>>
    %536 = vector.broadcast %535 : f32 to vector<2x196xf32>
    %537 = arith.mulf %299, %536 : vector<2x196xf32>
    %538 = arith.addf %534, %537 : vector<2x196xf32>
    %c1_263 = arith.constant 1 : index
    %c19_264 = arith.constant 19 : index
    %539 = memref.load %arg4[%c1_263, %c19_264] : memref<6x27xf32, #tpu.memory_space<smem>>
    %540 = vector.broadcast %539 : f32 to vector<2x196xf32>
    %541 = arith.mulf %301, %540 : vector<2x196xf32>
    %542 = arith.addf %538, %541 : vector<2x196xf32>
    %c1_265 = arith.constant 1 : index
    %c20_266 = arith.constant 20 : index
    %543 = memref.load %arg4[%c1_265, %c20_266] : memref<6x27xf32, #tpu.memory_space<smem>>
    %544 = vector.broadcast %543 : f32 to vector<2x196xf32>
    %545 = arith.mulf %305, %544 : vector<2x196xf32>
    %546 = arith.addf %542, %545 : vector<2x196xf32>
    %c1_267 = arith.constant 1 : index
    %c21_268 = arith.constant 21 : index
    %547 = memref.load %arg4[%c1_267, %c21_268] : memref<6x27xf32, #tpu.memory_space<smem>>
    %548 = vector.broadcast %547 : f32 to vector<2x196xf32>
    %549 = arith.mulf %309, %548 : vector<2x196xf32>
    %550 = arith.addf %546, %549 : vector<2x196xf32>
    %c1_269 = arith.constant 1 : index
    %c22_270 = arith.constant 22 : index
    %551 = memref.load %arg4[%c1_269, %c22_270] : memref<6x27xf32, #tpu.memory_space<smem>>
    %552 = vector.broadcast %551 : f32 to vector<2x196xf32>
    %553 = arith.mulf %311, %552 : vector<2x196xf32>
    %554 = arith.addf %550, %553 : vector<2x196xf32>
    %c1_271 = arith.constant 1 : index
    %c23_272 = arith.constant 23 : index
    %555 = memref.load %arg4[%c1_271, %c23_272] : memref<6x27xf32, #tpu.memory_space<smem>>
    %556 = vector.broadcast %555 : f32 to vector<2x196xf32>
    %557 = arith.mulf %315, %556 : vector<2x196xf32>
    %558 = arith.addf %554, %557 : vector<2x196xf32>
    %c1_273 = arith.constant 1 : index
    %c24_274 = arith.constant 24 : index
    %559 = memref.load %arg4[%c1_273, %c24_274] : memref<6x27xf32, #tpu.memory_space<smem>>
    %560 = vector.broadcast %559 : f32 to vector<2x196xf32>
    %561 = arith.mulf %319, %560 : vector<2x196xf32>
    %562 = arith.addf %558, %561 : vector<2x196xf32>
    %c1_275 = arith.constant 1 : index
    %c25_276 = arith.constant 25 : index
    %563 = memref.load %arg4[%c1_275, %c25_276] : memref<6x27xf32, #tpu.memory_space<smem>>
    %564 = vector.broadcast %563 : f32 to vector<2x196xf32>
    %565 = arith.mulf %321, %564 : vector<2x196xf32>
    %566 = arith.addf %562, %565 : vector<2x196xf32>
    %c1_277 = arith.constant 1 : index
    %c26_278 = arith.constant 26 : index
    %567 = memref.load %arg4[%c1_277, %c26_278] : memref<6x27xf32, #tpu.memory_space<smem>>
    %568 = vector.broadcast %567 : f32 to vector<2x196xf32>
    %569 = arith.mulf %325, %568 : vector<2x196xf32>
    %570 = arith.addf %566, %569 : vector<2x196xf32>
    %c1_279 = arith.constant 1 : index
    %571 = memref.load %arg5[%c1_279] : memref<6xf32, #tpu.memory_space<smem>>
    %c1_280 = arith.constant 1 : index
    %572 = memref.load %arg6[%c1_280] : memref<6xf32, #tpu.memory_space<smem>>
    %573 = vector.shape_cast %570 : vector<2x196xf32> to vector<1x2x196xf32>
    %cst_281 = arith.constant dense<0.000000e+00> : vector<1xf32>
    %574 = vector.multi_reduction <add>, %573, %cst_281 [1, 2] : vector<1x2x196xf32> to vector<1xf32>
    %575 = vector.shape_cast %574 : vector<1xf32> to vector<1x1x1xf32>
    %576 = vector.extract %575[0, 0, 0] : f32 from vector<1x1x1xf32>
    %cst_282 = arith.constant 3.920000e+02 : f32
    %577 = arith.divf %576, %cst_282 : f32
    %578 = vector.broadcast %577 : f32 to vector<2x196xf32>
    %579 = arith.subf %570, %578 : vector<2x196xf32>
    %580 = vector.broadcast %577 : f32 to vector<2x196xf32>
    %581 = arith.subf %570, %580 : vector<2x196xf32>
    %582 = arith.mulf %579, %581 : vector<2x196xf32>
    %583 = vector.shape_cast %582 : vector<2x196xf32> to vector<1x2x196xf32>
    %cst_283 = arith.constant dense<0.000000e+00> : vector<1xf32>
    %584 = vector.multi_reduction <add>, %583, %cst_283 [1, 2] : vector<1x2x196xf32> to vector<1xf32>
    %585 = vector.shape_cast %584 : vector<1xf32> to vector<1x1x1xf32>
    %586 = vector.extract %585[0, 0, 0] : f32 from vector<1x1x1xf32>
    %cst_284 = arith.constant 3.920000e+02 : f32
    %587 = arith.divf %586, %cst_284 : f32
    %588 = vector.broadcast %577 : f32 to vector<2x196xf32>
    %589 = arith.subf %570, %588 : vector<2x196xf32>
    %cst_285 = arith.constant 9.99999974E-6 : f32
    %590 = arith.addf %587, %cst_285 : f32
    %591 = math.rsqrt %590 : f32
    %592 = vector.broadcast %591 : f32 to vector<2x196xf32>
    %593 = arith.mulf %589, %592 : vector<2x196xf32>
    %594 = vector.broadcast %571 : f32 to vector<2x196xf32>
    %595 = arith.mulf %593, %594 : vector<2x196xf32>
    %596 = vector.broadcast %572 : f32 to vector<2x196xf32>
    %597 = arith.addf %595, %596 : vector<2x196xf32>
    %cst_286 = arith.constant 0.000000e+00 : f32
    %598 = vector.broadcast %cst_286 : f32 to vector<2x196xf32>
    %599 = arith.maximumf %597, %598 : vector<2x196xf32>
    %600 = arith.truncf %599 : vector<2x196xf32> to vector<2x196xbf16>
    %cst_287 = arith.constant dense<0.000000e+00> : vector<2x49xf32>
    %601 = tpu.matmul %600, %5, %cst_287 {dimension_numbers = #tpu.dot_dimension_numbers<[1], [0], [0], [1], [0, 0, 1, 1], [], []>} : vector<2x196xbf16>, vector<196x49xbf16>, vector<2x49xf32> -> vector<2x49xf32>
    %c2_288 = arith.constant 2 : index
    %c0_289 = arith.constant 0 : index
    %602 = memref.load %arg4[%c2_288, %c0_289] : memref<6x27xf32, #tpu.memory_space<smem>>
    %603 = vector.broadcast %602 : f32 to vector<2x196xf32>
    %604 = arith.mulf %239, %603 : vector<2x196xf32>
    %c2_290 = arith.constant 2 : index
    %c1_291 = arith.constant 1 : index
    %605 = memref.load %arg4[%c2_290, %c1_291] : memref<6x27xf32, #tpu.memory_space<smem>>
    %606 = vector.broadcast %605 : f32 to vector<2x196xf32>
    %607 = arith.mulf %241, %606 : vector<2x196xf32>
    %608 = arith.addf %604, %607 : vector<2x196xf32>
    %c2_292 = arith.constant 2 : index
    %c2_293 = arith.constant 2 : index
    %609 = memref.load %arg4[%c2_292, %c2_293] : memref<6x27xf32, #tpu.memory_space<smem>>
    %610 = vector.broadcast %609 : f32 to vector<2x196xf32>
    %611 = arith.mulf %245, %610 : vector<2x196xf32>
    %612 = arith.addf %608, %611 : vector<2x196xf32>
    %c2_294 = arith.constant 2 : index
    %c3_295 = arith.constant 3 : index
    %613 = memref.load %arg4[%c2_294, %c3_295] : memref<6x27xf32, #tpu.memory_space<smem>>
    %614 = vector.broadcast %613 : f32 to vector<2x196xf32>
    %615 = arith.mulf %249, %614 : vector<2x196xf32>
    %616 = arith.addf %612, %615 : vector<2x196xf32>
    %c2_296 = arith.constant 2 : index
    %c4_297 = arith.constant 4 : index
    %617 = memref.load %arg4[%c2_296, %c4_297] : memref<6x27xf32, #tpu.memory_space<smem>>
    %618 = vector.broadcast %617 : f32 to vector<2x196xf32>
    %619 = arith.mulf %251, %618 : vector<2x196xf32>
    %620 = arith.addf %616, %619 : vector<2x196xf32>
    %c2_298 = arith.constant 2 : index
    %c5_299 = arith.constant 5 : index
    %621 = memref.load %arg4[%c2_298, %c5_299] : memref<6x27xf32, #tpu.memory_space<smem>>
    %622 = vector.broadcast %621 : f32 to vector<2x196xf32>
    %623 = arith.mulf %255, %622 : vector<2x196xf32>
    %624 = arith.addf %620, %623 : vector<2x196xf32>
    %c2_300 = arith.constant 2 : index
    %c6_301 = arith.constant 6 : index
    %625 = memref.load %arg4[%c2_300, %c6_301] : memref<6x27xf32, #tpu.memory_space<smem>>
    %626 = vector.broadcast %625 : f32 to vector<2x196xf32>
    %627 = arith.mulf %259, %626 : vector<2x196xf32>
    %628 = arith.addf %624, %627 : vector<2x196xf32>
    %c2_302 = arith.constant 2 : index
    %c7_303 = arith.constant 7 : index
    %629 = memref.load %arg4[%c2_302, %c7_303] : memref<6x27xf32, #tpu.memory_space<smem>>
    %630 = vector.broadcast %629 : f32 to vector<2x196xf32>
    %631 = arith.mulf %261, %630 : vector<2x196xf32>
    %632 = arith.addf %628, %631 : vector<2x196xf32>
    %c2_304 = arith.constant 2 : index
    %c8_305 = arith.constant 8 : index
    %633 = memref.load %arg4[%c2_304, %c8_305] : memref<6x27xf32, #tpu.memory_space<smem>>
    %634 = vector.broadcast %633 : f32 to vector<2x196xf32>
    %635 = arith.mulf %265, %634 : vector<2x196xf32>
    %636 = arith.addf %632, %635 : vector<2x196xf32>
    %c2_306 = arith.constant 2 : index
    %c9_307 = arith.constant 9 : index
    %637 = memref.load %arg4[%c2_306, %c9_307] : memref<6x27xf32, #tpu.memory_space<smem>>
    %638 = vector.broadcast %637 : f32 to vector<2x196xf32>
    %639 = arith.mulf %269, %638 : vector<2x196xf32>
    %640 = arith.addf %636, %639 : vector<2x196xf32>
    %c2_308 = arith.constant 2 : index
    %c10_309 = arith.constant 10 : index
    %641 = memref.load %arg4[%c2_308, %c10_309] : memref<6x27xf32, #tpu.memory_space<smem>>
    %642 = vector.broadcast %641 : f32 to vector<2x196xf32>
    %643 = arith.mulf %271, %642 : vector<2x196xf32>
    %644 = arith.addf %640, %643 : vector<2x196xf32>
    %c2_310 = arith.constant 2 : index
    %c11_311 = arith.constant 11 : index
    %645 = memref.load %arg4[%c2_310, %c11_311] : memref<6x27xf32, #tpu.memory_space<smem>>
    %646 = vector.broadcast %645 : f32 to vector<2x196xf32>
    %647 = arith.mulf %275, %646 : vector<2x196xf32>
    %648 = arith.addf %644, %647 : vector<2x196xf32>
    %c2_312 = arith.constant 2 : index
    %c12_313 = arith.constant 12 : index
    %649 = memref.load %arg4[%c2_312, %c12_313] : memref<6x27xf32, #tpu.memory_space<smem>>
    %650 = vector.broadcast %649 : f32 to vector<2x196xf32>
    %651 = arith.mulf %279, %650 : vector<2x196xf32>
    %652 = arith.addf %648, %651 : vector<2x196xf32>
    %c2_314 = arith.constant 2 : index
    %c13_315 = arith.constant 13 : index
    %653 = memref.load %arg4[%c2_314, %c13_315] : memref<6x27xf32, #tpu.memory_space<smem>>
    %654 = vector.broadcast %653 : f32 to vector<2x196xf32>
    %655 = arith.mulf %281, %654 : vector<2x196xf32>
    %656 = arith.addf %652, %655 : vector<2x196xf32>
    %c2_316 = arith.constant 2 : index
    %c14_317 = arith.constant 14 : index
    %657 = memref.load %arg4[%c2_316, %c14_317] : memref<6x27xf32, #tpu.memory_space<smem>>
    %658 = vector.broadcast %657 : f32 to vector<2x196xf32>
    %659 = arith.mulf %285, %658 : vector<2x196xf32>
    %660 = arith.addf %656, %659 : vector<2x196xf32>
    %c2_318 = arith.constant 2 : index
    %c15_319 = arith.constant 15 : index
    %661 = memref.load %arg4[%c2_318, %c15_319] : memref<6x27xf32, #tpu.memory_space<smem>>
    %662 = vector.broadcast %661 : f32 to vector<2x196xf32>
    %663 = arith.mulf %289, %662 : vector<2x196xf32>
    %664 = arith.addf %660, %663 : vector<2x196xf32>
    %c2_320 = arith.constant 2 : index
    %c16_321 = arith.constant 16 : index
    %665 = memref.load %arg4[%c2_320, %c16_321] : memref<6x27xf32, #tpu.memory_space<smem>>
    %666 = vector.broadcast %665 : f32 to vector<2x196xf32>
    %667 = arith.mulf %291, %666 : vector<2x196xf32>
    %668 = arith.addf %664, %667 : vector<2x196xf32>
    %c2_322 = arith.constant 2 : index
    %c17_323 = arith.constant 17 : index
    %669 = memref.load %arg4[%c2_322, %c17_323] : memref<6x27xf32, #tpu.memory_space<smem>>
    %670 = vector.broadcast %669 : f32 to vector<2x196xf32>
    %671 = arith.mulf %295, %670 : vector<2x196xf32>
    %672 = arith.addf %668, %671 : vector<2x196xf32>
    %c2_324 = arith.constant 2 : index
    %c18_325 = arith.constant 18 : index
    %673 = memref.load %arg4[%c2_324, %c18_325] : memref<6x27xf32, #tpu.memory_space<smem>>
    %674 = vector.broadcast %673 : f32 to vector<2x196xf32>
    %675 = arith.mulf %299, %674 : vector<2x196xf32>
    %676 = arith.addf %672, %675 : vector<2x196xf32>
    %c2_326 = arith.constant 2 : index
    %c19_327 = arith.constant 19 : index
    %677 = memref.load %arg4[%c2_326, %c19_327] : memref<6x27xf32, #tpu.memory_space<smem>>
    %678 = vector.broadcast %677 : f32 to vector<2x196xf32>
    %679 = arith.mulf %301, %678 : vector<2x196xf32>
    %680 = arith.addf %676, %679 : vector<2x196xf32>
    %c2_328 = arith.constant 2 : index
    %c20_329 = arith.constant 20 : index
    %681 = memref.load %arg4[%c2_328, %c20_329] : memref<6x27xf32, #tpu.memory_space<smem>>
    %682 = vector.broadcast %681 : f32 to vector<2x196xf32>
    %683 = arith.mulf %305, %682 : vector<2x196xf32>
    %684 = arith.addf %680, %683 : vector<2x196xf32>
    %c2_330 = arith.constant 2 : index
    %c21_331 = arith.constant 21 : index
    %685 = memref.load %arg4[%c2_330, %c21_331] : memref<6x27xf32, #tpu.memory_space<smem>>
    %686 = vector.broadcast %685 : f32 to vector<2x196xf32>
    %687 = arith.mulf %309, %686 : vector<2x196xf32>
    %688 = arith.addf %684, %687 : vector<2x196xf32>
    %c2_332 = arith.constant 2 : index
    %c22_333 = arith.constant 22 : index
    %689 = memref.load %arg4[%c2_332, %c22_333] : memref<6x27xf32, #tpu.memory_space<smem>>
    %690 = vector.broadcast %689 : f32 to vector<2x196xf32>
    %691 = arith.mulf %311, %690 : vector<2x196xf32>
    %692 = arith.addf %688, %691 : vector<2x196xf32>
    %c2_334 = arith.constant 2 : index
    %c23_335 = arith.constant 23 : index
    %693 = memref.load %arg4[%c2_334, %c23_335] : memref<6x27xf32, #tpu.memory_space<smem>>
    %694 = vector.broadcast %693 : f32 to vector<2x196xf32>
    %695 = arith.mulf %315, %694 : vector<2x196xf32>
    %696 = arith.addf %692, %695 : vector<2x196xf32>
    %c2_336 = arith.constant 2 : index
    %c24_337 = arith.constant 24 : index
    %697 = memref.load %arg4[%c2_336, %c24_337] : memref<6x27xf32, #tpu.memory_space<smem>>
    %698 = vector.broadcast %697 : f32 to vector<2x196xf32>
    %699 = arith.mulf %319, %698 : vector<2x196xf32>
    %700 = arith.addf %696, %699 : vector<2x196xf32>
    %c2_338 = arith.constant 2 : index
    %c25_339 = arith.constant 25 : index
    %701 = memref.load %arg4[%c2_338, %c25_339] : memref<6x27xf32, #tpu.memory_space<smem>>
    %702 = vector.broadcast %701 : f32 to vector<2x196xf32>
    %703 = arith.mulf %321, %702 : vector<2x196xf32>
    %704 = arith.addf %700, %703 : vector<2x196xf32>
    %c2_340 = arith.constant 2 : index
    %c26_341 = arith.constant 26 : index
    %705 = memref.load %arg4[%c2_340, %c26_341] : memref<6x27xf32, #tpu.memory_space<smem>>
    %706 = vector.broadcast %705 : f32 to vector<2x196xf32>
    %707 = arith.mulf %325, %706 : vector<2x196xf32>
    %708 = arith.addf %704, %707 : vector<2x196xf32>
    %c2_342 = arith.constant 2 : index
    %709 = memref.load %arg5[%c2_342] : memref<6xf32, #tpu.memory_space<smem>>
    %c2_343 = arith.constant 2 : index
    %710 = memref.load %arg6[%c2_343] : memref<6xf32, #tpu.memory_space<smem>>
    %711 = vector.shape_cast %708 : vector<2x196xf32> to vector<1x2x196xf32>
    %cst_344 = arith.constant dense<0.000000e+00> : vector<1xf32>
    %712 = vector.multi_reduction <add>, %711, %cst_344 [1, 2] : vector<1x2x196xf32> to vector<1xf32>
    %713 = vector.shape_cast %712 : vector<1xf32> to vector<1x1x1xf32>
    %714 = vector.extract %713[0, 0, 0] : f32 from vector<1x1x1xf32>
    %cst_345 = arith.constant 3.920000e+02 : f32
    %715 = arith.divf %714, %cst_345 : f32
    %716 = vector.broadcast %715 : f32 to vector<2x196xf32>
    %717 = arith.subf %708, %716 : vector<2x196xf32>
    %718 = vector.broadcast %715 : f32 to vector<2x196xf32>
    %719 = arith.subf %708, %718 : vector<2x196xf32>
    %720 = arith.mulf %717, %719 : vector<2x196xf32>
    %721 = vector.shape_cast %720 : vector<2x196xf32> to vector<1x2x196xf32>
    %cst_346 = arith.constant dense<0.000000e+00> : vector<1xf32>
    %722 = vector.multi_reduction <add>, %721, %cst_346 [1, 2] : vector<1x2x196xf32> to vector<1xf32>
    %723 = vector.shape_cast %722 : vector<1xf32> to vector<1x1x1xf32>
    %724 = vector.extract %723[0, 0, 0] : f32 from vector<1x1x1xf32>
    %cst_347 = arith.constant 3.920000e+02 : f32
    %725 = arith.divf %724, %cst_347 : f32
    %726 = vector.broadcast %715 : f32 to vector<2x196xf32>
    %727 = arith.subf %708, %726 : vector<2x196xf32>
    %cst_348 = arith.constant 9.99999974E-6 : f32
    %728 = arith.addf %725, %cst_348 : f32
    %729 = math.rsqrt %728 : f32
    %730 = vector.broadcast %729 : f32 to vector<2x196xf32>
    %731 = arith.mulf %727, %730 : vector<2x196xf32>
    %732 = vector.broadcast %709 : f32 to vector<2x196xf32>
    %733 = arith.mulf %731, %732 : vector<2x196xf32>
    %734 = vector.broadcast %710 : f32 to vector<2x196xf32>
    %735 = arith.addf %733, %734 : vector<2x196xf32>
    %cst_349 = arith.constant 0.000000e+00 : f32
    %736 = vector.broadcast %cst_349 : f32 to vector<2x196xf32>
    %737 = arith.maximumf %735, %736 : vector<2x196xf32>
    %738 = arith.truncf %737 : vector<2x196xf32> to vector<2x196xbf16>
    %cst_350 = arith.constant dense<0.000000e+00> : vector<2x49xf32>
    %739 = tpu.matmul %738, %5, %cst_350 {dimension_numbers = #tpu.dot_dimension_numbers<[1], [0], [0], [1], [0, 0, 1, 1], [], []>} : vector<2x196xbf16>, vector<196x49xbf16>, vector<2x49xf32> -> vector<2x49xf32>
    %c3_351 = arith.constant 3 : index
    %c0_352 = arith.constant 0 : index
    %740 = memref.load %arg4[%c3_351, %c0_352] : memref<6x27xf32, #tpu.memory_space<smem>>
    %741 = vector.broadcast %740 : f32 to vector<2x196xf32>
    %742 = arith.mulf %239, %741 : vector<2x196xf32>
    %c3_353 = arith.constant 3 : index
    %c1_354 = arith.constant 1 : index
    %743 = memref.load %arg4[%c3_353, %c1_354] : memref<6x27xf32, #tpu.memory_space<smem>>
    %744 = vector.broadcast %743 : f32 to vector<2x196xf32>
    %745 = arith.mulf %241, %744 : vector<2x196xf32>
    %746 = arith.addf %742, %745 : vector<2x196xf32>
    %c3_355 = arith.constant 3 : index
    %c2_356 = arith.constant 2 : index
    %747 = memref.load %arg4[%c3_355, %c2_356] : memref<6x27xf32, #tpu.memory_space<smem>>
    %748 = vector.broadcast %747 : f32 to vector<2x196xf32>
    %749 = arith.mulf %245, %748 : vector<2x196xf32>
    %750 = arith.addf %746, %749 : vector<2x196xf32>
    %c3_357 = arith.constant 3 : index
    %c3_358 = arith.constant 3 : index
    %751 = memref.load %arg4[%c3_357, %c3_358] : memref<6x27xf32, #tpu.memory_space<smem>>
    %752 = vector.broadcast %751 : f32 to vector<2x196xf32>
    %753 = arith.mulf %249, %752 : vector<2x196xf32>
    %754 = arith.addf %750, %753 : vector<2x196xf32>
    %c3_359 = arith.constant 3 : index
    %c4_360 = arith.constant 4 : index
    %755 = memref.load %arg4[%c3_359, %c4_360] : memref<6x27xf32, #tpu.memory_space<smem>>
    %756 = vector.broadcast %755 : f32 to vector<2x196xf32>
    %757 = arith.mulf %251, %756 : vector<2x196xf32>
    %758 = arith.addf %754, %757 : vector<2x196xf32>
    %c3_361 = arith.constant 3 : index
    %c5_362 = arith.constant 5 : index
    %759 = memref.load %arg4[%c3_361, %c5_362] : memref<6x27xf32, #tpu.memory_space<smem>>
    %760 = vector.broadcast %759 : f32 to vector<2x196xf32>
    %761 = arith.mulf %255, %760 : vector<2x196xf32>
    %762 = arith.addf %758, %761 : vector<2x196xf32>
    %c3_363 = arith.constant 3 : index
    %c6_364 = arith.constant 6 : index
    %763 = memref.load %arg4[%c3_363, %c6_364] : memref<6x27xf32, #tpu.memory_space<smem>>
    %764 = vector.broadcast %763 : f32 to vector<2x196xf32>
    %765 = arith.mulf %259, %764 : vector<2x196xf32>
    %766 = arith.addf %762, %765 : vector<2x196xf32>
    %c3_365 = arith.constant 3 : index
    %c7_366 = arith.constant 7 : index
    %767 = memref.load %arg4[%c3_365, %c7_366] : memref<6x27xf32, #tpu.memory_space<smem>>
    %768 = vector.broadcast %767 : f32 to vector<2x196xf32>
    %769 = arith.mulf %261, %768 : vector<2x196xf32>
    %770 = arith.addf %766, %769 : vector<2x196xf32>
    %c3_367 = arith.constant 3 : index
    %c8_368 = arith.constant 8 : index
    %771 = memref.load %arg4[%c3_367, %c8_368] : memref<6x27xf32, #tpu.memory_space<smem>>
    %772 = vector.broadcast %771 : f32 to vector<2x196xf32>
    %773 = arith.mulf %265, %772 : vector<2x196xf32>
    %774 = arith.addf %770, %773 : vector<2x196xf32>
    %c3_369 = arith.constant 3 : index
    %c9_370 = arith.constant 9 : index
    %775 = memref.load %arg4[%c3_369, %c9_370] : memref<6x27xf32, #tpu.memory_space<smem>>
    %776 = vector.broadcast %775 : f32 to vector<2x196xf32>
    %777 = arith.mulf %269, %776 : vector<2x196xf32>
    %778 = arith.addf %774, %777 : vector<2x196xf32>
    %c3_371 = arith.constant 3 : index
    %c10_372 = arith.constant 10 : index
    %779 = memref.load %arg4[%c3_371, %c10_372] : memref<6x27xf32, #tpu.memory_space<smem>>
    %780 = vector.broadcast %779 : f32 to vector<2x196xf32>
    %781 = arith.mulf %271, %780 : vector<2x196xf32>
    %782 = arith.addf %778, %781 : vector<2x196xf32>
    %c3_373 = arith.constant 3 : index
    %c11_374 = arith.constant 11 : index
    %783 = memref.load %arg4[%c3_373, %c11_374] : memref<6x27xf32, #tpu.memory_space<smem>>
    %784 = vector.broadcast %783 : f32 to vector<2x196xf32>
    %785 = arith.mulf %275, %784 : vector<2x196xf32>
    %786 = arith.addf %782, %785 : vector<2x196xf32>
    %c3_375 = arith.constant 3 : index
    %c12_376 = arith.constant 12 : index
    %787 = memref.load %arg4[%c3_375, %c12_376] : memref<6x27xf32, #tpu.memory_space<smem>>
    %788 = vector.broadcast %787 : f32 to vector<2x196xf32>
    %789 = arith.mulf %279, %788 : vector<2x196xf32>
    %790 = arith.addf %786, %789 : vector<2x196xf32>
    %c3_377 = arith.constant 3 : index
    %c13_378 = arith.constant 13 : index
    %791 = memref.load %arg4[%c3_377, %c13_378] : memref<6x27xf32, #tpu.memory_space<smem>>
    %792 = vector.broadcast %791 : f32 to vector<2x196xf32>
    %793 = arith.mulf %281, %792 : vector<2x196xf32>
    %794 = arith.addf %790, %793 : vector<2x196xf32>
    %c3_379 = arith.constant 3 : index
    %c14_380 = arith.constant 14 : index
    %795 = memref.load %arg4[%c3_379, %c14_380] : memref<6x27xf32, #tpu.memory_space<smem>>
    %796 = vector.broadcast %795 : f32 to vector<2x196xf32>
    %797 = arith.mulf %285, %796 : vector<2x196xf32>
    %798 = arith.addf %794, %797 : vector<2x196xf32>
    %c3_381 = arith.constant 3 : index
    %c15_382 = arith.constant 15 : index
    %799 = memref.load %arg4[%c3_381, %c15_382] : memref<6x27xf32, #tpu.memory_space<smem>>
    %800 = vector.broadcast %799 : f32 to vector<2x196xf32>
    %801 = arith.mulf %289, %800 : vector<2x196xf32>
    %802 = arith.addf %798, %801 : vector<2x196xf32>
    %c3_383 = arith.constant 3 : index
    %c16_384 = arith.constant 16 : index
    %803 = memref.load %arg4[%c3_383, %c16_384] : memref<6x27xf32, #tpu.memory_space<smem>>
    %804 = vector.broadcast %803 : f32 to vector<2x196xf32>
    %805 = arith.mulf %291, %804 : vector<2x196xf32>
    %806 = arith.addf %802, %805 : vector<2x196xf32>
    %c3_385 = arith.constant 3 : index
    %c17_386 = arith.constant 17 : index
    %807 = memref.load %arg4[%c3_385, %c17_386] : memref<6x27xf32, #tpu.memory_space<smem>>
    %808 = vector.broadcast %807 : f32 to vector<2x196xf32>
    %809 = arith.mulf %295, %808 : vector<2x196xf32>
    %810 = arith.addf %806, %809 : vector<2x196xf32>
    %c3_387 = arith.constant 3 : index
    %c18_388 = arith.constant 18 : index
    %811 = memref.load %arg4[%c3_387, %c18_388] : memref<6x27xf32, #tpu.memory_space<smem>>
    %812 = vector.broadcast %811 : f32 to vector<2x196xf32>
    %813 = arith.mulf %299, %812 : vector<2x196xf32>
    %814 = arith.addf %810, %813 : vector<2x196xf32>
    %c3_389 = arith.constant 3 : index
    %c19_390 = arith.constant 19 : index
    %815 = memref.load %arg4[%c3_389, %c19_390] : memref<6x27xf32, #tpu.memory_space<smem>>
    %816 = vector.broadcast %815 : f32 to vector<2x196xf32>
    %817 = arith.mulf %301, %816 : vector<2x196xf32>
    %818 = arith.addf %814, %817 : vector<2x196xf32>
    %c3_391 = arith.constant 3 : index
    %c20_392 = arith.constant 20 : index
    %819 = memref.load %arg4[%c3_391, %c20_392] : memref<6x27xf32, #tpu.memory_space<smem>>
    %820 = vector.broadcast %819 : f32 to vector<2x196xf32>
    %821 = arith.mulf %305, %820 : vector<2x196xf32>
    %822 = arith.addf %818, %821 : vector<2x196xf32>
    %c3_393 = arith.constant 3 : index
    %c21_394 = arith.constant 21 : index
    %823 = memref.load %arg4[%c3_393, %c21_394] : memref<6x27xf32, #tpu.memory_space<smem>>
    %824 = vector.broadcast %823 : f32 to vector<2x196xf32>
    %825 = arith.mulf %309, %824 : vector<2x196xf32>
    %826 = arith.addf %822, %825 : vector<2x196xf32>
    %c3_395 = arith.constant 3 : index
    %c22_396 = arith.constant 22 : index
    %827 = memref.load %arg4[%c3_395, %c22_396] : memref<6x27xf32, #tpu.memory_space<smem>>
    %828 = vector.broadcast %827 : f32 to vector<2x196xf32>
    %829 = arith.mulf %311, %828 : vector<2x196xf32>
    %830 = arith.addf %826, %829 : vector<2x196xf32>
    %c3_397 = arith.constant 3 : index
    %c23_398 = arith.constant 23 : index
    %831 = memref.load %arg4[%c3_397, %c23_398] : memref<6x27xf32, #tpu.memory_space<smem>>
    %832 = vector.broadcast %831 : f32 to vector<2x196xf32>
    %833 = arith.mulf %315, %832 : vector<2x196xf32>
    %834 = arith.addf %830, %833 : vector<2x196xf32>
    %c3_399 = arith.constant 3 : index
    %c24_400 = arith.constant 24 : index
    %835 = memref.load %arg4[%c3_399, %c24_400] : memref<6x27xf32, #tpu.memory_space<smem>>
    %836 = vector.broadcast %835 : f32 to vector<2x196xf32>
    %837 = arith.mulf %319, %836 : vector<2x196xf32>
    %838 = arith.addf %834, %837 : vector<2x196xf32>
    %c3_401 = arith.constant 3 : index
    %c25_402 = arith.constant 25 : index
    %839 = memref.load %arg4[%c3_401, %c25_402] : memref<6x27xf32, #tpu.memory_space<smem>>
    %840 = vector.broadcast %839 : f32 to vector<2x196xf32>
    %841 = arith.mulf %321, %840 : vector<2x196xf32>
    %842 = arith.addf %838, %841 : vector<2x196xf32>
    %c3_403 = arith.constant 3 : index
    %c26_404 = arith.constant 26 : index
    %843 = memref.load %arg4[%c3_403, %c26_404] : memref<6x27xf32, #tpu.memory_space<smem>>
    %844 = vector.broadcast %843 : f32 to vector<2x196xf32>
    %845 = arith.mulf %325, %844 : vector<2x196xf32>
    %846 = arith.addf %842, %845 : vector<2x196xf32>
    %c3_405 = arith.constant 3 : index
    %847 = memref.load %arg5[%c3_405] : memref<6xf32, #tpu.memory_space<smem>>
    %c3_406 = arith.constant 3 : index
    %848 = memref.load %arg6[%c3_406] : memref<6xf32, #tpu.memory_space<smem>>
    %849 = vector.shape_cast %846 : vector<2x196xf32> to vector<1x2x196xf32>
    %cst_407 = arith.constant dense<0.000000e+00> : vector<1xf32>
    %850 = vector.multi_reduction <add>, %849, %cst_407 [1, 2] : vector<1x2x196xf32> to vector<1xf32>
    %851 = vector.shape_cast %850 : vector<1xf32> to vector<1x1x1xf32>
    %852 = vector.extract %851[0, 0, 0] : f32 from vector<1x1x1xf32>
    %cst_408 = arith.constant 3.920000e+02 : f32
    %853 = arith.divf %852, %cst_408 : f32
    %854 = vector.broadcast %853 : f32 to vector<2x196xf32>
    %855 = arith.subf %846, %854 : vector<2x196xf32>
    %856 = vector.broadcast %853 : f32 to vector<2x196xf32>
    %857 = arith.subf %846, %856 : vector<2x196xf32>
    %858 = arith.mulf %855, %857 : vector<2x196xf32>
    %859 = vector.shape_cast %858 : vector<2x196xf32> to vector<1x2x196xf32>
    %cst_409 = arith.constant dense<0.000000e+00> : vector<1xf32>
    %860 = vector.multi_reduction <add>, %859, %cst_409 [1, 2] : vector<1x2x196xf32> to vector<1xf32>
    %861 = vector.shape_cast %860 : vector<1xf32> to vector<1x1x1xf32>
    %862 = vector.extract %861[0, 0, 0] : f32 from vector<1x1x1xf32>
    %cst_410 = arith.constant 3.920000e+02 : f32
    %863 = arith.divf %862, %cst_410 : f32
    %864 = vector.broadcast %853 : f32 to vector<2x196xf32>
    %865 = arith.subf %846, %864 : vector<2x196xf32>
    %cst_411 = arith.constant 9.99999974E-6 : f32
    %866 = arith.addf %863, %cst_411 : f32
    %867 = math.rsqrt %866 : f32
    %868 = vector.broadcast %867 : f32 to vector<2x196xf32>
    %869 = arith.mulf %865, %868 : vector<2x196xf32>
    %870 = vector.broadcast %847 : f32 to vector<2x196xf32>
    %871 = arith.mulf %869, %870 : vector<2x196xf32>
    %872 = vector.broadcast %848 : f32 to vector<2x196xf32>
    %873 = arith.addf %871, %872 : vector<2x196xf32>
    %cst_412 = arith.constant 0.000000e+00 : f32
    %874 = vector.broadcast %cst_412 : f32 to vector<2x196xf32>
    %875 = arith.maximumf %873, %874 : vector<2x196xf32>
    %876 = arith.truncf %875 : vector<2x196xf32> to vector<2x196xbf16>
    %cst_413 = arith.constant dense<0.000000e+00> : vector<2x49xf32>
    %877 = tpu.matmul %876, %5, %cst_413 {dimension_numbers = #tpu.dot_dimension_numbers<[1], [0], [0], [1], [0, 0, 1, 1], [], []>} : vector<2x196xbf16>, vector<196x49xbf16>, vector<2x49xf32> -> vector<2x49xf32>
    %c4_414 = arith.constant 4 : index
    %c0_415 = arith.constant 0 : index
    %878 = memref.load %arg4[%c4_414, %c0_415] : memref<6x27xf32, #tpu.memory_space<smem>>
    %879 = vector.broadcast %878 : f32 to vector<2x196xf32>
    %880 = arith.mulf %239, %879 : vector<2x196xf32>
    %c4_416 = arith.constant 4 : index
    %c1_417 = arith.constant 1 : index
    %881 = memref.load %arg4[%c4_416, %c1_417] : memref<6x27xf32, #tpu.memory_space<smem>>
    %882 = vector.broadcast %881 : f32 to vector<2x196xf32>
    %883 = arith.mulf %241, %882 : vector<2x196xf32>
    %884 = arith.addf %880, %883 : vector<2x196xf32>
    %c4_418 = arith.constant 4 : index
    %c2_419 = arith.constant 2 : index
    %885 = memref.load %arg4[%c4_418, %c2_419] : memref<6x27xf32, #tpu.memory_space<smem>>
    %886 = vector.broadcast %885 : f32 to vector<2x196xf32>
    %887 = arith.mulf %245, %886 : vector<2x196xf32>
    %888 = arith.addf %884, %887 : vector<2x196xf32>
    %c4_420 = arith.constant 4 : index
    %c3_421 = arith.constant 3 : index
    %889 = memref.load %arg4[%c4_420, %c3_421] : memref<6x27xf32, #tpu.memory_space<smem>>
    %890 = vector.broadcast %889 : f32 to vector<2x196xf32>
    %891 = arith.mulf %249, %890 : vector<2x196xf32>
    %892 = arith.addf %888, %891 : vector<2x196xf32>
    %c4_422 = arith.constant 4 : index
    %c4_423 = arith.constant 4 : index
    %893 = memref.load %arg4[%c4_422, %c4_423] : memref<6x27xf32, #tpu.memory_space<smem>>
    %894 = vector.broadcast %893 : f32 to vector<2x196xf32>
    %895 = arith.mulf %251, %894 : vector<2x196xf32>
    %896 = arith.addf %892, %895 : vector<2x196xf32>
    %c4_424 = arith.constant 4 : index
    %c5_425 = arith.constant 5 : index
    %897 = memref.load %arg4[%c4_424, %c5_425] : memref<6x27xf32, #tpu.memory_space<smem>>
    %898 = vector.broadcast %897 : f32 to vector<2x196xf32>
    %899 = arith.mulf %255, %898 : vector<2x196xf32>
    %900 = arith.addf %896, %899 : vector<2x196xf32>
    %c4_426 = arith.constant 4 : index
    %c6_427 = arith.constant 6 : index
    %901 = memref.load %arg4[%c4_426, %c6_427] : memref<6x27xf32, #tpu.memory_space<smem>>
    %902 = vector.broadcast %901 : f32 to vector<2x196xf32>
    %903 = arith.mulf %259, %902 : vector<2x196xf32>
    %904 = arith.addf %900, %903 : vector<2x196xf32>
    %c4_428 = arith.constant 4 : index
    %c7_429 = arith.constant 7 : index
    %905 = memref.load %arg4[%c4_428, %c7_429] : memref<6x27xf32, #tpu.memory_space<smem>>
    %906 = vector.broadcast %905 : f32 to vector<2x196xf32>
    %907 = arith.mulf %261, %906 : vector<2x196xf32>
    %908 = arith.addf %904, %907 : vector<2x196xf32>
    %c4_430 = arith.constant 4 : index
    %c8_431 = arith.constant 8 : index
    %909 = memref.load %arg4[%c4_430, %c8_431] : memref<6x27xf32, #tpu.memory_space<smem>>
    %910 = vector.broadcast %909 : f32 to vector<2x196xf32>
    %911 = arith.mulf %265, %910 : vector<2x196xf32>
    %912 = arith.addf %908, %911 : vector<2x196xf32>
    %c4_432 = arith.constant 4 : index
    %c9_433 = arith.constant 9 : index
    %913 = memref.load %arg4[%c4_432, %c9_433] : memref<6x27xf32, #tpu.memory_space<smem>>
    %914 = vector.broadcast %913 : f32 to vector<2x196xf32>
    %915 = arith.mulf %269, %914 : vector<2x196xf32>
    %916 = arith.addf %912, %915 : vector<2x196xf32>
    %c4_434 = arith.constant 4 : index
    %c10_435 = arith.constant 10 : index
    %917 = memref.load %arg4[%c4_434, %c10_435] : memref<6x27xf32, #tpu.memory_space<smem>>
    %918 = vector.broadcast %917 : f32 to vector<2x196xf32>
    %919 = arith.mulf %271, %918 : vector<2x196xf32>
    %920 = arith.addf %916, %919 : vector<2x196xf32>
    %c4_436 = arith.constant 4 : index
    %c11_437 = arith.constant 11 : index
    %921 = memref.load %arg4[%c4_436, %c11_437] : memref<6x27xf32, #tpu.memory_space<smem>>
    %922 = vector.broadcast %921 : f32 to vector<2x196xf32>
    %923 = arith.mulf %275, %922 : vector<2x196xf32>
    %924 = arith.addf %920, %923 : vector<2x196xf32>
    %c4_438 = arith.constant 4 : index
    %c12_439 = arith.constant 12 : index
    %925 = memref.load %arg4[%c4_438, %c12_439] : memref<6x27xf32, #tpu.memory_space<smem>>
    %926 = vector.broadcast %925 : f32 to vector<2x196xf32>
    %927 = arith.mulf %279, %926 : vector<2x196xf32>
    %928 = arith.addf %924, %927 : vector<2x196xf32>
    %c4_440 = arith.constant 4 : index
    %c13_441 = arith.constant 13 : index
    %929 = memref.load %arg4[%c4_440, %c13_441] : memref<6x27xf32, #tpu.memory_space<smem>>
    %930 = vector.broadcast %929 : f32 to vector<2x196xf32>
    %931 = arith.mulf %281, %930 : vector<2x196xf32>
    %932 = arith.addf %928, %931 : vector<2x196xf32>
    %c4_442 = arith.constant 4 : index
    %c14_443 = arith.constant 14 : index
    %933 = memref.load %arg4[%c4_442, %c14_443] : memref<6x27xf32, #tpu.memory_space<smem>>
    %934 = vector.broadcast %933 : f32 to vector<2x196xf32>
    %935 = arith.mulf %285, %934 : vector<2x196xf32>
    %936 = arith.addf %932, %935 : vector<2x196xf32>
    %c4_444 = arith.constant 4 : index
    %c15_445 = arith.constant 15 : index
    %937 = memref.load %arg4[%c4_444, %c15_445] : memref<6x27xf32, #tpu.memory_space<smem>>
    %938 = vector.broadcast %937 : f32 to vector<2x196xf32>
    %939 = arith.mulf %289, %938 : vector<2x196xf32>
    %940 = arith.addf %936, %939 : vector<2x196xf32>
    %c4_446 = arith.constant 4 : index
    %c16_447 = arith.constant 16 : index
    %941 = memref.load %arg4[%c4_446, %c16_447] : memref<6x27xf32, #tpu.memory_space<smem>>
    %942 = vector.broadcast %941 : f32 to vector<2x196xf32>
    %943 = arith.mulf %291, %942 : vector<2x196xf32>
    %944 = arith.addf %940, %943 : vector<2x196xf32>
    %c4_448 = arith.constant 4 : index
    %c17_449 = arith.constant 17 : index
    %945 = memref.load %arg4[%c4_448, %c17_449] : memref<6x27xf32, #tpu.memory_space<smem>>
    %946 = vector.broadcast %945 : f32 to vector<2x196xf32>
    %947 = arith.mulf %295, %946 : vector<2x196xf32>
    %948 = arith.addf %944, %947 : vector<2x196xf32>
    %c4_450 = arith.constant 4 : index
    %c18_451 = arith.constant 18 : index
    %949 = memref.load %arg4[%c4_450, %c18_451] : memref<6x27xf32, #tpu.memory_space<smem>>
    %950 = vector.broadcast %949 : f32 to vector<2x196xf32>
    %951 = arith.mulf %299, %950 : vector<2x196xf32>
    %952 = arith.addf %948, %951 : vector<2x196xf32>
    %c4_452 = arith.constant 4 : index
    %c19_453 = arith.constant 19 : index
    %953 = memref.load %arg4[%c4_452, %c19_453] : memref<6x27xf32, #tpu.memory_space<smem>>
    %954 = vector.broadcast %953 : f32 to vector<2x196xf32>
    %955 = arith.mulf %301, %954 : vector<2x196xf32>
    %956 = arith.addf %952, %955 : vector<2x196xf32>
    %c4_454 = arith.constant 4 : index
    %c20_455 = arith.constant 20 : index
    %957 = memref.load %arg4[%c4_454, %c20_455] : memref<6x27xf32, #tpu.memory_space<smem>>
    %958 = vector.broadcast %957 : f32 to vector<2x196xf32>
    %959 = arith.mulf %305, %958 : vector<2x196xf32>
    %960 = arith.addf %956, %959 : vector<2x196xf32>
    %c4_456 = arith.constant 4 : index
    %c21_457 = arith.constant 21 : index
    %961 = memref.load %arg4[%c4_456, %c21_457] : memref<6x27xf32, #tpu.memory_space<smem>>
    %962 = vector.broadcast %961 : f32 to vector<2x196xf32>
    %963 = arith.mulf %309, %962 : vector<2x196xf32>
    %964 = arith.addf %960, %963 : vector<2x196xf32>
    %c4_458 = arith.constant 4 : index
    %c22_459 = arith.constant 22 : index
    %965 = memref.load %arg4[%c4_458, %c22_459] : memref<6x27xf32, #tpu.memory_space<smem>>
    %966 = vector.broadcast %965 : f32 to vector<2x196xf32>
    %967 = arith.mulf %311, %966 : vector<2x196xf32>
    %968 = arith.addf %964, %967 : vector<2x196xf32>
    %c4_460 = arith.constant 4 : index
    %c23_461 = arith.constant 23 : index
    %969 = memref.load %arg4[%c4_460, %c23_461] : memref<6x27xf32, #tpu.memory_space<smem>>
    %970 = vector.broadcast %969 : f32 to vector<2x196xf32>
    %971 = arith.mulf %315, %970 : vector<2x196xf32>
    %972 = arith.addf %968, %971 : vector<2x196xf32>
    %c4_462 = arith.constant 4 : index
    %c24_463 = arith.constant 24 : index
    %973 = memref.load %arg4[%c4_462, %c24_463] : memref<6x27xf32, #tpu.memory_space<smem>>
    %974 = vector.broadcast %973 : f32 to vector<2x196xf32>
    %975 = arith.mulf %319, %974 : vector<2x196xf32>
    %976 = arith.addf %972, %975 : vector<2x196xf32>
    %c4_464 = arith.constant 4 : index
    %c25_465 = arith.constant 25 : index
    %977 = memref.load %arg4[%c4_464, %c25_465] : memref<6x27xf32, #tpu.memory_space<smem>>
    %978 = vector.broadcast %977 : f32 to vector<2x196xf32>
    %979 = arith.mulf %321, %978 : vector<2x196xf32>
    %980 = arith.addf %976, %979 : vector<2x196xf32>
    %c4_466 = arith.constant 4 : index
    %c26_467 = arith.constant 26 : index
    %981 = memref.load %arg4[%c4_466, %c26_467] : memref<6x27xf32, #tpu.memory_space<smem>>
    %982 = vector.broadcast %981 : f32 to vector<2x196xf32>
    %983 = arith.mulf %325, %982 : vector<2x196xf32>
    %984 = arith.addf %980, %983 : vector<2x196xf32>
    %c4_468 = arith.constant 4 : index
    %985 = memref.load %arg5[%c4_468] : memref<6xf32, #tpu.memory_space<smem>>
    %c4_469 = arith.constant 4 : index
    %986 = memref.load %arg6[%c4_469] : memref<6xf32, #tpu.memory_space<smem>>
    %987 = vector.shape_cast %984 : vector<2x196xf32> to vector<1x2x196xf32>
    %cst_470 = arith.constant dense<0.000000e+00> : vector<1xf32>
    %988 = vector.multi_reduction <add>, %987, %cst_470 [1, 2] : vector<1x2x196xf32> to vector<1xf32>
    %989 = vector.shape_cast %988 : vector<1xf32> to vector<1x1x1xf32>
    %990 = vector.extract %989[0, 0, 0] : f32 from vector<1x1x1xf32>
    %cst_471 = arith.constant 3.920000e+02 : f32
    %991 = arith.divf %990, %cst_471 : f32
    %992 = vector.broadcast %991 : f32 to vector<2x196xf32>
    %993 = arith.subf %984, %992 : vector<2x196xf32>
    %994 = vector.broadcast %991 : f32 to vector<2x196xf32>
    %995 = arith.subf %984, %994 : vector<2x196xf32>
    %996 = arith.mulf %993, %995 : vector<2x196xf32>
    %997 = vector.shape_cast %996 : vector<2x196xf32> to vector<1x2x196xf32>
    %cst_472 = arith.constant dense<0.000000e+00> : vector<1xf32>
    %998 = vector.multi_reduction <add>, %997, %cst_472 [1, 2] : vector<1x2x196xf32> to vector<1xf32>
    %999 = vector.shape_cast %998 : vector<1xf32> to vector<1x1x1xf32>
    %1000 = vector.extract %999[0, 0, 0] : f32 from vector<1x1x1xf32>
    %cst_473 = arith.constant 3.920000e+02 : f32
    %1001 = arith.divf %1000, %cst_473 : f32
    %1002 = vector.broadcast %991 : f32 to vector<2x196xf32>
    %1003 = arith.subf %984, %1002 : vector<2x196xf32>
    %cst_474 = arith.constant 9.99999974E-6 : f32
    %1004 = arith.addf %1001, %cst_474 : f32
    %1005 = math.rsqrt %1004 : f32
    %1006 = vector.broadcast %1005 : f32 to vector<2x196xf32>
    %1007 = arith.mulf %1003, %1006 : vector<2x196xf32>
    %1008 = vector.broadcast %985 : f32 to vector<2x196xf32>
    %1009 = arith.mulf %1007, %1008 : vector<2x196xf32>
    %1010 = vector.broadcast %986 : f32 to vector<2x196xf32>
    %1011 = arith.addf %1009, %1010 : vector<2x196xf32>
    %cst_475 = arith.constant 0.000000e+00 : f32
    %1012 = vector.broadcast %cst_475 : f32 to vector<2x196xf32>
    %1013 = arith.maximumf %1011, %1012 : vector<2x196xf32>
    %1014 = arith.truncf %1013 : vector<2x196xf32> to vector<2x196xbf16>
    %cst_476 = arith.constant dense<0.000000e+00> : vector<2x49xf32>
    %1015 = tpu.matmul %1014, %5, %cst_476 {dimension_numbers = #tpu.dot_dimension_numbers<[1], [0], [0], [1], [0, 0, 1, 1], [], []>} : vector<2x196xbf16>, vector<196x49xbf16>, vector<2x49xf32> -> vector<2x49xf32>
    %c5_477 = arith.constant 5 : index
    %c0_478 = arith.constant 0 : index
    %1016 = memref.load %arg4[%c5_477, %c0_478] : memref<6x27xf32, #tpu.memory_space<smem>>
    %1017 = vector.broadcast %1016 : f32 to vector<2x196xf32>
    %1018 = arith.mulf %239, %1017 : vector<2x196xf32>
    %c5_479 = arith.constant 5 : index
    %c1_480 = arith.constant 1 : index
    %1019 = memref.load %arg4[%c5_479, %c1_480] : memref<6x27xf32, #tpu.memory_space<smem>>
    %1020 = vector.broadcast %1019 : f32 to vector<2x196xf32>
    %1021 = arith.mulf %241, %1020 : vector<2x196xf32>
    %1022 = arith.addf %1018, %1021 : vector<2x196xf32>
    %c5_481 = arith.constant 5 : index
    %c2_482 = arith.constant 2 : index
    %1023 = memref.load %arg4[%c5_481, %c2_482] : memref<6x27xf32, #tpu.memory_space<smem>>
    %1024 = vector.broadcast %1023 : f32 to vector<2x196xf32>
    %1025 = arith.mulf %245, %1024 : vector<2x196xf32>
    %1026 = arith.addf %1022, %1025 : vector<2x196xf32>
    %c5_483 = arith.constant 5 : index
    %c3_484 = arith.constant 3 : index
    %1027 = memref.load %arg4[%c5_483, %c3_484] : memref<6x27xf32, #tpu.memory_space<smem>>
    %1028 = vector.broadcast %1027 : f32 to vector<2x196xf32>
    %1029 = arith.mulf %249, %1028 : vector<2x196xf32>
    %1030 = arith.addf %1026, %1029 : vector<2x196xf32>
    %c5_485 = arith.constant 5 : index
    %c4_486 = arith.constant 4 : index
    %1031 = memref.load %arg4[%c5_485, %c4_486] : memref<6x27xf32, #tpu.memory_space<smem>>
    %1032 = vector.broadcast %1031 : f32 to vector<2x196xf32>
    %1033 = arith.mulf %251, %1032 : vector<2x196xf32>
    %1034 = arith.addf %1030, %1033 : vector<2x196xf32>
    %c5_487 = arith.constant 5 : index
    %c5_488 = arith.constant 5 : index
    %1035 = memref.load %arg4[%c5_487, %c5_488] : memref<6x27xf32, #tpu.memory_space<smem>>
    %1036 = vector.broadcast %1035 : f32 to vector<2x196xf32>
    %1037 = arith.mulf %255, %1036 : vector<2x196xf32>
    %1038 = arith.addf %1034, %1037 : vector<2x196xf32>
    %c5_489 = arith.constant 5 : index
    %c6_490 = arith.constant 6 : index
    %1039 = memref.load %arg4[%c5_489, %c6_490] : memref<6x27xf32, #tpu.memory_space<smem>>
    %1040 = vector.broadcast %1039 : f32 to vector<2x196xf32>
    %1041 = arith.mulf %259, %1040 : vector<2x196xf32>
    %1042 = arith.addf %1038, %1041 : vector<2x196xf32>
    %c5_491 = arith.constant 5 : index
    %c7_492 = arith.constant 7 : index
    %1043 = memref.load %arg4[%c5_491, %c7_492] : memref<6x27xf32, #tpu.memory_space<smem>>
    %1044 = vector.broadcast %1043 : f32 to vector<2x196xf32>
    %1045 = arith.mulf %261, %1044 : vector<2x196xf32>
    %1046 = arith.addf %1042, %1045 : vector<2x196xf32>
    %c5_493 = arith.constant 5 : index
    %c8_494 = arith.constant 8 : index
    %1047 = memref.load %arg4[%c5_493, %c8_494] : memref<6x27xf32, #tpu.memory_space<smem>>
    %1048 = vector.broadcast %1047 : f32 to vector<2x196xf32>
    %1049 = arith.mulf %265, %1048 : vector<2x196xf32>
    %1050 = arith.addf %1046, %1049 : vector<2x196xf32>
    %c5_495 = arith.constant 5 : index
    %c9_496 = arith.constant 9 : index
    %1051 = memref.load %arg4[%c5_495, %c9_496] : memref<6x27xf32, #tpu.memory_space<smem>>
    %1052 = vector.broadcast %1051 : f32 to vector<2x196xf32>
    %1053 = arith.mulf %269, %1052 : vector<2x196xf32>
    %1054 = arith.addf %1050, %1053 : vector<2x196xf32>
    %c5_497 = arith.constant 5 : index
    %c10_498 = arith.constant 10 : index
    %1055 = memref.load %arg4[%c5_497, %c10_498] : memref<6x27xf32, #tpu.memory_space<smem>>
    %1056 = vector.broadcast %1055 : f32 to vector<2x196xf32>
    %1057 = arith.mulf %271, %1056 : vector<2x196xf32>
    %1058 = arith.addf %1054, %1057 : vector<2x196xf32>
    %c5_499 = arith.constant 5 : index
    %c11_500 = arith.constant 11 : index
    %1059 = memref.load %arg4[%c5_499, %c11_500] : memref<6x27xf32, #tpu.memory_space<smem>>
    %1060 = vector.broadcast %1059 : f32 to vector<2x196xf32>
    %1061 = arith.mulf %275, %1060 : vector<2x196xf32>
    %1062 = arith.addf %1058, %1061 : vector<2x196xf32>
    %c5_501 = arith.constant 5 : index
    %c12_502 = arith.constant 12 : index
    %1063 = memref.load %arg4[%c5_501, %c12_502] : memref<6x27xf32, #tpu.memory_space<smem>>
    %1064 = vector.broadcast %1063 : f32 to vector<2x196xf32>
    %1065 = arith.mulf %279, %1064 : vector<2x196xf32>
    %1066 = arith.addf %1062, %1065 : vector<2x196xf32>
    %c5_503 = arith.constant 5 : index
    %c13_504 = arith.constant 13 : index
    %1067 = memref.load %arg4[%c5_503, %c13_504] : memref<6x27xf32, #tpu.memory_space<smem>>
    %1068 = vector.broadcast %1067 : f32 to vector<2x196xf32>
    %1069 = arith.mulf %281, %1068 : vector<2x196xf32>
    %1070 = arith.addf %1066, %1069 : vector<2x196xf32>
    %c5_505 = arith.constant 5 : index
    %c14_506 = arith.constant 14 : index
    %1071 = memref.load %arg4[%c5_505, %c14_506] : memref<6x27xf32, #tpu.memory_space<smem>>
    %1072 = vector.broadcast %1071 : f32 to vector<2x196xf32>
    %1073 = arith.mulf %285, %1072 : vector<2x196xf32>
    %1074 = arith.addf %1070, %1073 : vector<2x196xf32>
    %c5_507 = arith.constant 5 : index
    %c15_508 = arith.constant 15 : index
    %1075 = memref.load %arg4[%c5_507, %c15_508] : memref<6x27xf32, #tpu.memory_space<smem>>
    %1076 = vector.broadcast %1075 : f32 to vector<2x196xf32>
    %1077 = arith.mulf %289, %1076 : vector<2x196xf32>
    %1078 = arith.addf %1074, %1077 : vector<2x196xf32>
    %c5_509 = arith.constant 5 : index
    %c16_510 = arith.constant 16 : index
    %1079 = memref.load %arg4[%c5_509, %c16_510] : memref<6x27xf32, #tpu.memory_space<smem>>
    %1080 = vector.broadcast %1079 : f32 to vector<2x196xf32>
    %1081 = arith.mulf %291, %1080 : vector<2x196xf32>
    %1082 = arith.addf %1078, %1081 : vector<2x196xf32>
    %c5_511 = arith.constant 5 : index
    %c17_512 = arith.constant 17 : index
    %1083 = memref.load %arg4[%c5_511, %c17_512] : memref<6x27xf32, #tpu.memory_space<smem>>
    %1084 = vector.broadcast %1083 : f32 to vector<2x196xf32>
    %1085 = arith.mulf %295, %1084 : vector<2x196xf32>
    %1086 = arith.addf %1082, %1085 : vector<2x196xf32>
    %c5_513 = arith.constant 5 : index
    %c18_514 = arith.constant 18 : index
    %1087 = memref.load %arg4[%c5_513, %c18_514] : memref<6x27xf32, #tpu.memory_space<smem>>
    %1088 = vector.broadcast %1087 : f32 to vector<2x196xf32>
    %1089 = arith.mulf %299, %1088 : vector<2x196xf32>
    %1090 = arith.addf %1086, %1089 : vector<2x196xf32>
    %c5_515 = arith.constant 5 : index
    %c19_516 = arith.constant 19 : index
    %1091 = memref.load %arg4[%c5_515, %c19_516] : memref<6x27xf32, #tpu.memory_space<smem>>
    %1092 = vector.broadcast %1091 : f32 to vector<2x196xf32>
    %1093 = arith.mulf %301, %1092 : vector<2x196xf32>
    %1094 = arith.addf %1090, %1093 : vector<2x196xf32>
    %c5_517 = arith.constant 5 : index
    %c20_518 = arith.constant 20 : index
    %1095 = memref.load %arg4[%c5_517, %c20_518] : memref<6x27xf32, #tpu.memory_space<smem>>
    %1096 = vector.broadcast %1095 : f32 to vector<2x196xf32>
    %1097 = arith.mulf %305, %1096 : vector<2x196xf32>
    %1098 = arith.addf %1094, %1097 : vector<2x196xf32>
    %c5_519 = arith.constant 5 : index
    %c21_520 = arith.constant 21 : index
    %1099 = memref.load %arg4[%c5_519, %c21_520] : memref<6x27xf32, #tpu.memory_space<smem>>
    %1100 = vector.broadcast %1099 : f32 to vector<2x196xf32>
    %1101 = arith.mulf %309, %1100 : vector<2x196xf32>
    %1102 = arith.addf %1098, %1101 : vector<2x196xf32>
    %c5_521 = arith.constant 5 : index
    %c22_522 = arith.constant 22 : index
    %1103 = memref.load %arg4[%c5_521, %c22_522] : memref<6x27xf32, #tpu.memory_space<smem>>
    %1104 = vector.broadcast %1103 : f32 to vector<2x196xf32>
    %1105 = arith.mulf %311, %1104 : vector<2x196xf32>
    %1106 = arith.addf %1102, %1105 : vector<2x196xf32>
    %c5_523 = arith.constant 5 : index
    %c23_524 = arith.constant 23 : index
    %1107 = memref.load %arg4[%c5_523, %c23_524] : memref<6x27xf32, #tpu.memory_space<smem>>
    %1108 = vector.broadcast %1107 : f32 to vector<2x196xf32>
    %1109 = arith.mulf %315, %1108 : vector<2x196xf32>
    %1110 = arith.addf %1106, %1109 : vector<2x196xf32>
    %c5_525 = arith.constant 5 : index
    %c24_526 = arith.constant 24 : index
    %1111 = memref.load %arg4[%c5_525, %c24_526] : memref<6x27xf32, #tpu.memory_space<smem>>
    %1112 = vector.broadcast %1111 : f32 to vector<2x196xf32>
    %1113 = arith.mulf %319, %1112 : vector<2x196xf32>
    %1114 = arith.addf %1110, %1113 : vector<2x196xf32>
    %c5_527 = arith.constant 5 : index
    %c25_528 = arith.constant 25 : index
    %1115 = memref.load %arg4[%c5_527, %c25_528] : memref<6x27xf32, #tpu.memory_space<smem>>
    %1116 = vector.broadcast %1115 : f32 to vector<2x196xf32>
    %1117 = arith.mulf %321, %1116 : vector<2x196xf32>
    %1118 = arith.addf %1114, %1117 : vector<2x196xf32>
    %c5_529 = arith.constant 5 : index
    %c26_530 = arith.constant 26 : index
    %1119 = memref.load %arg4[%c5_529, %c26_530] : memref<6x27xf32, #tpu.memory_space<smem>>
    %1120 = vector.broadcast %1119 : f32 to vector<2x196xf32>
    %1121 = arith.mulf %325, %1120 : vector<2x196xf32>
    %1122 = arith.addf %1118, %1121 : vector<2x196xf32>
    %c5_531 = arith.constant 5 : index
    %1123 = memref.load %arg5[%c5_531] : memref<6xf32, #tpu.memory_space<smem>>
    %c5_532 = arith.constant 5 : index
    %1124 = memref.load %arg6[%c5_532] : memref<6xf32, #tpu.memory_space<smem>>
    %1125 = vector.shape_cast %1122 : vector<2x196xf32> to vector<1x2x196xf32>
    %cst_533 = arith.constant dense<0.000000e+00> : vector<1xf32>
    %1126 = vector.multi_reduction <add>, %1125, %cst_533 [1, 2] : vector<1x2x196xf32> to vector<1xf32>
    %1127 = vector.shape_cast %1126 : vector<1xf32> to vector<1x1x1xf32>
    %1128 = vector.extract %1127[0, 0, 0] : f32 from vector<1x1x1xf32>
    %cst_534 = arith.constant 3.920000e+02 : f32
    %1129 = arith.divf %1128, %cst_534 : f32
    %1130 = vector.broadcast %1129 : f32 to vector<2x196xf32>
    %1131 = arith.subf %1122, %1130 : vector<2x196xf32>
    %1132 = vector.broadcast %1129 : f32 to vector<2x196xf32>
    %1133 = arith.subf %1122, %1132 : vector<2x196xf32>
    %1134 = arith.mulf %1131, %1133 : vector<2x196xf32>
    %1135 = vector.shape_cast %1134 : vector<2x196xf32> to vector<1x2x196xf32>
    %cst_535 = arith.constant dense<0.000000e+00> : vector<1xf32>
    %1136 = vector.multi_reduction <add>, %1135, %cst_535 [1, 2] : vector<1x2x196xf32> to vector<1xf32>
    %1137 = vector.shape_cast %1136 : vector<1xf32> to vector<1x1x1xf32>
    %1138 = vector.extract %1137[0, 0, 0] : f32 from vector<1x1x1xf32>
    %cst_536 = arith.constant 3.920000e+02 : f32
    %1139 = arith.divf %1138, %cst_536 : f32
    %1140 = vector.broadcast %1129 : f32 to vector<2x196xf32>
    %1141 = arith.subf %1122, %1140 : vector<2x196xf32>
    %cst_537 = arith.constant 9.99999974E-6 : f32
    %1142 = arith.addf %1139, %cst_537 : f32
    %1143 = math.rsqrt %1142 : f32
    %1144 = vector.broadcast %1143 : f32 to vector<2x196xf32>
    %1145 = arith.mulf %1141, %1144 : vector<2x196xf32>
    %1146 = vector.broadcast %1123 : f32 to vector<2x196xf32>
    %1147 = arith.mulf %1145, %1146 : vector<2x196xf32>
    %1148 = vector.broadcast %1124 : f32 to vector<2x196xf32>
    %1149 = arith.addf %1147, %1148 : vector<2x196xf32>
    %cst_538 = arith.constant 0.000000e+00 : f32
    %1150 = vector.broadcast %cst_538 : f32 to vector<2x196xf32>
    %1151 = arith.maximumf %1149, %1150 : vector<2x196xf32>
    %1152 = arith.truncf %1151 : vector<2x196xf32> to vector<2x196xbf16>
    %cst_539 = arith.constant dense<0.000000e+00> : vector<2x49xf32>
    %1153 = tpu.matmul %1152, %5, %cst_539 {dimension_numbers = #tpu.dot_dimension_numbers<[1], [0], [0], [1], [0, 0, 1, 1], [], []>} : vector<2x196xbf16>, vector<196x49xbf16>, vector<2x49xf32> -> vector<2x49xf32>
    %c0_540 = arith.constant 0 : index
    %c0_541 = arith.constant 0 : index
    %1154 = vector.load %arg12[%c0_540, %c0_541] : memref<1x100xf32, #tpu.memory_space<vmem>>, vector<1x100xf32>
    %1155 = arith.truncf %463 : vector<2x49xf32> to vector<2x49xbf16>
    %c0_542 = arith.constant 0 : index
    %c0_543 = arith.constant 0 : index
    %c0_544 = arith.constant 0 : index
    %1156 = vector.load %arg11[%c0_542, %c0_543, %c0_544] : memref<6x49x100xbf16, #tpu.memory_space<vmem>>, vector<1x49x100xbf16>
    %1157 = vector.shape_cast %1156 : vector<1x49x100xbf16> to vector<49x100xbf16>
    %cst_545 = arith.constant dense<0.000000e+00> : vector<2x100xf32>
    %1158 = tpu.matmul %1155, %1157, %cst_545 {dimension_numbers = #tpu.dot_dimension_numbers<[1], [0], [0], [1], [0, 0, 1, 1], [], []>} : vector<2x49xbf16>, vector<49x100xbf16>, vector<2x100xf32> -> vector<2x100xf32>
    %1159 = vector.broadcast %1154 : vector<1x100xf32> to vector<2x100xf32>
    %1160 = arith.addf %1159, %1158 : vector<2x100xf32>
    %1161 = arith.truncf %601 : vector<2x49xf32> to vector<2x49xbf16>
    %c1_546 = arith.constant 1 : index
    %c0_547 = arith.constant 0 : index
    %c0_548 = arith.constant 0 : index
    %1162 = vector.load %arg11[%c1_546, %c0_547, %c0_548] : memref<6x49x100xbf16, #tpu.memory_space<vmem>>, vector<1x49x100xbf16>
    %1163 = vector.shape_cast %1162 : vector<1x49x100xbf16> to vector<49x100xbf16>
    %cst_549 = arith.constant dense<0.000000e+00> : vector<2x100xf32>
    %1164 = tpu.matmul %1161, %1163, %cst_549 {dimension_numbers = #tpu.dot_dimension_numbers<[1], [0], [0], [1], [0, 0, 1, 1], [], []>} : vector<2x49xbf16>, vector<49x100xbf16>, vector<2x100xf32> -> vector<2x100xf32>
    %1165 = arith.addf %1160, %1164 : vector<2x100xf32>
    %1166 = arith.truncf %739 : vector<2x49xf32> to vector<2x49xbf16>
    %c2_550 = arith.constant 2 : index
    %c0_551 = arith.constant 0 : index
    %c0_552 = arith.constant 0 : index
    %1167 = vector.load %arg11[%c2_550, %c0_551, %c0_552] : memref<6x49x100xbf16, #tpu.memory_space<vmem>>, vector<1x49x100xbf16>
    %1168 = vector.shape_cast %1167 : vector<1x49x100xbf16> to vector<49x100xbf16>
    %cst_553 = arith.constant dense<0.000000e+00> : vector<2x100xf32>
    %1169 = tpu.matmul %1166, %1168, %cst_553 {dimension_numbers = #tpu.dot_dimension_numbers<[1], [0], [0], [1], [0, 0, 1, 1], [], []>} : vector<2x49xbf16>, vector<49x100xbf16>, vector<2x100xf32> -> vector<2x100xf32>
    %1170 = arith.addf %1165, %1169 : vector<2x100xf32>
    %1171 = arith.truncf %877 : vector<2x49xf32> to vector<2x49xbf16>
    %c3_554 = arith.constant 3 : index
    %c0_555 = arith.constant 0 : index
    %c0_556 = arith.constant 0 : index
    %1172 = vector.load %arg11[%c3_554, %c0_555, %c0_556] : memref<6x49x100xbf16, #tpu.memory_space<vmem>>, vector<1x49x100xbf16>
    %1173 = vector.shape_cast %1172 : vector<1x49x100xbf16> to vector<49x100xbf16>
    %cst_557 = arith.constant dense<0.000000e+00> : vector<2x100xf32>
    %1174 = tpu.matmul %1171, %1173, %cst_557 {dimension_numbers = #tpu.dot_dimension_numbers<[1], [0], [0], [1], [0, 0, 1, 1], [], []>} : vector<2x49xbf16>, vector<49x100xbf16>, vector<2x100xf32> -> vector<2x100xf32>
    %1175 = arith.addf %1170, %1174 : vector<2x100xf32>
    %1176 = arith.truncf %1015 : vector<2x49xf32> to vector<2x49xbf16>
    %c4_558 = arith.constant 4 : index
    %c0_559 = arith.constant 0 : index
    %c0_560 = arith.constant 0 : index
    %1177 = vector.load %arg11[%c4_558, %c0_559, %c0_560] : memref<6x49x100xbf16, #tpu.memory_space<vmem>>, vector<1x49x100xbf16>
    %1178 = vector.shape_cast %1177 : vector<1x49x100xbf16> to vector<49x100xbf16>
    %cst_561 = arith.constant dense<0.000000e+00> : vector<2x100xf32>
    %1179 = tpu.matmul %1176, %1178, %cst_561 {dimension_numbers = #tpu.dot_dimension_numbers<[1], [0], [0], [1], [0, 0, 1, 1], [], []>} : vector<2x49xbf16>, vector<49x100xbf16>, vector<2x100xf32> -> vector<2x100xf32>
    %1180 = arith.addf %1175, %1179 : vector<2x100xf32>
    %1181 = arith.truncf %1153 : vector<2x49xf32> to vector<2x49xbf16>
    %c5_562 = arith.constant 5 : index
    %c0_563 = arith.constant 0 : index
    %c0_564 = arith.constant 0 : index
    %1182 = vector.load %arg11[%c5_562, %c0_563, %c0_564] : memref<6x49x100xbf16, #tpu.memory_space<vmem>>, vector<1x49x100xbf16>
    %1183 = vector.shape_cast %1182 : vector<1x49x100xbf16> to vector<49x100xbf16>
    %cst_565 = arith.constant dense<0.000000e+00> : vector<2x100xf32>
    %1184 = tpu.matmul %1181, %1183, %cst_565 {dimension_numbers = #tpu.dot_dimension_numbers<[1], [0], [0], [1], [0, 0, 1, 1], [], []>} : vector<2x49xbf16>, vector<49x100xbf16>, vector<2x100xf32> -> vector<2x100xf32>
    %1185 = arith.addf %1180, %1184 : vector<2x100xf32>
    %1186 = arith.truncf %1185 : vector<2x100xf32> to vector<2x100xbf16>
    %c0_566 = arith.constant 0 : index
    %c0_567 = arith.constant 0 : index
    %1187 = vector.load %arg13[%c0_566, %c0_567] : memref<100x10xbf16, #tpu.memory_space<vmem>>, vector<100x10xbf16>
    %cst_568 = arith.constant dense<0.000000e+00> : vector<2x10xf32>
    %1188 = tpu.matmul %1186, %1187, %cst_568 {dimension_numbers = #tpu.dot_dimension_numbers<[1], [0], [0], [1], [0, 0, 1, 1], [], []>} : vector<2x100xbf16>, vector<100x10xbf16>, vector<2x10xf32> -> vector<2x10xf32>
    %c0_569 = arith.constant 0 : index
    %c0_570 = arith.constant 0 : index
    %1189 = vector.load %arg14[%c0_569, %c0_570] : memref<1x10xf32, #tpu.memory_space<vmem>>, vector<1x10xf32>
    %1190 = vector.broadcast %1189 : vector<1x10xf32> to vector<2x10xf32>
    %1191 = arith.addf %1188, %1190 : vector<2x10xf32>
    %cst_571 = arith.constant dense<0xFF800000> : vector<2xf32>
    %1192 = vector.multi_reduction <maximumf>, %1191, %cst_571 [1] : vector<2x10xf32> to vector<2xf32>
    %1193 = vector.shape_cast %1192 : vector<2xf32> to vector<2x1xf32>
    %1194 = vector.broadcast %1193 : vector<2x1xf32> to vector<2x10xf32>
    %1195 = arith.subf %1191, %1194 : vector<2x10xf32>
    %1196 = math.exp %1195 : vector<2x10xf32>
    %cst_572 = arith.constant dense<0.000000e+00> : vector<2xf32>
    %1197 = vector.multi_reduction <add>, %1196, %cst_572 [1] : vector<2x10xf32> to vector<2xf32>
    %1198 = vector.shape_cast %1197 : vector<2xf32> to vector<2x1xf32>
    %1199 = math.log %1198 : vector<2x1xf32>
    %1200 = vector.broadcast %1199 : vector<2x1xf32> to vector<2x10xf32>
    %1201 = arith.subf %1195, %1200 : vector<2x10xf32>
    %c0_573 = arith.constant 0 : index
    %c0_574 = arith.constant 0 : index
    %1202 = vector.load %arg15[%c0_573, %c0_574] : memref<2x10xf32, #tpu.memory_space<vmem>>, vector<2x10xf32>
    tpu.vector_store %arg15[%c0_573, %c0_574], %1201 {strides = array<i32>} : memref<2x10xf32, #tpu.memory_space<vmem>>, vector<2x10xf32>,
    return
  }
}

</mosaic_0001>

<bundles_post_ra>
// kernel: squeeze.1
= control target key start
LH: loop header
LB: loop body
LE: loop exit
PB: predicated region body
PF: predicated region fallthrough
CT: control target
= control target key end

     0   :  { %vm5_vm0 = vcmask 1041409   ;;  %vm21_vm1 = vcmask 31744   ;;  %vm65_vm2 = vcmask 97280   ;;  %vm43_vm3 = vcmask 64512   ;;  %s514_s24 = smov 124   ;;  %s515_s6 = smov 116   ;;  %s822_s0 = inlined_call_operand.vmem [shape: f32[2,28,28], index: 0, kind: input, shape index: {}]   ;;  %s823_s1 = inlined_call_operand.vmem [shape: f32[2,784], index: 1, kind: output, shape index: {}]  }
   0x1   :  { %v415_v0 = vld [vmem:[%s822_s0 + $0x9] sm:$0x1]   ;;  %v423_v6 = vld [vmem:[%s822_s0 + $0x1b] sm:$0x1]   ;;  %v419_v12 = vld [vmem:[%s822_s0 + $0x12] sm:$0x1]  }
   0x2   :  { %v416_v1 = vld [vmem:[%s822_s0 + $0x28] sm:$0x2]   ;;  %v424_v7 = vld [vmem:[%s822_s0 + $0x3a] sm:$0x2]   ;;  %v420_v14 = vld [vmem:[%s822_s0 + $0x31] sm:$0x2]  }
   0x3   :  { %v14_v2 = vsel %vm5_vm0, %v416_v1, %v415_v0  ;;  %v417_v3 = vld [vmem:[%s822_s0 + $0x9] sm:$0x1]   ;;  %v425_v8 = vld [vmem:[%s822_s0 + $0x1b] sm:$0x1]   ;;  %v58_v10 = vsel %vm5_vm0, %v424_v7, %v423_v6  ;;  %v421_v15 = vld [vmem:[%s822_s0 + $0x12] sm:$0x1]   ;;  %v36_v18 = vsel %vm5_vm0, %v420_v14, %v419_v12 }
   0x4   :  { %v418_v4 = vld [vmem:[%s822_s0 + $0x28] sm:$0x2]   ;;  %v426_v11 = vld [vmem:[%s822_s0 + $0x3a] sm:$0x2]   ;;  %v422_v16 = vld [vmem:[%s822_s0 + $0x31] sm:$0x2]  }
   0x5   :  { %v20_v5 = vsel %vm5_vm0, %v418_v4, %v417_v3  ;;  %v64_v13 = vsel %vm5_vm0, %v426_v11, %v425_v8  ;;  %v42_v19 = vsel %vm5_vm0, %v422_v16, %v421_v15  ;;  %vm69_vm4 = vcmask 130048   ;;  %v427_v20 = vld [vmem:[%s822_s0 + $0x4] sm:$0x1]   ;;  %v431_v27 = vld [vmem:[%s822_s0 + $0xd] sm:$0x1]   ;;  %s516_s17 = smov 120  }
   0x6   :  { %v22_v9 = vsel %vm21_vm1, %v20_v5, %v14_v2  ;;  %v66_v17 = vsel %vm65_vm2, %v64_v13, %v58_v10  ;;  %v428_v21 = vld [vmem:[%s822_s0 + $0x23] sm:$0x2]   ;;  %v44_v22 = vsel %vm43_vm3, %v42_v19, %v36_v18  ;;  %vm47_vm5 = vcmask 162816   ;;  %v432_v28 = vld [vmem:[%s822_s0 + $0x2c] sm:$0x2]   ;;  %s517_s28 = smov 112  }
   0x7   :  { %23 = vrot.lane.b32.xlu0 %v22_v9, %s514_s24  ;;  %67 = vrot.lane.b32.xlu1 %v66_v17, %s515_s6  ;;  %v80_v23 = vsel %vm5_vm0, %v428_v21, %v427_v20  ;;  %v429_v24 = vld [vmem:[%s822_s0 + $0x4] sm:$0x1]   ;;  %v433_v29 = vld [vmem:[%s822_s0 + $0xd] sm:$0x1]   ;;  %v101_v31 = vsel %vm5_vm0, %v432_v28, %v431_v27  ;;  %vm25_vm6 = vcmask 195584   ;;  %s518_s4 = smov 108  }
   0x8   :  { %v430_v25 = vld [vmem:[%s822_s0 + $0x23] sm:$0x2]   ;;  %v434_v32 = vld [vmem:[%s822_s0 + $0x2c] sm:$0x2]   ;;  %v435_v33 = vld [vmem:[%s822_s0 + $0x16] sm:$0x1]  }
   0x9   :  { %v86_v26 = vsel %vm5_vm0, %v430_v25, %v429_v24  ;;  %v107_v34 = vsel %vm5_vm0, %v434_v32, %v433_v29  ;;  %v436_v35 = vld [vmem:[%s822_s0 + $0x35] sm:$0x2]   ;;  %v439_v41 = vld [vmem:[%s822_s0 + $0x8] sm:$0x1]   ;;  %v441_v44 = vld [vmem:[%s822_s0 + $0x11] sm:$0x1]  }
   0xa   :  { %v88_v30 = vsel %vm69_vm4, %v86_v26, %v80_v23  ;;  %v437_v36 = vld [vmem:[%s822_s0 + $0x16] sm:$0x1]   ;;  %v109_v38 = vsel %vm47_vm5, %v107_v34, %v101_v31  ;;  %v123_v39 = vsel %vm5_vm0, %v436_v35, %v435_v33  ;;  %v440_v42 = vld [vmem:[%s822_s0 + $0x27] sm:$0x2]   ;;  %v442_v45 = vld [vmem:[%s822_s0 + $0x30] sm:$0x2]  }
   0xb   :  { %45 = vrot.lane.b32.xlu0 %v44_v22, %s516_s17  ;;  %v438_v37 = vld [vmem:[%s822_s0 + $0x35] sm:$0x2]   ;;  %89 = vrot.lane.b32.xlu1 %v88_v30, %s517_s28  ;;  %v145_v46 = vsel %vm5_vm0, %v440_v42, %v439_v41  ;;  %s519_s9 = smov 104   ;;  %v443_v47 = vld [vmem:[%s822_s0 + $0x1a] sm:$0x1]   ;;  %v156_v49 = vsel %vm5_vm0, %v442_v45, %v441_v44  ;;  %s520_s14 = smov 96  }
   0xc   :  { %v129_v40 = vsel %vm5_vm0, %v438_v37, %v437_v36  ;;  %v444_v48 = vld [vmem:[%s822_s0 + $0x39] sm:$0x2]   ;;  %v445_v50 = vld [vmem:[%s822_s0 + $0x3] sm:$0x1]   ;;  %s521_s19 = smov 92   ;;  %s522_s24 = smov 88  }
   0xd   :  { %v131_v43 = vsel %vm25_vm6, %v129_v40, %v123_v39  ;;  %v446_v51 = vld [vmem:[%s822_s0 + $0x22] sm:$0x2]   ;;  %v167_v52 = vsel %vm5_vm0, %v444_v48, %v443_v47  ;;  %v447_v53 = vld [vmem:[%s822_s0 + $0xc] sm:$0x1]   ;;  %v449_v56 = vld [vmem:[%s822_s0 + $0x15] sm:$0x1]  }
   0xe   :  { %v448_v54 = vld [vmem:[%s822_s0 + $0x2b] sm:$0x2]   ;;  %v178_v55 = vsel %vm5_vm0, %v446_v51, %v445_v50  ;;  %v450_v57 = vld [vmem:[%s822_s0 + $0x34] sm:$0x2]   ;;  %s523_s29 = smov 84   ;;  %s524_s5 = smov 80  }
   0xf   :  { %110 = vrot.lane.b32.xlu0 %v109_v38, %s518_s4  ;;  %132 = vrot.lane.b32.xlu1 %v131_v43, %s519_s9  ;;  %v188_v58 = vsel %vm5_vm0, %v448_v54, %v447_v53  ;;  %v451_v59 = vld [vmem:[%s822_s0 + $0x7] sm:$0x1]   ;;  %v199_v61 = vsel %vm5_vm0, %v450_v57, %v449_v56  ;;  %v453_v62 = vld [vmem:[%s822_s0 + $0x10] sm:$0x1]   ;;  %s525_s10 = smov 76   ;;  %s526_s17 = smov 68  }
  0x10   :  { %v452_v60 = vld [vmem:[%s822_s0 + $0x26] sm:$0x2]   ;;  %v454_v63 = vld [vmem:[%s822_s0 + $0x2f] sm:$0x2]   ;;  %v455_v1 = vld [vmem:[%s822_s0 + $0x19] sm:$0x1]  }
  0x11   :  { %v210_v0 = vsel %vm5_vm0, %v452_v60, %v451_v59  ;;  %v456_v2 = vld [vmem:[%s822_s0 + $0x38] sm:$0x2]   ;;  %v221_v3 = vsel %vm5_vm0, %v454_v63, %v453_v62  ;;  %v457_v4 = vld [vmem:[%s822_s0 + $0x2] sm:$0x1]   ;;  %vm7_vm7 = vcmask 228352   ;;  %s531_s15 = smov 48  }
  0x12   :  { %v458_v5 = vld [vmem:[%s822_s0 + $0x21] sm:$0x2]   ;;  %v2_v6 = vld [vmem:[%s822_s0] sm:$0x1]   ;;  %v232_v7 = vsel %vm5_vm0, %v456_v2, %v455_v1  ;;  %v459_v9 = vld [vmem:[%s822_s0 + $0xb] sm:$0x1]  }
  0x13   :  { %146 = vrot.lane.b32.xlu0 %v145_v46, %s520_s14  ;;  %157 = vrot.lane.b32.xlu1 %v156_v49, %s521_s19  ;;  %v414_v8 = vld [vmem:[%s822_s0 + $0x1f] sm:$0x2]   ;;  %v460_v10 = vld [vmem:[%s822_s0 + $0x2a] sm:$0x2]   ;;  %v243_v12 = vsel %vm5_vm0, %v458_v5, %v457_v4  ;;  %s532_s20 = smov 40   ;;  %s533_s25 = smov 36  }
  0x14   :  { %v6_v11 = vsel %vm5_vm0, %v414_v8, %v2_v6  ;;  %v461_v13 = vld [vmem:[%s822_s0 + $0x14] sm:$0x1]   ;;  %v253_v15 = vsel %vm5_vm0, %v460_v10, %v459_v9  ;;  %v463_v16 = vld [vmem:[%s822_s0 + $0x6] sm:$0x1]   ;;  %v465_v19 = vld [vmem:[%s822_s0 + $0xf] sm:$0x1]  }
  0x15   :  { %8 = vst.msk [vmem:[#allocation0] sm:$0x3] %vm7_vm7, %v6_v11   ;;  %v462_v14 = vld [vmem:[%s822_s0 + $0x33] sm:$0x2]   ;;  %v464_v17 = vld [vmem:[%s822_s0 + $0x25] sm:$0x2]  }
  0x16   :  { %v264_v18 = vsel %vm5_vm0, %v462_v14, %v461_v13  ;;  %v466_v20 = vld [vmem:[%s822_s0 + $0x2e] sm:$0x2]   ;;  %v275_v21 = vsel %vm5_vm0, %v464_v17, %v463_v16  ;;  %v467_v22 = vld [vmem:[%s822_s0 + $0x18] sm:$0x1]   ;;  %v469_v25 = vld [vmem:[%s822_s0 + $0x1] sm:$0x1]  }
  0x17   :  { %168 = vrot.lane.b32.xlu0 %v167_v52, %s522_s24  ;;  %179 = vrot.lane.b32.xlu1 %v178_v55, %s523_s29  ;;  %s527_s24 = smov 64   ;;  %s528_s29 = smov 60   ;;  %v468_v23 = vld [vmem:[%s822_s0 + $0x37] sm:$0x2]   ;;  %v286_v24 = vsel %vm5_vm0, %v466_v20, %v465_v19  ;;  %v470_v26 = vld [vmem:[%s822_s0 + $0x20] sm:$0x2]  }
  0x18   :  { %v297_v27 = vsel %vm5_vm0, %v468_v23, %v467_v22  ;;  %v471_v28 = vld [vmem:[%s822_s0 + $0xa] sm:$0x1]   ;;  %v308_v30 = vsel %vm5_vm0, %v470_v26, %v469_v25  ;;  %s534_s30 = smov 32   ;;  %v473_v31 = vld [vmem:[%s822_s0 + $0x13] sm:$0x1]   ;;  %s535_s6 = smov 28  }
  0x19   :  { %v472_v29 = vld [vmem:[%s822_s0 + $0x29] sm:$0x2]   ;;  %v474_v32 = vld [vmem:[%s822_s0 + $0x32] sm:$0x2]   ;;  %v475_v34 = vld [vmem:[%s822_s0 + $0x5] sm:$0x1]  }
  0x1a   :  { %v318_v33 = vsel %vm5_vm0, %v472_v29, %v471_v28  ;;  %v476_v35 = vld [vmem:[%s822_s0 + $0x24] sm:$0x2]   ;;  %v329_v36 = vsel %vm5_vm0, %v474_v32, %v473_v31  ;;  %s536_s11 = smov 24   ;;  %v477_v37 = vld [vmem:[%s822_s0 + $0xe] sm:$0x1]   ;;  %s537_s16 = smov 20  }
  0x1b   :  { %189 = vrot.lane.b32.xlu0 %v188_v58, %s524_s5  ;;  %200 = vrot.lane.b32.xlu1 %v199_v61, %s525_s10  ;;  %s529_s5 = smov 56   ;;  %s530_s10 = smov 52   ;;  %v478_v38 = vld [vmem:[%s822_s0 + $0x2d] sm:$0x2]   ;;  %v340_v39 = vsel %vm5_vm0, %v476_v35, %v475_v34  ;;  %v479_v40 = vld [vmem:[%s822_s0 + $0x17] sm:$0x1]  }
  0x1c   :  { %v480_v41 = vld [vmem:[%s822_s0 + $0x36] sm:$0x2]   ;;  %v351_v42 = vsel %vm5_vm0, %v478_v38, %v477_v37  ;;  %s538_s0 = smov 12   ;;  %s539_s21 = smov 8   ;;  %vm28_vm8 = vcmask 1048544   ;;  %vm72_vm9 = vcmask 1048480  }
  0x1d   :  { %v362_v43 = vsel %vm5_vm0, %v480_v41, %v479_v40  ;;  %s540_s22 = smov 4   ;;  %vm50_vm10 = vcmask 1048512   ;;  %vm94_vm11 = vcmask 1048448   ;;  %vm115_vm12 = vcmask 1048416  }
  0x1e   :  { %vm137_vm13 = vcmask 1048384   ;;  %vm148_vm14 = vcmask 1015552   ;;  %vm159_vm15 = vcmask 982752   ;;  %vm170_vm0 = vcmask 949952  }
  0x1f   :  { %211 = vrot.lane.b32.xlu0 %v210_v0, %s526_s17  ;;  %222 = vrot.lane.b32.xlu1 %v221_v3, %s527_s24  ;;  %vm246_vm7 = vcmask 687552  }
  0x23   :  { %233 = vrot.lane.b32.xlu0 %v232_v7, %s528_s29  ;;  %244 = vrot.lane.b32.xlu1 %v243_v12, %s529_s5 }
  0x27   :  { %254 = vrot.lane.b32.xlu0 %v253_v15, %s530_s10  ;;  %265 = vrot.lane.b32.xlu1 %v264_v18, %s531_s15 }
  0x2b   :  { %276 = vrot.lane.b32.xlu0 %v275_v21, %s532_s20  ;;  %287 = vrot.lane.b32.xlu1 %v286_v24, %s533_s25 }
  0x2f   :  { %298 = vrot.lane.b32.xlu0 %v297_v27, %s534_s30  ;;  %309 = vrot.lane.b32.xlu1 %v308_v30, %s535_s6 }
  0x33   :  { %319 = vrot.lane.b32.xlu0 %v318_v33, %s536_s11  ;;  %330 = vrot.lane.b32.xlu1 %v329_v36, %s537_s16 }
  0x37   :  { %341 = vrot.lane.b32.xlu0 %v340_v39, %s538_s0  ;;  %352 = vrot.lane.b32.xlu1 %v351_v42, %s539_s21 }
  0x3b   :  { %363 = vrot.lane.b32.xlu0 %v362_v43, %s540_s22 }
  0x79   :  { %v24_v44 = vpop.permute.xlu0 %23   ;;  %v68_v45 = vpop.permute.xlu1 %67  }
  0x7a   :  { %27 = vst.msk [vmem:[#allocation0 + $0x10] sm:$0x3] %vm25_vm6, %v24_v44   ;;  %vm235_vm6 = vcmask 720352  }
  0x7b   :  { %30 = vst.msk [vmem:[#allocation0 + $0x8] sm:$0x3] %vm28_vm8, %v24_v44   ;;  %vm256_vm8 = vcmask 654752  }
  0x7c   :  { %71 = vst.msk [vmem:[#allocation0 + $0x30] sm:$0x3] %vm69_vm4, %v68_v45   ;;  %vm213_vm4 = vcmask 785952  }
  0x7d   :  { %74 = vst.msk [vmem:[#allocation0 + $0x28] sm:$0x3] %vm72_vm9, %v68_v45   ;;  %v46_v46 = vpop.permute.xlu0 %45   ;;  %v90_v47 = vpop.permute.xlu1 %89   ;;  %vm267_vm9 = vcmask 621952  }
  0x7e   :  { %49 = vst.msk [vmem:[#allocation0 + $0x20] sm:$0x3] %vm47_vm5, %v46_v46   ;;  %vm224_vm5 = vcmask 753152  }
  0x7f   :  { %52 = vst.msk [vmem:[#allocation0 + $0x18] sm:$0x3] %vm50_vm10, %v46_v46   ;;  %vm278_vm10 = vcmask 556352  }
  0x80   :  { %93 = vst.msk [vmem:[#allocation0 + $0x8] sm:$0x3] %vm65_vm2, %v90_v47   ;;  %vm191_vm2 = vcmask 884352  }
  0x81   :  { %95 = vst.msk [vmem:[#allocation0] sm:$0x3] %vm94_vm11, %v90_v47   ;;  %v111_v48 = vpop.permute.xlu0 %110   ;;  %v133_v50 = vpop.permute.xlu1 %132   ;;  %vm289_vm11 = vcmask 523552  }
  0x82   :  { %114 = vst.msk [vmem:[#allocation0 + $0x18] sm:$0x3] %vm43_vm3, %v111_v48   ;;  %vm202_vm3 = vcmask 851552  }
  0x83   :  { %117 = vst.msk [vmem:[#allocation0 + $0x10] sm:$0x3] %vm115_vm12, %v111_v48   ;;  %v404_v49 = vld [vmem:[#allocation0 + $0x30] sm:$0x3]  ;;  %vm300_vm12 = vcmask 490752  }
  0x84   :  { %486 = vst [vmem:[%s823_s1 + $0xc] sm:$0x3] %v404_v49  ;;  %136 = vst.msk [vmem:[#allocation0 + $0x28] sm:$0x3] %vm21_vm1, %v133_v50   ;;  %vm181_vm1 = vcmask 917152  }
  0x85   :  { %139 = vst.msk [vmem:[#allocation0 + $0x20] sm:$0x3] %vm137_vm13, %v133_v50   ;;  %v147_v51 = vpop.permute.xlu0 %146   ;;  %v158_v52 = vpop.permute.xlu1 %157   ;;  %vm311_vm13 = vcmask 457952  }
  0x86   :  { %150 = vst.msk [vmem:[#allocation0 + $0x8] sm:$0x3] %vm148_vm14, %v147_v51   ;;  %vm321_vm14 = vcmask 425152  }
  0x87   :  { %161 = vst.msk [vmem:[#allocation0 + $0x18] sm:$0x3] %vm159_vm15, %v158_v52   ;;  %vm332_vm15 = vcmask 392352  }
  0x89   :  { %v169_v53 = vpop.permute.xlu0 %168   ;;  %v180_v54 = vpop.permute.xlu1 %179  }
  0x8a   :  { %172 = vst.msk [vmem:[#allocation0 + $0x28] sm:$0x3] %vm170_vm0, %v169_v53   ;;  %vm343_vm0 = vcmask 326752  }
  0x8b   :  { %182 = vst.msk [vmem:[#allocation0] sm:$0x3] %vm181_vm1, %v180_v54   ;;  %vm354_vm1 = vcmask 293952  }
  0x8d   :  { %v190_v55 = vpop.permute.xlu0 %189   ;;  %v201_v56 = vpop.permute.xlu1 %200  }
  0x8e   :  { %193 = vst.msk [vmem:[#allocation0 + $0x10] sm:$0x3] %vm191_vm2, %v190_v55   ;;  %vm365_vm2 = vcmask 261152  }
  0x8f   :  { %204 = vst.msk [vmem:[#allocation0 + $0x20] sm:$0x3] %vm202_vm3, %v201_v56  }
  0x91   :  { %v212_v57 = vpop.permute.xlu0 %211   ;;  %v223_v58 = vpop.permute.xlu1 %222  }
  0x92   :  { %215 = vst.msk [vmem:[#allocation0 + $0x8] sm:$0x3] %vm213_vm4, %v212_v57  }
  0x93   :  { %226 = vst.msk [vmem:[#allocation0 + $0x18] sm:$0x3] %vm224_vm5, %v223_v58  }
  0x95   :  { %v234_v59 = vpop.permute.xlu0 %233   ;;  %v245_v60 = vpop.permute.xlu1 %244  }
  0x96   :  { %237 = vst.msk [vmem:[#allocation0 + $0x28] sm:$0x3] %vm235_vm6, %v234_v59  }
  0x97   :  { %247 = vst.msk [vmem:[#allocation0] sm:$0x3] %vm246_vm7, %v245_v60  }
  0x99   :  { %v255_v61 = vpop.permute.xlu0 %254   ;;  %v266_v62 = vpop.permute.xlu1 %265  }
  0x9a   :  { %258 = vst.msk [vmem:[#allocation0 + $0x10] sm:$0x3] %vm256_vm8, %v255_v61  }
  0x9b   :  { %269 = vst.msk [vmem:[#allocation0 + $0x20] sm:$0x3] %vm267_vm9, %v266_v62  }
  0x9d   :  { %v277_v63 = vpop.permute.xlu0 %276   ;;  %v288_v0 = vpop.permute.xlu1 %287  }
  0x9e   :  { %280 = vst.msk [vmem:[#allocation0 + $0x8] sm:$0x3] %vm278_vm10, %v277_v63  }
  0x9f   :  { %291 = vst.msk [vmem:[#allocation0 + $0x18] sm:$0x3] %vm289_vm11, %v288_v0  }
  0xa1   :  { %v299_v1 = vpop.permute.xlu0 %298   ;;  %v310_v2 = vpop.permute.xlu1 %309  }
  0xa2   :  { %302 = vst.msk [vmem:[#allocation0 + $0x28] sm:$0x3] %vm300_vm12, %v299_v1  }
  0xa3   :  { %312 = vst.msk [vmem:[#allocation0] sm:$0x3] %vm311_vm13, %v310_v2  }
  0xa5   :  { %v320_v3 = vpop.permute.xlu0 %319   ;;  %v331_v4 = vpop.permute.xlu1 %330  }
  0xa6   :  { %323 = vst.msk [vmem:[#allocation0 + $0x10] sm:$0x3] %vm321_vm14, %v320_v3  }
  0xa7   :  { %334 = vst.msk [vmem:[#allocation0 + $0x20] sm:$0x3] %vm332_vm15, %v331_v4  }
  0xa9   :  { %v342_v5 = vpop.permute.xlu0 %341   ;;  %v353_v7 = vpop.permute.xlu1 %352  }
  0xaa   :  { %345 = vst.msk [vmem:[#allocation0 + $0x8] sm:$0x3] %vm343_vm0, %v342_v5   ;;  %v371_v6 = vld [vmem:[#allocation0] sm:$0x3] }
  0xab   :  { %373 = vst [vmem:[%s823_s1] sm:$0x3] %v371_v6  ;;  %356 = vst.msk [vmem:[#allocation0 + $0x18] sm:$0x3] %vm354_vm1, %v353_v7  }
  0xad   :  { %v380_v8 = vld [vmem:[#allocation0 + $0x10] sm:$0x3]  ;;  %v364_v9 = vpop.permute.xlu0 %363  }
  0xae   :  { %482 = vst [vmem:[%s823_s1 + $0x4] sm:$0x3] %v380_v8  ;;  %367 = vst.msk [vmem:[#allocation0 + $0x28] sm:$0x3] %vm365_vm2, %v364_v9   ;;  %v392_v10 = vld [vmem:[#allocation0 + $0x20] sm:$0x3] }
  0xaf   :  { %484 = vst [vmem:[%s823_s1 + $0x8] sm:$0x3] %v392_v10 }
  0xb1   :  { %v375_v11 = vld [vmem:[#allocation0 + $0x8] sm:$0x3] }
  0xb2   :  { %481 = vst [vmem:[%s823_s1 + $0x2] sm:$0x3] %v375_v11  ;;  %v386_v12 = vld [vmem:[#allocation0 + $0x18] sm:$0x3] }
  0xb3   :  { %483 = vst [vmem:[%s823_s1 + $0x6] sm:$0x3] %v386_v12 }
  0xb5   :  { %v398_v13 = vld [vmem:[#allocation0 + $0x28] sm:$0x3] }
  0xb6   :  { %485 = vst [vmem:[%s823_s1 + $0xa] sm:$0x3] %v398_v13 }

// kernel: forward.1
= control target key start
LH: loop header
LB: loop body
LE: loop exit
PB: predicated region body
PF: predicated region fallthrough
CT: control target
= control target key end

     0   :  { %20 = vsyncpa [#allocation5], 0  ;;  %s10187_s0 = inlined_call_operand.vmem [shape: f32[2,1024], index: 0, kind: input, shape index: {}]   ;;  %s10188_s1 = inlined_call_operand.vmem [shape: f32[3,9], index: 1, kind: input, shape index: {}]   ;;  %s10189_s2 = inlined_call_operand.vmem [shape: f32[3], index: 2, kind: input, shape index: {}]   ;;  %s10190_s3 = inlined_call_operand.vmem [shape: f32[3], index: 3, kind: input, shape index: {}]   ;;  %s10191_s4 = inlined_call_operand.vmem [shape: f32[6,27], index: 4, kind: input, shape index: {}]   ;;  %s10192_s5 = inlined_call_operand.vmem [shape: f32[6], index: 5, kind: input, shape index: {}]   ;;  %s10193_s6 = inlined_call_operand.vmem [shape: f32[6], index: 6, kind: input, shape index: {}]   ;;  %s10194_s7 = inlined_call_operand.vmem [shape: f32[2,784], index: 7, kind: input, shape index: {}]   ;;  %s10195_s8 = inlined_call_operand.vmem [shape: f32[2,196], index: 8, kind: input, shape index: {}]   ;;  %s10196_s9 = inlined_call_operand.vmem [shape: bf16[784,196], index: 9, kind: input, shape index: {}]   ;;  %s10197_s10 = inlined_call_operand.vmem [shape: bf16[196,49], index: 10, kind: input, shape index: {}]   ;;  %s10198_s11 = inlined_call_operand.vmem [shape: bf16[6,49,100], index: 11, kind: input, shape index: {}]   ;;  %s10199_s12 = inlined_call_operand.vmem [shape: f32[1,100], index: 12, kind: input, shape index: {}]   ;;  %s10200_s13 = inlined_call_operand.vmem [shape: bf16[100,10], index: 13, kind: input, shape index: {}]   ;;  %s10201_s14 = inlined_call_operand.vmem [shape: f32[1,10], index: 14, kind: input, shape index: {}]   ;;  %s10202_s15 = inlined_call_operand.hbm [shape: f32[2,10], index: 15, kind: output, shape index: {}]  }
   0x1   :  { %21 = vsyncpa [#allocation7], 0 }
   0x2   :  { %22 = vsyncpa [#allocation10], 0 }
   0x3   :  { %23 = vsyncpa [#allocation13], 0  ;;  %s43_s20 = sshll.u32 %s10189_s2, 4  ;;  %s44_s20 = int_to_ptr.vmem [resolvable:$true] %s43_s20 }
   0x4   :  { %24 = vsyncpa [#allocation4], 0  ;;  %s63_s23 = sshll.u32 %s10191_s4, 4  ;;  %s7063_s24 = scalar_lea.vmem %s44_s20, 16  ;;  %s64_s23 = int_to_ptr.vmem [resolvable:$true] %s63_s23 }
   0x5   :  { %p7064_p0 = scmp.ne.s32.totalorder %s44_s20, %s7063_s24  ;;  %p7068_p1 = scmp.lt.s32.totalorder %s44_s20, %s44_s20 }
   0x6   :  { %p7069_p2 = scmp.lt.s32.totalorder %s7063_s24, %s7063_s24 }
   0x8   :  { %p7070_p3 = por %p7069_p2, %p7068_p1 }
   0xa   :  { %p7071_p4 = pnand %p7070_p3, %p7064_p0 }
   0xc   :  { %7074 = shalt.err (!%p7071_p4)
}
   0xd   :  { %s7167_s25 = smov [#allocation6]   ;;  %s7075_s26 = scalar_lea.vmem %s64_s23, 128 }
   0xe   :  { %46 = dma.vmem_to_smem %s44_s20, 16, %s7167_s25, [#allocation7]  }
   0xf   :  { %p7076_p5 = scmp.ne.s32.totalorder %s64_s23, %s7075_s26  ;;  %p7080_p6 = scmp.lt.s32.totalorder %s64_s23, %s64_s23 }
  0x10   :  { %p7081_p7 = scmp.lt.s32.totalorder %s7075_s26, %s7075_s26 }
  0x12   :  { %p7082_p8 = por %p7081_p7, %p7080_p6 }
  0x14   :  { %p7083_p9 = pnand %p7082_p8, %p7076_p5 }
  0x16   :  { %7086 = shalt.err (!%p7083_p9)
}
  0x17   :  { %s7168_s2 = smov [#allocation9]   ;;  %s33_s28 = sshll.u32 %s10188_s1, 4  ;;  %s34_s28 = int_to_ptr.vmem [resolvable:$true] %s33_s28 }
  0x18   :  { %66 = dma.vmem_to_smem %s64_s23, 128, %s7168_s2, [#allocation10]  }
  0x19   :  { %s53_s16 = sshll.u32 %s10190_s3, 4  ;;  %s7087_s17 = scalar_lea.vmem %s34_s28, 64  ;;  %s54_s16 = int_to_ptr.vmem [resolvable:$true] %s53_s16 }
  0x1a   :  { %p7088_p10 = scmp.ne.s32.totalorder %s34_s28, %s7087_s17  ;;  %p7092_p11 = scmp.lt.s32.totalorder %s34_s28, %s34_s28 }
  0x1b   :  { %p7093_p12 = scmp.lt.s32.totalorder %s7087_s17, %s7087_s17 }
  0x1d   :  { %p7094_p13 = por %p7093_p12, %p7092_p11 }
  0x1f   :  { %p7095_p0 = pnand %p7094_p13, %p7088_p10 }
  0x21   :  { %7098 = shalt.err (!%p7095_p0)
}
  0x22   :  { %s7169_s18 = smov [#allocation3]   ;;  %s7099_s19 = scalar_lea.vmem %s54_s16, 16 }
  0x23   :  { %36 = dma.vmem_to_smem %s34_s28, 64, %s7169_s18, [#allocation5]  }
  0x24   :  { %p7100_p1 = scmp.ne.s32.totalorder %s54_s16, %s7099_s19  ;;  %p7104_p2 = scmp.lt.s32.totalorder %s54_s16, %s54_s16 }
  0x25   :  { %p7105_p3 = scmp.lt.s32.totalorder %s7099_s19, %s7099_s19 }
  0x27   :  { %p7106_p4 = por %p7105_p3, %p7104_p2 }
  0x29   :  { %p7107_p5 = pnand %p7106_p4, %p7100_p1 }
  0x2b   :  { %7110 = shalt.err (!%p7107_p5)
}
  0x2c   :  { %s7170_s1 = smov [#allocation8]   ;;  %s73_s21 = sshll.u32 %s10192_s5, 4  ;;  %s74_s21 = int_to_ptr.vmem [resolvable:$true] %s73_s21 }
  0x2d   :  { %56 = dma.vmem_to_smem %s54_s16, 16, %s7170_s1, [#allocation7]  }
  0x2e   :  { %s83_s24 = sshll.u32 %s10193_s6, 4  ;;  %s7111_s25 = scalar_lea.vmem %s74_s21, 16  ;;  %s84_s24 = int_to_ptr.vmem [resolvable:$true] %s83_s24 }
  0x2f   :  { %p7112_p6 = scmp.ne.s32.totalorder %s74_s21, %s7111_s25  ;;  %p7116_p7 = scmp.lt.s32.totalorder %s74_s21, %s74_s21 }
  0x30   :  { %p7117_p8 = scmp.lt.s32.totalorder %s7111_s25, %s7111_s25 }
  0x32   :  { %p7118_p9 = por %p7117_p8, %p7116_p7 }
  0x34   :  { %p7119_p10 = pnand %p7118_p9, %p7112_p6 }
  0x36   :  { %7122 = shalt.err (!%p7119_p10)
}
  0x37   :  { %s7171_s26 = smov [#allocation11]   ;;  %s7123_s2 = scalar_lea.vmem %s84_s24, 16 }
  0x38   :  { %76 = dma.vmem_to_smem %s74_s21, 16, %s7171_s26, [#allocation10]  }
  0x39   :  { %p7124_p11 = scmp.ne.s32.totalorder %s84_s24, %s7123_s2  ;;  %p7128_p12 = scmp.lt.s32.totalorder %s84_s24, %s84_s24 }
  0x3a   :  { %p7129_p13 = scmp.lt.s32.totalorder %s7123_s2, %s7123_s2 }
  0x3c   :  { %p7130_p0 = por %p7129_p13, %p7128_p12 }
  0x3e   :  { %p7131_p1 = pnand %p7130_p0, %p7124_p11 }
  0x40   :  { %7134 = shalt.err (!%p7131_p1)
}
  0x41   :  { %s7172_s5 = smov [#allocation12]  }
  0x42   :  { %86 = dma.vmem_to_smem %s84_s24, 16, %s7172_s5, [#allocation13]  }
  0x43   :  { %7157 = dma.done.wait [#allocation5], 64  }
  0x44   :  { %7158 = vsyncadd [#allocation5], 4294967232 }
  0x45   :  { %7159 = dma.done.wait [#allocation7], 32  }
  0x46   :  { %7160 = vsyncadd [#allocation7], 4294967264 }
  0x47   :  { %7161 = dma.done.wait [#allocation10], 144  }
  0x48   :  { %7162 = vsyncadd [#allocation10], 4294967152 }
  0x49   :  { %7163 = dma.done.wait [#allocation13], 16  }
  0x4a   :  { %7164 = vsyncadd [#allocation13], 4294967280 }
  0x4b   :  { %121 = sfence }
  0x4c   :  { %v255_v0 = vlaneseq  ;;  %v7173_v1 = vmov 1983009808   ;;  %v6172_v3 = vld [vmem:[%s10194_s7 + $0x1] ss:$2 sm:$0x7f]  ;;  %s7175_s29 = smov 127  }
  0x4d   :  { %v286_v2 = vunpack.c.l.s4 %v7173_v1  ;;  %v123_v6 = vld [vmem:[%s10194_s7] ss:$2 sm:$0x7f]  ;;  %s7174_s7 = smov 101   ;;  %s6174_s30 = sld [smem:[#allocation3 + $0x1]]  ;;  %vm399_vm0 = vcmask 826368  }
  0x4e   :  { %v256_v4 = vshrl.u32 %v255_v0, 7  ;;  %s7176_s16 = smov 1   ;;  %s7177_s17 = smov 27   ;;  %v7327_v47 = vld [vmem:[%s10187_s0] sm:$0xff]  ;;  %v7334_v49 = vld [vmem:[%s10187_s0 + $0x8] sm:$0x3f] }
  0x4f   :  { %v287_v5 = vunpack.c.0.s8 %v286_v2  ;;  %s7321_s18 = sld [smem:[#allocation3 + $0x4]]  ;;  %s7178_s3 = smov 29   ;;  %v7340_v51 = vld [vmem:[%s10187_s0 + $0x2] sm:$0xff]  ;;  %vm415_vm1 = vcmask 1039360   ;;  %vm324_vm2 = vcmask 1041408   ;;  %vm431_vm3 = vcmask 7168  }
  0x50   :  { %v7300_v7 = vsub.s32 0, %v256_v4  ;;  %v7302_v8 = vsub.s32 1, %v256_v4  ;;  %v265_v9 = vsub.s32 2, %v256_v4  ;;  %v269_v10 = vsub.s32 3, %v256_v4  ;;  %s7179_s24 = smov 99   ;;  %s7352_s25 = sld [smem:[#allocation3 + $0x2]] }
  0x51   :  { %v7304_v11 = vsub.s32 %v287_v5, %v256_v4  ;;  %v273_v12 = vsub.s32 4, %v256_v4  ;;  %v277_v13 = vsub.s32 5, %v256_v4  ;;  %v281_v14 = vsub.s32 6, %v256_v4  ;;  %s7354_s26 = sld [smem:[#allocation3 + $0x3]]  ;;  %s7358_s2 = sld [smem:[#allocation3 + $0x5]] }
  0x52   :  { %10300 = vst [vmem:[#allocation20_spill] sm:$0xff] %v7300_v7  ;;  %10301 = vst [vmem:[#allocation21_spill] sm:$0xff] %v7302_v8  ;;  %v335_v15 = vrot.slane %v6172_v3, %v7300_v7  ;;  %v339_v16 = vrot.slane %v6172_v3, %v7302_v8  ;;  %v343_v17 = vrot.slane %v6172_v3, %v265_v9  ;;  %s7364_s5 = sld [smem:[#allocation3 + $0x6]]  ;;  %s7370_s6 = sld [smem:[#allocation3 + $0x7]]  ;;  %vm445_vm4 = vcmask 220160  }
  0x53   :  { %10302 = vst [vmem:[#allocation22_spill] sm:$0xff] %v7304_v11  ;;  %v347_v18 = vrot.slane %v6172_v3, %v269_v10  ;;  %v258_v19 = vrot.slane %v123_v6, %v7300_v7  ;;  %v262_v20 = vrot.slane %v123_v6, %v7302_v8  ;;  %v266_v21 = vrot.slane %v123_v6, %v265_v9  ;;  %s7372_s4 = sld [smem:[#allocation3 + $0x103]]  ;;  %s7181_s19 = smov 100   ;;  %v8366_v8 = vld [vmem:[%s10196_s9 + $0x1b0] ss:$8 sps:$4 sm:$0xff]  }
  0x54   :  { %v270_v22 = vrot.slane %v123_v6, %v269_v10  ;;  %v360_v23 = vcombine.low %v335_v15, %v339_v16  ;;  %v351_v25 = vrot.slane %v6172_v3, %v273_v12  ;;  %v355_v26 = vrot.slane %v6172_v3, %v277_v13  ;;  %s7421_s1 = sld [smem:[#allocation3 + $0x88]]  ;;  %s7182_s21 = smov 98   ;;  %v8372_v7 = vld [vmem:[%s10196_s9 + $0x1c4] ss:$8 sps:$4 sm:$0xff]  }
  0x55   :  { %v361_v24 = vcombine.low %v343_v17, %v347_v18  ;;  %v283_v27 = vcombine.low %v258_v19, %v262_v20  ;;  %v359_v29 = vrot.slane %v6172_v3, %v281_v14  ;;  %v274_v30 = vrot.slane %v123_v6, %v273_v12  ;;  %s7423_s20 = sld [smem:[#allocation3 + $0x108]]  ;;  %s7570_s22 = sld [smem:[#allocation3 + $0x84]] }
  0x56   :  { %v284_v28 = vcombine.low %v266_v21, %v270_v22  ;;  %v368_v31 = vrot.slane %v360_v23, %v7304_v11  ;;  %v377_v33 = vcombine.low %v351_v25, %v355_v26  ;;  %v278_v34 = vrot.slane %v123_v6, %v277_v13  ;;  %s7464_s27 = sld [smem:[#allocation3 + $0x80]]  ;;  %s6286_s23 = sld [smem:[#allocation3 + $0x85]] }
  0x57   :  { %v375_v32 = vrot.slane %v361_v24, %v7304_v11  ;;  %v291_v35 = vrot.slane %v283_v27, %v7304_v11  ;;  %v391_v37 = vrot.slane %v359_v29, %v7304_v11  ;;  %v282_v38 = vrot.slane %v123_v6, %v281_v14  ;;  %v408_v6 = vld [vmem:[%s10187_s0 + $0x8] sm:$0xff]  ;;  %s7467_s28 = sld [smem:[#allocation3 + $0x100]] }
  0x58   :  { %v298_v36 = vrot.slane %v284_v28, %v7304_v11  ;;  %v384_v40 = vrot.slane %v377_v33, %v7304_v11  ;;  %v300_v41 = vcombine.low %v274_v30, %v278_v34  ;;  %v472_v48 = vstv %s6174_s30  ;;  %s7392_s30 = sld [smem:[#allocation3 + $0x8]] }
  0x59   :  { %v376_v39 = vcombine.low %v368_v31, %v375_v32  ;;  %v314_v43 = vrot.slane %v282_v38, %v7304_v11  ;;  %v473_v50 = vmul.f32 %v472_v48, %v7327_v47  ;;  %v532_v52 = vstv %s7321_s18  ;;  %v7430_v38 = vld [vmem:[%s10187_s0 + $0xa] sm:$0x3f]  ;;  %s467_s18 = sld [smem:[#allocation3]] }
  0x5a   :  { %v299_v42 = vcombine.low %v291_v35, %v298_v36  ;;  %v392_v44 = vcombine.low %v384_v40, %v391_v37  ;;  %v307_v45 = vrot.slane %v300_v41, %v7304_v11  ;;  %v474_v53 = vmul.f32 %v472_v48, %v7334_v49 }
  0x5b   :  { %393 = vrot.lane.b32.xlu0 %v376_v39, %s7174_s7  ;;  %v533_v54 = vmul.f32 %v532_v52, %v7340_v51  ;;  %v492_v60 = vstv %s7352_s25  ;;  %v512_v3 = vstv %s7354_s26  ;;  %v551_v21 = vstv %s7358_s2  ;;  %s7184_s25 = smov 71   ;;  %s7185_s26 = smov 70  }
  0x5c   :  { %409 = vrot.lane.b32.xlu1 %v299_v42, %s7175_s29  ;;  %v315_v46 = vcombine.low %v307_v45, %v314_v43  ;;  %v571_v25 = vstv %s7364_s5  ;;  %v591_v28 = vstv %s7370_s6  ;;  %v2212_v29 = vstv %s7372_s4  ;;  %s7183_s6 = smov 72   ;;  %s6282_s2 = sld [smem:[#allocation3 + $0x81]] }
  0x5d   :  { %vm459_vm5 = vcmask 236544   ;;  %v592_v41 = vmul.f32 %v591_v28, %v7340_v51  ;;  %vm322_vm6 = vcmask 809984   ;;  %vm483_vm7 = vcmask 1045504   ;;  %s6283_s5 = sld [smem:[#allocation3 + $0x82]]  ;;  %s6298_s4 = sld [smem:[#allocation3 + $0x105]] }
  0x5e   :  { %v611_v48 = vstv %s7392_s30  ;;  %vm504_vm8 = vcmask 1031168   ;;  %vm524_vm9 = vcmask 818176   ;;  %vm562_vm10 = vcmask 801792   ;;  %s6284_s30 = sld [smem:[#allocation3 + $0x83]] }
  0x5f   :  { %395 = vrot.lane.b32.xlu0 %v392_v44, %s7174_s7  ;;  %s7180_s7 = smov 126   ;;  %vm582_vm11 = vcmask 588800   ;;  %vm602_vm12 = vcmask 580608   ;;  %vm622_vm13 = vcmask 572416   ;;  %vm705_vm14 = vcmask 123904  }
  0x60   :  { %411 = vrot.lane.b32.xlu1 %v315_v46, %s7175_s29  ;;  %vm1400_vm15 = vcmask 130048  }
  0x63   :  { %425 = vrot.lane.b32.xlu0 %v376_v39, %s7176_s16 }
  0x64   :  { %439 = vrot.lane.b32.xlu1 %v299_v42, %s7177_s17 }
  0x67   :  { %427 = vrot.lane.b32.xlu0 %v392_v44, %s7176_s16 }
  0x68   :  { %441 = vrot.lane.b32.xlu1 %v315_v46, %s7177_s17  ;;  %s7394_s17 = sld [smem:[#allocation3 + $0x86]] }
  0x6b   :  { %453 = vrot.lane.b32.xlu0 %v376_v39, %s7178_s3 }
  0x6c   :  { %455 = vrot.lane.b32.xlu1 %v392_v44, %s7178_s3 }
  0x6f   :  { %316 = vrot.lane.b32.xlu0 %v299_v42, %s7179_s24 }
  0x70   :  { %477 = vrot.lane.b32.xlu1 %v473_v50, %s7175_s29  ;;  %v1668_v50 = vstv %s7394_s17 }
  0x73   :  { %479 = vrot.lane.b32.xlu0 %v474_v53, %s7175_s29 }
  0x74   :  { %318 = vrot.lane.b32.xlu1 %v315_v46, %s7179_s24 }
  0x77   :  { %537 = vrot.lane.b32.xlu0 %v533_v54, %s7179_s24 }
  0xcd   :  { %v394_v55 = vpop.permute.xlu0 %393 }
  0xce   :  { %v397_v56 = vrot.slane %v394_v55, 6  ;;  %v410_v57 = vpop.permute.xlu1 %409 }
  0xcf   :  { %v413_v58 = vrot.slane %v410_v57, 6 }
  0xd0   :  { %v400_v59 = vsel %vm399_vm0, %v397_v56, %v394_v55 }
  0xd1   :  { %v7361_v61 = vmul.f32 %v400_v59, %v7327_v47  ;;  %v416_v62 = vsel %vm415_vm1, %v413_v58, %v410_v57  ;;  %v396_v63 = vpop.permute.xlu0 %395 }
  0xd2   :  { %v7367_v0 = vmul.f32 %v416_v62, %v7327_v47  ;;  %v398_v1 = vrot.slane %v396_v63, 6  ;;  %v412_v2 = vpop.permute.xlu1 %411 }
  0xd3   :  { %v414_v4 = vrot.slane %v412_v2, 6  ;;  %v493_v5 = vmul.f32 %v492_v60, %v7361_v61 }
  0xd4   :  { %v401_v9 = vsel %vm324_vm2, %v397_v56, %v398_v1  ;;  %v513_v13 = vmul.f32 %v512_v3, %v7367_v0  ;;  %v1706_v1 = vstv %s7421_s1 }
  0xd5   :  { %v417_v10 = vsel %vm324_vm2, %v413_v58, %v414_v4  ;;  %v426_v12 = vpop.permute.xlu0 %425  ;;  %497 = vrot.lane.b32.xlu0 %v493_v5, %s7180_s7  ;;  %v402_v19 = vsel %vm399_vm0, %v401_v9, %v396_v63  ;;  %v534_v4 = vmul.f32 %v532_v52, %v7430_v38  ;;  %vm2784_vm0 = vcmask 551938  }
  0xd6   :  { %v418_v14 = vsel %vm415_vm1, %v417_v10, %v412_v2  ;;  %v429_v15 = vrot.slane %v426_v12, 6  ;;  %v440_v16 = vpop.permute.xlu1 %439  ;;  %v7408_v30 = vmul.f32 %v402_v19, %v7334_v49  ;;  %v2307_v2 = vstv %s7423_s20 }
  0xd7   :  { %v7387_v17 = vmul.f32 %v418_v14, %v408_v6  ;;  %v443_v18 = vrot.slane %v440_v16, 6  ;;  %v593_v6 = vmul.f32 %v591_v28, %v7430_v38  ;;  %v1569_v19 = vstv %s7464_s27  ;;  %s7713_s27 = sld [smem:[#allocation3 + $0x101]] }
  0xd8   :  { %v432_v20 = vsel %vm431_vm3, %v429_v15, %v426_v12  ;;  %v494_v44 = vmul.f32 %v492_v60, %v7408_v30 }
  0xd9   :  { %v7397_v22 = vmul.f32 %v432_v20, %v7340_v51  ;;  %v446_v23 = vsel %vm445_vm4, %v443_v18, %v440_v16  ;;  %v428_v24 = vpop.permute.xlu0 %427  ;;  %517 = vrot.lane.b32.xlu0 %v513_v13, %s7181_s19  ;;  %v7416_v33 = vmul.f32 %v2212_v29, %v7387_v17  ;;  %v514_v59 = vmul.f32 %v512_v3, %v7387_v17 }
  0xda   :  { %v7403_v26 = vmul.f32 %v446_v23, %v7340_v51  ;;  %v442_v27 = vpop.permute.xlu1 %441  ;;  %v430_v35 = vrot.slane %v428_v24, 6  ;;  %v2170_v20 = vstv %s7467_s28 }
  0xdb   :  { %v552_v31 = vmul.f32 %v551_v21, %v7397_v22  ;;  %v444_v32 = vrot.slane %v442_v27, 6 }
  0xdc   :  { %v572_v34 = vmul.f32 %v571_v25, %v7403_v26  ;;  %v433_v53 = vsel %vm324_vm2, %v429_v15, %v430_v35 }
  0xdd   :  { %556 = vrot.lane.b32.xlu1 %v552_v31, %s7182_s21  ;;  %v454_v36 = vpop.permute.xlu0 %453  ;;  %v447_v37 = vsel %vm324_vm2, %v443_v18, %v444_v32  ;;  %v434_v63 = vsel %vm431_vm3, %v433_v53, %v428_v24 }
  0xde   :  { %v457_v39 = vrot.slane %v454_v36, 6  ;;  %576 = vrot.lane.b32.xlu0 %v572_v34, %s7183_s6  ;;  %v448_v40 = vsel %vm445_vm4, %v447_v37, %v442_v27  ;;  %v456_v42 = vpop.permute.xlu1 %455  ;;  %v7484_v52 = vmul.f32 %v434_v63, %v7430_v38  ;;  %vm8751_vm4 = vmor %vm2784_vm0, %vm324_vm2 }
  0xdf   :  { %v7436_v43 = vmul.f32 %v448_v40, %v7430_v38  ;;  %v458_v45 = vrot.slane %v456_v42, 6 }
  0xe0   :  { %v460_v46 = vsel %vm459_vm5, %v457_v39, %v454_v36  ;;  %v553_v16 = vmul.f32 %v551_v21, %v7484_v52 }
  0xe1   :  { %v7446_v54 = vmul.f32 %v460_v46, %v7340_v51  ;;  %499 = vrot.lane.b32.xlu1 %v494_v44, %s7180_s7  ;;  %v461_v55 = vsel %vm324_vm2, %v457_v39, %v458_v45  ;;  %v7453_v56 = vmul.f32 %v1668_v50, %v7436_v43  ;;  %v317_v9 = vpop.permute.xlu0 %316  ;;  %v573_v27 = vmul.f32 %v571_v25, %v7436_v43 }
  0xe2   :  { %596 = vrot.lane.b32.xlu0 %v592_v41, %s7184_s25  ;;  %v462_v57 = vsel %vm459_vm5, %v461_v55, %v456_v42  ;;  %v478_v58 = vpop.permute.xlu1 %477  ;;  %v320_v12 = vrot.slane %v317_v9, 6  ;;  %v468_v41 = vstv %s467_s18  ;;  %s7580_s18 = sld [smem:[#allocation3 + $0x87]] }
  0xe3   :  { %v612_v60 = vmul.f32 %v611_v48, %v7446_v54  ;;  %v466_v62 = vmul.f32 %v462_v57, %v7430_v38  ;;  %v481_v37 = vrot.slane %v478_v58, 2 }
  0xe4   :  { %v323_v35 = vsel %vm322_vm6, %v320_v12, %v317_v9 }
  0xe5   :  { %519 = vrot.lane.b32.xlu1 %v514_v59, %s7181_s19  ;;  %v7475_v3 = vmul.f32 %v1706_v1, %v466_v62  ;;  %v7479_v5 = vmul.f32 %v2307_v2, %v466_v62  ;;  %v613_v28 = vmul.f32 %v611_v48, %v466_v62  ;;  %v480_v21 = vpop.permute.xlu0 %479  ;;  %v7512_v40 = vmul.f32 %v323_v35, %v7327_v47 }
  0xe6   :  { %616 = vrot.lane.b32.xlu0 %v612_v60, %s7185_s26  ;;  %v319_v10 = vpop.permute.xlu1 %318  ;;  %v482_v36 = vrot.slane %v480_v21, 2 }
  0xe7   :  { %v321_v13 = vrot.slane %v319_v10, 6  ;;  %v469_v45 = vmul.f32 %v468_v41, %v7512_v40 }
  0xe8   :  { %v484_v42 = vsel %vm483_vm7, %v481_v37, %v482_v36 }
  0xe9   :  { %539 = vrot.lane.b32.xlu1 %v534_v4, %s7179_s24  ;;  %v325_v14 = vsel %vm324_vm2, %v320_v12, %v321_v13  ;;  %v538_v31 = vpop.permute.xlu0 %537  ;;  %v485_v55 = vsel %vm415_vm1, %v478_v58, %v484_v42 }
  0xea   :  { %598 = vrot.lane.b32.xlu0 %v593_v6, %s7184_s25  ;;  %v326_v15 = vsel %vm322_vm6, %v325_v14, %v319_v10  ;;  %v489_v62 = vadd.f32 %v485_v55, %v469_v45  ;;  %v541_v6 = vrot.slane %v538_v31, 6  ;;  %v486_v14 = vsel %vm415_vm1, %v480_v21, %v482_v36 }
  0xeb   :  { %v330_v18 = vmul.f32 %v326_v15, %v7334_v49 }
  0xed   :  { %558 = vrot.lane.b32.xlu1 %v553_v16, %s7182_s21  ;;  %v7499_v23 = vmul.f32 %v1569_v19, %v330_v18  ;;  %v7503_v24 = vmul.f32 %v2170_v20, %v330_v18  ;;  %v470_v10 = vmul.f32 %v468_v41, %v330_v18 }
  0xef   :  { %v490_v18 = vadd.f32 %v486_v14, %v470_v10 }
  0xf1   :  { %578 = vrot.lane.b32.xlu1 %v573_v27, %s7183_s6 }
  0xf5   :  { %618 = vrot.lane.b32.xlu1 %v613_v28, %s7185_s26 }
 0x147   :  { %v498_v32 = vpop.permute.xlu0 %497 }
 0x148   :  { %v501_v46 = vrot.slane %v498_v32, 2 }
 0x14b   :  { %v518_v34 = vpop.permute.xlu0 %517 }
 0x14c   :  { %v521_v63 = vrot.slane %v518_v34, 2 }
 0x14f   :  { %v557_v39 = vpop.permute.xlu1 %556 }
 0x150   :  { %v7514_v25 = vpop.permute.xlu0 %576  ;;  %v560_v15 = vrot.slane %v557_v39, 6 }
 0x151   :  { %v580_v35 = vrot.slane %v7514_v25, 6 }
 0x152   :  { %v563_v21 = vsel %vm562_vm10, %v560_v15, %v557_v39 }
 0x153   :  { %v500_v44 = vpop.permute.xlu1 %499 }
 0x154   :  { %v502_v48 = vrot.slane %v500_v44, 2  ;;  %v597_v53 = vpop.permute.xlu0 %596 }
 0x155   :  { %v600_v36 = vrot.slane %v597_v53, 6 }
 0x156   :  { %v503_v57 = vsel %vm483_vm7, %v501_v46, %v502_v48  ;;  %v506_v37 = vsel %vm504_vm8, %v500_v44, %v502_v48 }
 0x157   :  { %v505_v59 = vsel %vm504_vm8, %v498_v32, %v503_v57  ;;  %v520_v60 = vpop.permute.xlu1 %519  ;;  %v543_v32 = vsel %vm322_vm6, %v541_v6, %v538_v31  ;;  %v510_v55 = vadd.f32 %v506_v37, %v490_v18 }
 0x158   :  { %v522_v4 = vrot.slane %v520_v60, 2  ;;  %v617_v9 = vpop.permute.xlu0 %616  ;;  %v509_v12 = vadd.f32 %v505_v59, %v489_v62  ;;  %v583_v59 = vsel %vm582_vm11, %v580_v35, %v7514_v25 }
 0x159   :  { %v620_v44 = vrot.slane %v617_v9, 6 }
 0x15a   :  { %v523_v13 = vsel %vm483_vm7, %v521_v63, %v522_v4 }
 0x15b   :  { %v525_v58 = vsel %vm524_vm9, %v518_v34, %v523_v13  ;;  %v540_v16 = vpop.permute.xlu1 %539  ;;  %v526_v34 = vsel %vm524_vm9, %v520_v60, %v522_v4  ;;  %v603_v60 = vsel %vm602_vm12, %v600_v36, %v597_v53 }
 0x15c   :  { %v529_v27 = vadd.f32 %v525_v58, %v509_v12  ;;  %v542_v28 = vrot.slane %v540_v16, 6  ;;  %v599_v45 = vpop.permute.xlu0 %598  ;;  %v530_v62 = vadd.f32 %v526_v34, %v510_v55  ;;  %v623_v58 = vsel %vm622_vm13, %v620_v44, %v617_v9 }
 0x15e   :  { %v548_v41 = vadd.f32 %v543_v32, %v529_v27  ;;  %v544_v42 = vsel %vm324_vm2, %v541_v6, %v542_v28  ;;  %v601_v6 = vrot.slane %v599_v45, 6 }
 0x15f   :  { %v559_v46 = vpop.permute.xlu1 %558  ;;  %v545_v48 = vsel %vm322_vm6, %v544_v42, %v540_v16 }
 0x160   :  { %v568_v57 = vadd.f32 %v563_v21, %v548_v41  ;;  %v561_v31 = vrot.slane %v559_v46, 6  ;;  %v549_v13 = vadd.f32 %v545_v48, %v530_v62  ;;  %v604_v27 = vsel %vm324_vm2, %v600_v36, %v601_v6 }
 0x161   :  { %v605_v9 = vsel %vm602_vm12, %v604_v27, %v599_v45 }
 0x162   :  { %v588_v63 = vadd.f32 %v583_v59, %v568_v57  ;;  %v564_v39 = vsel %vm324_vm2, %v560_v15, %v561_v31  ;;  %v1573_v59 = vstv %s6282_s2  ;;  %s6295_s2 = sld [smem:[#allocation3 + $0x102]] }
 0x163   :  { %v565_v4 = vsel %vm562_vm10, %v564_v39, %v559_v46  ;;  %v579_v10 = vpop.permute.xlu1 %578  ;;  %v1574_v48 = vmul.f32 %v1573_v59, %v7327_v47  ;;  %v1575_v62 = vmul.f32 %v1573_v59, %v7334_v49  ;;  %v1630_v49 = vstv %s7570_s22  ;;  %s7720_s22 = sld [smem:[#allocation3 + $0x104]] }
 0x164   :  { %v608_v12 = vadd.f32 %v603_v60, %v588_v63  ;;  %v581_v14 = vrot.slane %v579_v10, 6  ;;  %v569_v16 = vadd.f32 %v565_v4, %v549_v13  ;;  %v1592_v63 = vstv %s6283_s5 }
 0x165   :  { %v1593_v6 = vmul.f32 %v1592_v63, %v7361_v61  ;;  %v1594_v39 = vmul.f32 %v1592_v63, %v7408_v30  ;;  %v1611_v60 = vstv %s6284_s30 }
 0x166   :  { %v7537_v25 = vadd.f32 %v623_v58, %v608_v12  ;;  %v584_v28 = vsel %vm324_vm2, %v580_v35, %v581_v14  ;;  %v1612_v47 = vmul.f32 %v1611_v60, %v7367_v0  ;;  %v1613_v4 = vmul.f32 %v1611_v60, %v7387_v17 }
 0x167   :  { %v585_v32 = vsel %vm582_vm11, %v584_v28, %v579_v10  ;;  %v619_v15 = vpop.permute.xlu1 %618  ;;  %v1631_v10 = vmul.f32 %v1630_v49, %v7340_v51  ;;  %v1649_v12 = vstv %s6286_s23  ;;  %v1687_v14 = vstv %s7580_s18  ;;  %s6299_s23 = sld [smem:[#allocation3 + $0x106]]  ;;  %s6300_s18 = sld [smem:[#allocation3 + $0x107]] }
 0x168   :  { %v589_v37 = vadd.f32 %v585_v32, %v569_v16  ;;  %v621_v53 = vrot.slane %v619_v15, 6  ;;  %v641_v18 = vrot.slane %v7537_v25, %v7304_v11  ;;  %v634_v41 = vcombine.high %v7537_v25, %v7537_v25 }
 0x169   :  { %v1650_v13 = vmul.f32 %v1649_v12, %v7397_v22  ;;  %v1669_v58 = vmul.f32 %v1668_v50, %v7403_v26  ;;  %v1688_v17 = vmul.f32 %v1687_v14, %v7340_v51  ;;  %v1651_v27 = vmul.f32 %v1649_v12, %v7484_v52 }
 0x16a   :  { %v609_v42 = vadd.f32 %v605_v9, %v589_v37  ;;  %v624_v21 = vsel %vm324_vm2, %v620_v44, %v621_v53  ;;  %667 = vrot.lane.b32.xlu0 %v641_v18, %s7178_s3  ;;  %v649_v36 = vcombine.high %v641_v18, %v641_v18  ;;  %v648_v35 = vrot.slane %v634_v41, %v7304_v11 }
 0x16b   :  { %v625_v34 = vsel %vm622_vm13, %v624_v21, %v619_v15  ;;  %v1707_v16 = vmul.f32 %v1706_v1, %v7446_v54 }
 0x16c   :  { %v7551_v46 = vadd.f32 %v625_v34, %v609_v42  ;;  %669 = vrot.lane.b32.xlu1 %v649_v36, %s7178_s3  ;;  %v650_v55 = vcombine.high %v648_v35, %v648_v35 }
 0x16e   :  { %671 = vrot.lane.b32.xlu0 %v648_v35, %s7178_s3  ;;  %v658_v45 = vrot.slane %v7551_v46, %v7304_v11  ;;  %v651_v57 = vcombine.high %v7551_v46, %v7551_v46 }
 0x170   :  { %673 = vrot.lane.b32.xlu1 %v650_v55, %s7178_s3  ;;  %v666_v31 = vcombine.high %v658_v45, %v658_v45  ;;  %v665_v44 = vrot.slane %v651_v57, %v7304_v11 }
 0x172   :  { %675 = vrot.lane.b32.xlu0 %v658_v45, %s7178_s3 }
 0x174   :  { %677 = vrot.lane.b32.xlu1 %v666_v31, %s7178_s3 }
 0x176   :  { %679 = vrot.lane.b32.xlu0 %v665_v44, %s7178_s3 }
 0x17a   :  { %1578 = vrot.lane.b32.xlu0 %v1574_v48, %s7175_s29 }
 0x17e   :  { %1580 = vrot.lane.b32.xlu0 %v1575_v62, %s7175_s29 }
 0x182   :  { %1597 = vrot.lane.b32.xlu0 %v1593_v6, %s7180_s7 }
 0x186   :  { %1599 = vrot.lane.b32.xlu0 %v1594_v39, %s7180_s7 }
 0x18a   :  { %1616 = vrot.lane.b32.xlu0 %v1612_v47, %s7181_s19 }
 0x18e   :  { %1618 = vrot.lane.b32.xlu0 %v1613_v4, %s7181_s19 }
 0x192   :  { %1635 = vrot.lane.b32.xlu0 %v1631_v10, %s7179_s24 }
 0x196   :  { %1654 = vrot.lane.b32.xlu0 %v1650_v13, %s7182_s21 }
 0x19a   :  { %1673 = vrot.lane.b32.xlu0 %v1669_v58, %s7183_s6 }
 0x19e   :  { %1692 = vrot.lane.b32.xlu0 %v1688_v17, %s7184_s25 }
 0x1a2   :  { %1656 = vrot.lane.b32.xlu0 %v1651_v27, %s7182_s21 }
 0x1a6   :  { %1711 = vrot.lane.b32.xlu0 %v1707_v16, %s7185_s26 }
 0x1dc   :  { %v668_v28 = vpop.permute.xlu0 %667 }
 0x1de   :  { %v670_v32 = vpop.permute.xlu1 %669 }
 0x1df   :  { %v681_v15 = vsel %vm459_vm5, %v668_v28, %v670_v32  ;;  %v1632_v28 = vmul.f32 %v1630_v49, %v7430_v38 }
 0x1e0   :  { %v672_v50 = vpop.permute.xlu0 %671  ;;  %v694_v51 = vsel %vm324_vm2, %v681_v15, 0.0 }
 0x1e1   :  { %v682_v37 = vsel %vm459_vm5, %v670_v32, %v672_v50 }
 0x1e2   :  { %v695_v53 = vsel %vm324_vm2, %v682_v37, 0.0  ;;  %v674_v18 = vpop.permute.xlu1 %673 }
 0x1e3   :  { %v696_v41 = vadd.f32 %v695_v53, %v694_v51  ;;  %v683_v9 = vsel %vm459_vm5, %v672_v50, %v674_v18 }
 0x1e4   :  { %v697_v42 = vsel %vm324_vm2, %v683_v9, 0.0  ;;  %v676_v1 = vpop.permute.xlu0 %675 }
 0x1e5   :  { %v698_v21 = vadd.f32 %v697_v42, %v696_v41  ;;  %v684_v36 = vsel %vm459_vm5, %v674_v18, %v676_v1 }
 0x1e6   :  { %v699_v35 = vsel %vm324_vm2, %v684_v36, 0.0  ;;  %v678_v34 = vpop.permute.xlu1 %677 }
 0x1e7   :  { %v700_v55 = vadd.f32 %v699_v35, %v698_v21  ;;  %v685_v45 = vsel %vm459_vm5, %v676_v1, %v678_v34 }
 0x1e8   :  { %v701_v57 = vsel %vm324_vm2, %v685_v45, 0.0  ;;  %v680_v31 = vpop.permute.xlu0 %679 }
 0x1e9   :  { %v686_v59 = vsel %vm459_vm5, %v678_v34, %v680_v31  ;;  %v702_v44 = vadd.f32 %v701_v57, %v700_v55  ;;  %v706_v6 = vsel %vm705_vm14, %v680_v31, 0.0 }
 0x1ea   :  { %v703_v48 = vsel %vm324_vm2, %v686_v59, 0.0 }
 0x1eb   :  { %v704_v62 = vadd.f32 %v703_v48, %v702_v44 }
 0x1ec   :  { %v1579_v63 = vpop.permute.xlu0 %1578 }
 0x1ed   :  { %v707_v39 = vadd.f32 %v706_v6, %v704_v62 }
 0x1ef   :  { %708 = vadd.xlane.f32.xlu1 %v707_v39  ;;  %v1582_v39 = vrot.slane %v1579_v63, 2 }
 0x1f0   :  { %v1581_v60 = vpop.permute.xlu0 %1580 }
 0x1f1   :  { %v1583_v47 = vrot.slane %v1581_v60, 2 }
 0x1f3   :  { %v1586_v4 = vsel %vm415_vm1, %v1581_v60, %v1583_v47  ;;  %v1584_v60 = vsel %vm483_vm7, %v1582_v39, %v1583_v47 }
 0x1f4   :  { %v1590_v10 = vadd.f32 %v1586_v4, %v7499_v23  ;;  %v1598_v12 = vpop.permute.xlu0 %1597  ;;  %v1689_v23 = vmul.f32 %v1687_v14, %v7430_v38 }
 0x1f5   :  { %v1601_v4 = vrot.slane %v1598_v12, 2 }
 0x1f8   :  { %v1600_v13 = vpop.permute.xlu0 %1599 }
 0x1f9   :  { %v1602_v58 = vrot.slane %v1600_v13, 2 }
 0x1fb   :  { %v1605_v17 = vsel %vm504_vm8, %v1600_v13, %v1602_v58 }
 0x1fc   :  { %v1609_v27 = vadd.f32 %v1605_v17, %v1590_v10  ;;  %v1617_v16 = vpop.permute.xlu0 %1616  ;;  %v1603_v10 = vsel %vm483_vm7, %v1601_v4, %v1602_v58  ;;  %v1585_v17 = vsel %vm415_vm1, %v1579_v63, %v1584_v60 }
 0x1fd   :  { %v1620_v13 = vrot.slane %v1617_v16, 2 }
 0x200   :  { %v1619_v32 = vpop.permute.xlu0 %1618  ;;  %1637 = vrot.lane.b32.xlu1 %v1632_v28, %s7179_s24 }
 0x201   :  { %v1621_v15 = vrot.slane %v1619_v32, 2 }
 0x203   :  { %v1624_v50 = vsel %vm524_vm9, %v1619_v32, %v1621_v15  ;;  %v1622_v28 = vsel %vm483_vm7, %v1620_v13, %v1621_v15  ;;  %v1604_v32 = vsel %vm504_vm8, %v1598_v12, %v1603_v10 }
 0x204   :  { %v1628_v37 = vadd.f32 %v1624_v50, %v1609_v27  ;;  %1675 = vrot.lane.b32.xlu1 %v7453_v56, %s7183_s6  ;;  %v1636_v51 = vpop.permute.xlu0 %1635  ;;  %v1570_v27 = vmul.f32 %v1569_v19, %v7512_v40 }
 0x205   :  { %v1639_v35 = vrot.slane %v1636_v51, 6 }
 0x206   :  { %v1589_v50 = vadd.f32 %v1585_v17, %v1570_v27 }
 0x208   :  { %1694 = vrot.lane.b32.xlu1 %v1689_v23, %s7184_s25  ;;  %v1655_v53 = vpop.permute.xlu0 %1654  ;;  %v1608_v23 = vadd.f32 %v1604_v32, %v1589_v50 }
 0x209   :  { %v1658_v34 = vrot.slane %v1655_v53, 6 }
 0x20b   :  { %v1660_v12 = vsel %vm562_vm10, %v1658_v34, %v1655_v53 }
 0x20c   :  { %v7621_v18 = vpop.permute.xlu0 %1673 }
 0x20d   :  { %v1677_v58 = vrot.slane %v7621_v18, 6 }
 0x210   :  { %v7623_v41 = vpop.permute.xlu0 %1692 }
 0x214   :  { %v1657_v49 = vpop.permute.xlu0 %1656 }
 0x215   :  { %v1659_v1 = vrot.slane %v1657_v49, 6 }
 0x217   :  { %v1661_v14 = vsel %vm324_vm2, %v1658_v34, %v1659_v1 }
 0x218   :  { %v1662_v48 = vsel %vm562_vm10, %v1661_v14, %v1657_v49  ;;  %v1641_v49 = vsel %vm322_vm6, %v1639_v35, %v1636_v51  ;;  %v1712_v63 = vpop.permute.xlu0 %1711  ;;  %v1679_v51 = vsel %vm582_vm11, %v1677_v58, %v7621_v18 }
 0x27c   :  { %v709_v9 = vpop.xlane.xlu1 %708 }
 0x27d   :  { %v710_v42 = vrot.slane %v709_v9, 4 }
 0x27f   :  { %v711_v21 = vadd.f32 %v710_v42, %v709_v9 }
 0x280   :  { %v1638_v36 = vpop.permute.xlu1 %1637 }
 0x281   :  { %v1640_v55 = vrot.slane %v1638_v36, 6  ;;  %v712_v56 = vrot.slane %v711_v21, 2 }
 0x283   :  { %v1642_v45 = vsel %vm324_vm2, %v1639_v35, %v1640_v55  ;;  %v713_v57 = vadd.f32 %v712_v56, %v711_v21  ;;  %v1715_v21 = vrot.slane %v1712_v63, 6 }
 0x284   :  { %v1643_v31 = vsel %vm322_vm6, %v1642_v45, %v1638_v36  ;;  %v1676_v4 = vpop.permute.xlu1 %1675 }
 0x285   :  { %v1647_v59 = vadd.f32 %v1643_v31, %v1628_v37  ;;  %v714_v44 = vrot.slane %v713_v57, 1  ;;  %v1623_v37 = vsel %vm524_vm9, %v1617_v16, %v1622_v28  ;;  %v1696_v16 = vrot.slane %v7623_v41, 6 }
 0x286   :  { %v1627_v47 = vadd.f32 %v1623_v37, %v1608_v23  ;;  %v1717_v55 = vsel %vm622_vm13, %v1715_v21, %v1712_v63  ;;  %v1678_v13 = vrot.slane %v1676_v4, 6 }
 0x287   :  { %v7629_v62 = vadd.f32 %v1662_v48, %v1647_v59  ;;  %v715_v6 = vadd.f32 %v714_v44, %v713_v57 }
 0x288   :  { %v1646_v15 = vadd.f32 %v1641_v49, %v1627_v47  ;;  %v1695_v10 = vpop.permute.xlu1 %1694  ;;  %v1680_v28 = vsel %vm324_vm2, %v1677_v58, %v1678_v13 }
 0x289   :  { %6752 = vpush %v715_v6  ;;  %v1697_v17 = vrot.slane %v1695_v10, 6  ;;  %v1681_v37 = vsel %vm582_vm11, %v1680_v28, %v1676_v4 }
 0x28a   :  { %v1665_v36 = vadd.f32 %v1660_v12, %v1646_v15 }
 0x28b   :  { %v1699_v50 = vsel %vm324_vm2, %v1696_v16, %v1697_v17  ;;  %v2174_v17 = vstv %s7713_s27 }
 0x28c   :  { %v1684_v53 = vadd.f32 %v1679_v51, %v1665_v36  ;;  %v1700_v47 = vsel %vm602_vm12, %v1699_v50, %v1695_v10 }
 0x2ba   :  { %s6753_s17 = spop %6752 }
 0x2bb   :  { %s719_s1 = smul.f32 0.0006377551, %s6753_s17  ;;  %s7188_s17 = smov 13  }
 0x2bd   :  { %v720_v9 = vstv %s719_s1  ;;  %s8040_s1 = sld [smem:[#allocation6]] }
 0x2be   :  { %v7643_v42 = vsub.f32 %v7537_v25, %v720_v9  ;;  %v7646_v19 = vsub.f32 %v7551_v46, %v720_v9  ;;  %v1698_v46 = vsel %vm602_vm12, %v1696_v16, %v7623_v41  ;;  %v1685_v9 = vadd.f32 %v1681_v37, %v7629_v62 }
 0x2bf   :  { %v1703_v56 = vadd.f32 %v1698_v46, %v1684_v53 }
 0x2c0   :  { %v723_v1 = vmul.f32 %v7643_v42, %v7643_v42  ;;  %v724_v25 = vmul.f32 %v7646_v19, %v7646_v19  ;;  %v1704_v15 = vadd.f32 %v1700_v47, %v1685_v9  ;;  %v2213_v47 = vmul.f32 %v2212_v29, %v7367_v0 }
 0x2c1   :  { %v7663_v45 = vadd.f32 %v1717_v55, %v1703_v56  ;;  %v2269_v9 = vstv %s6299_s23  ;;  %v2308_v0 = vmul.f32 %v2307_v2, %v7446_v54  ;;  %s6313_s23 = sld [smem:[#allocation9 + $0x9]] }
 0x2c2   :  { %v734_v35 = vrot.slane %v723_v1, %v7304_v11  ;;  %v751_v18 = vrot.slane %v724_v25, %v7304_v11  ;;  %v727_v14 = vcombine.high %v723_v1, %v723_v1  ;;  %v744_v57 = vcombine.high %v724_v25, %v724_v25 }
 0x2c3   :  { %v1735_v59 = vrot.slane %v7663_v45, %v7304_v11  ;;  %v1728_v44 = vcombine.high %v7663_v45, %v7663_v45  ;;  %v2271_v29 = vmul.f32 %v2269_v9, %v7436_v43 }
 0x2c4   :  { %760 = vrot.lane.b32.xlu0 %v734_v35, %s7178_s3  ;;  %v742_v34 = vcombine.high %v734_v35, %v734_v35  ;;  %v741_v41 = vrot.slane %v727_v14, %v7304_v11  ;;  %v758_v31 = vrot.slane %v744_v57, %v7304_v11  ;;  %v759_v39 = vcombine.high %v751_v18, %v751_v18 }
 0x2c5   :  { %v1743_v6 = vcombine.high %v1735_v59, %v1735_v59 }
 0x2c6   :  { %762 = vrot.lane.b32.xlu1 %v742_v34, %s7178_s3  ;;  %v743_v48 = vcombine.high %v741_v41, %v741_v41 }
 0x2c8   :  { %768 = vrot.lane.b32.xlu0 %v751_v18, %s7178_s3 }
 0x2ca   :  { %1713 = vrot.lane.b32.xlu1 %v7475_v3, %s7185_s26  ;;  %v1742_v3 = vrot.slane %v1728_v44, %v7304_v11 }
 0x2cc   :  { %764 = vrot.lane.b32.xlu0 %v741_v41, %s7178_s3  ;;  %v1744_v60 = vcombine.high %v1742_v3, %v1742_v3 }
 0x2ce   :  { %772 = vrot.lane.b32.xlu1 %v758_v31, %s7178_s3 }
 0x2d0   :  { %766 = vrot.lane.b32.xlu0 %v743_v48, %s7178_s3 }
 0x2d2   :  { %1763 = vrot.lane.b32.xlu1 %v1743_v6, %s7178_s3 }
 0x2d4   :  { %770 = vrot.lane.b32.xlu0 %v759_v39, %s7178_s3 }
 0x2d6   :  { %1767 = vrot.lane.b32.xlu1 %v1744_v60, %s7178_s3 }
 0x2d8   :  { %1761 = vrot.lane.b32.xlu0 %v1735_v59, %s7178_s3 }
 0x2dc   :  { %1765 = vrot.lane.b32.xlu0 %v1742_v3, %s7178_s3 }
 0x336   :  { %v761_v27 = vpop.permute.xlu0 %760 }
 0x338   :  { %v763_v32 = vpop.permute.xlu1 %762 }
 0x339   :  { %v774_v1 = vsel %vm459_vm5, %v761_v27, %v763_v32  ;;  %v7048_v27 = vld [vmem:[%s10187_s0] sm:$0xff] }
 0x33a   :  { %v769_v23 = vpop.permute.xlu0 %768  ;;  %v787_v35 = vsel %vm324_vm2, %v774_v1, 0.0  ;;  %v2175_v28 = vmul.f32 %v7048_v27, %v2174_v17 }
 0x33c   :  { %v1714_v49 = vpop.permute.xlu1 %1713 }
 0x33d   :  { %v1716_v63 = vrot.slane %v1714_v49, 6 }
 0x33e   :  { %v765_v12 = vpop.permute.xlu0 %764 }
 0x33f   :  { %v1718_v51 = vsel %vm324_vm2, %v1715_v21, %v1716_v63  ;;  %v775_v58 = vsel %vm459_vm5, %v763_v32, %v765_v12  ;;  %v2193_v32 = vstv %s6295_s2  ;;  %v2270_v63 = vmul.f32 %v2269_v9, %v7403_v26 }
 0x340   :  { %v1719_v36 = vsel %vm622_vm13, %v1718_v51, %v1714_v49  ;;  %v788_v16 = vsel %vm324_vm2, %v775_v58, 0.0  ;;  %v773_v18 = vpop.permute.xlu1 %772  ;;  %v2194_v50 = vmul.f32 %v2193_v32, %v7361_v61  ;;  %v2195_v37 = vmul.f32 %v2193_v32, %v7408_v30  ;;  %v7049_v49 = vld [vmem:[%s10187_s0 + $0x2] sm:$0xff] }
 0x341   :  { %v7693_v25 = vadd.f32 %v1719_v36, %v1704_v15  ;;  %v789_v53 = vadd.f32 %v788_v16, %v787_v35  ;;  %v798_v10 = vsel %vm705_vm14, %v773_v18, 0.0  ;;  %v2288_v30 = vstv %s6300_s18  ;;  %s8990_s18 = sld [smem:[#allocation9 + $0xd]] }
 0x342   :  { %v767_v46 = vpop.permute.xlu0 %766  ;;  %v2290_v15 = vmul.f32 %v2288_v30, %v7430_v38 }
 0x343   :  { %v776_v62 = vsel %vm459_vm5, %v765_v12, %v767_v46  ;;  %v777_v34 = vsel %vm459_vm5, %v767_v46, %v769_v23  ;;  %v1752_v55 = vrot.slane %v7693_v25, %v7304_v11  ;;  %v1745_v41 = vcombine.high %v7693_v25, %v7693_v25 }
 0x344   :  { %v790_v21 = vsel %vm324_vm2, %v776_v62, 0.0  ;;  %v792_v14 = vsel %vm324_vm2, %v777_v34, 0.0  ;;  %v2289_v12 = vmul.f32 %v7049_v49, %v2288_v30  ;;  %v1764_v51 = vpop.permute.xlu1 %1763 }
 0x345   :  { %v791_v56 = vadd.f32 %v790_v21, %v789_v53  ;;  %1769 = vrot.lane.b32.xlu0 %v1752_v55, %s7178_s3  ;;  %v1760_v48 = vcombine.high %v1752_v55, %v1752_v55  ;;  %v1759_v60 = vrot.slane %v1745_v41, %v7304_v11 }
 0x346   :  { %v771_v57 = vpop.permute.xlu0 %770 }
 0x347   :  { %v793_v31 = vadd.f32 %v792_v14, %v791_v56  ;;  %v778_v59 = vsel %vm459_vm5, %v769_v23, %v771_v57  ;;  %v779_v44 = vsel %vm459_vm5, %v771_v57, %v773_v18  ;;  %v2231_v23 = vstv %s7720_s22 }
 0x348   :  { %v794_v6 = vsel %vm324_vm2, %v778_v59, 0.0  ;;  %v796_v39 = vsel %vm324_vm2, %v779_v44, 0.0  ;;  %v2232_v61 = vmul.f32 %v7049_v49, %v2231_v23  ;;  %v1768_v54 = vpop.permute.xlu1 %1767 }
 0x349   :  { %1771 = vrot.lane.b32.xlu0 %v1760_v48, %s7178_s3  ;;  %v795_v3 = vadd.f32 %v794_v6, %v793_v31 }
 0x34a   :  { %v1762_v1 = vpop.permute.xlu0 %1761 }
 0x34b   :  { %v797_v4 = vadd.f32 %v796_v39, %v795_v3  ;;  %v1775_v36 = vsel %vm459_vm5, %v1762_v1, %v1764_v51  ;;  %v7050_v3 = vld [vmem:[%s10187_s0 + $0x8] sm:$0x3f] }
 0x34c   :  { %v1788_v2 = vsel %vm324_vm2, %v1775_v36, 0.0  ;;  %v2176_v39 = vmul.f32 %v7050_v3, %v2174_v17 }
 0x34d   :  { %1773 = vrot.lane.b32.xlu0 %v1759_v60, %s7178_s3  ;;  %v799_v13 = vadd.f32 %v798_v10, %v797_v4 }
 0x34e   :  { %v1766_v26 = vpop.permute.xlu0 %1765 }
 0x34f   :  { %800 = vadd.xlane.f32.xlu1 %v799_v13  ;;  %v1776_v58 = vsel %vm459_vm5, %v1764_v51, %v1766_v26  ;;  %v1777_v43 = vsel %vm459_vm5, %v1766_v26, %v1768_v54  ;;  %v2250_v13 = vstv %s6298_s4 }
 0x350   :  { %v1789_v16 = vsel %vm324_vm2, %v1776_v58, 0.0  ;;  %v1791_v62 = vsel %vm324_vm2, %v1777_v43, 0.0  ;;  %v2252_v17 = vmul.f32 %v2250_v13, %v7484_v52 }
 0x351   :  { %v1790_v46 = vadd.f32 %v1789_v16, %v1788_v2 }
 0x353   :  { %v1792_v21 = vadd.f32 %v1791_v62, %v1790_v46 }
 0x360   :  { %2179 = vrot.lane.b32.xlu1 %v2175_v28, %s7175_s29  ;;  %v2251_v28 = vmul.f32 %v2250_v13, %v7397_v22 }
 0x364   :  { %2198 = vrot.lane.b32.xlu1 %v2194_v50, %s7180_s7  ;;  %v2233_v50 = vmul.f32 %v2231_v23, %v7430_v38 }
 0x368   :  { %2200 = vrot.lane.b32.xlu1 %v2195_v37, %s7180_s7 }
 0x36c   :  { %2217 = vrot.lane.b32.xlu1 %v2213_v47, %s7181_s19 }
 0x370   :  { %2236 = vrot.lane.b32.xlu1 %v2232_v61, %s7179_s24 }
 0x374   :  { %2274 = vrot.lane.b32.xlu1 %v2270_v63, %s7183_s6 }
 0x378   :  { %2293 = vrot.lane.b32.xlu1 %v2289_v12, %s7184_s25 }
 0x37c   :  { %2312 = vrot.lane.b32.xlu1 %v2308_v0, %s7185_s26 }
 0x380   :  { %2276 = vrot.lane.b32.xlu1 %v2271_v29, %s7183_s6  ;;  %s7192_s6 = smov 114  }
 0x384   :  { %2295 = vrot.lane.b32.xlu1 %v2290_v15, %s7184_s25 }
 0x3b7   :  { %v1770_v35 = vpop.permute.xlu0 %1769 }
 0x3b8   :  { %v1778_v53 = vsel %vm459_vm5, %v1768_v54, %v1770_v35 }
 0x3b9   :  { %v1793_v34 = vsel %vm324_vm2, %v1778_v53, 0.0 }
 0x3ba   :  { %v1794_v14 = vadd.f32 %v1793_v34, %v1792_v21 }
 0x3bb   :  { %v1772_v55 = vpop.permute.xlu0 %1771 }
 0x3bc   :  { %v1779_v56 = vsel %vm459_vm5, %v1770_v35, %v1772_v55 }
 0x3bd   :  { %v1795_v18 = vsel %vm324_vm2, %v1779_v56, 0.0 }
 0x3be   :  { %v1796_v31 = vadd.f32 %v1795_v18, %v1794_v14 }
 0x3bf   :  { %v1774_v57 = vpop.permute.xlu0 %1773 }
 0x3c0   :  { %v1780_v41 = vsel %vm459_vm5, %v1772_v55, %v1774_v57  ;;  %v1799_v48 = vsel %vm705_vm14, %v1774_v57, 0.0 }
 0x3c1   :  { %v1797_v59 = vsel %vm324_vm2, %v1780_v41, 0.0 }
 0x3c2   :  { %v1798_v44 = vadd.f32 %v1797_v59, %v1796_v31 }
 0x3c4   :  { %v1800_v6 = vadd.f32 %v1799_v48, %v1798_v44 }
 0x3c6   :  { %1801 = vadd.xlane.f32.xlu0 %v1800_v6 }
 0x3dc   :  { %2181 = vrot.lane.b32.xlu0 %v2176_v39, %s7175_s29  ;;  %v801_v60 = vpop.xlane.xlu1 %800 }
 0x3dd   :  { %v802_v4 = vrot.slane %v801_v60, 4 }
 0x3df   :  { %v803_v10 = vadd.f32 %v802_v4, %v801_v60 }
 0x3e0   :  { %2219 = vrot.lane.b32.xlu0 %v7416_v33, %s7181_s19  ;;  %v2180_v49 = vpop.permute.xlu1 %2179 }
 0x3e1   :  { %v804_v27 = vrot.slane %v803_v10, 2 }
 0x3e3   :  { %v805_v32 = vadd.f32 %v804_v27, %v803_v10 }
 0x3e4   :  { %2255 = vrot.lane.b32.xlu0 %v2251_v28, %s7182_s21  ;;  %v2199_v61 = vpop.permute.xlu1 %2198 }
 0x3e5   :  { %v806_v37 = vrot.slane %v805_v32, 1 }
 0x3e7   :  { %v807_v47 = vadd.f32 %v806_v37, %v805_v32 }
 0x3e8   :  { %2238 = vrot.lane.b32.xlu0 %v2233_v50, %s7179_s24  ;;  %v2201_v9 = vpop.permute.xlu1 %2200 }
 0x3e9   :  { %6754 = vpush %v807_v47  ;;  %v2203_v15 = vrot.slane %v2201_v9, 2 }
 0x3eb   :  { %v2206_v2 = vsel %vm504_vm8, %v2201_v9, %v2203_v15  ;;  %v2202_v9 = vrot.slane %v2199_v61, 2 }
 0x3ec   :  { %2257 = vrot.lane.b32.xlu0 %v2252_v17, %s7182_s21  ;;  %v2218_v38 = vpop.permute.xlu1 %2217  ;;  %v2183_v17 = vrot.slane %v2180_v49, 2 }
 0x3f0   :  { %v2237_v23 = vpop.permute.xlu1 %2236 }
 0x3f1   :  { %v2240_v14 = vrot.slane %v2237_v23, 6 }
 0x3f4   :  { %v7771_v30 = vpop.permute.xlu1 %2274 }
 0x3f5   :  { %v2278_v48 = vrot.slane %v7771_v30, 6 }
 0x3f8   :  { %v7773_v63 = vpop.permute.xlu1 %2293 }
 0x3f9   :  { %v2297_v6 = vrot.slane %v7773_v63, 6 }
 0x3fc   :  { %v7775_v51 = vpop.permute.xlu1 %2312 }
 0x400   :  { %v2277_v62 = vpop.permute.xlu1 %2276 }
 0x401   :  { %v2279_v41 = vrot.slane %v2277_v62, 6 }
 0x403   :  { %v2281_v60 = vsel %vm324_vm2, %v2278_v48, %v2279_v41 }
 0x404   :  { %v2296_v18 = vpop.permute.xlu1 %2295  ;;  %v2282_v32 = vsel %vm582_vm11, %v2281_v60, %v2277_v62 }
 0x405   :  { %v2298_v31 = vrot.slane %v2296_v18, 6 }
 0x407   :  { %v2300_v13 = vsel %vm324_vm2, %v2297_v6, %v2298_v31 }
 0x408   :  { %v2301_v50 = vsel %vm602_vm12, %v2300_v13, %v2296_v18 }
 0x41a   :  { %s6755_s0 = spop %6754 }
 0x41b   :  { %s811_s25 = smul.f32 0.0006377551, %s6755_s0  ;;  %s6306_s0 = sld [smem:[#allocation9 + $0x2]] }
 0x41d   :  { %s812_s27 = sadd.f32 1e-05, %s811_s25  ;;  %s8051_s25 = sld [smem:[#allocation8]] }
 0x41f   :  { %v813_v33 = vstv %s812_s27 }
 0x420   :  { %7026 = vrsqrt.f32 %v813_v33 }
 0x42a   :  { %v7027_v22 = vpop.eup %7026 }
 0x42b   :  { %6756 = vpush %v7027_v22 }
 0x453   :  { %v1802_v12 = vpop.xlane.xlu0 %1801 }
 0x454   :  { %v1803_v52 = vrot.slane %v1802_v12, 4 }
 0x456   :  { %v1804_v0 = vadd.f32 %v1803_v52, %v1802_v12  ;;  %v2171_v12 = vmul.f32 %v2170_v20, %v7512_v40  ;;  %v2204_v52 = vsel %vm483_vm7, %v2202_v9, %v2203_v15 }
 0x457   :  { %v2182_v29 = vpop.permute.xlu0 %2181 }
 0x458   :  { %v2184_v1 = vrot.slane %v2182_v29, 2  ;;  %v1805_v26 = vrot.slane %v1804_v0, 2 }
 0x45a   :  { %v2187_v58 = vsel %vm415_vm1, %v2182_v29, %v2184_v1  ;;  %v1806_v36 = vadd.f32 %v1805_v26, %v1804_v0  ;;  %v2185_v33 = vsel %vm483_vm7, %v2183_v17, %v2184_v1  ;;  %v2221_v0 = vrot.slane %v2218_v38, 2 }
 0x45b   :  { %v2191_v16 = vadd.f32 %v2187_v58, %v7503_v24  ;;  %v2220_v54 = vpop.permute.xlu0 %2219  ;;  %v2186_v22 = vsel %vm415_vm1, %v2180_v49, %v2185_v33  ;;  %v2205_v58 = vsel %vm504_vm8, %v2199_v61, %v2204_v52  ;;  %v2242_v1 = vsel %vm322_vm6, %v2240_v14, %v2237_v23 }
 0x45c   :  { %v2222_v35 = vrot.slane %v2220_v54, 2  ;;  %v1807_v43 = vrot.slane %v1806_v36, 1  ;;  %v2190_v29 = vadd.f32 %v2186_v22, %v2171_v12  ;;  %s7803_s2 = spop %6756 }
 0x45d   :  { %v2210_v46 = vadd.f32 %v2206_v2, %v2191_v16 }
 0x45e   :  { %v2225_v53 = vsel %vm524_vm9, %v2220_v54, %v2222_v35  ;;  %v1808_v21 = vadd.f32 %v1807_v43, %v1806_v36  ;;  %v2223_v26 = vsel %vm483_vm7, %v2221_v0, %v2222_v35  ;;  %v2209_v36 = vadd.f32 %v2205_v58, %v2190_v29 }
 0x45f   :  { %v2229_v34 = vadd.f32 %v2225_v53, %v2210_v46  ;;  %v2256_v55 = vpop.permute.xlu0 %2255  ;;  %v2224_v16 = vsel %vm524_vm9, %v2218_v38, %v2223_v26  ;;  %v2280_v38 = vsel %vm582_vm11, %v2278_v48, %v7771_v30  ;;  %v2299_v43 = vsel %vm602_vm12, %v2297_v6, %v7773_v63 }
 0x460   :  { %6758 = vpush %v1808_v21  ;;  %v2259_v3 = vrot.slane %v2256_v55, 6  ;;  %v2228_v54 = vadd.f32 %v2224_v16, %v2209_v36  ;;  %vm2858_vm7 = vcmask 941056   ;;  %vm2878_vm11 = vcmask 105472  }
 0x461   :  { %vm2885_vm12 = vcmask 121856  }
 0x462   :  { %v2247_v2 = vadd.f32 %v2242_v1, %v2228_v54  ;;  %v2261_v49 = vsel %vm562_vm10, %v2259_v3, %v2256_v55 }
 0x463   :  { %v2239_v56 = vpop.permute.xlu0 %2238 }
 0x464   :  { %v2241_v57 = vrot.slane %v2239_v56, 6  ;;  %v2266_v20 = vadd.f32 %v2261_v49, %v2247_v2 }
 0x466   :  { %v2243_v24 = vsel %vm324_vm2, %v2240_v14, %v2241_v57  ;;  %v2285_v35 = vadd.f32 %v2280_v38, %v2266_v20 }
 0x467   :  { %v2244_v59 = vsel %vm322_vm6, %v2243_v24, %v2239_v56  ;;  %v2258_v44 = vpop.permute.xlu0 %2257 }
 0x468   :  { %v2260_v39 = vrot.slane %v2258_v44, 6  ;;  %v2248_v4 = vadd.f32 %v2244_v59, %v2229_v34  ;;  %v2304_v62 = vadd.f32 %v2299_v43, %v2285_v35 }
 0x46a   :  { %v2262_v10 = vsel %vm324_vm2, %v2259_v3, %v2260_v39 }
 0x46b   :  { %v2263_v27 = vsel %vm562_vm10, %v2262_v10, %v2258_v44 }
 0x46c   :  { %v2267_v28 = vadd.f32 %v2263_v27, %v2248_v4 }
 0x46e   :  { %v2286_v37 = vadd.f32 %v2282_v32, %v2267_v28 }
 0x470   :  { %v7791_v47 = vadd.f32 %v2301_v50, %v2286_v37 }
 0x491   :  { %s6759_s28 = spop %6758 }
 0x492   :  { %s1812_s5 = smul.f32 0.0006377551, %s6759_s28  ;;  %s7917_s28 = sld [smem:[#allocation6 + $0x1]] }
 0x494   :  { %v1813_v40 = vstv %s1812_s5  ;;  %s6303_s5 = sld [smem:[#allocation8 + $0x2]] }
 0x495   :  { %v7807_v15 = vsub.f32 %v7663_v45, %v1813_v40  ;;  %v7810_v61 = vsub.f32 %v7693_v25, %v1813_v40  ;;  %v2316_v45 = vrot.slane %v7775_v51, 6 }
 0x497   :  { %v1816_v23 = vmul.f32 %v7807_v15, %v7807_v15  ;;  %v1817_v46 = vmul.f32 %v7810_v61, %v7810_v61  ;;  %v2318_v55 = vsel %vm622_vm13, %v2316_v45, %v7775_v51 }
 0x498   :  { %v7828_v21 = vadd.f32 %v2318_v55, %v2304_v62 }
 0x499   :  { %v1827_v53 = vrot.slane %v1816_v23, %v7304_v11  ;;  %v1844_v30 = vrot.slane %v1817_v46, %v7304_v11  ;;  %v1820_v34 = vcombine.high %v1816_v23, %v1816_v23  ;;  %v1837_v63 = vcombine.high %v1817_v46, %v1817_v46 }
 0x49a   :  { %v2336_v14 = vrot.slane %v7828_v21, %v7304_v11  ;;  %v2329_v51 = vcombine.high %v7828_v21, %v7828_v21 }
 0x49b   :  { %1853 = vrot.lane.b32.xlu0 %v1827_v53, %s7178_s3  ;;  %v1835_v25 = vcombine.high %v1827_v53, %v1827_v53  ;;  %v1834_v56 = vrot.slane %v1820_v34, %v7304_v11  ;;  %v1851_v18 = vrot.slane %v1837_v63, %v7304_v11  ;;  %v1852_v24 = vcombine.high %v1844_v30, %v1844_v30 }
 0x49c   :  { %v2344_v41 = vcombine.high %v2336_v14, %v2336_v14 }
 0x49d   :  { %1855 = vrot.lane.b32.xlu1 %v1835_v25, %s7178_s3  ;;  %v1836_v57 = vcombine.high %v1834_v56, %v1834_v56 }
 0x49f   :  { %1861 = vrot.lane.b32.xlu0 %v1844_v30, %s7178_s3 }
 0x4a1   :  { %2314 = vrot.lane.b32.xlu1 %v7479_v5, %s7185_s26  ;;  %v2343_v5 = vrot.slane %v2329_v51, %v7304_v11 }
 0x4a3   :  { %1857 = vrot.lane.b32.xlu0 %v1834_v56, %s7178_s3  ;;  %v2345_v31 = vcombine.high %v2343_v5, %v2343_v5 }
 0x4a5   :  { %1865 = vrot.lane.b32.xlu1 %v1851_v18, %s7178_s3 }
 0x4a7   :  { %1859 = vrot.lane.b32.xlu0 %v1836_v57, %s7178_s3 }
 0x4a9   :  { %2364 = vrot.lane.b32.xlu1 %v2344_v41, %s7178_s3 }
 0x4ab   :  { %1863 = vrot.lane.b32.xlu0 %v1852_v24, %s7178_s3 }
 0x4ad   :  { %2368 = vrot.lane.b32.xlu1 %v2345_v31, %s7178_s3 }
 0x4af   :  { %2362 = vrot.lane.b32.xlu0 %v2336_v14, %s7178_s3 }
 0x4b3   :  { %2366 = vrot.lane.b32.xlu0 %v2343_v5, %s7178_s3 }
 0x50d   :  { %v1854_v59 = vpop.permute.xlu0 %1853 }
 0x50f   :  { %v1856_v44 = vpop.permute.xlu1 %1855 }
 0x510   :  { %v1867_v60 = vsel %vm459_vm5, %v1854_v59, %v1856_v44 }
 0x511   :  { %v1862_v48 = vpop.permute.xlu0 %1861  ;;  %v1880_v32 = vsel %vm324_vm2, %v1867_v60, 0.0 }
 0x513   :  { %v2315_v6 = vpop.permute.xlu1 %2314 }
 0x514   :  { %v2317_v3 = vrot.slane %v2315_v6, 6 }
 0x515   :  { %v1858_v39 = vpop.permute.xlu0 %1857 }
 0x516   :  { %v2319_v4 = vsel %vm324_vm2, %v2316_v45, %v2317_v3  ;;  %v1868_v10 = vsel %vm459_vm5, %v1856_v44, %v1858_v39 }
 0x517   :  { %v2320_v13 = vsel %vm622_vm13, %v2319_v4, %v2315_v6  ;;  %v1881_v27 = vsel %vm324_vm2, %v1868_v10, 0.0  ;;  %v1866_v52 = vpop.permute.xlu1 %1865  ;;  %vm2956_vm13 = vcmask 916480  }
 0x518   :  { %v7853_v28 = vadd.f32 %v2320_v13, %v7791_v47  ;;  %v1882_v37 = vadd.f32 %v1881_v27, %v1880_v32  ;;  %v1891_v40 = vsel %vm705_vm14, %v1866_v52, 0.0 }
 0x519   :  { %v1860_v50 = vpop.permute.xlu0 %1859 }
 0x51a   :  { %v1869_v17 = vsel %vm459_vm5, %v1858_v39, %v1860_v50  ;;  %v1870_v33 = vsel %vm459_vm5, %v1860_v50, %v1862_v48  ;;  %v2353_v22 = vrot.slane %v7853_v28, %v7304_v11  ;;  %v2346_v47 = vcombine.high %v7853_v28, %v7853_v28 }
 0x51b   :  { %v1883_v9 = vsel %vm324_vm2, %v1869_v17, 0.0  ;;  %v1885_v0 = vsel %vm324_vm2, %v1870_v33, 0.0  ;;  %v2365_v43 = vpop.permute.xlu1 %2364  ;;  %v7889_v17 = vld [vmem:[%s10196_s9 + $0x4] ss:$8 sps:$4 sm:$0xff]   ;;  %v7894_v33 = vld [vmem:[%s10196_s9] ss:$8 sps:$4 sm:$0xff]  }
 0x51c   :  { %v1884_v12 = vadd.f32 %v1883_v9, %v1882_v37  ;;  %2370 = vrot.lane.b32.xlu0 %v2353_v22, %s7178_s3  ;;  %v2361_v16 = vcombine.high %v2353_v22, %v2353_v22  ;;  %v2360_v49 = vrot.slane %v2346_v47, %v7304_v11  ;;  %v7899_v22 = vld [vmem:[%s10196_s9 + $0x14] ss:$8 sps:$4 sm:$0xff]   ;;  %1404 = vmatprep.subr.bf16.mxu0 %v7889_v17  ;;  %v7907_v9 = vld [vmem:[%s10196_s9 + $0x10] ss:$8 sps:$4 sm:$0xff]   ;;  %v7914_v47 = vld [vmem:[%s10196_s9 + $0x24] ss:$8 sps:$4 sm:$0xff]  }
 0x51d   :  { %v1864_v29 = vpop.permute.xlu0 %1863  ;;  %2005 = vmatprep.subr.bf16.mxu1 %v7889_v17  ;;  %1405 = vmatpush1.bf16.msra.mxu0 %v7894_v33 }
 0x51e   :  { %v1886_v26 = vadd.f32 %v1885_v0, %v1884_v12  ;;  %v1871_v58 = vsel %vm459_vm5, %v1862_v48, %v1864_v29  ;;  %v1872_v36 = vsel %vm459_vm5, %v1864_v29, %v1866_v52  ;;  %2006 = vmatpush1.bf16.msra.mxu1 %v7894_v33  ;;  %1406 = vmatprep.subr.bf16.mxu0 %v7899_v22  ;;  %v7923_v29 = vld [vmem:[%s10196_s9 + $0x20] ss:$8 sps:$4 sm:$0xff]  }
 0x51f   :  { %v1887_v54 = vsel %vm324_vm2, %v1871_v58, 0.0  ;;  %v1889_v2 = vsel %vm324_vm2, %v1872_v36, 0.0  ;;  %v2369_v62 = vpop.permute.xlu1 %2368  ;;  %2007 = vmatprep.subr.bf16.mxu1 %v7899_v22 }
 0x520   :  { %2372 = vrot.lane.b32.xlu0 %v2361_v16, %s7178_s3  ;;  %v1888_v1 = vadd.f32 %v1887_v54, %v1886_v26  ;;  %v7932_v26 = vld [vmem:[%s10196_s9 + $0x34] ss:$8 sps:$4 sm:$0xff]   ;;  %v7939_v16 = vld [vmem:[%s10196_s9 + $0x30] ss:$8 sps:$4 sm:$0xff]   ;;  %v7946_v54 = vld [vmem:[%s10196_s9 + $0x44] ss:$8 sps:$4 sm:$0xff]  }
 0x521   :  { %v2363_v35 = vpop.permute.xlu0 %2362  ;;  %1407 = vmatpush1.bf16.msra.mxu0 %v7907_v9 }
 0x522   :  { %v1890_v20 = vadd.f32 %v1889_v2, %v1888_v1  ;;  %v2376_v53 = vsel %vm459_vm5, %v2363_v35, %v2365_v43  ;;  %2008 = vmatpush1.bf16.msra.mxu1 %v7907_v9  ;;  %1408 = vmatprep.subr.bf16.mxu0 %v7914_v47 }
 0x523   :  { %v2389_v25 = vsel %vm324_vm2, %v2376_v53, 0.0  ;;  %2009 = vmatprep.subr.bf16.mxu1 %v7914_v47  ;;  %v7988_v53 = vld [vmem:[%s10196_s9 + $0x64] ss:$8 sps:$4 sm:$0xff]  }
 0x524   :  { %2374 = vrot.lane.b32.xlu0 %v2360_v49, %s7178_s3  ;;  %v1892_v38 = vadd.f32 %v1891_v40, %v1890_v20  ;;  %v1912_v49 = vstv %s7917_s28  ;;  %s8815_s28 = sld [smem:[#allocation9 + $0x4]] }
 0x525   :  { %v2367_v23 = vpop.permute.xlu0 %2366  ;;  %1409 = vmatpush1.bf16.msra.mxu0 %v7923_v29 }
 0x526   :  { %1893 = vadd.xlane.f32.xlu1 %v1892_v38  ;;  %v2377_v46 = vsel %vm459_vm5, %v2365_v43, %v2367_v23  ;;  %v2378_v34 = vsel %vm459_vm5, %v2367_v23, %v2369_v62  ;;  %2010 = vmatpush1.bf16.msra.mxu1 %v7923_v29  ;;  %v7960_v38 = vld [vmem:[%s10196_s9 + $0x40] ss:$8 sps:$4 sm:$0xff]   ;;  %v7968_v23 = vld [vmem:[%s10196_s9 + $0x54] ss:$8 sps:$4 sm:$0xff]  }
 0x527   :  { %v2390_v45 = vsel %vm324_vm2, %v2377_v46, 0.0  ;;  %v2392_v56 = vsel %vm324_vm2, %v2378_v34, 0.0  ;;  %1410 = vmatprep.subr.bf16.mxu0 %v7932_v26  ;;  %2011 = vmatprep.subr.bf16.mxu1 %v7932_v26  ;;  %v7981_v46 = vld [vmem:[%s10196_s9 + $0x50] ss:$8 sps:$4 sm:$0xff]   ;;  %v8023_v34 = vld [vmem:[%s10196_s9 + $0x80] ss:$8 sps:$4 sm:$0xff]  }
 0x528   :  { %v2391_v55 = vadd.f32 %v2390_v45, %v2389_v25  ;;  %v7995_v45 = vld [vmem:[%s10196_s9 + $0x60] ss:$8 sps:$4 sm:$0xff]   ;;  %v8009_v25 = vld [vmem:[%s10196_s9 + $0x70] ss:$8 sps:$4 sm:$0xff]  }
 0x529   :  { %1411 = vmatpush1.bf16.msra.mxu0 %v7939_v16 }
 0x52a   :  { %v2393_v51 = vadd.f32 %v2392_v56, %v2391_v55  ;;  %2012 = vmatpush1.bf16.msra.mxu1 %v7939_v16  ;;  %1412 = vmatprep.subr.bf16.mxu0 %v7946_v54  ;;  %v8033_v55 = vld [vmem:[%s10196_s9 + $0x94] ss:$8 sps:$4 sm:$0xff]   ;;  %v8049_v56 = vld [vmem:[%s10196_s9 + $0xa4] ss:$8 sps:$4 sm:$0xff]  }
 0x52b   :  { %2013 = vmatprep.subr.bf16.mxu1 %v7946_v54 }
 0x52d   :  { %1413 = vmatpush1.bf16.msra.mxu0 %v7960_v38 }
 0x52e   :  { %2014 = vmatpush1.bf16.msra.mxu1 %v7960_v38  ;;  %1414 = vmatprep.subr.bf16.mxu0 %v7968_v23 }
 0x52f   :  { %2015 = vmatprep.subr.bf16.mxu1 %v7968_v23 }
 0x531   :  { %1415 = vmatpush1.bf16.msra.mxu0 %v7981_v46 }
 0x532   :  { %1416 = vmatprep.subr.bf16.mxu0 %v7988_v53  ;;  %2016 = vmatpush1.bf16.msra.mxu1 %v7981_v46 }
 0x533   :  { %2017 = vmatprep.subr.bf16.mxu1 %v7988_v53 }
 0x535   :  { %1417 = vmatpush1.bf16.msra.mxu0 %v7995_v45 }
 0x536   :  { %2018 = vmatpush1.bf16.msra.mxu1 %v7995_v45 }
 0x58e   :  { %v2371_v30 = vpop.permute.xlu0 %2370 }
 0x58f   :  { %v2379_v63 = vsel %vm459_vm5, %v2369_v62, %v2371_v30  ;;  %v8001_v62 = vld [vmem:[%s10196_s9 + $0x74] ss:$8 sps:$4 sm:$0xff]  }
 0x590   :  { %v2394_v18 = vsel %vm324_vm2, %v2379_v63, 0.0  ;;  %1418 = vmatprep.subr.bf16.mxu0 %v8001_v62  ;;  %2019 = vmatprep.subr.bf16.mxu1 %v8001_v62  ;;  %v8038_v63 = vld [vmem:[%s10196_s9 + $0x90] ss:$8 sps:$4 sm:$0xff]  }
 0x591   :  { %v2395_v5 = vadd.f32 %v2394_v18, %v2393_v51  ;;  %1419 = vmatpush1.bf16.msra.mxu0 %v8009_v25  ;;  %2020 = vmatpush1.bf16.msra.mxu1 %v8009_v25  ;;  %v816_v18 = vstv %s7803_s2  ;;  %s6315_s2 = sld [smem:[#allocation9 + $0xb]] }
 0x592   :  { %v2373_v14 = vpop.permute.xlu0 %2372 }
 0x593   :  { %v2380_v57 = vsel %vm459_vm5, %v2371_v30, %v2373_v14  ;;  %v8015_v30 = vld [vmem:[%s10196_s9 + $0x84] ss:$8 sps:$4 sm:$0xff]  }
 0x594   :  { %v2396_v41 = vsel %vm324_vm2, %v2380_v57, 0.0  ;;  %1420 = vmatprep.subr.bf16.mxu0 %v8015_v30  ;;  %2021 = vmatprep.subr.bf16.mxu1 %v8015_v30  ;;  %v817_v57 = vmul.f32 %v816_v18, %v7643_v42 }
 0x595   :  { %v2397_v31 = vadd.f32 %v2396_v41, %v2395_v5  ;;  %1421 = vmatpush1.bf16.msra.mxu0 %v8023_v34  ;;  %2022 = vmatpush1.bf16.msra.mxu1 %v8023_v34 }
 0x596   :  { %v2375_v24 = vpop.permute.xlu0 %2374  ;;  %1422 = vmatprep.subr.bf16.mxu0 %v8033_v55  ;;  %2023 = vmatprep.subr.bf16.mxu1 %v8033_v55 }
 0x597   :  { %v2381_v59 = vsel %vm459_vm5, %v2373_v14, %v2375_v24  ;;  %v2400_v6 = vsel %vm705_vm14, %v2375_v24, 0.0  ;;  %v8057_v14 = vld [vmem:[%s10196_s9 + $0xa0] ss:$8 sps:$4 sm:$0xff]   ;;  %v8073_v24 = vld [vmem:[%s10196_s9 + $0xb4] ss:$8 sps:$4 sm:$0xff]  }
 0x598   :  { %v2398_v44 = vsel %vm324_vm2, %v2381_v59, 0.0  ;;  %v8079_v59 = vld [vmem:[%s10196_s9 + $0xb0] ss:$8 sps:$4 sm:$0xff]  }
 0x599   :  { %v2399_v48 = vadd.f32 %v2398_v44, %v2397_v31  ;;  %1423 = vmatpush1.bf16.msra.mxu0 %v8038_v63  ;;  %2024 = vmatpush1.bf16.msra.mxu1 %v8038_v63  ;;  %v819_v31 = vstv %s8040_s1  ;;  %s7189_s1 = smov 113  }
 0x59a   :  { %1424 = vmatprep.subr.bf16.mxu0 %v8049_v56  ;;  %2025 = vmatprep.subr.bf16.mxu1 %v8049_v56 }
 0x59b   :  { %v2401_v3 = vadd.f32 %v2400_v6, %v2399_v48  ;;  %v8093_v6 = vld [vmem:[%s10196_s9 + $0xc4] ss:$8 sps:$4 sm:$0xff]  }
 0x59d   :  { %2402 = vadd.xlane.f32.xlu0 %v2401_v3  ;;  %1425 = vmatpush1.bf16.msra.mxu0 %v8057_v14  ;;  %v822_v3 = vstv %s8051_s25 }
 0x59e   :  { %2026 = vmatpush1.bf16.msra.mxu1 %v8057_v14  ;;  %1426 = vmatprep.subr.bf16.mxu0 %v8073_v24 }
 0x59f   :  { %2027 = vmatprep.subr.bf16.mxu1 %v8073_v24 }
 0x5a1   :  { %1427 = vmatpush1.bf16.msra.mxu0 %v8079_v59 }
 0x5a2   :  { %2028 = vmatpush1.bf16.msra.mxu1 %v8079_v59  ;;  %1428 = vmatprep.subr.bf16.mxu0 %v8093_v6 }
 0x5a3   :  { %2029 = vmatprep.subr.bf16.mxu1 %v8093_v6 }
 0x5b3   :  { %v1894_v39 = vpop.xlane.xlu1 %1893 }
 0x5b4   :  { %v1895_v60 = vrot.slane %v1894_v39, 4 }
 0x5b6   :  { %v1896_v4 = vadd.f32 %v1895_v60, %v1894_v39  ;;  %v8099_v39 = vld [vmem:[%s10196_s9 + $0xc0] ss:$8 sps:$4 sm:$0xff]  }
 0x5b7   :  { %1429 = vmatpush1.bf16.msra.mxu0 %v8099_v39  ;;  %2030 = vmatpush1.bf16.msra.mxu1 %v8099_v39 }
 0x5b8   :  { %v1897_v10 = vrot.slane %v1896_v4, 2 }
 0x5ba   :  { %v1898_v13 = vadd.f32 %v1897_v10, %v1896_v4 }
 0x5bc   :  { %v1899_v27 = vrot.slane %v1898_v13, 1 }
 0x5be   :  { %v1900_v32 = vadd.f32 %v1899_v27, %v1898_v13  ;;  %v8111_v27 = vld [vmem:[%s10196_s9 + $0xd4] ss:$8 sps:$4 sm:$0xff]  }
 0x5bf   :  { %1430 = vmatprep.subr.bf16.mxu0 %v8111_v27  ;;  %2031 = vmatprep.subr.bf16.mxu1 %v8111_v27 }
 0x5c0   :  { %6760 = vpush %v1900_v32  ;;  %v8116_v32 = vld [vmem:[%s10196_s9 + $0xd0] ss:$8 sps:$4 sm:$0xff]  }
 0x5c1   :  { %10305 = vst [vmem:[#allocation25_spill] sm:$0xff] %v8116_v32  ;;  %1431 = vmatpush1.bf16.msra.mxu0 %v8116_v32  ;;  %2032 = vmatpush1.bf16.msra.mxu1 %v8116_v32  ;;  %v8454_v32 = vld [vmem:[%s10196_s9 + $0x224] ss:$8 sps:$4 sm:$0xff]  }
 0x5c2   :  { %10325 = vst [vmem:[#allocation45_spill] sm:$0xff] %v8454_v32 }
 0x5f1   :  { %s6761_s26 = spop %6760 }
 0x5f2   :  { %s1904_s30 = smul.f32 0.0006377551, %s6761_s26 }
 0x5f4   :  { %s1905_s22 = sadd.f32 1e-05, %s1904_s30  ;;  %s7926_s30 = sld [smem:[#allocation8 + $0x1]] }
 0x5f6   :  { %v1906_v50 = vstv %s1905_s22  ;;  %s6316_s22 = sld [smem:[#allocation9 + $0xc]] }
 0x5f7   :  { %7028 = vrsqrt.f32 %v1906_v50 }
 0x5fa   :  { %v1915_v35 = vstv %s7926_s30  ;;  %s8817_s30 = sld [smem:[#allocation9 + $0x5]] }
 0x601   :  { %v7029_v37 = vpop.eup %7028 }
 0x602   :  { %6762 = vpush %v7029_v37 }
 0x62a   :  { %v2403_v12 = vpop.xlane.xlu0 %2402 }
 0x62b   :  { %v2404_v52 = vrot.slane %v2403_v12, 4 }
 0x62d   :  { %v2405_v0 = vadd.f32 %v2404_v52, %v2403_v12  ;;  %v8127_v52 = vld [vmem:[%s10196_s9 + $0xe4] ss:$8 sps:$4 sm:$0xff]  }
 0x62e   :  { %10306 = vst [vmem:[#allocation26_spill] sm:$0xff] %v8127_v52  ;;  %1432 = vmatprep.subr.bf16.mxu0 %v8127_v52  ;;  %2033 = vmatprep.subr.bf16.mxu1 %v8127_v52 }
 0x62f   :  { %v2406_v58 = vrot.slane %v2405_v0, 2 }
 0x631   :  { %v2407_v36 = vadd.f32 %v2406_v58, %v2405_v0  ;;  %v8132_v0 = vld [vmem:[%s10196_s9 + $0xe0] ss:$8 sps:$4 sm:$0xff]  }
 0x632   :  { %10307 = vst [vmem:[#allocation27_spill] sm:$0xff] %v8132_v0  ;;  %1433 = vmatpush1.bf16.msra.mxu0 %v8132_v0  ;;  %2034 = vmatpush1.bf16.msra.mxu1 %v8132_v0  ;;  %v8416_v0 = vld [vmem:[%s10196_s9 + $0x1f0] ss:$8 sps:$4 sm:$0xff]  }
 0x633   :  { %s7949_s20 = spop %6762  ;;  %v2408_v1 = vrot.slane %v2407_v36, 1  ;;  %10320 = vst [vmem:[#allocation40_spill] sm:$0xff] %v8416_v0 }
 0x634   :  { %v1909_v2 = vstv %s7949_s20 }
 0x635   :  { %v1911_v20 = vmul.f32 %v1909_v2, %v7810_v61  ;;  %v2409_v40 = vadd.f32 %v2408_v1, %v2407_v36  ;;  %v8143_v1 = vld [vmem:[%s10196_s9 + $0xf4] ss:$8 sps:$4 sm:$0xff]  }
 0x636   :  { %10308 = vst [vmem:[#allocation28_spill] sm:$0xff] %v8143_v1  ;;  %1434 = vmatprep.subr.bf16.mxu0 %v8143_v1  ;;  %2035 = vmatprep.subr.bf16.mxu1 %v8143_v1 }
 0x637   :  { %v1914_v61 = vmul.f32 %v1912_v49, %v1911_v20  ;;  %6764 = vpush %v2409_v40  ;;  %v8148_v20 = vld [vmem:[%s10196_s9 + $0xf0] ss:$8 sps:$4 sm:$0xff]   ;;  %v818_v40 = vmul.f32 %v816_v18, %v7646_v19 }
 0x638   :  { %10309 = vst [vmem:[#allocation29_spill] sm:$0xff] %v8148_v20  ;;  %1435 = vmatpush1.bf16.msra.mxu0 %v8148_v20  ;;  %2036 = vmatpush1.bf16.msra.mxu1 %v8148_v20  ;;  %v8408_v20 = vld [vmem:[%s10196_s9 + $0x1f4] ss:$8 sps:$4 sm:$0xff]  }
 0x639   :  { %v7975_v43 = vadd.f32 %v1915_v35, %v1914_v61  ;;  %v821_v19 = vmul.f32 %v819_v31, %v818_v40  ;;  %10319 = vst [vmem:[#allocation39_spill] sm:$0xff] %v8408_v20 }
 0x668   :  { %s6765_s4 = spop %6764 }
 0x669   :  { %s2413_s27 = smul.f32 0.0006377551, %s6765_s4  ;;  %s7191_s4 = smov 15  }
 0x66b   :  { %v2414_v51 = vstv %s2413_s27  ;;  %s6302_s27 = sld [smem:[#allocation6 + $0x2]] }
 0x66c   :  { %v8065_v41 = vsub.f32 %v7828_v21, %v2414_v51  ;;  %v8068_v5 = vsub.f32 %v7853_v28, %v2414_v51  ;;  %v820_v28 = vmul.f32 %v819_v31, %v817_v57 }
 0x66e   :  { %10303 = vst [vmem:[#allocation23_spill] sm:$0xff] %v8065_v41  ;;  %10304 = vst [vmem:[#allocation24_spill] sm:$0xff] %v8068_v5  ;;  %v2417_v42 = vmul.f32 %v8065_v41, %v8065_v41  ;;  %v2418_v21 = vmul.f32 %v8068_v5, %v8068_v5  ;;  %v823_v10 = vadd.f32 %v822_v3, %v820_v28  ;;  %v8390_v5 = vld [vmem:[%s10196_s9 + $0x1d0] ss:$8 sps:$4 sm:$0xff]   ;;  %v8396_v41 = vld [vmem:[%s10196_s9 + $0x1e4] ss:$8 sps:$4 sm:$0xff]  }
 0x66f   :  { %v824_v28 = vadd.f32 %v822_v3, %v821_v19  ;;  %10316 = vst [vmem:[#allocation36_spill] sm:$0xff] %v8390_v5  ;;  %10317 = vst [vmem:[#allocation37_spill] sm:$0xff] %v8396_v41 }
 0x670   :  { %v2428_v44 = vrot.slane %v2417_v42, %v7304_v11  ;;  %v2421_v48 = vcombine.high %v2417_v42, %v2417_v42  ;;  %v2445_v60 = vrot.slane %v2418_v21, %v7304_v11  ;;  %v825_v37 = vmax.f32 %v823_v10, 0.0  ;;  %v8160_v42 = vld [vmem:[%s10196_s9 + $0x104] ss:$8 sps:$4 sm:$0xff]  }
 0x671   :  { %v2438_v58 = vcombine.high %v2418_v21, %v2418_v21  ;;  %10310 = vst [vmem:[#allocation30_spill] sm:$0xff] %v8160_v42  ;;  %1445 = vmatprep.subr.bf16.mxu0 %v8160_v42  ;;  %2046 = vmatprep.subr.bf16.mxu1 %v8160_v42  ;;  %v8402_v42 = vld [vmem:[%s10196_s9 + $0x1e0] ss:$8 sps:$4 sm:$0xff]  }
 0x672   :  { %2454 = vrot.lane.b32.xlu1 %v2428_v44, %s7178_s3  ;;  %v2436_v4 = vcombine.high %v2428_v44, %v2428_v44  ;;  %v2435_v13 = vrot.slane %v2421_v48, %v7304_v11  ;;  %v2453_v50 = vcombine.high %v2445_v60, %v2445_v60  ;;  %v836_v36 = vrot.slane %v825_v37, %v7304_v11 }
 0x673   :  { %v829_v61 = vcombine.high %v825_v37, %v825_v37  ;;  %v2452_v51 = vrot.slane %v2438_v58, %v7304_v11  ;;  %v1910_v44 = vmul.f32 %v1909_v2, %v7807_v15  ;;  %10318 = vst [vmem:[#allocation38_spill] sm:$0xff] %v8402_v42 }
 0x674   :  { %2456 = vrot.lane.b32.xlu0 %v2436_v4, %s7178_s3  ;;  %v2437_v12 = vcombine.high %v2435_v13, %v2435_v13  ;;  %v844_v57 = vcombine.high %v836_v36, %v836_v36  ;;  %v869_v10 = vpack.c.bf16 %v836_v36, %v836_v36 }
 0x675   :  { %v843_v21 = vrot.slane %v829_v61, %v7304_v11  ;;  %v1913_v4 = vmul.f32 %v1912_v49, %v1910_v44 }
 0x676   :  { %2458 = vrot.lane.b32.xlu1 %v2435_v13, %s7178_s3  ;;  %v870_v18 = vpack.c.bf16 %v844_v57, %v844_v57 }
 0x677   :  { %v871_v48 = vpack.c.bf16 %v843_v21, %v843_v21  ;;  %v845_v13 = vcombine.high %v843_v21, %v843_v21 }
 0x678   :  { %2464 = vrot.lane.b32.xlu0 %v2453_v50, %s7178_s3  ;;  %v1916_v50 = vadd.f32 %v1915_v35, %v1913_v4 }
 0x679   :  { %v872_v37 = vpack.c.bf16 %v845_v13, %v845_v13 }
 0x67a   :  { %2460 = vrot.lane.b32.xlu1 %v2437_v12, %s7178_s3  ;;  %v8179_v12 = vmax.f32 %v1916_v50, 0.0 }
 0x67c   :  { %v1929_v49 = vrot.slane %v8179_v12, %v7304_v11 }
 0x67e   :  { %2462 = vrot.lane.b32.xlu1 %v2445_v60, %s7178_s3  ;;  %v826_v60 = vmax.f32 %v824_v28, 0.0  ;;  %v1937_v35 = vcombine.high %v1929_v49, %v1929_v49 }
 0x680   :  { %v853_v31 = vrot.slane %v826_v60, %v7304_v11  ;;  %v846_v3 = vcombine.high %v826_v60, %v826_v60  ;;  %v1963_v61 = vpack.c.bf16 %v1937_v35, %v1937_v35 }
 0x682   :  { %2466 = vrot.lane.b32.xlu1 %v2452_v51, %s7178_s3  ;;  %v873_v15 = vpack.c.bf16 %v853_v31, %v853_v31  ;;  %v861_v2 = vcombine.high %v853_v31, %v853_v31  ;;  %v860_v36 = vrot.slane %v846_v3, %v7304_v11  ;;  %v1962_v51 = vpack.c.bf16 %v1929_v49, %v1929_v49 }
 0x684   :  { %v874_v58 = vpack.c.bf16 %v861_v2, %v861_v2  ;;  %v875_v40 = vpack.c.bf16 %v860_v36, %v860_v36 }
 0x686   :  { %885 = vrot.lane.b32.xlu1 %v870_v18, %s7178_s3 }
 0x68a   :  { %887 = vrot.lane.b32.xlu1 %v871_v48, %s7178_s3 }
 0x68e   :  { %883 = vrot.lane.b32.xlu1 %v869_v10, %s7178_s3 }
 0x692   :  { %889 = vrot.lane.b32.xlu1 %v872_v37, %s7178_s3 }
 0x696   :  { %891 = vrot.lane.b32.xlu1 %v873_v15, %s7178_s3 }
 0x69a   :  { %893 = vrot.lane.b32.xlu1 %v874_v58, %s7178_s3 }
 0x69e   :  { %895 = vrot.lane.b32.xlu1 %v875_v40, %s7178_s3 }
 0x6a2   :  { %1978 = vrot.lane.b32.xlu1 %v1963_v61, %s7178_s3 }
 0x6a6   :  { %1976 = vrot.lane.b32.xlu1 %v1962_v51, %s7178_s3 }
 0x6e4   :  { %v2455_v57 = vpop.permute.xlu1 %2454 }
 0x6e6   :  { %v2457_v19 = vpop.permute.xlu0 %2456 }
 0x6e7   :  { %v2468_v28 = vsel %vm459_vm5, %v2455_v57, %v2457_v19 }
 0x6e8   :  { %v2459_v18 = vpop.permute.xlu1 %2458  ;;  %v2481_v4 = vsel %vm324_vm2, %v2468_v28, 0.0 }
 0x6e9   :  { %v2469_v21 = vsel %vm459_vm5, %v2457_v19, %v2459_v18 }
 0x6ea   :  { %v2482_v44 = vsel %vm324_vm2, %v2469_v21, 0.0  ;;  %v2465_v31 = vpop.permute.xlu0 %2464 }
 0x6eb   :  { %v2483_v13 = vadd.f32 %v2482_v44, %v2481_v4  ;;  %v8209_v44 = vld [vmem:[%s10196_s9 + $0x100] ss:$8 sps:$4 sm:$0xff]  }
 0x6ec   :  { %v2461_v48 = vpop.permute.xlu1 %2460 }
 0x6ed   :  { %v2470_v60 = vsel %vm459_vm5, %v2459_v18, %v2461_v48 }
 0x6ee   :  { %v2484_v10 = vsel %vm324_vm2, %v2470_v60, 0.0  ;;  %v8214_v60 = vld [vmem:[%s10196_s9 + $0x114] ss:$8 sps:$4 sm:$0xff]  }
 0x6ef   :  { %v2485_v37 = vadd.f32 %v2484_v10, %v2483_v13  ;;  %v8221_v10 = vld [vmem:[%s10196_s9 + $0x110] ss:$8 sps:$4 sm:$0xff]  }
 0x6f0   :  { %v2463_v50 = vpop.permute.xlu1 %2462 }
 0x6f1   :  { %v2471_v3 = vsel %vm459_vm5, %v2461_v48, %v2463_v50  ;;  %v2472_v15 = vsel %vm459_vm5, %v2463_v50, %v2465_v31  ;;  %v1922_v50 = vcombine.high %v8179_v12, %v8179_v12 }
 0x6f2   :  { %v2486_v2 = vsel %vm324_vm2, %v2471_v3, 0.0  ;;  %v2488_v58 = vsel %vm324_vm2, %v2472_v15, 0.0  ;;  %v8245_v15 = vld [vmem:[%s10196_s9 + $0x134] ss:$8 sps:$4 sm:$0xff]  }
 0x6f3   :  { %v2487_v49 = vadd.f32 %v2486_v2, %v2485_v37  ;;  %v8237_v37 = vld [vmem:[%s10196_s9 + $0x120] ss:$8 sps:$4 sm:$0xff]   ;;  %v8251_v2 = vmax.f32 %v7975_v43, 0.0 }
 0x6f4   :  { %v2467_v36 = vpop.permute.xlu1 %2466 }
 0x6f5   :  { %v2489_v40 = vadd.f32 %v2488_v58, %v2487_v49  ;;  %v2473_v35 = vsel %vm459_vm5, %v2465_v31, %v2467_v36  ;;  %v2492_v57 = vsel %vm705_vm14, %v2467_v36, 0.0  ;;  %v8229_v31 = vld [vmem:[%s10196_s9 + $0x124] ss:$8 sps:$4 sm:$0xff]   ;;  %10311 = vst [vmem:[#allocation31_spill] sm:$0xff] %v8251_v2  ;;  %v8257_v49 = vld [vmem:[%s10196_s9 + $0x130] ss:$8 sps:$4 sm:$0xff]   ;;  %v8260_v58 = vrot.slane %v1922_v50, %v7304_v11 }
 0x6f6   :  { %v2490_v61 = vsel %vm324_vm2, %v2473_v35, 0.0  ;;  %v8266_v36 = vld [vmem:[%s10196_s9 + $0x144] ss:$8 sps:$4 sm:$0xff]   ;;  %v8270_v43 = vrot.slane %v8251_v2, %v7304_v11  ;;  %v8330_v50 = vld [vmem:[%s10196_s9 + $0x180] ss:$8 sps:$4 sm:$0xff]   ;;  %vm3188_vm14 = vcmask 549888  }
 0x6f7   :  { %v2491_v51 = vadd.f32 %v2490_v61, %v2489_v40  ;;  %10312 = vst [vmem:[#allocation32_spill] sm:$0xff] %v8260_v58  ;;  %v8276_v40 = vld [vmem:[%s10196_s9 + $0x140] ss:$8 sps:$4 sm:$0xff]   ;;  %v1964_v35 = vpack.c.bf16 %v8260_v58, %v8260_v58  ;;  %v8284_v61 = vld [vmem:[%s10196_s9 + $0x154] ss:$8 sps:$4 sm:$0xff]  }
 0x6f8   :  { %v886_v19 = vpop.permute.xlu1 %885  ;;  %10313 = vst [vmem:[#allocation33_spill] sm:$0xff] %v8270_v43  ;;  %v8360_v58 = vld [vmem:[%s10196_s9 + $0x1b4] ss:$8 sps:$4 sm:$0xff]   ;;  %v8378_v11 = vld [vmem:[%s10196_s9 + $0x1c0] ss:$8 sps:$4 sm:$0xff]  }
 0x6f9   :  { %v2493_v18 = vadd.f32 %v2492_v57, %v2491_v51  ;;  %v8291_v51 = vld [vmem:[%s10196_s9 + $0x150] ss:$8 sps:$4 sm:$0xff]   ;;  %v1966_v57 = vpack.c.bf16 %v8270_v43, %v8270_v43  ;;  %v8354_v43 = vld [vmem:[%s10196_s9 + $0x1a0] ss:$8 sps:$4 sm:$0xff]   ;;  %10314 = vst [vmem:[#allocation34_spill] sm:$0xff] %v8378_v11 }
 0x6fa   :  { %v8384_v2 = vld [vmem:[%s10196_s9 + $0x1d4] ss:$8 sps:$4 sm:$0xff]  }
 0x6fb   :  { %2494 = vadd.xlane.f32.xlu0 %v2493_v18  ;;  %v8306_v18 = vld [vmem:[%s10196_s9 + $0x160] ss:$8 sps:$4 sm:$0xff]   ;;  %10315 = vst [vmem:[#allocation35_spill] sm:$0xff] %v8384_v2 }
 0x6fc   :  { %v8202_v21 = vpop.permute.xlu1 %887 }
 0x6fd   :  { %v899_v28 = vsel %vm459_vm5, %v886_v19, %v8202_v21 }
 0x6fe   :  { %1436 = vmatprep.mubr.bf16.mxu0 %v899_v28  ;;  %v8312_v28 = vld [vmem:[%s10196_s9 + $0x174] ss:$8 sps:$4 sm:$0xff]  }
 0x700   :  { %v884_v48 = vpop.permute.xlu1 %883 }
 0x701   :  { %v898_v4 = vsel %vm459_vm5, %v884_v48, %v886_v19  ;;  %v8299_v19 = vld [vmem:[%s10196_s9 + $0x164] ss:$8 sps:$4 sm:$0xff]   ;;  %v8318_v48 = vld [vmem:[%s10196_s9 + $0x170] ss:$8 sps:$4 sm:$0xff]  }
 0x702   :  { %1437 = vmatmul.mubr.bf16.vlgmr.msra.gmra.mrb[0].mxu0 %v898_v4  ;;  %v8324_v4 = vld [vmem:[%s10196_s9 + $0x184] ss:$8 sps:$4 sm:$0xff]  }
 0x703   :  { %1446 = vmatpush1.bf16.msra.mxu0 %v8209_v44 }
 0x704   :  { %v8223_v13 = vpop.permute.xlu1 %889  ;;  %1447 = vmatprep.subr.bf16.mxu0 %v8214_v60 }
 0x705   :  { %v900_v52 = vsel %vm459_vm5, %v8202_v21, %v8223_v13  ;;  %v8472_v21 = vld [vmem:[%s10196_s9 + $0x230] ss:$8 sps:$4 sm:$0xff]  }
 0x706   :  { %10328 = vst [vmem:[#allocation48_spill] sm:$0xff] %v8472_v21 }
 0x707   :  { %1448 = vmatpush1.bf16.msra.mxu0 %v8221_v10 }
 0x708   :  { %v8239_v3 = vpop.permute.xlu1 %891  ;;  %1449 = vmatprep.subr.bf16.mxu0 %v8229_v31 }
 0x709   :  { %v901_v12 = vsel %vm459_vm5, %v8223_v13, %v8239_v3  ;;  %v8478_v13 = vld [vmem:[%s10196_s9 + $0x244] ss:$8 sps:$4 sm:$0xff]  }
 0x70a   :  { %1477 = vmatprep.mubr.bf16.mxu0 %v901_v12  ;;  %v8336_v12 = vld [vmem:[%s10196_s9 + $0x194] ss:$8 sps:$4 sm:$0xff]   ;;  %10329 = vst [vmem:[#allocation49_spill] sm:$0xff] %v8478_v13 }
 0x70b   :  { %1450 = vmatpush1.bf16.msra.mxu0 %v8237_v37 }
 0x70c   :  { %1451 = vmatprep.subr.bf16.mxu0 %v8245_v15  ;;  %v8410_v1 = vpop.permute.xlu1 %893 }
 0x70f   :  { %1452 = vmatpush1.bf16.msra.mxu0 %v8257_v49 }
 0x710   :  { %1453 = vmatprep.subr.bf16.mxu0 %v8266_v36 }
 0x711   :  { %1980 = vrot.lane.b32.xlu0 %v1964_v35, %s7178_s3  ;;  %v8342_v35 = vld [vmem:[%s10196_s9 + $0x190] ss:$8 sps:$4 sm:$0xff]  }
 0x713   :  { %1454 = vmatpush1.bf16.msra.mxu0 %v8276_v40 }
 0x714   :  { %1455 = vmatprep.subr.bf16.mxu0 %v8284_v61 }
 0x715   :  { %1984 = vrot.lane.b32.xlu0 %v1966_v57, %s7178_s3  ;;  %v8348_v57 = vld [vmem:[%s10196_s9 + $0x1a4] ss:$8 sps:$4 sm:$0xff]  }
 0x717   :  { %1456 = vmatpush1.bf16.msra.mxu0 %v8291_v51 }
 0x718   :  { %1457 = vmatprep.subr.bf16.mxu0 %v8299_v19 }
 0x71b   :  { %1458 = vmatpush1.bf16.msra.mxu0 %v8306_v18 }
 0x71c   :  { %1459 = vmatprep.subr.bf16.mxu0 %v8312_v28 }
 0x71f   :  { %1460 = vmatpush1.bf16.msra.mxu0 %v8318_v48 }
 0x720   :  { %1461 = vmatprep.subr.bf16.mxu0 %v8324_v4 }
 0x723   :  { %1462 = vmatpush1.bf16.msra.mxu0 %v8330_v50 }
 0x724   :  { %1463 = vmatprep.subr.bf16.mxu0 %v8336_v12 }
 0x727   :  { %1464 = vmatpush1.bf16.msra.mxu0 %v8342_v35 }
 0x728   :  { %1465 = vmatprep.subr.bf16.mxu0 %v8348_v57 }
 0x72b   :  { %1466 = vmatpush1.bf16.msra.mxu0 %v8354_v43 }
 0x72c   :  { %1467 = vmatprep.subr.bf16.mxu0 %v8360_v58 }
 0x72f   :  { %1468 = vmatpush1.bf16.msra.mxu0 %v8366_v8 }
 0x730   :  { %1469 = vmatprep.subr.bf16.mxu0 %v8372_v7 }
 0x733   :  { %1470 = vmatpush1.bf16.msra.mxu0 %v8378_v11 }
 0x734   :  { %1471 = vmatprep.subr.bf16.mxu0 %v8384_v2 }
 0x737   :  { %1472 = vmatpush1.bf16.msra.mxu0 %v8390_v5  ;;  %v8424_v5 = vpop.permute.xlu1 %895 }
 0x738   :  { %1473 = vmatprep.subr.bf16.mxu0 %v8396_v41  ;;  %v8422_v41 = vld [vmem:[%s10196_s9 + $0x204] ss:$8 sps:$4 sm:$0xff]  }
 0x739   :  { %10321 = vst [vmem:[#allocation41_spill] sm:$0xff] %v8422_v41 }
 0x73b   :  { %1474 = vmatpush1.bf16.msra.mxu0 %v8402_v42  ;;  %v8430_v42 = vld [vmem:[%s10196_s9 + $0x200] ss:$8 sps:$4 sm:$0xff]  }
 0x73c   :  { %1475 = vmatprep.subr.bf16.mxu0 %v8408_v20  ;;  %10322 = vst [vmem:[#allocation42_spill] sm:$0xff] %v8430_v42  ;;  %v8436_v20 = vld [vmem:[%s10196_s9 + $0x214] ss:$8 sps:$4 sm:$0xff]  }
 0x73d   :  { %10323 = vst [vmem:[#allocation43_spill] sm:$0xff] %v8436_v20 }
 0x73f   :  { %1476 = vmatpush1.bf16.msra.mxu0 %v8416_v0  ;;  %v903_v0 = vsel %vm459_vm5, %v8410_v1, %v8424_v5 }
 0x740   :  { %1486 = vmatprep.subr.bf16.mxu0 %v8422_v41  ;;  %v8448_v41 = vld [vmem:[%s10196_s9 + $0x210] ss:$8 sps:$4 sm:$0xff]  }
 0x741   :  { %10324 = vst [vmem:[#allocation44_spill] sm:$0xff] %v8448_v41 }
 0x742   :  { %1478 = vmatmul.mubr.bf16.vlgmr.msra.gmra.mrb[0].mxu0 %v900_v52  ;;  %v8460_v52 = vld [vmem:[%s10196_s9 + $0x220] ss:$8 sps:$4 sm:$0xff]  }
 0x743   :  { %1487 = vmatpush1.bf16.msra.mxu0 %v8430_v42  ;;  %1518 = vmatprep.mubr.bf16.mxu0 %v903_v0  ;;  %10326 = vst [vmem:[#allocation46_spill] sm:$0xff] %v8460_v52  ;;  %v8466_v0 = vld [vmem:[%s10196_s9 + $0x234] ss:$8 sps:$4 sm:$0xff]  }
 0x744   :  { %1488 = vmatprep.subr.bf16.mxu0 %v8436_v20  ;;  %10327 = vst [vmem:[#allocation47_spill] sm:$0xff] %v8466_v0 }
 0x747   :  { %1489 = vmatpush1.bf16.msra.mxu0 %v8448_v41 }
 0x748   :  { %1490 = vmatprep.subr.bf16.mxu0 %v8454_v32  ;;  %v8484_v32 = vld [vmem:[%s10196_s9 + $0x240] ss:$8 sps:$4 sm:$0xff]  }
 0x749   :  { %10330 = vst [vmem:[#allocation50_spill] sm:$0xff] %v8484_v32 }
 0x74b   :  { %1491 = vmatpush1.bf16.msra.mxu0 %v8460_v52  ;;  %v8490_v52 = vld [vmem:[%s10196_s9 + $0x254] ss:$8 sps:$4 sm:$0xff]  }
 0x74c   :  { %1492 = vmatprep.subr.bf16.mxu0 %v8466_v0  ;;  %10331 = vst [vmem:[#allocation51_spill] sm:$0xff] %v8490_v52  ;;  %v8496_v0 = vld [vmem:[%s10196_s9 + $0x250] ss:$8 sps:$4 sm:$0xff]  }
 0x74d   :  { %10332 = vst [vmem:[#allocation52_spill] sm:$0xff] %v8496_v0 }
 0x74f   :  { %1493 = vmatpush1.bf16.msra.mxu0 %v8472_v21  ;;  %v8502_v21 = vld [vmem:[%s10196_s9 + $0x264] ss:$8 sps:$4 sm:$0xff]  }
 0x750   :  { %1494 = vmatprep.subr.bf16.mxu0 %v8478_v13  ;;  %10333 = vst [vmem:[#allocation53_spill] sm:$0xff] %v8502_v21  ;;  %v8508_v13 = vld [vmem:[%s10196_s9 + $0x260] ss:$8 sps:$4 sm:$0xff]  }
 0x751   :  { %10334 = vst [vmem:[#allocation54_spill] sm:$0xff] %v8508_v13 }
 0x753   :  { %1495 = vmatpush1.bf16.msra.mxu0 %v8484_v32  ;;  %v8514_v32 = vld [vmem:[%s10196_s9 + $0x274] ss:$8 sps:$4 sm:$0xff]  }
 0x754   :  { %1496 = vmatprep.subr.bf16.mxu0 %v8490_v52  ;;  %10335 = vst [vmem:[#allocation55_spill] sm:$0xff] %v8514_v32  ;;  %v8520_v52 = vld [vmem:[%s10196_s9 + $0x270] ss:$8 sps:$4 sm:$0xff]  }
 0x755   :  { %10336 = vst [vmem:[#allocation56_spill] sm:$0xff] %v8520_v52 }
 0x757   :  { %1497 = vmatpush1.bf16.msra.mxu0 %v8496_v0  ;;  %v8526_v0 = vld [vmem:[%s10196_s9 + $0x284] ss:$8 sps:$4 sm:$0xff]  }
 0x758   :  { %1498 = vmatprep.subr.bf16.mxu0 %v8502_v21  ;;  %10337 = vst [vmem:[#allocation57_spill] sm:$0xff] %v8526_v0  ;;  %v8532_v21 = vld [vmem:[%s10196_s9 + $0x280] ss:$8 sps:$4 sm:$0xff]  }
 0x759   :  { %10338 = vst [vmem:[#allocation58_spill] sm:$0xff] %v8532_v21 }
 0x75b   :  { %1499 = vmatpush1.bf16.msra.mxu0 %v8508_v13  ;;  %v8538_v13 = vld [vmem:[%s10196_s9 + $0x294] ss:$8 sps:$4 sm:$0xff]  }
 0x75c   :  { %1500 = vmatprep.subr.bf16.mxu0 %v8514_v32  ;;  %10339 = vst [vmem:[#allocation59_spill] sm:$0xff] %v8538_v13  ;;  %v8544_v32 = vld [vmem:[%s10196_s9 + $0x290] ss:$8 sps:$4 sm:$0xff]  }
 0x75d   :  { %10340 = vst [vmem:[#allocation60_spill] sm:$0xff] %v8544_v32 }
 0x75f   :  { %1501 = vmatpush1.bf16.msra.mxu0 %v8520_v52  ;;  %v8550_v52 = vld [vmem:[%s10196_s9 + $0x2a4] ss:$8 sps:$4 sm:$0xff]  }
 0x760   :  { %1502 = vmatprep.subr.bf16.mxu0 %v8526_v0  ;;  %10341 = vst [vmem:[#allocation61_spill] sm:$0xff] %v8550_v52  ;;  %v8556_v0 = vld [vmem:[%s10196_s9 + $0x2a0] ss:$8 sps:$4 sm:$0xff]  }
 0x761   :  { %10342 = vst [vmem:[#allocation62_spill] sm:$0xff] %v8556_v0 }
 0x763   :  { %1503 = vmatpush1.bf16.msra.mxu0 %v8532_v21  ;;  %v8562_v21 = vld [vmem:[%s10196_s9 + $0x2b4] ss:$8 sps:$4 sm:$0xff]  }
 0x764   :  { %1504 = vmatprep.subr.bf16.mxu0 %v8538_v13  ;;  %10343 = vst [vmem:[#allocation63_spill] sm:$0xff] %v8562_v21  ;;  %v8568_v13 = vld [vmem:[%s10196_s9 + $0x2b0] ss:$8 sps:$4 sm:$0xff]  }
 0x765   :  { %10344 = vst [vmem:[#allocation64_spill] sm:$0xff] %v8568_v13 }
 0x767   :  { %1505 = vmatpush1.bf16.msra.mxu0 %v8544_v32  ;;  %v8574_v32 = vld [vmem:[%s10196_s9 + $0x2c4] ss:$8 sps:$4 sm:$0xff]  }
 0x768   :  { %1506 = vmatprep.subr.bf16.mxu0 %v8550_v52  ;;  %10345 = vst [vmem:[#allocation65_spill] sm:$0xff] %v8574_v32  ;;  %v8580_v52 = vld [vmem:[%s10196_s9 + $0x2c0] ss:$8 sps:$4 sm:$0xff]  }
 0x769   :  { %10346 = vst [vmem:[#allocation66_spill] sm:$0xff] %v8580_v52 }
 0x76b   :  { %1507 = vmatpush1.bf16.msra.mxu0 %v8556_v0  ;;  %v8586_v0 = vld [vmem:[%s10196_s9 + $0x2d4] ss:$8 sps:$4 sm:$0xff]  }
 0x76c   :  { %1508 = vmatprep.subr.bf16.mxu0 %v8562_v21  ;;  %10347 = vst [vmem:[#allocation67_spill] sm:$0xff] %v8586_v0  ;;  %v8592_v21 = vld [vmem:[%s10196_s9 + $0x2d0] ss:$8 sps:$4 sm:$0xff]  }
 0x76d   :  { %10348 = vst [vmem:[#allocation68_spill] sm:$0xff] %v8592_v21 }
 0x76f   :  { %1509 = vmatpush1.bf16.msra.mxu0 %v8568_v13  ;;  %v8598_v13 = vld [vmem:[%s10196_s9 + $0x2e4] ss:$8 sps:$4 sm:$0xff]  }
 0x770   :  { %1510 = vmatprep.subr.bf16.mxu0 %v8574_v32  ;;  %10349 = vst [vmem:[#allocation69_spill] sm:$0xff] %v8598_v13  ;;  %v8604_v32 = vld [vmem:[%s10196_s9 + $0x2e0] ss:$8 sps:$4 sm:$0xff]  }
 0x771   :  { %10350 = vst [vmem:[#allocation70_spill] sm:$0xff] %v8604_v32 }
 0x773   :  { %1511 = vmatpush1.bf16.msra.mxu0 %v8580_v52  ;;  %v8610_v52 = vld [vmem:[%s10196_s9 + $0x2f4] ss:$8 sps:$4 sm:$0xff]  }
 0x774   :  { %1512 = vmatprep.subr.bf16.mxu0 %v8586_v0  ;;  %10351 = vst [vmem:[#allocation71_spill] sm:$0xff] %v8610_v52  ;;  %v8616_v0 = vld [vmem:[%s10196_s9 + $0x2f0] ss:$8 sps:$4 sm:$0xff]  }
 0x775   :  { %10352 = vst [vmem:[#allocation72_spill] sm:$0xff] %v8616_v0 }
 0x777   :  { %1513 = vmatpush1.bf16.msra.mxu0 %v8592_v21  ;;  %v8622_v21 = vld [vmem:[%s10196_s9 + $0x304] ss:$8 sps:$4 sm:$0xff]  }
 0x778   :  { %1514 = vmatprep.subr.bf16.mxu0 %v8598_v13  ;;  %10353 = vst [vmem:[#allocation73_spill] sm:$0xff] %v8622_v21  ;;  %v8628_v13 = vld [vmem:[%s10196_s9 + $0x300] ss:$8 sps:$4 sm:$0xff]  }
 0x77b   :  { %1515 = vmatpush1.bf16.msra.mxu0 %v8604_v32  ;;  %v902_v32 = vsel %vm459_vm5, %v8239_v3, %v8410_v1  ;;  %v10370_v3 = vld [vmem:[#allocation31_spill] sm:$0xff] }
 0x77c   :  { %1516 = vmatprep.subr.bf16.mxu0 %v8610_v52  ;;  %v7186_v52 = vmov 0  }
 0x77f   :  { %1517 = vmatpush1.bf16.msra.mxu0 %v8616_v0  ;;  %v1979_v0 = vpop.permute.xlu1 %1978 }
 0x780   :  { %1527 = vmatprep.subr.bf16.mxu0 %v8622_v21 }
 0x782   :  { %1519 = vmatmul.mubr.bf16.vlgmr.msra.gmra.mrb[0].mxu0 %v902_v32 }
 0x783   :  { %1528 = vmatpush1.bf16.msra.mxu0 %v8628_v13  ;;  %1559 = vmatprep.mubr.bf16.mxu0 %v7186_v52  ;;  %v1977_v42 = vpop.permute.xlu1 %1976 }
 0x784   :  { %2606 = vmatprep.subr.bf16.mxu0 %v7889_v17  ;;  %v1990_v32 = vsel %vm459_vm5, %v1977_v42, %v1979_v0 }
 0x788   :  { %v2495_v41 = vpop.xlane.xlu0 %2494 }
 0x789   :  { %v2496_v20 = vrot.slane %v2495_v41, 4 }
 0x78b   :  { %v2497_v2 = vadd.f32 %v2496_v20, %v2495_v41 }
 0x78c   :  { %v8637_v11 = vpop.permute.xlu0 %1980 }
 0x78d   :  { %v1991_v21 = vsel %vm459_vm5, %v1979_v0, %v8637_v11  ;;  %v2498_v1 = vrot.slane %v2497_v2, 2 }
 0x78e   :  { %6280 = vmatmul.mubr.msk.bf16.vlgmr.msra.gmra.mrb[0].mxu0 %vm1400_vm15, %v8424_v5  ;;  %2037 = vmatprep.mubr.bf16.mxu1 %v1991_v21  ;;  %v10369_v5 = vld [vmem:[#allocation24_spill] sm:$0xff] }
 0x78f   :  { %2038 = vmatmul.mubr.bf16.vlgmr.msra.gmra.mrb[0].mxu1 %v1990_v32  ;;  %v2499_v17 = vadd.f32 %v2498_v1, %v2497_v2  ;;  %2607 = vmatpush1.bf16.msra.mxu0 %v7894_v33  ;;  %v10354_v33 = vld [vmem:[#allocation34_spill] sm:$0xff]  ;;  %v1939_v2 = vcombine.high %v10370_v3, %v10370_v3 }
 0x790   :  { %2608 = vmatprep.subr.bf16.mxu0 %v7899_v22  ;;  %2047 = vmatpush1.bf16.msra.mxu1 %v8209_v44  ;;  %v10355_v22 = vld [vmem:[#allocation35_spill] sm:$0xff]  ;;  %v10371_v32 = vld [vmem:[#allocation22_spill] sm:$0xff] }
 0x791   :  { %v2500_v41 = vrot.slane %v2499_v17, 1  ;;  %2048 = vmatprep.subr.bf16.mxu1 %v8214_v60 }
 0x793   :  { %v2501_v20 = vadd.f32 %v2500_v41, %v2499_v17  ;;  %2609 = vmatpush1.bf16.msra.mxu0 %v7907_v9  ;;  %v10356_v9 = vld [vmem:[#allocation25_spill] sm:$0xff] }
 0x794   :  { %2610 = vmatprep.subr.bf16.mxu0 %v7914_v47  ;;  %2049 = vmatpush1.bf16.msra.mxu1 %v8221_v10  ;;  %v10357_v47 = vld [vmem:[#allocation26_spill] sm:$0xff] }
 0x795   :  { %6766 = vpush %v2501_v20  ;;  %2050 = vmatprep.subr.bf16.mxu1 %v8229_v31  ;;  %v126_v20 = vld [vmem:[%s10195_s8] ss:$2 sm:$0x3] }
 0x797   :  { %2611 = vmatpush1.bf16.msra.mxu0 %v7923_v29  ;;  %v10358_v29 = vld [vmem:[#allocation36_spill] sm:$0xff] }
 0x798   :  { %2612 = vmatprep.subr.bf16.mxu0 %v7932_v26  ;;  %2051 = vmatpush1.bf16.msra.mxu1 %v8237_v37  ;;  %v10359_v26 = vld [vmem:[#allocation37_spill] sm:$0xff] }
 0x799   :  { %2052 = vmatprep.subr.bf16.mxu1 %v8245_v15 }
 0x79b   :  { %2613 = vmatpush1.bf16.msra.mxu0 %v7939_v16  ;;  %v10360_v16 = vld [vmem:[#allocation27_spill] sm:$0xff] }
 0x79c   :  { %2614 = vmatprep.subr.bf16.mxu0 %v7946_v54  ;;  %2053 = vmatpush1.bf16.msra.mxu1 %v8257_v49  ;;  %v10361_v54 = vld [vmem:[#allocation28_spill] sm:$0xff] }
 0x79d   :  { %2054 = vmatprep.subr.bf16.mxu1 %v8266_v36 }
 0x79f   :  { %2615 = vmatpush1.bf16.msra.mxu0 %v7960_v38  ;;  %v10362_v38 = vld [vmem:[#allocation38_spill] sm:$0xff] }
 0x7a0   :  { %2616 = vmatprep.subr.bf16.mxu0 %v7968_v23  ;;  %2055 = vmatpush1.bf16.msra.mxu1 %v8276_v40  ;;  %v10363_v23 = vld [vmem:[#allocation39_spill] sm:$0xff] }
 0x7a1   :  { %2056 = vmatprep.subr.bf16.mxu1 %v8284_v61 }
 0x7a3   :  { %2617 = vmatpush1.bf16.msra.mxu0 %v7981_v46 }
 0x7a4   :  { %2618 = vmatprep.subr.bf16.mxu0 %v7988_v53  ;;  %2057 = vmatpush1.bf16.msra.mxu1 %v8291_v51  ;;  %v10364_v53 = vld [vmem:[#allocation29_spill] sm:$0xff] }
 0x7a5   :  { %2058 = vmatprep.subr.bf16.mxu1 %v8299_v19 }
 0x7a7   :  { %2619 = vmatpush1.bf16.msra.mxu0 %v7995_v45  ;;  %v10365_v45 = vld [vmem:[#allocation30_spill] sm:$0xff] }
 0x7a8   :  { %2620 = vmatprep.subr.bf16.mxu0 %v8001_v62  ;;  %2059 = vmatpush1.bf16.msra.mxu1 %v8306_v18  ;;  %v10366_v62 = vld [vmem:[#allocation40_spill] sm:$0xff] }
 0x7a9   :  { %2060 = vmatprep.subr.bf16.mxu1 %v8312_v28 }
 0x7ab   :  { %2621 = vmatpush1.bf16.msra.mxu0 %v8009_v25  ;;  %v10367_v25 = vld [vmem:[#allocation41_spill] sm:$0xff] }
 0x7ac   :  { %2622 = vmatprep.subr.bf16.mxu0 %v8015_v30  ;;  %2061 = vmatpush1.bf16.msra.mxu1 %v8318_v48 }
 0x7ad   :  { %2062 = vmatprep.subr.bf16.mxu1 %v8324_v4 }
 0x7af   :  { %2623 = vmatpush1.bf16.msra.mxu0 %v8023_v34  ;;  %v7187_v34 = vmov 0.0  }
 0x7b0   :  { %2624 = vmatprep.subr.bf16.mxu0 %v8033_v55  ;;  %2063 = vmatpush1.bf16.msra.mxu1 %v8330_v50  ;;  %2770 = vst [vmem:[#allocation2] sm:$0x3f] %v7187_v34  ;;  %2771 = vst [vmem:[#allocation2 + $0x6] sm:$0x3f] %v7187_v34 }
 0x7b1   :  { %2064 = vmatprep.subr.bf16.mxu1 %v8336_v12  ;;  %2772 = vst [vmem:[#allocation2 + $0xc] sm:$0x3f] %v7187_v34 }
 0x7b3   :  { %2625 = vmatpush1.bf16.msra.mxu0 %v8038_v63  ;;  %v2513_v63 = vstv %s6302_s27  ;;  %s7193_s27 = smov 112  }
 0x7b4   :  { %2626 = vmatprep.subr.bf16.mxu0 %v8049_v56  ;;  %2065 = vmatpush1.bf16.msra.mxu1 %v8342_v35  ;;  %v10368_v56 = vld [vmem:[#allocation23_spill] sm:$0xff] }
 0x7b5   :  { %2066 = vmatprep.subr.bf16.mxu1 %v8348_v57 }
 0x7b7   :  { %2627 = vmatpush1.bf16.msra.mxu0 %v8057_v14 }
 0x7b8   :  { %2628 = vmatprep.subr.bf16.mxu0 %v8073_v24  ;;  %2067 = vmatpush1.bf16.msra.mxu1 %v8354_v43 }
 0x7b9   :  { %2068 = vmatprep.subr.bf16.mxu1 %v8360_v58 }
 0x7bb   :  { %2629 = vmatpush1.bf16.msra.mxu0 %v8079_v59  ;;  %v2516_v59 = vstv %s6303_s5  ;;  %s2905_s5 = sld [smem:[#allocation9]] }
 0x7bc   :  { %2630 = vmatprep.subr.bf16.mxu0 %v8093_v6  ;;  %2069 = vmatpush1.bf16.msra.mxu1 %v8366_v8 }
 0x7bd   :  { %2070 = vmatprep.subr.bf16.mxu1 %v8372_v7 }
 0x7bf   :  { %2631 = vmatpush1.bf16.msra.mxu0 %v8099_v39 }
 0x7c0   :  { %2632 = vmatprep.subr.bf16.mxu0 %v8111_v27  ;;  %2071 = vmatpush1.bf16.msra.mxu1 %v10354_v33 }
 0x7c1   :  { %2072 = vmatprep.subr.bf16.mxu1 %v10355_v22 }
 0x7c3   :  { %2633 = vmatpush1.bf16.msra.mxu0 %v10356_v9 }
 0x7c4   :  { %2634 = vmatprep.subr.bf16.mxu0 %v10357_v47  ;;  %2073 = vmatpush1.bf16.msra.mxu1 %v10358_v29 }
 0x7c5   :  { %2074 = vmatprep.subr.bf16.mxu1 %v10359_v26 }
 0x7c6   :  { %s6767_s9 = spop %6766 }
 0x7c7   :  { %s2505_s20 = smul.f32 0.0006377551, %s6767_s9  ;;  %2635 = vmatpush1.bf16.msra.mxu0 %v10360_v16  ;;  %s8825_s9 = sld [smem:[#allocation9 + $0x6]] }
 0x7c8   :  { %2636 = vmatprep.subr.bf16.mxu0 %v10361_v54  ;;  %2075 = vmatpush1.bf16.msra.mxu1 %v10362_v38  ;;  %v1953_v54 = vrot.slane %v1939_v2, %v10371_v32 }
 0x7c9   :  { %s2506_s25 = sadd.f32 1e-05, %s2505_s20  ;;  %2076 = vmatprep.subr.bf16.mxu1 %v10363_v23  ;;  %s8833_s20 = sld [smem:[#allocation9 + $0x7]] }
 0x7cb   :  { %v2507_v46 = vstv %s2506_s25  ;;  %2637 = vmatpush1.bf16.msra.mxu0 %v10364_v53  ;;  %s8847_s25 = sld [smem:[#allocation9 + $0x8]] }
 0x7cc   :  { %7030 = vrsqrt.f32 %v2507_v46  ;;  %2647 = vmatprep.subr.bf16.mxu0 %v10365_v45  ;;  %2077 = vmatpush1.bf16.msra.mxu1 %v10366_v62  ;;  %v10372_v45 = vld [vmem:[#allocation20_spill] sm:$0xff] }
 0x7cd   :  { %2087 = vmatprep.subr.bf16.mxu1 %v10367_v25 }
 0x7d6   :  { %v7031_v30 = vpop.eup %7030 }
 0x7d7   :  { %6768 = vpush %v7031_v30  ;;  %v2818_v30 = vrot.slane %v126_v20, %v10372_v45 }
 0x808   :  { %s6769_s26 = spop %6768 }
 0x809   :  { %v2510_v55 = vstv %s6769_s26  ;;  %s6314_s26 = sld [smem:[#allocation9 + $0xa]] }
 0x80a   :  { %v2511_v14 = vmul.f32 %v2510_v55, %v10368_v56  ;;  %v2512_v24 = vmul.f32 %v2510_v55, %v10369_v5  ;;  %v10373_v55 = vld [vmem:[#allocation21_spill] sm:$0xff]  ;;  %v1968_v56 = vpack.c.bf16 %v1953_v54, %v1953_v54 }
 0x80c   :  { %v2514_v6 = vmul.f32 %v2513_v63, %v2511_v14  ;;  %v2515_v39 = vmul.f32 %v2513_v63, %v2512_v24  ;;  %v2822_v63 = vrot.slane %v126_v20, %v10373_v55 }
 0x80e   :  { %v2517_v27 = vadd.f32 %v2516_v59, %v2514_v6  ;;  %v2518_v42 = vadd.f32 %v2516_v59, %v2515_v39  ;;  %v2823_v24 = vcombine.low %v2818_v30, %v2822_v63 }
 0x810   :  { %v2519_v0 = vmax.f32 %v2517_v27, 0.0  ;;  %v2520_v21 = vmax.f32 %v2518_v42, 0.0  ;;  %v2830_v39 = vrot.slane %v2823_v24, %v10371_v32  ;;  %v10374_v27 = vld [vmem:[#allocation32_spill] sm:$0xff] }
 0x811   :  { %v1938_v42 = vcombine.high %v10374_v27, %v10374_v27 }
 0x812   :  { %v2523_v1 = vcombine.high %v2519_v0, %v2519_v0  ;;  %v2530_v17 = vrot.slane %v2519_v0, %v10371_v32  ;;  %v2547_v41 = vrot.slane %v2520_v21, %v10371_v32  ;;  %v2540_v9 = vcombine.high %v2520_v21, %v2520_v21  ;;  %v6173_v0 = vld [vmem:[%s10195_s8 + $0x1] ss:$2 sm:$0x3]  ;;  %s7190_s8 = smov 115  }
 0x813   :  { %v1965_v3 = vpack.c.bf16 %v1938_v42, %v1938_v42  ;;  %v2842_v20 = vrot.slane %v6173_v0, %v10372_v45 }
 0x814   :  { %v2567_v47 = vpack.c.bf16 %v2547_v41, %v2547_v41  ;;  %v2538_v16 = vcombine.high %v2530_v17, %v2530_v17  ;;  %v2537_v53 = vrot.slane %v2523_v1, %v10371_v32  ;;  %v2554_v14 = vrot.slane %v2540_v9, %v10371_v32  ;;  %v10375_v1 = vld [vmem:[#allocation33_spill] sm:$0xff] }
 0x815   :  { %v2563_v6 = vpack.c.bf16 %v2530_v17, %v2530_v17  ;;  %v1954_v17 = vcombine.high %v10375_v1, %v10375_v1  ;;  %v2846_v9 = vrot.slane %v6173_v0, %v10373_v55 }
 0x816   :  { %2585 = vrot.lane.b32.xlu0 %v2567_v47, %s7178_s3  ;;  %v2564_v46 = vpack.c.bf16 %v2538_v16, %v2538_v16  ;;  %v2565_v5 = vpack.c.bf16 %v2537_v53, %v2537_v53  ;;  %v2569_v59 = vpack.c.bf16 %v2554_v14, %v2554_v14  ;;  %v2539_v2 = vcombine.high %v2537_v53, %v2537_v53 }
 0x817   :  { %v1967_v47 = vpack.c.bf16 %v1954_v17, %v1954_v17  ;;  %v2555_v16 = vcombine.high %v2547_v41, %v2547_v41  ;;  %v2847_v54 = vcombine.low %v2842_v20, %v2846_v9 }
 0x818   :  { %2579 = vrot.lane.b32.xlu1 %v2564_v46, %s7178_s3  ;;  %v2566_v21 = vpack.c.bf16 %v2539_v2, %v2539_v2 }
 0x819   :  { %v2568_v46 = vpack.c.bf16 %v2555_v16, %v2555_v16  ;;  %v2854_v53 = vrot.slane %v2847_v54, %v10371_v32 }
 0x81a   :  { %1988 = vrot.lane.b32.xlu0 %v1968_v56, %s7178_s3 }
 0x81c   :  { %2581 = vrot.lane.b32.xlu1 %v2565_v5, %s7178_s3 }
 0x81e   :  { %2589 = vrot.lane.b32.xlu0 %v2569_v59, %s7178_s3 }
 0x820   :  { %2577 = vrot.lane.b32.xlu1 %v2563_v6, %s7178_s3  ;;  %v8762_v6 = vpop.permute.xlu0 %1984 }
 0x822   :  { %2862 = vrot.lane.b32.xlu0 %v2830_v39, %s7175_s29 }
 0x824   :  { %1982 = vrot.lane.b32.xlu1 %v1965_v3, %s7178_s3 }
 0x826   :  { %2875 = vrot.lane.b32.xlu0 %v2830_v39, %s7188_s17  ;;  %s8992_s17 = sld [smem:[#allocation9 + $0xe]] }
 0x828   :  { %2583 = vrot.lane.b32.xlu1 %v2566_v21, %s7178_s3 }
 0x82a   :  { %2831 = vrot.lane.b32.xlu0 %v2830_v39, %s7189_s1 }
 0x82c   :  { %1986 = vrot.lane.b32.xlu1 %v1967_v47, %s7178_s3 }
 0x830   :  { %2587 = vrot.lane.b32.xlu1 %v2568_v46, %s7178_s3  ;;  %s6305_s3 = sld [smem:[#allocation9 + $0x1]] }
 0x834   :  { %2855 = vrot.lane.b32.xlu1 %v2854_v53, %s7190_s8  ;;  %s8997_s8 = sld [smem:[#allocation9 + $0xf]] }
 0x836   :  { %v2909_v5 = vstv %s6305_s3  ;;  %s6320_s3 = sld [smem:[#allocation9 + $0x10]] }
 0x838   :  { %2869 = vrot.lane.b32.xlu1 %v2854_v53, %s7176_s16  ;;  %s6307_s16 = sld [smem:[#allocation9 + $0x3]] }
 0x83c   :  { %2882 = vrot.lane.b32.xlu1 %v2854_v53, %s7191_s4 }
 0x83e   :  { %v2929_v46 = vstv %s6307_s16  ;;  %s6321_s16 = sld [smem:[#allocation9 + $0x11]] }
 0x861   :  { %v1561_v45 = vpop.f32.mrb[0].mxu0 }
 0x862   :  { %v1563_v30 = vpop.f32.mrb[1].mxu0 }
 0x863   :  { %v2775_v55 = vcombine.low %v1561_v45, %v1563_v30  ;;  %v1565_v41 = vpop.f32.mrb[2].mxu0  ;;  %v10379_v30 = vld [vmem:[#allocation43_spill] sm:$0xff] }
 0x864   :  { %v1566_v56 = vpop.f32.mrb[3].mxu0 }
 0x865   :  { %v2782_v14 = vrot.slane %v2775_v55, %v10371_v32  ;;  %v10382_v56 = vld [vmem:[#allocation46_spill] sm:$0xff] }
 0x867   :  { %2786 = vst.msk [vmem:[#allocation2 + $0x2] sm:$0xf] %vm8751_vm4, %v2782_v14 }
 0x86e   :  { %v8758_v24 = vld [vmem:[#allocation2] sm:$0x3f] }
 0x86f   :  { %v2910_v59 = vmul.f32 %v2909_v5, %v8758_v24  ;;  %v10384_v5 = vld [vmem:[#allocation48_spill] sm:$0xff] }
 0x871   :  { %2912 = vrot.lane.b32.xlu1 %v2910_v59, %s7175_s29 }
 0x888   :  { %v8764_v39 = vpop.permute.xlu0 %2585 }
 0x88a   :  { %v2580_v27 = vpop.permute.xlu1 %2579 }
 0x88c   :  { %v8766_v42 = vpop.permute.xlu0 %1988 }
 0x88e   :  { %v8768_v3 = vpop.permute.xlu1 %2581 }
 0x88f   :  { %v2592_v2 = vsel %vm459_vm5, %v2580_v27, %v8768_v3 }
 0x890   :  { %2638 = vmatprep.mubr.bf16.mxu0 %v2592_v2  ;;  %v8772_v0 = vpop.permute.xlu0 %2589 }
 0x892   :  { %v2578_v21 = vpop.permute.xlu1 %2577 }
 0x893   :  { %v2591_v1 = vsel %vm459_vm5, %v2578_v21, %v2580_v27  ;;  %v10385_v27 = vld [vmem:[#allocation49_spill] sm:$0xff] }
 0x894   :  { %2639 = vmatmul.mubr.bf16.vlgmr.msra.gmra.mrb[4].mxu0 %v2591_v1  ;;  %v2863_v17 = vpop.permute.xlu0 %2862  ;;  %v10386_v1 = vld [vmem:[#allocation50_spill] sm:$0xff] }
 0x895   :  { %2648 = vmatpush1.bf16.msra.mxu0 %v8209_v44  ;;  %v2864_v20 = vrot.slane %v2863_v17, 6  ;;  %v10378_v44 = vld [vmem:[#allocation42_spill] sm:$0xff] }
 0x896   :  { %v1983_v9 = vpop.permute.xlu1 %1982  ;;  %2649 = vmatprep.subr.bf16.mxu0 %v8214_v60 }
 0x897   :  { %v8778_v47 = vsel %vm415_vm1, %v2864_v20, %v2863_v17  ;;  %v1993_v16 = vsel %vm459_vm5, %v1983_v9, %v8762_v6  ;;  %v1992_v54 = vsel %vm459_vm5, %v8637_v11, %v1983_v9  ;;  %v10387_v20 = vld [vmem:[#allocation51_spill] sm:$0xff]  ;;  %v8837_v9 = vld [vmem:[#allocation2 + $0x2] sm:$0xf] }
 0x898   :  { %v8786_v53 = vmul.f32 %v8778_v47, %v8758_v24  ;;  %2078 = vmatprep.mubr.bf16.mxu1 %v1993_v16 }
 0x899   :  { %2650 = vmatpush1.bf16.msra.mxu0 %v8221_v10  ;;  %2079 = vmatmul.mubr.bf16.vlgmr.msra.gmra.mrb[0].mxu1 %v1992_v54  ;;  %v10380_v10 = vld [vmem:[#allocation44_spill] sm:$0xff] }
 0x89a   :  { %2088 = vmatpush1.bf16.msra.mxu1 %v10378_v44  ;;  %v8790_v60 = vpop.permute.xlu1 %2583  ;;  %2651 = vmatprep.subr.bf16.mxu0 %v8229_v31  ;;  %v2930_v45 = vmul.f32 %v2929_v46, %v8786_v53  ;;  %v10381_v31 = vld [vmem:[#allocation45_spill] sm:$0xff]  ;;  %v2940_v46 = vstv %s8815_s28  ;;  %s6324_s28 = sld [smem:[#allocation9 + $0x14]] }
 0x89b   :  { %2089 = vmatprep.subr.bf16.mxu1 %v10379_v30  ;;  %v2594_v11 = vsel %vm459_vm5, %v8790_v60, %v8764_v39 }
 0x89c   :  { %2932 = vrot.lane.b32.xlu1 %v2930_v45, %s7192_s6  ;;  %2679 = vmatprep.mubr.bf16.mxu0 %v2594_v11  ;;  %v2950_v45 = vstv %s8817_s30  ;;  %v10388_v11 = vld [vmem:[#allocation52_spill] sm:$0xff]  ;;  %s6325_s30 = sld [smem:[#allocation9 + $0x15]] }
 0x89d   :  { %2652 = vmatpush1.bf16.msra.mxu0 %v8237_v37  ;;  %v10383_v37 = vld [vmem:[#allocation47_spill] sm:$0xff] }
 0x89e   :  { %2090 = vmatpush1.bf16.msra.mxu1 %v10380_v10  ;;  %v8801_v55 = vpop.permute.xlu1 %1986  ;;  %2653 = vmatprep.subr.bf16.mxu0 %v8245_v15  ;;  %v2876_v15 = vpop.permute.xlu0 %2875 }
 0x89f   :  { %2091 = vmatprep.subr.bf16.mxu1 %v10381_v31  ;;  %v1995_v41 = vsel %vm459_vm5, %v8801_v55, %v8766_v42  ;;  %v2877_v2 = vrot.slane %v2876_v15, 6 }
 0x8a0   :  { %2119 = vmatprep.mubr.bf16.mxu1 %v1995_v41 }
 0x8a1   :  { %2654 = vmatpush1.bf16.msra.mxu0 %v8257_v49  ;;  %v8839_v16 = vsel %vm2878_vm11, %v2877_v2, %v2876_v15 }
 0x8a2   :  { %2092 = vmatpush1.bf16.msra.mxu1 %v10382_v56  ;;  %v8810_v14 = vpop.permute.xlu1 %2587  ;;  %2655 = vmatprep.subr.bf16.mxu0 %v8266_v36 }
 0x8a3   :  { %2093 = vmatprep.subr.bf16.mxu1 %v10383_v37 }
 0x8a5   :  { %2656 = vmatpush1.bf16.msra.mxu0 %v8276_v40  ;;  %v2919_v40 = vstv %s6306_s0  ;;  %s6323_s0 = sld [smem:[#allocation9 + $0x13]] }
 0x8a6   :  { %2094 = vmatpush1.bf16.msra.mxu1 %v10384_v5  ;;  %v2856_v49 = vpop.permute.xlu1 %2855  ;;  %2657 = vmatprep.subr.bf16.mxu0 %v8284_v61 }
 0x8a7   :  { %v2857_v59 = vrot.slane %v2856_v49, 6  ;;  %2095 = vmatprep.subr.bf16.mxu1 %v10385_v27 }
 0x8a9   :  { %v8822_v36 = vsel %vm2858_vm7, %v2857_v59, %v2856_v49  ;;  %2658 = vmatpush1.bf16.msra.mxu0 %v8291_v51  ;;  %v8859_v49 = vmul.f32 %v8839_v16, %v8837_v9  ;;  %v2941_v59 = vmul.f32 %v2940_v46, %v8837_v9  ;;  %v10391_v46 = vld [vmem:[#allocation55_spill] sm:$0xff] }
 0x8aa   :  { %v8829_v21 = vmul.f32 %v8822_v36, %v8758_v24  ;;  %2096 = vmatpush1.bf16.msra.mxu1 %v10386_v1  ;;  %v2870_v61 = vpop.permute.xlu1 %2869  ;;  %2659 = vmatprep.subr.bf16.mxu0 %v8299_v19 }
 0x8ab   :  { %v2871_v17 = vrot.slane %v2870_v61, 6  ;;  %2097 = vmatprep.subr.bf16.mxu1 %v10387_v20 }
 0x8ac   :  { %v2920_v51 = vmul.f32 %v2919_v40, %v8829_v21 }
 0x8ad   :  { %v8842_v54 = vsel %vm431_vm3, %v2871_v17, %v2870_v61  ;;  %2660 = vmatpush1.bf16.msra.mxu0 %v8306_v18  ;;  %v10389_v18 = vld [vmem:[#allocation53_spill] sm:$0xff]  ;;  %v2961_v61 = vstv %s8825_s9  ;;  %v10390_v17 = vld [vmem:[#allocation54_spill] sm:$0xff]  ;;  %vm2834_vm3 = vcmask 924672   ;;  %s6326_s9 = sld [smem:[#allocation9 + $0x16]] }
 0x8ae   :  { %v8851_v19 = vmul.f32 %v8842_v54, %v8837_v9  ;;  %2098 = vmatpush1.bf16.msra.mxu1 %v10388_v11  ;;  %2922 = vrot.lane.b32.xlu0 %v2920_v51, %s7180_s7  ;;  %v2883_v41 = vpop.permute.xlu1 %2882 }
 0x8af   :  { %v2884_v15 = vrot.slane %v2883_v41, 6  ;;  %2661 = vmatprep.subr.bf16.mxu0 %v8312_v28  ;;  %2099 = vmatprep.subr.bf16.mxu1 %v10389_v18  ;;  %v2971_v28 = vstv %s8833_s20  ;;  %s6327_s20 = sld [smem:[#allocation9 + $0x17]] }
 0x8b0   :  { %v2951_v2 = vmul.f32 %v2950_v45, %v8851_v19  ;;  %v2962_v45 = vmul.f32 %v2961_v61, %v8859_v49  ;;  %v10396_v61 = vld [vmem:[#allocation60_spill] sm:$0xff] }
 0x8b1   :  { %v8864_v40 = vsel %vm2885_vm12, %v2884_v15, %v2883_v41  ;;  %2662 = vmatpush1.bf16.msra.mxu0 %v8318_v48  ;;  %v2972_v48 = vmul.f32 %v2971_v28, %v8837_v9  ;;  %v2981_v41 = vstv %s8847_s25  ;;  %v10392_v15 = vld [vmem:[#allocation56_spill] sm:$0xff]  ;;  %v10398_v28 = vld [vmem:[#allocation62_spill] sm:$0xff]  ;;  %s6328_s25 = sld [smem:[#allocation9 + $0x18]] }
 0x8b2   :  { %2100 = vmatpush1.bf16.msra.mxu1 %v10390_v17  ;;  %2943 = vrot.lane.b32.xlu0 %v2941_v59, %s7189_s1  ;;  %v8875_v51 = vmul.f32 %v8864_v40, %v8837_v9 }
 0x8b3   :  { %2953 = vrot.lane.b32.xlu1 %v2951_v2, %s7193_s27  ;;  %2663 = vmatprep.subr.bf16.mxu0 %v8324_v4  ;;  %v10393_v4 = vld [vmem:[#allocation57_spill] sm:$0xff]  ;;  %v10394_v2 = vld [vmem:[#allocation58_spill] sm:$0xff] }
 0x8b4   :  { %2101 = vmatprep.subr.bf16.mxu1 %v10391_v46  ;;  %v2982_v59 = vmul.f32 %v2981_v41, %v8875_v51 }
 0x8b5   :  { %2664 = vmatpush1.bf16.msra.mxu0 %v8330_v50  ;;  %v10395_v50 = vld [vmem:[#allocation59_spill] sm:$0xff] }
 0x8b6   :  { %2102 = vmatpush1.bf16.msra.mxu1 %v10392_v15  ;;  %2964 = vrot.lane.b32.xlu0 %v2962_v45, %s7181_s19 }
 0x8b7   :  { %2974 = vrot.lane.b32.xlu1 %v2972_v48, %s7179_s24  ;;  %2665 = vmatprep.subr.bf16.mxu0 %v8336_v12  ;;  %v10397_v12 = vld [vmem:[#allocation61_spill] sm:$0xff] }
 0x8b8   :  { %2103 = vmatprep.subr.bf16.mxu1 %v10393_v4 }
 0x8b9   :  { %2666 = vmatpush1.bf16.msra.mxu0 %v8342_v35  ;;  %v10399_v35 = vld [vmem:[#allocation63_spill] sm:$0xff] }
 0x8ba   :  { %2104 = vmatpush1.bf16.msra.mxu1 %v10394_v2  ;;  %2984 = vrot.lane.b32.xlu0 %v2982_v59, %s7182_s21 }
 0x8bb   :  { %2667 = vmatprep.subr.bf16.mxu0 %v8348_v57  ;;  %2105 = vmatprep.subr.bf16.mxu1 %v10395_v50  ;;  %v10400_v57 = vld [vmem:[#allocation64_spill] sm:$0xff] }
 0x8bd   :  { %2668 = vmatpush1.bf16.msra.mxu0 %v8354_v43  ;;  %v10401_v43 = vld [vmem:[#allocation65_spill] sm:$0xff] }
 0x8be   :  { %2106 = vmatpush1.bf16.msra.mxu1 %v10396_v61  ;;  %2669 = vmatprep.subr.bf16.mxu0 %v8360_v58  ;;  %v10402_v58 = vld [vmem:[#allocation66_spill] sm:$0xff] }
 0x8bf   :  { %2107 = vmatprep.subr.bf16.mxu1 %v10397_v12 }
 0x8c1   :  { %2670 = vmatpush1.bf16.msra.mxu0 %v8366_v8  ;;  %v10403_v8 = vld [vmem:[#allocation67_spill] sm:$0xff] }
 0x8c2   :  { %2108 = vmatpush1.bf16.msra.mxu1 %v10398_v28  ;;  %2671 = vmatprep.subr.bf16.mxu0 %v8372_v7  ;;  %v10404_v7 = vld [vmem:[#allocation68_spill] sm:$0xff] }
 0x8c3   :  { %2109 = vmatprep.subr.bf16.mxu1 %v10399_v35 }
 0x8c5   :  { %2672 = vmatpush1.bf16.msra.mxu0 %v10354_v33  ;;  %v10405_v33 = vld [vmem:[#allocation69_spill] sm:$0xff] }
 0x8c6   :  { %2110 = vmatpush1.bf16.msra.mxu1 %v10400_v57  ;;  %2673 = vmatprep.subr.bf16.mxu0 %v10355_v22  ;;  %v10406_v22 = vld [vmem:[#allocation70_spill] sm:$0xff] }
 0x8c7   :  { %2111 = vmatprep.subr.bf16.mxu1 %v10401_v43 }
 0x8c9   :  { %2674 = vmatpush1.bf16.msra.mxu0 %v10358_v29  ;;  %v2593_v29 = vsel %vm459_vm5, %v8768_v3, %v8790_v60 }
 0x8ca   :  { %2112 = vmatpush1.bf16.msra.mxu1 %v10402_v58  ;;  %2675 = vmatprep.subr.bf16.mxu0 %v10359_v26  ;;  %v10407_v26 = vld [vmem:[#allocation71_spill] sm:$0xff] }
 0x8cb   :  { %2113 = vmatprep.subr.bf16.mxu1 %v10403_v8 }
 0x8cd   :  { %2676 = vmatpush1.bf16.msra.mxu0 %v10362_v38  ;;  %v2596_v38 = vsel %vm459_vm5, %v8810_v14, %v8772_v0 }
 0x8ce   :  { %2114 = vmatpush1.bf16.msra.mxu1 %v10404_v7  ;;  %2677 = vmatprep.subr.bf16.mxu0 %v10363_v23  ;;  %v10408_v23 = vld [vmem:[#allocation72_spill] sm:$0xff] }
 0x8cf   :  { %2115 = vmatprep.subr.bf16.mxu1 %v10405_v33 }
 0x8d1   :  { %2678 = vmatpush1.bf16.msra.mxu0 %v10366_v62  ;;  %v10409_v62 = vld [vmem:[#allocation73_spill] sm:$0xff] }
 0x8d2   :  { %2116 = vmatpush1.bf16.msra.mxu1 %v10406_v22  ;;  %2688 = vmatprep.subr.bf16.mxu0 %v10367_v25  ;;  %v1994_v25 = vsel %vm459_vm5, %v8762_v6, %v8801_v55  ;;  %v2595_v6 = vsel %vm459_vm5, %v8764_v39, %v8810_v14  ;;  %vm2935_vm5 = vcmask 932864  }
 0x8d3   :  { %2117 = vmatprep.subr.bf16.mxu1 %v10407_v26 }
 0x8d4   :  { %2680 = vmatmul.mubr.bf16.vlgmr.msra.gmra.mrb[4].mxu0 %v2593_v29 }
 0x8d5   :  { %2689 = vmatpush1.bf16.msra.mxu0 %v10378_v44  ;;  %2720 = vmatprep.mubr.bf16.mxu0 %v2596_v38  ;;  %v3005_v38 = vstv %s6315_s2  ;;  %s6322_s2 = sld [smem:[#allocation9 + $0x12]] }
 0x8d6   :  { %2118 = vmatpush1.bf16.msra.mxu1 %v10408_v23  ;;  %2690 = vmatprep.subr.bf16.mxu0 %v10379_v30 }
 0x8d7   :  { %2128 = vmatprep.subr.bf16.mxu1 %v10409_v62 }
 0x8d9   :  { %2120 = vmatmul.mubr.bf16.vlgmr.msra.gmra.mrb[0].mxu1 %v1994_v25  ;;  %2691 = vmatpush1.bf16.msra.mxu0 %v10380_v10  ;;  %v2906_v10 = vstv %s2905_s5  ;;  %s6329_s5 = sld [smem:[#allocation9 + $0x19]] }
 0x8da   :  { %2692 = vmatprep.subr.bf16.mxu0 %v10381_v31  ;;  %2129 = vmatpush1.bf16.msra.mxu1 %v8628_v13 }
 0x8db   :  { %2160 = vmatprep.mubr.bf16.mxu1 %v7186_v52  ;;  %3377 = vmatprep.subr.bf16.mxu1 %v7186_v52 }
 0x8dd   :  { %2693 = vmatpush1.bf16.msra.mxu0 %v10382_v56 }
 0x8de   :  { %2694 = vmatprep.subr.bf16.mxu0 %v10383_v37 }
 0x8e1   :  { %2695 = vmatpush1.bf16.msra.mxu0 %v10384_v5 }
 0x8e2   :  { %2696 = vmatprep.subr.bf16.mxu0 %v10385_v27 }
 0x8e3   :  { %v2913_v44 = vpop.permute.xlu1 %2912 }
 0x8e4   :  { %v2914_v39 = vrot.slane %v2913_v44, 2 }
 0x8e5   :  { %6292 = vmatmul.mubr.msk.bf16.vlgmr.msra.gmra.mrb[0].mxu1 %vm1400_vm15, %v8766_v42  ;;  %2697 = vmatpush1.bf16.msra.mxu0 %v10386_v1  ;;  %v2832_v42 = vpop.permute.xlu0 %2831 }
 0x8e6   :  { %2698 = vmatprep.subr.bf16.mxu0 %v10387_v20  ;;  %v2833_v3 = vrot.slane %v2832_v42, 6  ;;  %v2915_v31 = vsel %vm415_vm1, %v2913_v44, %v2914_v39  ;;  %v3015_v44 = vstv %s6316_s22  ;;  %s6346_s22 = sld [smem:[#allocation9 + $0x81]] }
 0x8e8   :  { %v8974_v60 = vsel %vm2834_vm3, %v2833_v3, %v2832_v42 }
 0x8e9   :  { %2699 = vmatpush1.bf16.msra.mxu0 %v10388_v11 }
 0x8ea   :  { %2700 = vmatprep.subr.bf16.mxu0 %v10389_v18 }
 0x8ed   :  { %2701 = vmatpush1.bf16.msra.mxu0 %v10390_v17 }
 0x8ee   :  { %2702 = vmatprep.subr.bf16.mxu0 %v10391_v46 }
 0x8f1   :  { %2703 = vmatpush1.bf16.msra.mxu0 %v10392_v15 }
 0x8f2   :  { %2704 = vmatprep.subr.bf16.mxu0 %v10393_v4 }
 0x8f5   :  { %2705 = vmatpush1.bf16.msra.mxu0 %v10394_v2 }
 0x8f6   :  { %2706 = vmatprep.subr.bf16.mxu0 %v10395_v50 }
 0x8f9   :  { %2707 = vmatpush1.bf16.msra.mxu0 %v10396_v61 }
 0x8fa   :  { %2708 = vmatprep.subr.bf16.mxu0 %v10397_v12 }
 0x8fd   :  { %2709 = vmatpush1.bf16.msra.mxu0 %v10398_v28 }
 0x8fe   :  { %2710 = vmatprep.subr.bf16.mxu0 %v10399_v35 }
 0x901   :  { %2711 = vmatpush1.bf16.msra.mxu0 %v10400_v57 }
 0x902   :  { %2712 = vmatprep.subr.bf16.mxu0 %v10401_v43 }
 0x905   :  { %2713 = vmatpush1.bf16.msra.mxu0 %v10402_v58 }
 0x906   :  { %2714 = vmatprep.subr.bf16.mxu0 %v10403_v8 }
 0x909   :  { %2715 = vmatpush1.bf16.msra.mxu0 %v10404_v7 }
 0x90a   :  { %2716 = vmatprep.subr.bf16.mxu0 %v10405_v33 }
 0x90d   :  { %2717 = vmatpush1.bf16.msra.mxu0 %v10406_v22  ;;  %v2995_v22 = vstv %s6314_s26  ;;  %s6330_s26 = sld [smem:[#allocation9 + $0x1a]] }
 0x90e   :  { %2718 = vmatprep.subr.bf16.mxu0 %v10407_v26  ;;  %v2933_v56 = vpop.permute.xlu1 %2932 }
 0x90f   :  { %v2934_v27 = vrot.slane %v2933_v56, 2 }
 0x911   :  { %2719 = vmatpush1.bf16.msra.mxu0 %v10408_v23  ;;  %v2936_v11 = vsel %vm2935_vm5, %v2933_v56, %v2934_v27 }
 0x912   :  { %2729 = vmatprep.subr.bf16.mxu0 %v10409_v62 }
 0x914   :  { %2721 = vmatmul.mubr.bf16.vlgmr.msra.gmra.mrb[4].mxu0 %v2595_v6 }
 0x915   :  { %2730 = vmatpush1.bf16.msra.mxu0 %v8628_v13  ;;  %2761 = vmatprep.mubr.bf16.mxu0 %v7186_v52  ;;  %v8978_v13 = vmul.f32 %v8974_v60, %v8758_v24 }
 0x916   :  { %5093 = vmatprep.subr.bf16.mxu0 %v7186_v52 }
 0x920   :  { %6304 = vmatmul.mubr.msk.bf16.vlgmr.msra.gmra.mrb[4].mxu0 %vm1400_vm15, %v8772_v0  ;;  %v2923_v30 = vpop.permute.xlu0 %2922  ;;  %v2907_v0 = vmul.f32 %v2906_v10, %v8978_v13 }
 0x921   :  { %v2924_v55 = vrot.slane %v2923_v30, 2 }
 0x922   :  { %v2917_v37 = vadd.f32 %v2915_v31, %v2907_v0 }
 0x923   :  { %v2925_v14 = vsel %vm504_vm8, %v2923_v30, %v2924_v55  ;;  %v2991_v30 = vstv %s6313_s23  ;;  %v3025_v55 = vstv %s8990_s18  ;;  %s6347_s23 = sld [smem:[#allocation9 + $0x82]]  ;;  %s6348_s18 = sld [smem:[#allocation9 + $0x83]] }
 0x924   :  { %v2944_v5 = vpop.permute.xlu0 %2943  ;;  %v2927_v1 = vadd.f32 %v2925_v14, %v2917_v37  ;;  %v3035_v37 = vstv %s8992_s17  ;;  %s6349_s17 = sld [smem:[#allocation9 + $0x84]] }
 0x925   :  { %v2945_v20 = vrot.slane %v2944_v5, 6  ;;  %v2954_v17 = vpop.permute.xlu1 %2953 }
 0x926   :  { %v2938_v18 = vadd.f32 %v2936_v11, %v2927_v1  ;;  %v2955_v41 = vrot.slane %v2954_v17, 6 }
 0x927   :  { %v2946_v46 = vsel %vm2834_vm3, %v2945_v20, %v2944_v5  ;;  %v3045_v20 = vstv %s8997_s8  ;;  %s6350_s8 = sld [smem:[#allocation9 + $0x85]] }
 0x928   :  { %v2965_v45 = vpop.permute.xlu0 %2964  ;;  %v2948_v4 = vadd.f32 %v2946_v46, %v2938_v18  ;;  %v2957_v28 = vsel %vm2956_vm13, %v2955_v41, %v2954_v17  ;;  %v3055_v18 = vstv %s6320_s3  ;;  %s6351_s3 = sld [smem:[#allocation9 + $0x86]] }
 0x929   :  { %v2966_v50 = vrot.slane %v2965_v45, 6  ;;  %v2975_v57 = vpop.permute.xlu1 %2974 }
 0x92a   :  { %v2959_v35 = vadd.f32 %v2957_v28, %v2948_v4  ;;  %v2976_v8 = vrot.slane %v2975_v57, 6 }
 0x92b   :  { %v2967_v43 = vsel %vm524_vm9, %v2966_v50, %v2965_v45  ;;  %v3065_v45 = vstv %s6321_s16  ;;  %s6352_s16 = sld [smem:[#allocation9 + $0x87]] }
 0x92c   :  { %v2985_v58 = vpop.permute.xlu0 %2984  ;;  %v2969_v7 = vadd.f32 %v2967_v43, %v2959_v35  ;;  %v2977_v29 = vsel %vm322_vm6, %v2976_v8, %v2975_v57  ;;  %v3089_v35 = vstv %s6324_s28  ;;  %v3099_v8 = vstv %s6325_s30  ;;  %s6356_s28 = sld [smem:[#allocation9 + $0x8b]]  ;;  %s6357_s30 = sld [smem:[#allocation9 + $0x8c]] }
 0x92d   :  { %v2986_v33 = vrot.slane %v2985_v58, 6 }
 0x92e   :  { %v2979_v23 = vadd.f32 %v2977_v29, %v2969_v7 }
 0x92f   :  { %v2987_v42 = vsel %vm562_vm10, %v2986_v33, %v2985_v58  ;;  %v3109_v33 = vstv %s6326_s9  ;;  %s6358_s9 = sld [smem:[#allocation9 + $0x8d]] }
 0x930   :  { %v2989_v31 = vadd.f32 %v2987_v42, %v2979_v23  ;;  %v3129_v23 = vstv %s6328_s25  ;;  %v3139_v42 = vstv %s6329_s5  ;;  %s6360_s25 = sld [smem:[#allocation9 + $0x8f]]  ;;  %s6361_s5 = sld [smem:[#allocation9 + $0x90]] }
 0x9b8   :  { %v2162_v48 = vpop.f32.mrb[0].mxu1 }
 0x9b9   :  { %v2164_v15 = vpop.f32.mrb[1].mxu1 }
 0x9ba   :  { %v2789_v59 = vcombine.low %v2162_v48, %v2164_v15  ;;  %v2166_v2 = vpop.f32.mrb[2].mxu1 }
 0x9bb   :  { %v2167_v61 = vpop.f32.mrb[3].mxu1 }
 0x9bc   :  { %v2796_v12 = vrot.slane %v2789_v59, %v10371_v32 }
 0x9be   :  { %2799 = vst.msk [vmem:[#allocation2 + $0x8] sm:$0xf] %vm8751_vm4, %v2796_v12  ;;  %v3079_v12 = vstv %s6323_s0  ;;  %s6353_s0 = sld [smem:[#allocation9 + $0x88]] }
 0x9c5   :  { %v8995_v26 = vld [vmem:[#allocation2 + $0x6] sm:$0x3f] }
 0x9c6   :  { %v2996_v62 = vmul.f32 %v2995_v22, %v8995_v26  ;;  %v9002_v25 = vmul.f32 %v8995_v26, %v8822_v36  ;;  %v9006_v6 = vmul.f32 %v8995_v26, %v8778_v47  ;;  %v9009_v3 = vld [vmem:[#allocation2 + $0x8] sm:$0xf]  ;;  %v9015_v10 = vmul.f32 %v8995_v26, %v8974_v60 }
 0x9c7   :  { %v9022_v56 = vmul.f32 %v9009_v3, %v8842_v54  ;;  %v3026_v5 = vmul.f32 %v3025_v55, %v9009_v3  ;;  %v9030_v27 = vmul.f32 %v9009_v3, %v8839_v16  ;;  %v9041_v46 = vmul.f32 %v9009_v3, %v8864_v40 }
 0x9c8   :  { %2998 = vrot.lane.b32.xlu1 %v2996_v62, %s7175_s29  ;;  %v3006_v39 = vmul.f32 %v3005_v38, %v9002_v25  ;;  %v3016_v0 = vmul.f32 %v3015_v44, %v9006_v6  ;;  %v2992_v14 = vmul.f32 %v2991_v30, %v9015_v10  ;;  %v3056_v48 = vmul.f32 %v3055_v18, %v9009_v3 }
 0x9c9   :  { %v3036_v11 = vmul.f32 %v3035_v37, %v9022_v56  ;;  %v3046_v17 = vmul.f32 %v3045_v20, %v9030_v27  ;;  %v3066_v41 = vmul.f32 %v3065_v45, %v9041_v46  ;;  %v3149_v30 = vstv %s6330_s26  ;;  %s6364_s26 = sld [smem:[#allocation9 + $0x93]] }
 0x9ca   :  { %3008 = vrot.lane.b32.xlu0 %v3006_v39, %s7180_s7  ;;  %v9032_v1 = vadd.f32 %v2992_v14, %v2989_v31 }
 0x9cc   :  { %3018 = vrot.lane.b32.xlu1 %v3016_v0, %s7192_s6 }
 0x9ce   :  { %3028 = vrot.lane.b32.xlu0 %v3026_v5, %s7189_s1 }
 0x9d0   :  { %3038 = vrot.lane.b32.xlu1 %v3036_v11, %s7193_s27 }
 0x9d2   :  { %3048 = vrot.lane.b32.xlu0 %v3046_v17, %s7181_s19 }
 0x9d4   :  { %3058 = vrot.lane.b32.xlu1 %v3056_v48, %s7179_s24 }
 0x9d6   :  { %3068 = vrot.lane.b32.xlu0 %v3066_v41, %s7182_s21 }
 0x9f3   :  { %v2763_v15 = vpop.f32.mrb[4].mxu0 }
 0x9f4   :  { %v2765_v4 = vpop.f32.mrb[5].mxu0 }
 0x9f5   :  { %v2802_v59 = vcombine.low %v2763_v15, %v2765_v4  ;;  %v2767_v2 = vpop.f32.mrb[6].mxu0 }
 0x9f6   :  { %v2768_v50 = vpop.f32.mrb[7].mxu0 }
 0x9f7   :  { %v2809_v61 = vrot.slane %v2802_v59, %v10371_v32 }
 0x9f9   :  { %2812 = vst.msk [vmem:[#allocation2 + $0xe] sm:$0xf] %vm8751_vm4, %v2809_v61 }
 0xa00   :  { %v9051_v28 = vld [vmem:[#allocation2 + $0xc] sm:$0x3f] }
 0xa01   :  { %v3080_v57 = vmul.f32 %v3079_v12, %v9051_v28  ;;  %v9056_v43 = vmul.f32 %v9051_v28, %v8822_v36  ;;  %v9060_v58 = vmul.f32 %v9051_v28, %v8778_v47  ;;  %v9062_v63 = vld [vmem:[#allocation2 + $0xe] sm:$0xf]  ;;  %v3119_v47 = vstv %s6327_s20  ;;  %s6359_s20 = sld [smem:[#allocation9 + $0x8e]] }
 0xa02   :  { %v9070_v36 = vmul.f32 %v9062_v63, %v8842_v54  ;;  %v3110_v29 = vmul.f32 %v3109_v33, %v9062_v63  ;;  %v9076_v38 = vmul.f32 %v9062_v63, %v8839_v16  ;;  %v9084_v44 = vmul.f32 %v9062_v63, %v8864_v40 }
 0xa03   :  { %3082 = vrot.lane.b32.xlu1 %v3080_v57, %s7175_s29  ;;  %v3090_v7 = vmul.f32 %v3089_v35, %v9056_v43  ;;  %v3100_v22 = vmul.f32 %v3099_v8, %v9060_v58  ;;  %v3140_v16 = vmul.f32 %v3139_v42, %v9062_v63 }
 0xa04   :  { %v3120_v62 = vmul.f32 %v3119_v47, %v9070_v36  ;;  %v3130_v54 = vmul.f32 %v3129_v23, %v9076_v38  ;;  %v3150_v39 = vmul.f32 %v3149_v30, %v9084_v44  ;;  %v3075_v23 = vstv %s6322_s2  ;;  %s6366_s2 = sld [smem:[#allocation9 + $0x95]] }
 0xa05   :  { %3092 = vrot.lane.b32.xlu0 %v3090_v7, %s7180_s7 }
 0xa07   :  { %3102 = vrot.lane.b32.xlu1 %v3100_v22, %s7192_s6  ;;  %v9100_v22 = vmul.f32 %v9051_v28, %v8974_v60 }
 0xa09   :  { %3112 = vrot.lane.b32.xlu0 %v3110_v29, %s7189_s1  ;;  %v3076_v30 = vmul.f32 %v3075_v23, %v9100_v22 }
 0xa0b   :  { %3122 = vrot.lane.b32.xlu1 %v3120_v62, %s7193_s27 }
 0xa0d   :  { %3132 = vrot.lane.b32.xlu0 %v3130_v54, %s7181_s19 }
 0xa0f   :  { %3142 = vrot.lane.b32.xlu1 %v3140_v16, %s7179_s24 }
 0xa11   :  { %3152 = vrot.lane.b32.xlu0 %v3150_v39, %s7182_s21 }
 0xa3a   :  { %v2999_v55 = vpop.permute.xlu1 %2998 }
 0xa3b   :  { %v3000_v31 = vrot.slane %v2999_v55, 2 }
 0xa3c   :  { %v3009_v0 = vpop.permute.xlu0 %3008 }
 0xa3d   :  { %v3001_v14 = vsel %vm415_vm1, %v2999_v55, %v3000_v31  ;;  %v3010_v37 = vrot.slane %v3009_v0, 2 }
 0xa3e   :  { %v3003_v40 = vadd.f32 %v3001_v14, %v9032_v1  ;;  %v3019_v5 = vpop.permute.xlu1 %3018 }
 0xa3f   :  { %v3011_v20 = vsel %vm504_vm8, %v3009_v0, %v3010_v37  ;;  %v3020_v11 = vrot.slane %v3019_v5, 2 }
 0xa40   :  { %v3013_v18 = vadd.f32 %v3011_v20, %v3003_v40  ;;  %v3029_v17 = vpop.permute.xlu0 %3028 }
 0xa41   :  { %v3021_v45 = vsel %vm2935_vm5, %v3019_v5, %v3020_v11  ;;  %v3030_v48 = vrot.slane %v3029_v17, 6 }
 0xa42   :  { %v3023_v41 = vadd.f32 %v3021_v45, %v3013_v18  ;;  %v3039_v15 = vpop.permute.xlu1 %3038 }
 0xa43   :  { %v3031_v4 = vsel %vm2834_vm3, %v3030_v48, %v3029_v17  ;;  %v3040_v59 = vrot.slane %v3039_v15, 6 }
 0xa44   :  { %v3033_v2 = vadd.f32 %v3031_v4, %v3023_v41  ;;  %v3049_v50 = vpop.permute.xlu0 %3048 }
 0xa45   :  { %v3041_v61 = vsel %vm2956_vm13, %v3040_v59, %v3039_v15  ;;  %v3050_v1 = vrot.slane %v3049_v50, 6 }
 0xa46   :  { %v3043_v12 = vadd.f32 %v3041_v61, %v3033_v2  ;;  %v3059_v35 = vpop.permute.xlu1 %3058 }
 0xa47   :  { %v3051_v57 = vsel %vm524_vm9, %v3050_v1, %v3049_v50  ;;  %v3060_v8 = vrot.slane %v3059_v35, 6 }
 0xa48   :  { %v3053_v7 = vadd.f32 %v3051_v57, %v3043_v12  ;;  %v3069_v33 = vpop.permute.xlu0 %3068 }
 0xa49   :  { %v3061_v47 = vsel %vm322_vm6, %v3060_v8, %v3059_v35  ;;  %v3070_v29 = vrot.slane %v3069_v33, 6 }
 0xa4a   :  { %v3063_v62 = vadd.f32 %v3061_v47, %v3053_v7 }
 0xa4b   :  { %v3071_v42 = vsel %vm562_vm10, %v3070_v29, %v3069_v33 }
 0xa4c   :  { %v3073_v54 = vadd.f32 %v3071_v42, %v3063_v62 }
 0xa4e   :  { %v3077_v16 = vadd.f32 %v3076_v30, %v3073_v54 }
 0xa75   :  { %v3083_v39 = vpop.permute.xlu1 %3082 }
 0xa76   :  { %v3084_v55 = vrot.slane %v3083_v39, 2 }
 0xa77   :  { %v3093_v31 = vpop.permute.xlu0 %3092 }
 0xa78   :  { %v3085_v0 = vsel %vm415_vm1, %v3083_v39, %v3084_v55  ;;  %v3094_v14 = vrot.slane %v3093_v31, 2  ;;  %v3431_v55 = vstv %s6347_s23  ;;  %s6370_s23 = sld [smem:[#allocation9 + $0x99]] }
 0xa79   :  { %v3087_v37 = vadd.f32 %v3085_v0, %v3077_v16  ;;  %v3103_v60 = vpop.permute.xlu1 %3102  ;;  %v3421_v16 = vstv %s6346_s22  ;;  %v3441_v0 = vstv %s6348_s18  ;;  %s6368_s22 = sld [smem:[#allocation9 + $0x97]]  ;;  %s6345_s18 = sld [smem:[#allocation9 + $0x80]] }
 0xa7a   :  { %v3095_v40 = vsel %vm504_vm8, %v3093_v31, %v3094_v14  ;;  %v3104_v5 = vrot.slane %v3103_v60, 2  ;;  %v3422_v39 = vmul.f32 %v3421_v16, %v8758_v24  ;;  %v3432_v31 = vmul.f32 %v3431_v55, %v8829_v21 }
 0xa7b   :  { %v3097_v20 = vadd.f32 %v3095_v40, %v3087_v37  ;;  %v3113_v11 = vpop.permute.xlu0 %3112  ;;  %v3442_v14 = vmul.f32 %v3441_v0, %v8786_v53  ;;  %v3451_v37 = vstv %s6349_s17  ;;  %v3461_v40 = vstv %s6350_s8  ;;  %s6355_s17 = sld [smem:[#allocation9 + $0x8a]]  ;;  %s6362_s8 = sld [smem:[#allocation9 + $0x91]] }
 0xa7c   :  { %v3105_v18 = vsel %vm2935_vm5, %v3103_v60, %v3104_v5  ;;  %v3114_v17 = vrot.slane %v3113_v11, 6  ;;  %v3452_v60 = vmul.f32 %v3451_v37, %v8837_v9  ;;  %v3462_v24 = vmul.f32 %v3461_v40, %v8851_v19 }
 0xa7d   :  { %v3107_v45 = vadd.f32 %v3105_v18, %v3097_v20  ;;  %v3123_v48 = vpop.permute.xlu1 %3122  ;;  %v3471_v5 = vstv %s6351_s3  ;;  %s6365_s3 = sld [smem:[#allocation9 + $0x94]] }
 0xa7e   :  { %v3115_v41 = vsel %vm2834_vm3, %v3114_v17, %v3113_v11  ;;  %v3124_v15 = vrot.slane %v3123_v48, 6  ;;  %v3472_v20 = vmul.f32 %v3471_v5, %v8859_v49  ;;  %v3481_v11 = vstv %s6352_s16  ;;  %s6354_s16 = sld [smem:[#allocation9 + $0x89]] }
 0xa7f   :  { %v3117_v4 = vadd.f32 %v3115_v41, %v3107_v45  ;;  %v3133_v59 = vpop.permute.xlu0 %3132  ;;  %v3482_v18 = vmul.f32 %v3481_v11, %v8837_v9  ;;  %v3491_v17 = vstv %s6353_s0  ;;  %s6367_s0 = sld [smem:[#allocation9 + $0x96]] }
 0xa80   :  { %v3125_v2 = vsel %vm2956_vm13, %v3124_v15, %v3123_v48  ;;  %v3134_v50 = vrot.slane %v3133_v59, 6  ;;  %v3492_v45 = vmul.f32 %v3491_v17, %v8875_v51  ;;  %v3515_v48 = vstv %s6356_s28  ;;  %s6369_s28 = sld [smem:[#allocation9 + $0x98]] }
 0xa81   :  { %v3127_v61 = vadd.f32 %v3125_v2, %v3117_v4  ;;  %v3143_v1 = vpop.permute.xlu1 %3142  ;;  %v3516_v41 = vmul.f32 %v3515_v48, %v9002_v25  ;;  %v3525_v15 = vstv %s6357_s30  ;;  %v3545_v2 = vstv %s6359_s20  ;;  %s6371_s30 = sld [smem:[#allocation9 + $0x9a]] }
 0xa82   :  { %v3135_v12 = vsel %vm524_vm9, %v3134_v50, %v3133_v59  ;;  %v3144_v35 = vrot.slane %v3143_v1, 6  ;;  %v3526_v4 = vmul.f32 %v3525_v15, %v9006_v6  ;;  %v3535_v59 = vstv %s6358_s9  ;;  %s6363_s9 = sld [smem:[#allocation9 + $0x92]] }
 0xa83   :  { %v3137_v57 = vadd.f32 %v3135_v12, %v3127_v61  ;;  %v3153_v8 = vpop.permute.xlu0 %3152  ;;  %v3536_v9 = vmul.f32 %v3535_v59, %v9009_v3  ;;  %v3546_v50 = vmul.f32 %v3545_v2, %v9022_v56  ;;  %v3555_v61 = vstv %s6360_s25 }
 0xa84   :  { %v3145_v7 = vsel %vm322_vm6, %v3144_v35, %v3143_v1  ;;  %v3154_v33 = vrot.slane %v3153_v8, 6  ;;  %v3556_v1 = vmul.f32 %v3555_v61, %v9030_v27  ;;  %v3565_v12 = vstv %s6361_s5  ;;  %s6376_s5 = sld [smem:[#allocation9 + $0x101]] }
 0xa85   :  { %v3147_v47 = vadd.f32 %v3145_v7, %v3137_v57  ;;  %v3566_v35 = vmul.f32 %v3565_v12, %v9009_v3  ;;  %v3589_v57 = vstv %s6364_s26  ;;  %v3609_v7 = vstv %s6366_s2  ;;  %s6378_s26 = sld [smem:[#allocation9 + $0x103]]  ;;  %s6377_s2 = sld [smem:[#allocation9 + $0x102]] }
 0xa86   :  { %v3155_v29 = vsel %vm562_vm10, %v3154_v33, %v3153_v8  ;;  %v3590_v8 = vmul.f32 %v3589_v57, %v9051_v28  ;;  %v3610_v33 = vmul.f32 %v3609_v7, %v9060_v58  ;;  %v3505_v59 = vstv %s6355_s17  ;;  %s6385_s17 = sld [smem:[#allocation9 + $0x10a]] }
 0xa87   :  { %v9113_v23 = vadd.f32 %v3155_v29, %v3147_v47  ;;  %v3629_v47 = vstv %s6368_s22  ;;  %s6379_s22 = sld [smem:[#allocation9 + $0x104]] }
 0xa88   :  { %v3630_v29 = vmul.f32 %v3629_v47, %v9070_v36 }
 0xa89   :  { %v3161_v62 = vcombine.high %v9113_v23, %v9113_v23  ;;  %v3168_v42 = vrot.slane %v9113_v23, %v10371_v32 }
 0xa8b   :  { %3177 = vrot.lane.b32.xlu1 %v3168_v42, %s7191_s4  ;;  %v3176_v54 = vcombine.high %v3168_v42, %v3168_v42  ;;  %v3175_v30 = vrot.slane %v3161_v62, %v10371_v32  ;;  %v3649_v62 = vstv %s6370_s23  ;;  %s6382_s23 = sld [smem:[#allocation9 + $0x107]] }
 0xa8c   :  { %v3650_v42 = vmul.f32 %v3649_v62, %v9062_v63 }
 0xa8d   :  { %3179 = vrot.lane.b32.xlu0 %v3176_v54, %s7191_s4 }
 0xa8f   :  { %3181 = vrot.lane.b32.xlu1 %v3175_v30, %s7191_s4 }
 0xa93   :  { %3424 = vrot.lane.b32.xlu1 %v3422_v39, %s7175_s29 }
 0xa97   :  { %3434 = vrot.lane.b32.xlu1 %v3432_v31, %s7180_s7 }
 0xa9b   :  { %3444 = vrot.lane.b32.xlu1 %v3442_v14, %s7192_s6 }
 0xa9f   :  { %3454 = vrot.lane.b32.xlu1 %v3452_v60, %s7189_s1 }
 0xaa3   :  { %3464 = vrot.lane.b32.xlu1 %v3462_v24, %s7193_s27 }
 0xaa7   :  { %3474 = vrot.lane.b32.xlu1 %v3472_v20, %s7181_s19  ;;  %v3418_v20 = vstv %s6345_s18  ;;  %s6380_s18 = sld [smem:[#allocation9 + $0x105]] }
 0xaab   :  { %3484 = vrot.lane.b32.xlu1 %v3482_v18, %s7179_s24 }
 0xaaf   :  { %3494 = vrot.lane.b32.xlu1 %v3492_v45, %s7182_s21  ;;  %v3419_v45 = vmul.f32 %v3418_v20, %v8978_v13 }
 0xab3   :  { %3518 = vrot.lane.b32.xlu1 %v3516_v41, %s7180_s7 }
 0xab7   :  { %3528 = vrot.lane.b32.xlu1 %v3526_v4, %s7192_s6 }
 0xabb   :  { %3538 = vrot.lane.b32.xlu1 %v3536_v9, %s7189_s1 }
 0xabf   :  { %3548 = vrot.lane.b32.xlu1 %v3546_v50, %s7193_s27 }
 0xac3   :  { %3558 = vrot.lane.b32.xlu1 %v3556_v1, %s7181_s19 }
 0xac7   :  { %3568 = vrot.lane.b32.xlu1 %v3566_v35, %s7179_s24  ;;  %v3506_v35 = vmul.f32 %v3505_v59, %v8995_v26 }
 0xacb   :  { %3592 = vrot.lane.b32.xlu1 %v3590_v8, %s7175_s29  ;;  %v3575_v8 = vstv %s6362_s8  ;;  %s6381_s8 = sld [smem:[#allocation9 + $0x106]] }
 0xacf   :  { %3612 = vrot.lane.b32.xlu1 %v3610_v33, %s7192_s6 }
 0xad3   :  { %3632 = vrot.lane.b32.xlu1 %v3630_v29, %s7193_s27 }
 0xad7   :  { %3652 = vrot.lane.b32.xlu1 %v3650_v42, %s7179_s24  ;;  %v3576_v42 = vmul.f32 %v3575_v8, %v9041_v46 }
 0xafd   :  { %v3178_v54 = vpop.permute.xlu1 %3177 }
 0xaff   :  { %v3180_v30 = vpop.permute.xlu0 %3179 }
 0xb00   :  { %v3183_v16 = vsel %vm2885_vm12, %v3178_v54, %v3180_v30 }
 0xb01   :  { %v3182_v39 = vpop.permute.xlu1 %3181  ;;  %v3187_v31 = vsel %vm324_vm2, %v3183_v16, 0.0 }
 0xb02   :  { %v3184_v55 = vsel %vm2885_vm12, %v3180_v30, %v3182_v39  ;;  %v3599_v30 = vstv %s6365_s3  ;;  %s6387_s3 = sld [smem:[#allocation9 + $0x10c]] }
 0xb03   :  { %v3189_v0 = vsel %vm3188_vm14, %v3184_v55, 0.0 }
 0xb04   :  { %v3190_v14 = vadd.f32 %v3189_v0, %v3187_v31  ;;  %v3600_v0 = vmul.f32 %v3599_v30, %v9056_v43 }
 0xb05   :  { %v3425_v37 = vpop.permute.xlu1 %3424 }
 0xb06   :  { %3191 = vadd.xlane.f32.xlu0 %v3190_v14  ;;  %v3426_v24 = vrot.slane %v3425_v37, 2  ;;  %v3501_v14 = vstv %s6354_s16  ;;  %s6383_s16 = sld [smem:[#allocation9 + $0x108]] }
 0xb08   :  { %v3427_v18 = vsel %vm415_vm1, %v3425_v37, %v3426_v24 }
 0xb09   :  { %v3435_v60 = vpop.permute.xlu1 %3434  ;;  %v3429_v4 = vadd.f32 %v3427_v18, %v3419_v45  ;;  %v3659_v45 = vstv %s6371_s30  ;;  %s6391_s30 = sld [smem:[#allocation9 + $0x110]] }
 0xb0a   :  { %v3436_v11 = vrot.slane %v3435_v60, 2 }
 0xb0c   :  { %v3437_v41 = vsel %vm504_vm8, %v3435_v60, %v3436_v11  ;;  %v3619_v60 = vstv %s6367_s0  ;;  %v3639_v11 = vstv %s6369_s28  ;;  %s6389_s0 = sld [smem:[#allocation9 + $0x10e]]  ;;  %s6386_s28 = sld [smem:[#allocation9 + $0x10b]] }
 0xb0d   :  { %v3445_v40 = vpop.permute.xlu1 %3444  ;;  %v3439_v50 = vadd.f32 %v3437_v41, %v3429_v4  ;;  %v3620_v20 = vmul.f32 %v3619_v60, %v9062_v63 }
 0xb0e   :  { %v3446_v17 = vrot.slane %v3445_v40, 2 }
 0xb10   :  { %v3447_v9 = vsel %vm2935_vm5, %v3445_v40, %v3446_v17  ;;  %v3640_v17 = vmul.f32 %v3639_v11, %v9076_v38 }
 0xb11   :  { %v3455_v5 = vpop.permute.xlu1 %3454  ;;  %v3449_v57 = vadd.f32 %v3447_v9, %v3439_v50 }
 0xb12   :  { %v3456_v15 = vrot.slane %v3455_v5, 6 }
 0xb14   :  { %v3457_v1 = vsel %vm2834_vm3, %v3456_v15, %v3455_v5  ;;  %v3502_v5 = vmul.f32 %v3501_v14, %v9015_v10 }
 0xb15   :  { %v3465_v48 = vpop.permute.xlu1 %3464  ;;  %v3459_v33 = vadd.f32 %v3457_v1, %v3449_v57 }
 0xb16   :  { %v3466_v2 = vrot.slane %v3465_v48, 6 }
 0xb18   :  { %v3467_v7 = vsel %vm2956_vm13, %v3466_v2, %v3465_v48  ;;  %v3660_v48 = vmul.f32 %v3659_v45, %v9084_v44  ;;  %v3585_v45 = vstv %s6363_s9  ;;  %s6388_s9 = sld [smem:[#allocation9 + $0x10d]] }
 0xb19   :  { %v3475_v61 = vpop.permute.xlu1 %3474  ;;  %v3469_v54 = vadd.f32 %v3467_v7, %v3459_v33 }
 0xb1a   :  { %v3476_v12 = vrot.slane %v3475_v61, 6 }
 0xb1c   :  { %3508 = vrot.lane.b32.xlu0 %v3506_v35, %s7175_s29  ;;  %v3477_v29 = vsel %vm524_vm9, %v3476_v12, %v3475_v61 }
 0xb1d   :  { %v3485_v47 = vpop.permute.xlu1 %3484  ;;  %v3479_v39 = vadd.f32 %v3477_v29, %v3469_v54 }
 0xb1e   :  { %v3486_v62 = vrot.slane %v3485_v47, 6 }
 0xb20   :  { %v3487_v16 = vsel %vm322_vm6, %v3486_v62, %v3485_v47  ;;  %3578 = vrot.lane.b32.xlu0 %v3576_v42, %s7182_s21 }
 0xb21   :  { %v3495_v55 = vpop.permute.xlu1 %3494  ;;  %v3489_v37 = vadd.f32 %v3487_v16, %v3479_v39 }
 0xb22   :  { %v3496_v31 = vrot.slane %v3495_v55, 6 }
 0xb24   :  { %v3497_v40 = vsel %vm562_vm10, %v3496_v31, %v3495_v55  ;;  %3602 = vrot.lane.b32.xlu0 %v3600_v0, %s7180_s7 }
 0xb25   :  { %v3499_v24 = vadd.f32 %v3497_v40, %v3489_v37  ;;  %v3519_v41 = vpop.permute.xlu1 %3518 }
 0xb26   :  { %v3520_v1 = vrot.slane %v3519_v41, 2 }
 0xb27   :  { %v3503_v18 = vadd.f32 %v3502_v5, %v3499_v24 }
 0xb28   :  { %3622 = vrot.lane.b32.xlu0 %v3620_v20, %s7189_s1  ;;  %v3521_v29 = vsel %vm504_vm8, %v3519_v41, %v3520_v1 }
 0xb29   :  { %v3529_v15 = vpop.permute.xlu1 %3528 }
 0xb2a   :  { %v3530_v8 = vrot.slane %v3529_v15, 2 }
 0xb2c   :  { %3642 = vrot.lane.b32.xlu0 %v3640_v17, %s7181_s19  ;;  %v3531_v30 = vsel %vm2935_vm5, %v3529_v15, %v3530_v8  ;;  %v3586_v15 = vmul.f32 %v3585_v45, %v9100_v22 }
 0xb2d   :  { %v3539_v4 = vpop.permute.xlu1 %3538 }
 0xb2e   :  { %v3540_v62 = vrot.slane %v3539_v4, 6 }
 0xb30   :  { %3662 = vrot.lane.b32.xlu0 %v3660_v48, %s7182_s21  ;;  %v3541_v0 = vsel %vm2834_vm3, %v3540_v62, %v3539_v4 }
 0xb31   :  { %v3549_v59 = vpop.permute.xlu1 %3548 }
 0xb32   :  { %v3550_v16 = vrot.slane %v3549_v59, 6 }
 0xb34   :  { %v3551_v40 = vsel %vm2956_vm13, %v3550_v16, %v3549_v59 }
 0xb35   :  { %v3559_v57 = vpop.permute.xlu1 %3558 }
 0xb36   :  { %v3560_v14 = vrot.slane %v3559_v57, 6 }
 0xb38   :  { %v3561_v20 = vsel %vm524_vm9, %v3560_v14, %v3559_v57 }
 0xb39   :  { %v3569_v55 = vpop.permute.xlu1 %3568 }
 0xb3a   :  { %v3570_v24 = vrot.slane %v3569_v55, 6 }
 0xb3c   :  { %v3571_v17 = vsel %vm322_vm6, %v3570_v24, %v3569_v55 }
 0xb93   :  { %v3192_v9 = vpop.xlane.xlu0 %3191 }
 0xb94   :  { %v3193_v2 = vrot.slane %v3192_v9, 4 }
 0xb96   :  { %v3194_v50 = vadd.f32 %v3193_v2, %v3192_v9  ;;  %v3593_v2 = vpop.permute.xlu1 %3592 }
 0xb97   :  { %v3509_v61 = vpop.permute.xlu0 %3508 }
 0xb98   :  { %v3510_v12 = vrot.slane %v3509_v61, 2  ;;  %v3195_v35 = vrot.slane %v3194_v50, 2 }
 0xb9a   :  { %v3511_v7 = vsel %vm415_vm1, %v3509_v61, %v3510_v12  ;;  %v3196_v33 = vadd.f32 %v3195_v35, %v3194_v50  ;;  %v3594_v50 = vrot.slane %v3593_v2, 2  ;;  %v3613_v12 = vpop.permute.xlu1 %3612 }
 0xb9b   :  { %v3513_v47 = vadd.f32 %v3511_v7, %v3503_v18  ;;  %v3579_v60 = vpop.permute.xlu0 %3578  ;;  %v3614_v57 = vrot.slane %v3613_v12, 2 }
 0xb9c   :  { %v3197_v42 = vrot.slane %v3196_v33, 1  ;;  %v3580_v11 = vrot.slane %v3579_v60, 6  ;;  %v3595_v59 = vsel %vm415_vm1, %v3593_v2, %v3594_v50 }
 0xb9d   :  { %v3523_v54 = vadd.f32 %v3521_v29, %v3513_v47  ;;  %v3615_v47 = vsel %vm2935_vm5, %v3613_v12, %v3614_v57 }
 0xb9e   :  { %v3198_v39 = vadd.f32 %v3197_v42, %v3196_v33  ;;  %v3581_v41 = vsel %vm562_vm10, %v3580_v11, %v3579_v60  ;;  %v3633_v62 = vpop.permute.xlu1 %3632 }
 0xb9f   :  { %v3533_v31 = vadd.f32 %v3531_v30, %v3523_v54  ;;  %v3603_v61 = vpop.permute.xlu0 %3602  ;;  %v3634_v54 = vrot.slane %v3633_v62, 6 }
 0xba0   :  { %6770 = vpush %v3198_v39  ;;  %v3604_v1 = vrot.slane %v3603_v61, 2 }
 0xba1   :  { %v3543_v37 = vadd.f32 %v3541_v0, %v3533_v31  ;;  %v3635_v55 = vsel %vm2956_vm13, %v3634_v54, %v3633_v62 }
 0xba2   :  { %v3605_v8 = vsel %vm504_vm8, %v3603_v61, %v3604_v1  ;;  %v3653_v0 = vpop.permute.xlu1 %3652 }
 0xba3   :  { %v3553_v5 = vadd.f32 %v3551_v40, %v3543_v37  ;;  %v3623_v33 = vpop.permute.xlu0 %3622  ;;  %v3654_v37 = vrot.slane %v3653_v0, 6 }
 0xba4   :  { %v3624_v29 = vrot.slane %v3623_v33, 6 }
 0xba5   :  { %v3563_v18 = vadd.f32 %v3561_v20, %v3553_v5 }
 0xba6   :  { %v3625_v30 = vsel %vm2834_vm3, %v3624_v29, %v3623_v33 }
 0xba7   :  { %v3573_v48 = vadd.f32 %v3571_v17, %v3563_v18  ;;  %v3643_v39 = vpop.permute.xlu0 %3642  ;;  %v3655_v18 = vsel %vm322_vm6, %v3654_v37, %v3653_v0  ;;  %v9230_v0 = vld [vmem:[#allocation2] sm:$0x3f]  ;;  %v3870_v37 = vstv %s6378_s26  ;;  %s6392_s26 = sld [smem:[#allocation9 + $0x111]] }
 0xba8   :  { %v3644_v31 = vrot.slane %v3643_v39, 6 }
 0xba9   :  { %v3583_v4 = vadd.f32 %v3581_v41, %v3573_v48 }
 0xbaa   :  { %v3645_v60 = vsel %vm524_vm9, %v3644_v31, %v3643_v39  ;;  %v3850_v31 = vstv %s6376_s5  ;;  %s6396_s5 = sld [smem:[#allocation9 + $0x115]] }
 0xbab   :  { %v3587_v9 = vadd.f32 %v3586_v15, %v3583_v4  ;;  %v3663_v5 = vpop.permute.xlu0 %3662 }
 0xbac   :  { %v3664_v17 = vrot.slane %v3663_v5, 6 }
 0xbad   :  { %v3597_v35 = vadd.f32 %v3595_v59, %v3587_v9 }
 0xbae   :  { %v3665_v4 = vsel %vm562_vm10, %v3664_v17, %v3663_v5  ;;  %v3910_v17 = vstv %s6382_s23  ;;  %s6400_s23 = sld [smem:[#allocation9 + $0x119]] }
 0xbaf   :  { %v3607_v7 = vadd.f32 %v3605_v8, %v3597_v35 }
 0xbb1   :  { %v3617_v42 = vadd.f32 %v3615_v47, %v3607_v7 }
 0xbb3   :  { %v3627_v16 = vadd.f32 %v3625_v30, %v3617_v42 }
 0xbb5   :  { %v3637_v14 = vadd.f32 %v3635_v55, %v3627_v16 }
 0xbb7   :  { %v3647_v24 = vadd.f32 %v3645_v60, %v3637_v14  ;;  %v3851_v14 = vmul.f32 %v9230_v0, %v3850_v31  ;;  %v3871_v60 = vmul.f32 %v3870_v37, %v8786_v53  ;;  %v4078_v37 = vstv %s6400_s23  ;;  %s6409_s23 = sld [smem:[#allocation9 + $0x184]] }
 0xbb9   :  { %v3657_v45 = vadd.f32 %v3655_v18, %v3647_v24  ;;  %v3880_v24 = vstv %s6379_s22  ;;  %s6395_s22 = sld [smem:[#allocation9 + $0x114]] }
 0xbbb   :  { %v9209_v9 = vadd.f32 %v3665_v4, %v3657_v45  ;;  %v3890_v45 = vstv %s6380_s18  ;;  %v3900_v4 = vstv %s6381_s8  ;;  %s6397_s18 = sld [smem:[#allocation9 + $0x116]]  ;;  %s6401_s8 = sld [smem:[#allocation9 + $0x11a]] }
 0xbbd   :  { %v3678_v2 = vrot.slane %v9209_v9, %v10371_v32  ;;  %v3671_v50 = vcombine.high %v9209_v9, %v9209_v9 }
 0xbbf   :  { %v3686_v61 = vcombine.high %v3678_v2, %v3678_v2  ;;  %v3685_v59 = vrot.slane %v3671_v50, %v10371_v32  ;;  %v3954_v50 = vstv %s6387_s3  ;;  %v4028_v31 = vstv %s6395_s22  ;;  %s6375_s3 = sld [smem:[#allocation9 + $0x100]]  ;;  %s6407_s22 = sld [smem:[#allocation9 + $0x182]] }
 0xbd1   :  { %s6771_s20 = spop %6770 }
 0xbd2   :  { %s3202_s25 = smul.f32 0.0025510204, %s6771_s20  ;;  %s6394_s20 = sld [smem:[#allocation9 + $0x113]] }
 0xbd4   :  { %v3203_v40 = vstv %s3202_s25  ;;  %s6390_s25 = sld [smem:[#allocation9 + $0x10f]] }
 0xbd5   :  { %v9201_v20 = vsub.f32 %v9113_v23, %v3203_v40  ;;  %v3860_v40 = vstv %s6377_s2  ;;  %s6398_s2 = sld [smem:[#allocation9 + $0x117]] }
 0xbd6   :  { %v3861_v5 = vmul.f32 %v3860_v40, %v8829_v21  ;;  %v4079_v40 = vmul.f32 %v4078_v37, %v9062_v63 }
 0xbd7   :  { %v3205_v11 = vmul.f32 %v9201_v20, %v9201_v20 }
 0xbd9   :  { %v3207_v48 = vcombine.high %v3205_v11, %v3205_v11  ;;  %v3214_v41 = vrot.slane %v3205_v11, %v10371_v32  ;;  %v9237_v11 = vld [vmem:[#allocation2 + $0x2] sm:$0xf] }
 0xbda   :  { %v3881_v18 = vmul.f32 %v9237_v11, %v3880_v24 }
 0xbdb   :  { %3223 = vrot.lane.b32.xlu1 %v3214_v41, %s7191_s4  ;;  %v3222_v15 = vcombine.high %v3214_v41, %v3214_v41  ;;  %v3221_v23 = vrot.slane %v3207_v48, %v10371_v32  ;;  %v3911_v48 = vmul.f32 %v9237_v11, %v3910_v17  ;;  %v3891_v41 = vmul.f32 %v3890_v45, %v8851_v19 }
 0xbdc   :  { %v4088_v17 = vstv %s6401_s8  ;;  %s6415_s8 = sld [smem:[#allocation9 + $0x18a]] }
 0xbdd   :  { %3225 = vrot.lane.b32.xlu0 %v3222_v15, %s7191_s4  ;;  %v3934_v15 = vstv %s6385_s17  ;;  %s6399_s17 = sld [smem:[#allocation9 + $0x118]]  ;;  %v4089_v45 = vmul.f32 %v4088_v17, %v9084_v44 }
 0xbdf   :  { %3227 = vrot.lane.b32.xlu1 %v3221_v23, %s7191_s4  ;;  %v3935_v23 = vmul.f32 %v3934_v15, %v8995_v26 }
 0xbe3   :  { %3687 = vrot.lane.b32.xlu1 %v3678_v2, %s7191_s4  ;;  %v3901_v2 = vmul.f32 %v3900_v4, %v8859_v49 }
 0xbe7   :  { %3689 = vrot.lane.b32.xlu1 %v3686_v61, %s7191_s4  ;;  %v3920_v61 = vstv %s6383_s16  ;;  %s6384_s16 = sld [smem:[#allocation9 + $0x109]] }
 0xbeb   :  { %3691 = vrot.lane.b32.xlu1 %v3685_v59, %s7191_s4  ;;  %v3955_v59 = vmul.f32 %v3954_v50, %v9006_v6 }
 0xc4d   :  { %v3224_v1 = vpop.permute.xlu1 %3223 }
 0xc4f   :  { %v3226_v12 = vpop.permute.xlu0 %3225 }
 0xc50   :  { %v3229_v35 = vsel %vm2885_vm12, %v3224_v1, %v3226_v12  ;;  %v3921_v1 = vmul.f32 %v3920_v61, %v8875_v51 }
 0xc51   :  { %v3228_v57 = vpop.permute.xlu1 %3227  ;;  %v3233_v7 = vsel %vm324_vm2, %v3229_v35, 0.0  ;;  %v3944_v35 = vstv %s6386_s28 }
 0xc52   :  { %v3230_v8 = vsel %vm2885_vm12, %v3226_v12, %v3228_v57  ;;  %v3974_v12 = vstv %s6389_s0  ;;  %v3945_v57 = vmul.f32 %v3944_v35, %v9002_v25  ;;  %v3847_v35 = vstv %s6375_s3  ;;  %s6393_s0 = sld [smem:[#allocation9 + $0x112]]  ;;  %s6411_s3 = sld [smem:[#allocation9 + $0x186]] }
 0xc53   :  { %v3234_v33 = vsel %vm3188_vm14, %v3230_v8, 0.0  ;;  %v3975_v26 = vmul.f32 %v3974_v12, %v9022_v56  ;;  %v3994_v8 = vstv %s6391_s30 }
 0xc54   :  { %v3235_v47 = vadd.f32 %v3234_v33, %v3233_v7  ;;  %v3964_v7 = vstv %s6388_s9  ;;  %v3995_v33 = vmul.f32 %v3994_v8, %v9009_v3 }
 0xc55   :  { %v3688_v29 = vpop.permute.xlu1 %3687 }
 0xc56   :  { %3236 = vadd.xlane.f32.xlu0 %v3235_v47  ;;  %v3965_v47 = vmul.f32 %v3964_v7, %v9009_v3 }
 0xc59   :  { %v3690_v62 = vpop.permute.xlu1 %3689 }
 0xc5a   :  { %v3693_v42 = vsel %vm2885_vm12, %v3688_v29, %v3690_v62  ;;  %v4018_v29 = vstv %s6394_s20 }
 0xc5b   :  { %v3697_v16 = vsel %vm324_vm2, %v3693_v42, 0.0  ;;  %v4019_v42 = vmul.f32 %v4018_v29, %v9051_v28 }
 0xc5d   :  { %v3692_v54 = vpop.permute.xlu1 %3691 }
 0xc5e   :  { %v3694_v30 = vsel %vm2885_vm12, %v3690_v62, %v3692_v54  ;;  %v3984_v62 = vstv %s6390_s25 }
 0xc5f   :  { %v3698_v39 = vsel %vm3188_vm14, %v3694_v30, 0.0  ;;  %v3985_v54 = vmul.f32 %v3984_v62, %v9030_v27  ;;  %v4038_v30 = vstv %s6396_s5 }
 0xc60   :  { %v3699_v55 = vadd.f32 %v3698_v39, %v3697_v16  ;;  %v4004_v16 = vstv %s6392_s26  ;;  %v4039_v3 = vmul.f32 %v4038_v30, %v9060_v58  ;;  %s6406_s26 = sld [smem:[#allocation9 + $0x181]] }
 0xc61   :  { %v4005_v39 = vmul.f32 %v4004_v16, %v9041_v46 }
 0xc62   :  { %3700 = vadd.xlane.f32.xlu1 %v3699_v55  ;;  %v4058_v55 = vstv %s6398_s2  ;;  %s6408_s2 = sld [smem:[#allocation9 + $0x183]] }
 0xc63   :  { %v4059_v28 = vmul.f32 %v4058_v55, %v9070_v36 }
 0xc6c   :  { %3853 = vrot.lane.b32.xlu0 %v3851_v14, %s7175_s29  ;;  %v4029_v14 = vmul.f32 %v4028_v31, %v9056_v43 }
 0xc70   :  { %3873 = vrot.lane.b32.xlu0 %v3871_v60, %s7192_s6  ;;  %v4048_v60 = vstv %s6397_s18  ;;  %s6412_s18 = sld [smem:[#allocation9 + $0x187]] }
 0xc71   :  { %v4049_v24 = vmul.f32 %v4048_v60, %v9062_v63 }
 0xc73   :  { %3863 = vrot.lane.b32.xlu1 %v3861_v5, %s7180_s7  ;;  %v4068_v5 = vstv %s6399_s17  ;;  %s6410_s17 = sld [smem:[#allocation9 + $0x185]] }
 0xc74   :  { %3883 = vrot.lane.b32.xlu0 %v3881_v18, %s7189_s1  ;;  %v4069_v18 = vmul.f32 %v4068_v5, %v9076_v38 }
 0xc77   :  { %3913 = vrot.lane.b32.xlu1 %v3911_v48, %s7179_s24 }
 0xc78   :  { %3893 = vrot.lane.b32.xlu0 %v3891_v41, %s7193_s27 }
 0xc7b   :  { %3937 = vrot.lane.b32.xlu1 %v3935_v23, %s7175_s29 }
 0xc7c   :  { %3903 = vrot.lane.b32.xlu0 %v3901_v2, %s7181_s19 }
 0xc7f   :  { %3957 = vrot.lane.b32.xlu1 %v3955_v59, %s7192_s6 }
 0xc80   :  { %3923 = vrot.lane.b32.xlu0 %v3921_v1, %s7182_s21 }
 0xc83   :  { %3977 = vrot.lane.b32.xlu1 %v3975_v26, %s7193_s27 }
 0xc84   :  { %3947 = vrot.lane.b32.xlu0 %v3945_v57, %s7180_s7  ;;  %v3848_v57 = vmul.f32 %v3847_v35, %v8978_v13 }
 0xc87   :  { %3997 = vrot.lane.b32.xlu1 %v3995_v33, %s7179_s24 }
 0xc88   :  { %3967 = vrot.lane.b32.xlu0 %v3965_v47, %s7189_s1 }
 0xc8b   :  { %4021 = vrot.lane.b32.xlu1 %v4019_v42, %s7175_s29 }
 0xc8c   :  { %3987 = vrot.lane.b32.xlu0 %v3985_v54, %s7181_s19 }
 0xc8f   :  { %4041 = vrot.lane.b32.xlu1 %v4039_v3, %s7192_s6 }
 0xc90   :  { %4007 = vrot.lane.b32.xlu0 %v4005_v39, %s7182_s21 }
 0xc93   :  { %4061 = vrot.lane.b32.xlu1 %v4059_v28, %s7193_s27 }
 0xc94   :  { %4031 = vrot.lane.b32.xlu0 %v4029_v14, %s7180_s7 }
 0xc97   :  { %4081 = vrot.lane.b32.xlu1 %v4079_v40, %s7179_s24 }
 0xc98   :  { %4051 = vrot.lane.b32.xlu0 %v4049_v24, %s7189_s1 }
 0xc9c   :  { %4071 = vrot.lane.b32.xlu0 %v4069_v18, %s7181_s19 }
 0xca0   :  { %4091 = vrot.lane.b32.xlu0 %v4089_v45, %s7182_s21 }
 0xce3   :  { %v3237_v48 = vpop.xlane.xlu0 %3236 }
 0xce4   :  { %v3238_v41 = vrot.slane %v3237_v48, 4 }
 0xce6   :  { %v3239_v15 = vadd.f32 %v3238_v41, %v3237_v48 }
 0xce7   :  { %v3854_v4 = vpop.permute.xlu0 %3853 }
 0xce8   :  { %v3240_v63 = vrot.slane %v3239_v15, 2  ;;  %v3855_v61 = vrot.slane %v3854_v4, 2 }
 0xcea   :  { %v3241_v23 = vadd.f32 %v3240_v63, %v3239_v15  ;;  %v3856_v26 = vsel %vm415_vm1, %v3854_v4, %v3855_v61  ;;  %v3930_v4 = vstv %s6384_s16  ;;  %s6417_s16 = sld [smem:[#allocation9 + $0x18c]] }
 0xceb   :  { %v3874_v2 = vpop.permute.xlu0 %3873  ;;  %v3858_v29 = vadd.f32 %v3856_v26, %v3848_v57  ;;  %v3931_v61 = vmul.f32 %v3930_v4, %v9015_v10 }
 0xcec   :  { %v3242_v50 = vrot.slane %v3241_v23, 1  ;;  %v3875_v33 = vrot.slane %v3874_v2, 2 }
 0xcee   :  { %v3243_v59 = vadd.f32 %v3242_v50, %v3241_v23  ;;  %v3876_v3 = vsel %vm2935_vm5, %v3874_v2, %v3875_v33 }
 0xcef   :  { %v3884_v1 = vpop.permute.xlu0 %3883  ;;  %v9282_v12 = vpop.xlane.xlu1 %3700 }
 0xcf0   :  { %6772 = vpush %v3243_v59  ;;  %v3885_v62 = vrot.slane %v3884_v1, 6  ;;  %v3702_v4 = vrot.slane %v9282_v12, 4 }
 0xcf2   :  { %v3886_v31 = vsel %vm2834_vm3, %v3885_v62, %v3884_v1 }
 0xcf3   :  { %v3894_v8 = vpop.permute.xlu0 %3893  ;;  %v3864_v7 = vpop.permute.xlu1 %3863 }
 0xcf4   :  { %v3865_v47 = vrot.slane %v3864_v7, 2  ;;  %v3895_v39 = vrot.slane %v3894_v8, 6 }
 0xcf6   :  { %v3866_v42 = vsel %vm504_vm8, %v3864_v7, %v3865_v47  ;;  %v3896_v40 = vsel %vm2956_vm13, %v3895_v39, %v3894_v8 }
 0xcf7   :  { %v3868_v54 = vadd.f32 %v3866_v42, %v3858_v29  ;;  %v3904_v30 = vpop.permute.xlu0 %3903  ;;  %v3914_v16 = vpop.permute.xlu1 %3913 }
 0xcf8   :  { %v3905_v28 = vrot.slane %v3904_v30, 6  ;;  %v3915_v24 = vrot.slane %v3914_v16, 6 }
 0xcf9   :  { %v3878_v55 = vadd.f32 %v3876_v3, %v3868_v54 }
 0xcfa   :  { %v3906_v18 = vsel %vm524_vm9, %v3905_v28, %v3904_v30  ;;  %v3916_v15 = vsel %vm322_vm6, %v3915_v24, %v3914_v16 }
 0xcfb   :  { %v3888_v14 = vadd.f32 %v3886_v31, %v3878_v55  ;;  %v3924_v37 = vpop.permute.xlu0 %3923  ;;  %v3938_v60 = vpop.permute.xlu1 %3937 }
 0xcfc   :  { %v3925_v17 = vrot.slane %v3924_v37, 6  ;;  %v3939_v2 = vrot.slane %v3938_v60, 2 }
 0xcfd   :  { %v3898_v5 = vadd.f32 %v3896_v40, %v3888_v14 }
 0xcfe   :  { %v3926_v23 = vsel %vm562_vm10, %v3925_v17, %v3924_v37  ;;  %v3940_v57 = vsel %vm415_vm1, %v3938_v60, %v3939_v2 }
 0xcff   :  { %v3908_v45 = vadd.f32 %v3906_v18, %v3898_v5  ;;  %v3948_v48 = vpop.permute.xlu0 %3947  ;;  %v3958_v41 = vpop.permute.xlu1 %3957  ;;  %v4014_v18 = vstv %s6393_s0  ;;  %s6413_s0 = sld [smem:[#allocation9 + $0x188]] }
 0xd00   :  { %v3949_v1 = vrot.slane %v3948_v48, 2  ;;  %v3959_v8 = vrot.slane %v3958_v41, 2 }
 0xd01   :  { %v3918_v63 = vadd.f32 %v3916_v15, %v3908_v45 }
 0xd02   :  { %v3950_v47 = vsel %vm504_vm8, %v3948_v48, %v3949_v1  ;;  %v3960_v42 = vsel %vm2935_vm5, %v3958_v41, %v3959_v8  ;;  %v4015_v41 = vmul.f32 %v4014_v18, %v9100_v22 }
 0xd03   :  { %v3928_v50 = vadd.f32 %v3926_v23, %v3918_v63  ;;  %v3968_v59 = vpop.permute.xlu0 %3967  ;;  %v3978_v26 = vpop.permute.xlu1 %3977  ;;  %v3703_v63 = vadd.f32 %v3702_v4, %v9282_v12 }
 0xd04   :  { %v3969_v29 = vrot.slane %v3968_v59, 6  ;;  %v3979_v54 = vrot.slane %v3978_v26, 6 }
 0xd05   :  { %v3932_v35 = vadd.f32 %v3931_v61, %v3928_v50  ;;  %v3704_v23 = vrot.slane %v3703_v63, 2 }
 0xd06   :  { %v3970_v3 = vsel %vm2834_vm3, %v3969_v29, %v3968_v59  ;;  %v3980_v28 = vsel %vm2956_vm13, %v3979_v54, %v3978_v26 }
 0xd07   :  { %v3942_v7 = vadd.f32 %v3940_v57, %v3932_v35  ;;  %v3988_v33 = vpop.permute.xlu0 %3987  ;;  %v3998_v16 = vpop.permute.xlu1 %3997  ;;  %v3705_v50 = vadd.f32 %v3704_v23, %v3703_v63 }
 0xd08   :  { %v3989_v39 = vrot.slane %v3988_v33, 6  ;;  %v3999_v14 = vrot.slane %v3998_v16, 6 }
 0xd09   :  { %v3952_v62 = vadd.f32 %v3950_v47, %v3942_v7  ;;  %v3706_v61 = vrot.slane %v3705_v50, 1 }
 0xd0a   :  { %v3990_v60 = vsel %vm524_vm9, %v3989_v39, %v3988_v33  ;;  %v4000_v5 = vsel %vm322_vm6, %v3999_v14, %v3998_v16 }
 0xd0b   :  { %v3962_v30 = vadd.f32 %v3960_v42, %v3952_v62  ;;  %v4008_v31 = vpop.permute.xlu0 %4007  ;;  %v3707_v1 = vadd.f32 %v3706_v61, %v3705_v50  ;;  %v4022_v35 = vpop.permute.xlu1 %4021 }
 0xd0c   :  { %v4009_v40 = vrot.slane %v4008_v31, 6  ;;  %v4023_v26 = vrot.slane %v4022_v35, 2 }
 0xd0d   :  { %v3972_v55 = vadd.f32 %v3970_v3, %v3962_v30 }
 0xd0e   :  { %v4010_v45 = vsel %vm562_vm10, %v4009_v40, %v4008_v31  ;;  %v4024_v8 = vsel %vm415_vm1, %v4022_v35, %v4023_v26 }
 0xd0f   :  { %v3982_v37 = vadd.f32 %v3980_v28, %v3972_v55  ;;  %v4032_v57 = vpop.permute.xlu0 %4031  ;;  %v4042_v12 = vpop.permute.xlu1 %4041 }
 0xd10   :  { %v4033_v7 = vrot.slane %v4032_v57, 2  ;;  %v4043_v29 = vrot.slane %v4042_v12, 2 }
 0xd11   :  { %v3992_v24 = vadd.f32 %v3990_v60, %v3982_v37 }
 0xd12   :  { %v4034_v47 = vsel %vm504_vm8, %v4032_v57, %v4033_v7  ;;  %v4044_v54 = vsel %vm2935_vm5, %v4042_v12, %v4043_v29 }
 0xd13   :  { %v4002_v17 = vadd.f32 %v4000_v5, %v3992_v24  ;;  %v4052_v42 = vpop.permute.xlu0 %4051  ;;  %v4062_v3 = vpop.permute.xlu1 %4061 }
 0xd14   :  { %v4053_v30 = vrot.slane %v4052_v42, 6  ;;  %v4063_v55 = vrot.slane %v4062_v3, 6 }
 0xd15   :  { %v4012_v48 = vadd.f32 %v4010_v45, %v4002_v17 }
 0xd16   :  { %v4054_v39 = vsel %vm2834_vm3, %v4053_v30, %v4052_v42  ;;  %v4064_v14 = vsel %vm2956_vm13, %v4063_v55, %v4062_v3 }
 0xd17   :  { %v4016_v15 = vadd.f32 %v4015_v41, %v4012_v48  ;;  %v4072_v28 = vpop.permute.xlu0 %4071  ;;  %v4082_v40 = vpop.permute.xlu1 %4081 }
 0xd18   :  { %v4073_v37 = vrot.slane %v4072_v28, 6  ;;  %v4083_v5 = vrot.slane %v4082_v40, 6 }
 0xd19   :  { %v4026_v33 = vadd.f32 %v4024_v8, %v4016_v15 }
 0xd1a   :  { %v4074_v24 = vsel %vm524_vm9, %v4073_v37, %v4072_v28  ;;  %v4084_v15 = vsel %vm322_vm6, %v4083_v5, %v4082_v40  ;;  %v4309_v5 = vstv %s6409_s23  ;;  %s6428_s23 = sld [smem:[#allocation9 + $0x197]] }
 0xd1b   :  { %v4036_v62 = vadd.f32 %v4034_v47, %v4026_v33  ;;  %v4092_v45 = vpop.permute.xlu0 %4091 }
 0xd1c   :  { %v4093_v4 = vrot.slane %v4092_v45, 6 }
 0xd1d   :  { %v4046_v16 = vadd.f32 %v4044_v54, %v4036_v62 }
 0xd1e   :  { %v4094_v61 = vsel %vm562_vm10, %v4093_v4, %v4092_v45  ;;  %v4339_v45 = vstv %s6412_s18  ;;  %v4363_v4 = vstv %s6415_s8  ;;  %s6425_s18 = sld [smem:[#allocation9 + $0x194]]  ;;  %s6427_s8 = sld [smem:[#allocation9 + $0x196]] }
 0xd1f   :  { %v4056_v31 = vadd.f32 %v4054_v39, %v4046_v16 }
 0xd21   :  { %s6773_s28 = spop %6772  ;;  %v4066_v60 = vadd.f32 %v4064_v14, %v4056_v31  ;;  %v4279_v14 = vstv %s6406_s26  ;;  %s6420_s26 = sld [smem:[#allocation9 + $0x18f]] }
 0xd22   :  { %s3247_s30 = smul.f32 0.0025510204, %s6773_s28  ;;  %v4280_v37 = vmul.f32 %v9230_v0, %v4279_v14  ;;  %v4319_v0 = vstv %s6410_s17  ;;  %s6419_s28 = sld [smem:[#allocation9 + $0x18e]] }
 0xd23   :  { %v4076_v17 = vadd.f32 %v4074_v24, %v4066_v60  ;;  %v4299_v60 = vstv %s6408_s2  ;;  %v4289_v24 = vstv %s6407_s22  ;;  %s6426_s2 = sld [smem:[#allocation9 + $0x195]]  ;;  %s6422_s22 = sld [smem:[#allocation9 + $0x191]] }
 0xd24   :  { %s3248_s9 = sadd.f32 1e-05, %s3247_s30  ;;  %v4300_v40 = vmul.f32 %v4299_v60, %v8786_v53  ;;  %s6416_s30 = sld [smem:[#allocation9 + $0x18b]]  ;;  %v4457_v14 = vstv %s6425_s18 }
 0xd25   :  { %v4086_v63 = vadd.f32 %v4084_v15, %v4076_v17  ;;  %v4310_v17 = vmul.f32 %v9237_v11, %v4309_v5  ;;  %v4320_v15 = vmul.f32 %v4319_v0, %v8851_v19  ;;  %s6430_s17 = sld [smem:[#allocation9 + $0x199]]  ;;  %v4458_v60 = vmul.f32 %v4457_v14, %v9056_v43  ;;  %v9389_v5 = vld [vmem:[#allocation2 + $0xe] sm:$0xf]  ;;  %s6438_s18 = sld [smem:[#allocation9 + $0x203]] }
 0xd26   :  { %v3249_v2 = vstv %s3248_s9  ;;  %s6421_s9 = sld [smem:[#allocation9 + $0x190]] }
 0xd27   :  { %7032 = vrsqrt.f32 %v3249_v2 }
 0xd31   :  { %v7033_v59 = vpop.eup %7032 }
 0xd32   :  { %6774 = vpush %v7033_v59  ;;  %v9322_v59 = vadd.f32 %v4094_v61, %v4086_v63  ;;  %v4329_v63 = vstv %s6411_s3  ;;  %v4383_v61 = vstv %s6417_s16  ;;  %s6429_s3 = sld [smem:[#allocation9 + $0x198]]  ;;  %s6431_s16 = sld [smem:[#allocation9 + $0x19a]] }
 0xd33   :  { %6776 = vpush %v3707_v1 }
 0xd34   :  { %v4107_v1 = vrot.slane %v9322_v59, %v10371_v32  ;;  %v4100_v35 = vcombine.high %v9322_v59, %v9322_v59 }
 0xd36   :  { %v4115_v26 = vcombine.high %v4107_v1, %v4107_v1  ;;  %v4114_v57 = vrot.slane %v4100_v35, %v10371_v32  ;;  %v4403_v35 = vstv %s6419_s28  ;;  %s6414_s28 = sld [smem:[#allocation9 + $0x189]] }
 0xd63   :  { %s9310_s20 = spop %6774 }
 0xd64   :  { %s6777_s25 = spop %6776 }
 0xd65   :  { %s3711_s5 = smul.f32 0.0025510204, %s6777_s25  ;;  %s6418_s25 = sld [smem:[#allocation9 + $0x18d]] }
 0xd67   :  { %v3712_v18 = vstv %s3711_s5  ;;  %s6424_s5 = sld [smem:[#allocation9 + $0x193]] }
 0xd68   :  { %v9314_v48 = vsub.f32 %v9209_v9, %v3712_v18  ;;  %v4290_v18 = vmul.f32 %v4289_v24, %v8829_v21  ;;  %v4477_v24 = vstv %s6427_s8  ;;  %s6439_s8 = sld [smem:[#allocation9 + $0x204]] }
 0xd6a   :  { %v3714_v41 = vmul.f32 %v9314_v48, %v9314_v48 }
 0xd6c   :  { %v3716_v23 = vcombine.high %v3714_v41, %v3714_v41  ;;  %v3723_v2 = vrot.slane %v3714_v41, %v10371_v32  ;;  %v4340_v41 = vmul.f32 %v9237_v11, %v4339_v45  ;;  %v4349_v11 = vstv %s6413_s0  ;;  %s6405_s0 = sld [smem:[#allocation9 + $0x180]] }
 0xd6d   :  { %v4497_v45 = vstv %s6429_s3  ;;  %s6442_s3 = sld [smem:[#allocation9 + $0x207]] }
 0xd6e   :  { %3732 = vrot.lane.b32.xlu1 %v3723_v2, %s7191_s4  ;;  %v3731_v50 = vcombine.high %v3723_v2, %v3723_v2  ;;  %v3730_v9 = vrot.slane %v3716_v23, %v10371_v32  ;;  %v9355_v23 = vld [vmem:[#allocation2 + $0x6] sm:$0x3f]  ;;  %v4498_v0 = vmul.f32 %v4497_v45, %v9076_v38 }
 0xd6f   :  { %v4364_v2 = vmul.f32 %v9355_v23, %v4363_v4 }
 0xd70   :  { %3734 = vrot.lane.b32.xlu0 %v3731_v50, %s7191_s4  ;;  %v4330_v50 = vmul.f32 %v4329_v63, %v8859_v49 }
 0xd72   :  { %3736 = vrot.lane.b32.xlu1 %v3730_v9, %s7191_s4  ;;  %v4384_v9 = vmul.f32 %v4383_v61, %v9006_v6 }
 0xd76   :  { %4116 = vrot.lane.b32.xlu1 %v4107_v1, %s7191_s4  ;;  %v4350_v1 = vmul.f32 %v4349_v11, %v8875_v51 }
 0xd7a   :  { %4118 = vrot.lane.b32.xlu1 %v4115_v26, %s7191_s4  ;;  %v4373_v26 = vstv %s6416_s30  ;;  %s6423_s30 = sld [smem:[#allocation9 + $0x192]] }
 0xd7e   :  { %4120 = vrot.lane.b32.xlu1 %v4114_v57, %s7191_s4  ;;  %v4404_v57 = vmul.f32 %v4403_v35, %v9022_v56 }
 0xde0   :  { %v3733_v8 = vpop.permute.xlu1 %3732 }
 0xde2   :  { %v3735_v7 = vpop.permute.xlu0 %3734 }
 0xde3   :  { %v3738_v33 = vsel %vm2885_vm12, %v3733_v8, %v3735_v7  ;;  %v4374_v8 = vmul.f32 %v4373_v26, %v9002_v25 }
 0xde4   :  { %v3737_v12 = vpop.permute.xlu1 %3736  ;;  %v3742_v29 = vsel %vm324_vm2, %v3738_v33, 0.0  ;;  %v4393_v33 = vstv %s6418_s25 }
 0xde5   :  { %v3739_v47 = vsel %vm2885_vm12, %v3735_v7, %v3737_v12  ;;  %v4423_v7 = vstv %s6421_s9  ;;  %v9369_v12 = vld [vmem:[#allocation2 + $0x8] sm:$0xf] }
 0xde6   :  { %v3743_v62 = vsel %vm3188_vm14, %v3739_v47, 0.0  ;;  %v4424_v47 = vmul.f32 %v9369_v12, %v4423_v7  ;;  %v4276_v7 = vstv %s6405_s0  ;;  %s6445_s0 = sld [smem:[#allocation9 + $0x20a]] }
 0xde7   :  { %v3744_v42 = vadd.f32 %v3743_v62, %v3742_v29  ;;  %v4394_v29 = vmul.f32 %v9369_v12, %v4393_v33  ;;  %v4447_v62 = vstv %s6424_s5 }
 0xde8   :  { %v4117_v54 = vpop.permute.xlu1 %4116 }
 0xde9   :  { %3745 = vadd.xlane.f32.xlu0 %v3744_v42  ;;  %v4413_v42 = vstv %s6420_s26 }
 0xdec   :  { %v4119_v30 = vpop.permute.xlu1 %4118 }
 0xded   :  { %v4122_v16 = vsel %vm2885_vm12, %v4117_v54, %v4119_v30  ;;  %v9375_v54 = vld [vmem:[#allocation2 + $0xc] sm:$0x3f] }
 0xdee   :  { %v4126_v55 = vsel %vm324_vm2, %v4122_v16, 0.0  ;;  %v4414_v16 = vmul.f32 %v4413_v42, %v9030_v27 }
 0xdf0   :  { %v4121_v3 = vpop.permute.xlu1 %4120 }
 0xdf1   :  { %v4123_v39 = vsel %vm2885_vm12, %v4119_v30, %v4121_v3  ;;  %v4448_v30 = vmul.f32 %v9375_v54, %v4447_v62  ;;  %v4467_v3 = vstv %s6426_s2 }
 0xdf2   :  { %v4127_v31 = vsel %vm3188_vm14, %v4123_v39, 0.0  ;;  %v4433_v39 = vstv %s6422_s22 }
 0xdf3   :  { %v4128_v28 = vadd.f32 %v4127_v31, %v4126_v55  ;;  %v4468_v55 = vmul.f32 %v4467_v3, %v9060_v58  ;;  %v4434_v31 = vmul.f32 %v4433_v39, %v9041_v46 }
 0xdf5   :  { %4129 = vadd.xlane.f32.xlu1 %v4128_v28  ;;  %v4487_v28 = vstv %s6428_s23  ;;  %s6436_s23 = sld [smem:[#allocation9 + $0x201]] }
 0xdff   :  { %4282 = vrot.lane.b32.xlu0 %v4280_v37, %s7175_s29  ;;  %v4488_v37 = vmul.f32 %v4487_v28, %v9070_v36 }
 0xe03   :  { %4302 = vrot.lane.b32.xlu0 %v4300_v40, %s7192_s6  ;;  %v4507_v40 = vstv %s6430_s17  ;;  %s6437_s17 = sld [smem:[#allocation9 + $0x202]] }
 0xe06   :  { %4292 = vrot.lane.b32.xlu1 %v4290_v18, %s7180_s7  ;;  %v4508_v18 = vmul.f32 %v9389_v5, %v4507_v40 }
 0xe07   :  { %4312 = vrot.lane.b32.xlu0 %v4310_v17, %s7189_s1  ;;  %v4478_v17 = vmul.f32 %v9389_v5, %v4477_v24 }
 0xe0a   :  { %4342 = vrot.lane.b32.xlu1 %v4340_v41, %s7179_s24  ;;  %v4517_v41 = vstv %s6431_s16  ;;  %s6440_s16 = sld [smem:[#allocation9 + $0x205]] }
 0xe0b   :  { %4322 = vrot.lane.b32.xlu0 %v4320_v15, %s7193_s27  ;;  %v4518_v15 = vmul.f32 %v4517_v41, %v9084_v44 }
 0xe0e   :  { %4366 = vrot.lane.b32.xlu1 %v4364_v2, %s7175_s29 }
 0xe0f   :  { %4332 = vrot.lane.b32.xlu0 %v4330_v50, %s7181_s19 }
 0xe12   :  { %4386 = vrot.lane.b32.xlu1 %v4384_v9, %s7192_s6 }
 0xe13   :  { %4352 = vrot.lane.b32.xlu0 %v4350_v1, %s7182_s21 }
 0xe16   :  { %4406 = vrot.lane.b32.xlu1 %v4404_v57, %s7193_s27 }
 0xe17   :  { %4376 = vrot.lane.b32.xlu0 %v4374_v8, %s7180_s7 }
 0xe1a   :  { %4426 = vrot.lane.b32.xlu1 %v4424_v47, %s7179_s24  ;;  %v4277_v47 = vmul.f32 %v4276_v7, %v8978_v13 }
 0xe1b   :  { %4396 = vrot.lane.b32.xlu0 %v4394_v29, %s7189_s1 }
 0xe1e   :  { %4450 = vrot.lane.b32.xlu1 %v4448_v30, %s7175_s29 }
 0xe1f   :  { %4416 = vrot.lane.b32.xlu0 %v4414_v16, %s7181_s19 }
 0xe22   :  { %4470 = vrot.lane.b32.xlu1 %v4468_v55, %s7192_s6 }
 0xe23   :  { %4436 = vrot.lane.b32.xlu0 %v4434_v31, %s7182_s21 }
 0xe26   :  { %4490 = vrot.lane.b32.xlu1 %v4488_v37, %s7193_s27 }
 0xe27   :  { %4460 = vrot.lane.b32.xlu0 %v4458_v60, %s7180_s7 }
 0xe2a   :  { %4510 = vrot.lane.b32.xlu1 %v4508_v18, %s7179_s24 }
 0xe2b   :  { %4480 = vrot.lane.b32.xlu0 %v4478_v17, %s7189_s1 }
 0xe2f   :  { %4500 = vrot.lane.b32.xlu0 %v4498_v0, %s7181_s19 }
 0xe33   :  { %4520 = vrot.lane.b32.xlu0 %v4518_v15, %s7182_s21 }
 0xe76   :  { %v3746_v4 = vpop.xlane.xlu0 %3745 }
 0xe77   :  { %v3747_v63 = vrot.slane %v3746_v4, 4 }
 0xe79   :  { %v3748_v2 = vadd.f32 %v3747_v63, %v3746_v4 }
 0xe7a   :  { %v4283_v50 = vpop.permute.xlu0 %4282 }
 0xe7b   :  { %v3749_v61 = vrot.slane %v3748_v2, 2  ;;  %v4284_v35 = vrot.slane %v4283_v50, 2 }
 0xe7d   :  { %v3750_v11 = vadd.f32 %v3749_v61, %v3748_v2  ;;  %v4285_v33 = vsel %vm415_vm1, %v4283_v50, %v4284_v35 }
 0xe7e   :  { %v4303_v9 = vpop.permute.xlu0 %4302  ;;  %v4287_v16 = vadd.f32 %v4285_v33, %v4277_v47 }
 0xe7f   :  { %v3751_v1 = vrot.slane %v3750_v11, 1  ;;  %v4304_v42 = vrot.slane %v4303_v9, 2 }
 0xe81   :  { %v3752_v26 = vadd.f32 %v3751_v1, %v3750_v11  ;;  %v4305_v14 = vsel %vm2935_vm5, %v4303_v9, %v4304_v42  ;;  %v4359_v9 = vstv %s6414_s28  ;;  %s6441_s28 = sld [smem:[#allocation9 + $0x206]] }
 0xe82   :  { %v4313_v57 = vpop.permute.xlu0 %4312  ;;  %v9399_v8 = vpop.xlane.xlu1 %4129  ;;  %v4360_v7 = vmul.f32 %v4359_v9, %v9015_v10 }
 0xe83   :  { %6778 = vpush %v3752_v26  ;;  %v4314_v3 = vrot.slane %v4313_v57, 6 }
 0xe85   :  { %v4315_v40 = vsel %vm2834_vm3, %v4314_v3, %v4313_v57 }
 0xe86   :  { %v4323_v29 = vpop.permute.xlu0 %4322  ;;  %v4293_v62 = vpop.permute.xlu1 %4292 }
 0xe87   :  { %v4294_v30 = vrot.slane %v4293_v62, 2  ;;  %v4324_v37 = vrot.slane %v4323_v29, 6 }
 0xe89   :  { %v4295_v39 = vsel %vm504_vm8, %v4293_v62, %v4294_v30  ;;  %v4325_v0 = vsel %vm2956_vm13, %v4324_v37, %v4323_v29 }
 0xe8a   :  { %v4297_v55 = vadd.f32 %v4295_v39, %v4287_v16  ;;  %v4333_v31 = vpop.permute.xlu0 %4332  ;;  %v4343_v28 = vpop.permute.xlu1 %4342 }
 0xe8b   :  { %v4334_v24 = vrot.slane %v4333_v31, 6  ;;  %v4344_v41 = vrot.slane %v4343_v28, 6 }
 0xe8c   :  { %v4307_v60 = vadd.f32 %v4305_v14, %v4297_v55 }
 0xe8d   :  { %v4335_v4 = vsel %vm524_vm9, %v4334_v24, %v4333_v31  ;;  %v4345_v11 = vsel %vm322_vm6, %v4344_v41, %v4343_v28 }
 0xe8e   :  { %v4317_v18 = vadd.f32 %v4315_v40, %v4307_v60  ;;  %v4353_v17 = vpop.permute.xlu0 %4352  ;;  %v4367_v45 = vpop.permute.xlu1 %4366 }
 0xe8f   :  { %v4354_v63 = vrot.slane %v4353_v17, 6  ;;  %v4368_v26 = vrot.slane %v4367_v45, 2 }
 0xe90   :  { %v4327_v15 = vadd.f32 %v4325_v0, %v4317_v18 }
 0xe91   :  { %v4355_v35 = vsel %vm562_vm10, %v4354_v63, %v4353_v17  ;;  %v4369_v42 = vsel %vm415_vm1, %v4367_v45, %v4368_v26  ;;  %v4131_v26 = vrot.slane %v9399_v8, 4 }
 0xe92   :  { %v4337_v2 = vadd.f32 %v4335_v4, %v4327_v15  ;;  %v4377_v50 = vpop.permute.xlu0 %4376  ;;  %v4387_v61 = vpop.permute.xlu1 %4386 }
 0xe93   :  { %v4378_v47 = vrot.slane %v4377_v50, 2  ;;  %v4388_v30 = vrot.slane %v4387_v61, 2 }
 0xe94   :  { %v4347_v1 = vadd.f32 %v4345_v11, %v4337_v2 }
 0xe95   :  { %v4379_v39 = vsel %vm504_vm8, %v4377_v50, %v4378_v47  ;;  %v4389_v28 = vsel %vm2935_vm5, %v4387_v61, %v4388_v30  ;;  %v4443_v50 = vstv %s6423_s30  ;;  %s6447_s30 = sld [smem:[#allocation9 + $0x20c]] }
 0xe96   :  { %v4357_v57 = vadd.f32 %v4355_v35, %v4347_v1  ;;  %v4397_v33 = vpop.permute.xlu0 %4396  ;;  %v4407_v62 = vpop.permute.xlu1 %4406  ;;  %v4444_v9 = vmul.f32 %v4443_v50, %v9100_v22 }
 0xe97   :  { %v4398_v55 = vrot.slane %v4397_v33, 6  ;;  %v4408_v14 = vrot.slane %v4407_v62, 6 }
 0xe98   :  { %v4361_v29 = vadd.f32 %v4360_v7, %v4357_v57  ;;  %v4132_v57 = vadd.f32 %v4131_v26, %v9399_v8 }
 0xe99   :  { %v4399_v40 = vsel %vm2834_vm3, %v4398_v55, %v4397_v33  ;;  %v4409_v45 = vsel %vm2956_vm13, %v4408_v14, %v4407_v62 }
 0xe9a   :  { %v4371_v16 = vadd.f32 %v4369_v42, %v4361_v29  ;;  %v4417_v3 = vpop.permute.xlu0 %4416  ;;  %v4427_v60 = vpop.permute.xlu1 %4426  ;;  %v4133_v7 = vrot.slane %v4132_v57, 2 }
 0xe9b   :  { %v4418_v24 = vrot.slane %v4417_v3, 6  ;;  %v4428_v0 = vrot.slane %v4427_v60, 6 }
 0xe9c   :  { %v4381_v31 = vadd.f32 %v4379_v39, %v4371_v16  ;;  %v4134_v47 = vadd.f32 %v4133_v7, %v4132_v57 }
 0xe9d   :  { %v4419_v15 = vsel %vm524_vm9, %v4418_v24, %v4417_v3  ;;  %v4429_v2 = vsel %vm322_vm6, %v4428_v0, %v4427_v60 }
 0xe9e   :  { %v4391_v37 = vadd.f32 %v4389_v28, %v4381_v31  ;;  %v4437_v17 = vpop.permute.xlu0 %4436  ;;  %v4135_v29 = vrot.slane %v4134_v47, 1  ;;  %v4451_v30 = vpop.permute.xlu1 %4450 }
 0xe9f   :  { %v4438_v4 = vrot.slane %v4437_v17, 6  ;;  %v4452_v16 = vrot.slane %v4451_v30, 2 }
 0xea0   :  { %v4401_v18 = vadd.f32 %v4399_v40, %v4391_v37  ;;  %v4136_v42 = vadd.f32 %v4135_v29, %v4134_v47 }
 0xea1   :  { %v4439_v11 = vsel %vm562_vm10, %v4438_v4, %v4437_v17  ;;  %v4453_v39 = vsel %vm415_vm1, %v4451_v30, %v4452_v16 }
 0xea2   :  { %v4411_v41 = vadd.f32 %v4409_v45, %v4401_v18  ;;  %v4461_v3 = vpop.permute.xlu0 %4460  ;;  %v4471_v8 = vpop.permute.xlu1 %4470 }
 0xea3   :  { %v4462_v55 = vrot.slane %v4461_v3, 2  ;;  %v4472_v14 = vrot.slane %v4471_v8, 2 }
 0xea4   :  { %v4421_v63 = vadd.f32 %v4419_v15, %v4411_v41 }
 0xea5   :  { %v4463_v28 = vsel %vm504_vm8, %v4461_v3, %v4462_v55  ;;  %v4473_v40 = vsel %vm2935_vm5, %v4471_v8, %v4472_v14 }
 0xea6   :  { %v4431_v61 = vadd.f32 %v4429_v2, %v4421_v63  ;;  %v4481_v60 = vpop.permute.xlu0 %4480  ;;  %v4491_v17 = vpop.permute.xlu1 %4490 }
 0xea7   :  { %v4482_v24 = vrot.slane %v4481_v60, 6  ;;  %v4492_v0 = vrot.slane %v4491_v17, 6 }
 0xea8   :  { %v4441_v1 = vadd.f32 %v4439_v11, %v4431_v61 }
 0xea9   :  { %v4483_v45 = vsel %vm2834_vm3, %v4482_v24, %v4481_v60  ;;  %v4493_v4 = vsel %vm2956_vm13, %v4492_v0, %v4491_v17 }
 0xeaa   :  { %v4445_v35 = vadd.f32 %v4444_v9, %v4441_v1  ;;  %v4501_v15 = vpop.permute.xlu0 %4500  ;;  %v4511_v50 = vpop.permute.xlu1 %4510 }
 0xeab   :  { %v4502_v63 = vrot.slane %v4501_v15, 6  ;;  %v4512_v11 = vrot.slane %v4511_v50, 6 }
 0xeac   :  { %v4455_v31 = vadd.f32 %v4453_v39, %v4445_v35 }
 0xead   :  { %v4503_v61 = vsel %vm524_vm9, %v4502_v63, %v4501_v15  ;;  %v4513_v7 = vsel %vm322_vm6, %v4512_v11, %v4511_v50  ;;  %v4708_v50 = vstv %s6436_s23  ;;  %s6454_s23 = sld [smem:[#allocation9 + $0x213]] }
 0xeae   :  { %v4465_v37 = vadd.f32 %v4463_v28, %v4455_v31  ;;  %v4521_v35 = vpop.permute.xlu0 %4520 }
 0xeb0   :  { %v4475_v18 = vadd.f32 %v4473_v40, %v4465_v37 }
 0xeb2   :  { %v4485_v41 = vadd.f32 %v4483_v45, %v4475_v18 }
 0xeb4   :  { %s6779_s9 = spop %6778  ;;  %v4495_v2 = vadd.f32 %v4493_v4, %v4485_v41 }
 0xeb5   :  { %s3756_s25 = smul.f32 0.0025510204, %s6779_s9  ;;  %s6443_s9 = sld [smem:[#allocation9 + $0x208]] }
 0xeb6   :  { %v4505_v1 = vadd.f32 %v4503_v61, %v4495_v2  ;;  %v9460_v61 = vld [vmem:[#allocation2] sm:$0x3f] }
 0xeb7   :  { %s3757_s5 = sadd.f32 1e-05, %s3756_s25  ;;  %v4709_v11 = vmul.f32 %v9460_v61, %v4708_v50  ;;  %s6449_s25 = sld [smem:[#allocation9 + $0x20e]] }
 0xeb8   :  { %v4515_v47 = vadd.f32 %v4513_v7, %v4505_v1 }
 0xeb9   :  { %v3758_v33 = vstv %s3757_s5  ;;  %s6446_s5 = sld [smem:[#allocation9 + $0x20b]] }
 0xeba   :  { %7034 = vrsqrt.f32 %v3758_v33  ;;  %v4522_v33 = vrot.slane %v4521_v35, 6 }
 0xebc   :  { %v4523_v30 = vsel %vm562_vm10, %v4522_v33, %v4521_v35  ;;  %v4718_v35 = vstv %s6437_s17  ;;  %v9467_v33 = vld [vmem:[#allocation2 + $0x2] sm:$0xf]  ;;  %s6456_s17 = sld [smem:[#allocation9 + $0x215]] }
 0xebd   :  { %v9439_v16 = vadd.f32 %v4523_v30, %v4515_v47  ;;  %v4719_v7 = vmul.f32 %v4718_v35, %v8829_v21 }
 0xebf   :  { %v4536_v3 = vrot.slane %v9439_v16, %v10371_v32  ;;  %v4529_v39 = vcombine.high %v9439_v16, %v9439_v16 }
 0xec1   :  { %v4544_v55 = vcombine.high %v4536_v3, %v4536_v3  ;;  %v4543_v31 = vrot.slane %v4529_v39, %v10371_v32 }
 0xec4   :  { %v7035_v62 = vpop.eup %7034 }
 0xec5   :  { %6780 = vpush %v7035_v62 }
 0xec6   :  { %6782 = vpush %v4136_v42 }
 0xef6   :  { %s9427_s26 = spop %6780 }
 0xef7   :  { %s6783_s2 = spop %6782 }
 0xef8   :  { %s4140_s22 = smul.f32 0.0025510204, %s6783_s2  ;;  %s6451_s2 = sld [smem:[#allocation9 + $0x210]] }
 0xefa   :  { %v4141_v9 = vstv %s4140_s22  ;;  %s6448_s22 = sld [smem:[#allocation9 + $0x20d]] }
 0xefb   :  { %v9431_v26 = vsub.f32 %v9322_v59, %v4141_v9  ;;  %v4728_v9 = vstv %s6438_s18  ;;  %s6450_s18 = sld [smem:[#allocation9 + $0x20f]] }
 0xefc   :  { %v4729_v1 = vmul.f32 %v4728_v9, %v8786_v53 }
 0xefd   :  { %v4143_v57 = vmul.f32 %v9431_v26, %v9431_v26 }
 0xeff   :  { %v4145_v29 = vcombine.high %v4143_v57, %v4143_v57  ;;  %v4152_v62 = vrot.slane %v4143_v57, %v10371_v32  ;;  %v4738_v57 = vstv %s6439_s8  ;;  %s6452_s8 = sld [smem:[#allocation9 + $0x211]] }
 0xf00   :  { %v4739_v47 = vmul.f32 %v9467_v33, %v4738_v57 }
 0xf01   :  { %4161 = vrot.lane.b32.xlu1 %v4152_v62, %s7191_s4  ;;  %v4160_v42 = vcombine.high %v4152_v62, %v4152_v62  ;;  %v4159_v59 = vrot.slane %v4145_v29, %v10371_v32  ;;  %v4768_v29 = vstv %s6442_s3  ;;  %v4748_v62 = vstv %s6440_s16  ;;  %s6458_s3 = sld [smem:[#allocation9 + $0x217]]  ;;  %s6455_s16 = sld [smem:[#allocation9 + $0x214]] }
 0xf02   :  { %v4749_v30 = vmul.f32 %v4748_v62, %v8851_v19 }
 0xf03   :  { %4163 = vrot.lane.b32.xlu0 %v4160_v42, %s7191_s4  ;;  %v4769_v42 = vmul.f32 %v9467_v33, %v4768_v29 }
 0xf05   :  { %4165 = vrot.lane.b32.xlu1 %v4159_v59, %s7191_s4  ;;  %v4792_v59 = vstv %s6445_s0  ;;  %s6460_s0 = sld [smem:[#allocation9 + $0x219]] }
 0xf06   :  { %v4793_v39 = vmul.f32 %v9355_v23, %v4792_v59 }
 0xf07   :  { %v4886_v9 = vstv %s6455_s16  ;;  %s6466_s16 = sld [smem:[#allocation9 + $0x281]] }
 0xf09   :  { %4545 = vrot.lane.b32.xlu1 %v4536_v3, %s7191_s4  ;;  %v4758_v3 = vstv %s6441_s28  ;;  %s6457_s28 = sld [smem:[#allocation9 + $0x216]] }
 0xf0b   :  { %v4936_v35 = vstv %s6460_s0  ;;  %s6468_s0 = sld [smem:[#allocation9 + $0x283]] }
 0xf0d   :  { %4547 = vrot.lane.b32.xlu1 %v4544_v55, %s7191_s4  ;;  %v4759_v55 = vmul.f32 %v4758_v3, %v8859_v49 }
 0xf0f   :  { %v4906_v57 = vstv %s6457_s28  ;;  %s6467_s28 = sld [smem:[#allocation9 + $0x282]] }
 0xf11   :  { %4549 = vrot.lane.b32.xlu1 %v4543_v31, %s7191_s4  ;;  %v4812_v31 = vstv %s6447_s30  ;;  %s6459_s30 = sld [smem:[#allocation9 + $0x218]] }
 0xf17   :  { %v4926_v29 = vstv %s6459_s30  ;;  %s6469_s30 = sld [smem:[#allocation9 + $0x284]] }
 0xf18   :  { %v4927_v62 = vmul.f32 %v4926_v29, %v9076_v38 }
 0xf73   :  { %v4162_v8 = vpop.permute.xlu1 %4161 }
 0xf75   :  { %v4164_v28 = vpop.permute.xlu0 %4163 }
 0xf76   :  { %v4167_v14 = vsel %vm2885_vm12, %v4162_v8, %v4164_v28  ;;  %v4778_v8 = vstv %s6443_s9  ;;  %s6461_s9 = sld [smem:[#allocation9 + $0x21a]] }
 0xf77   :  { %v4166_v37 = vpop.permute.xlu1 %4165  ;;  %v4171_v40 = vsel %vm324_vm2, %v4167_v14, 0.0  ;;  %v4779_v14 = vmul.f32 %v4778_v8, %v8875_v51 }
 0xf78   :  { %v4168_v60 = vsel %vm2885_vm12, %v4164_v28, %v4166_v37  ;;  %v4813_v28 = vmul.f32 %v4812_v31, %v9006_v6  ;;  %v4832_v37 = vstv %s6449_s25  ;;  %s6435_s25 = sld [smem:[#allocation9 + $0x200]] }
 0xf79   :  { %v4172_v24 = vsel %vm3188_vm14, %v4168_v60, 0.0  ;;  %v4802_v60 = vstv %s6446_s5  ;;  %v4833_v23 = vmul.f32 %v4832_v37, %v9022_v56  ;;  %s6444_s5 = sld [smem:[#allocation9 + $0x209]] }
 0xf7a   :  { %v4173_v18 = vadd.f32 %v4172_v24, %v4171_v40  ;;  %v4803_v40 = vmul.f32 %v4802_v60, %v9002_v25  ;;  %v4852_v24 = vstv %s6451_s2  ;;  %s6453_s2 = sld [smem:[#allocation9 + $0x212]] }
 0xf7b   :  { %v4546_v17 = vpop.permute.xlu1 %4545 }
 0xf7c   :  { %4174 = vadd.xlane.f32.xlu0 %v4173_v18  ;;  %v4822_v18 = vstv %s6448_s22 }
 0xf7f   :  { %v4548_v45 = vpop.permute.xlu1 %4547 }
 0xf80   :  { %v4551_v0 = vsel %vm2885_vm12, %v4546_v17, %v4548_v45  ;;  %v4853_v17 = vmul.f32 %v9369_v12, %v4852_v24 }
 0xf81   :  { %v4555_v4 = vsel %vm324_vm2, %v4551_v0, 0.0  ;;  %v4876_v0 = vstv %s6454_s23 }
 0xf83   :  { %v4550_v41 = vpop.permute.xlu1 %4549 }
 0xf84   :  { %v4552_v15 = vsel %vm2885_vm12, %v4548_v45, %v4550_v41  ;;  %v4823_v45 = vmul.f32 %v9369_v12, %v4822_v18  ;;  %v4842_v41 = vstv %s6450_s18 }
 0xf85   :  { %v4556_v63 = vsel %vm3188_vm14, %v4552_v15, 0.0  ;;  %v4877_v15 = vmul.f32 %v9375_v54, %v4876_v0 }
 0xf86   :  { %v4557_v2 = vadd.f32 %v4556_v63, %v4555_v4  ;;  %v4843_v4 = vmul.f32 %v4842_v41, %v9030_v27  ;;  %v4896_v63 = vstv %s6456_s17 }
 0xf87   :  { %v4897_v12 = vmul.f32 %v4896_v63, %v9060_v58 }
 0xf88   :  { %4558 = vadd.xlane.f32.xlu1 %v4557_v2  ;;  %v4862_v2 = vstv %s6452_s8 }
 0xf89   :  { %v4863_v50 = vmul.f32 %v4862_v2, %v9041_v46 }
 0xf92   :  { %4711 = vrot.lane.b32.xlu0 %v4709_v11, %s7175_s29  ;;  %v4916_v11 = vstv %s6458_s3 }
 0xf93   :  { %v4917_v54 = vmul.f32 %v4916_v11, %v9070_v36 }
 0xf96   :  { %4731 = vrot.lane.b32.xlu0 %v4729_v1, %s7192_s6  ;;  %v4887_v1 = vmul.f32 %v4886_v9, %v9056_v43 }
 0xf99   :  { %4721 = vrot.lane.b32.xlu1 %v4719_v7, %s7180_s7  ;;  %v4937_v7 = vmul.f32 %v9389_v5, %v4936_v35 }
 0xf9a   :  { %4741 = vrot.lane.b32.xlu0 %v4739_v47, %s7189_s1  ;;  %v4907_v47 = vmul.f32 %v9389_v5, %v4906_v57 }
 0xf9d   :  { %4771 = vrot.lane.b32.xlu1 %v4769_v42, %s7179_s24  ;;  %v4946_v42 = vstv %s6461_s9  ;;  %s6472_s9 = sld [smem:[#allocation9 + $0x287]] }
 0xf9e   :  { %4751 = vrot.lane.b32.xlu0 %v4749_v30, %s7193_s27  ;;  %v4947_v30 = vmul.f32 %v4946_v42, %v9084_v44 }
 0xfa1   :  { %4795 = vrot.lane.b32.xlu1 %v4793_v39, %s7175_s29 }
 0xfa2   :  { %4761 = vrot.lane.b32.xlu0 %v4759_v55, %s7181_s19 }
 0xfa5   :  { %4815 = vrot.lane.b32.xlu1 %v4813_v28, %s7192_s6 }
 0xfa6   :  { %4781 = vrot.lane.b32.xlu0 %v4779_v14, %s7182_s21 }
 0xfa9   :  { %4835 = vrot.lane.b32.xlu1 %v4833_v23, %s7193_s27 }
 0xfaa   :  { %4805 = vrot.lane.b32.xlu0 %v4803_v40, %s7180_s7  ;;  %v4705_v40 = vstv %s6435_s25  ;;  %s6470_s25 = sld [smem:[#allocation9 + $0x285]] }
 0xfab   :  { %v4706_v18 = vmul.f32 %v4705_v40, %v8978_v13 }
 0xfad   :  { %4855 = vrot.lane.b32.xlu1 %v4853_v17, %s7179_s24 }
 0xfae   :  { %4825 = vrot.lane.b32.xlu0 %v4823_v45, %s7189_s1 }
 0xfb1   :  { %4879 = vrot.lane.b32.xlu1 %v4877_v15, %s7175_s29 }
 0xfb2   :  { %4845 = vrot.lane.b32.xlu0 %v4843_v4, %s7181_s19 }
 0xfb5   :  { %4899 = vrot.lane.b32.xlu1 %v4897_v12, %s7192_s6 }
 0xfb6   :  { %4865 = vrot.lane.b32.xlu0 %v4863_v50, %s7182_s21 }
 0xfb9   :  { %4919 = vrot.lane.b32.xlu1 %v4917_v54, %s7193_s27 }
 0xfba   :  { %4889 = vrot.lane.b32.xlu0 %v4887_v1, %s7180_s7 }
 0xfbd   :  { %4939 = vrot.lane.b32.xlu1 %v4937_v7, %s7179_s24 }
 0xfbe   :  { %4909 = vrot.lane.b32.xlu0 %v4907_v47, %s7189_s1 }
 0xfc2   :  { %4929 = vrot.lane.b32.xlu0 %v4927_v62, %s7181_s19 }
 0xfc6   :  { %4949 = vrot.lane.b32.xlu0 %v4947_v30, %s7182_s21 }
0x1009   :  { %v4175_v59 = vpop.xlane.xlu0 %4174 }
0x100a   :  { %v4176_v3 = vrot.slane %v4175_v59, 4 }
0x100c   :  { %v4177_v39 = vadd.f32 %v4176_v3, %v4175_v59 }
0x100d   :  { %v4712_v55 = vpop.permute.xlu0 %4711 }
0x100e   :  { %v4178_v31 = vrot.slane %v4177_v39, 2  ;;  %v4713_v14 = vrot.slane %v4712_v55, 2 }
0x1010   :  { %v4179_v5 = vadd.f32 %v4178_v31, %v4177_v39  ;;  %v4714_v24 = vsel %vm415_vm1, %v4712_v55, %v4713_v14 }
0x1011   :  { %v4732_v8 = vpop.permute.xlu0 %4731  ;;  %v4716_v15 = vadd.f32 %v4714_v24, %v4706_v18 }
0x1012   :  { %v4180_v28 = vrot.slane %v4179_v5, 1  ;;  %v4733_v0 = vrot.slane %v4732_v8, 2 }
0x1014   :  { %v4181_v37 = vadd.f32 %v4180_v28, %v4179_v5  ;;  %v4734_v11 = vsel %vm2935_vm5, %v4732_v8, %v4733_v0  ;;  %v4788_v5 = vstv %s6444_s5  ;;  %s6475_s5 = sld [smem:[#allocation9 + $0x28a]] }
0x1015   :  { %v4742_v60 = vpop.permute.xlu0 %4741  ;;  %v9512_v23 = vpop.xlane.xlu1 %4558 }
0x1016   :  { %6784 = vpush %v4181_v37  ;;  %v4743_v4 = vrot.slane %v4742_v60, 6 }
0x1018   :  { %v4744_v1 = vsel %vm2834_vm3, %v4743_v4, %v4742_v60  ;;  %v4789_v60 = vmul.f32 %v4788_v5, %v9015_v10 }
0x1019   :  { %v4752_v17 = vpop.permute.xlu0 %4751  ;;  %v4722_v45 = vpop.permute.xlu1 %4721 }
0x101a   :  { %v4723_v41 = vrot.slane %v4722_v45, 2  ;;  %v4753_v9 = vrot.slane %v4752_v17, 6 }
0x101c   :  { %v4724_v63 = vsel %vm504_vm8, %v4722_v45, %v4723_v41  ;;  %v4754_v29 = vsel %vm2956_vm13, %v4753_v9, %v4752_v17 }
0x101d   :  { %v4726_v2 = vadd.f32 %v4724_v63, %v4716_v15  ;;  %v4762_v12 = vpop.permute.xlu0 %4761  ;;  %v4772_v50 = vpop.permute.xlu1 %4771 }
0x101e   :  { %v4763_v35 = vrot.slane %v4762_v12, 6  ;;  %v4773_v62 = vrot.slane %v4772_v50, 6 }
0x101f   :  { %v4736_v54 = vadd.f32 %v4734_v11, %v4726_v2 }
0x1020   :  { %v4764_v30 = vsel %vm524_vm9, %v4763_v35, %v4762_v12  ;;  %v4774_v31 = vsel %vm322_vm6, %v4773_v62, %v4772_v50 }
0x1021   :  { %v4746_v57 = vadd.f32 %v4744_v1, %v4736_v54  ;;  %v4782_v7 = vpop.permute.xlu0 %4781  ;;  %v4796_v47 = vpop.permute.xlu1 %4795 }
0x1022   :  { %v4783_v59 = vrot.slane %v4782_v7, 6  ;;  %v4797_v14 = vrot.slane %v4796_v47, 2 }
0x1023   :  { %v4756_v42 = vadd.f32 %v4754_v29, %v4746_v57 }
0x1024   :  { %v4784_v28 = vsel %vm562_vm10, %v4783_v59, %v4782_v7  ;;  %v4798_v45 = vsel %vm415_vm1, %v4796_v47, %v4797_v14 }
0x1025   :  { %v4766_v3 = vadd.f32 %v4764_v30, %v4756_v42  ;;  %v4806_v39 = vpop.permute.xlu0 %4805  ;;  %v4816_v55 = vpop.permute.xlu1 %4815 }
0x1026   :  { %v4807_v24 = vrot.slane %v4806_v39, 2  ;;  %v4817_v0 = vrot.slane %v4816_v55, 2 }
0x1027   :  { %v4776_v8 = vadd.f32 %v4774_v31, %v4766_v3  ;;  %v4872_v3 = vstv %s6453_s2  ;;  %s6471_s2 = sld [smem:[#allocation9 + $0x286]] }
0x1028   :  { %v4808_v4 = vsel %vm504_vm8, %v4806_v39, %v4807_v24  ;;  %v4818_v12 = vsel %vm2935_vm5, %v4816_v55, %v4817_v0  ;;  %v4873_v5 = vmul.f32 %v4872_v3, %v9100_v22 }
0x1029   :  { %v4786_v37 = vadd.f32 %v4784_v28, %v4776_v8  ;;  %v4826_v40 = vpop.permute.xlu0 %4825  ;;  %v4836_v17 = vpop.permute.xlu1 %4835  ;;  %v4560_v28 = vrot.slane %v9512_v23, 4 }
0x102a   :  { %v4827_v63 = vrot.slane %v4826_v40, 6  ;;  %v4837_v50 = vrot.slane %v4836_v17, 6 }
0x102b   :  { %v4790_v18 = vadd.f32 %v4789_v60, %v4786_v37  ;;  %v4561_v14 = vadd.f32 %v4560_v28, %v9512_v23 }
0x102c   :  { %v4828_v54 = vsel %vm2834_vm3, %v4827_v63, %v4826_v40  ;;  %v4838_v7 = vsel %vm2956_vm13, %v4837_v50, %v4836_v17 }
0x102d   :  { %v4800_v41 = vadd.f32 %v4798_v45, %v4790_v18  ;;  %v4846_v15 = vpop.permute.xlu0 %4845  ;;  %v4856_v9 = vpop.permute.xlu1 %4855  ;;  %v4562_v37 = vrot.slane %v4561_v14, 2 }
0x102e   :  { %v4847_v1 = vrot.slane %v4846_v15, 6  ;;  %v4857_v47 = vrot.slane %v4856_v9, 6 }
0x102f   :  { %v4810_v2 = vadd.f32 %v4808_v4, %v4800_v41  ;;  %v4563_v40 = vadd.f32 %v4562_v37, %v4561_v14 }
0x1030   :  { %v4848_v62 = vsel %vm524_vm9, %v4847_v1, %v4846_v15  ;;  %v4858_v59 = vsel %vm322_vm6, %v4857_v47, %v4856_v9 }
0x1031   :  { %v4820_v11 = vadd.f32 %v4818_v12, %v4810_v2  ;;  %v4866_v57 = vpop.permute.xlu0 %4865  ;;  %v4564_v24 = vrot.slane %v4563_v40, 1  ;;  %v4880_v45 = vpop.permute.xlu1 %4879 }
0x1032   :  { %v4867_v42 = vrot.slane %v4866_v57, 6  ;;  %v4881_v0 = vrot.slane %v4880_v45, 2 }
0x1033   :  { %v4830_v35 = vadd.f32 %v4828_v54, %v4820_v11  ;;  %v4565_v17 = vadd.f32 %v4564_v24, %v4563_v40 }
0x1034   :  { %v4868_v55 = vsel %vm562_vm10, %v4867_v42, %v4866_v57  ;;  %v4882_v15 = vsel %vm415_vm1, %v4880_v45, %v4881_v0 }
0x1035   :  { %v4840_v29 = vadd.f32 %v4838_v7, %v4830_v35  ;;  %v4890_v41 = vpop.permute.xlu0 %4889  ;;  %v4900_v23 = vpop.permute.xlu1 %4899 }
0x1036   :  { %v4891_v4 = vrot.slane %v4890_v41, 2  ;;  %v4901_v12 = vrot.slane %v4900_v23, 2 }
0x1037   :  { %v4850_v30 = vadd.f32 %v4848_v62, %v4840_v29 }
0x1038   :  { %v4892_v2 = vsel %vm504_vm8, %v4890_v41, %v4891_v4  ;;  %v4902_v9 = vsel %vm2935_vm5, %v4900_v23, %v4901_v12 }
0x1039   :  { %v4860_v39 = vadd.f32 %v4858_v59, %v4850_v30  ;;  %v4910_v11 = vpop.permute.xlu0 %4909  ;;  %v4920_v35 = vpop.permute.xlu1 %4919 }
0x103a   :  { %v4911_v54 = vrot.slane %v4910_v11, 6  ;;  %v4921_v7 = vrot.slane %v4920_v35, 6 }
0x103b   :  { %v4870_v31 = vadd.f32 %v4868_v55, %v4860_v39 }
0x103c   :  { %v4912_v57 = vsel %vm2834_vm3, %v4911_v54, %v4910_v11  ;;  %v4922_v62 = vsel %vm2956_vm13, %v4921_v7, %v4920_v35 }
0x103d   :  { %v4874_v8 = vadd.f32 %v4873_v5, %v4870_v31  ;;  %v4930_v29 = vpop.permute.xlu0 %4929  ;;  %v4940_v59 = vpop.permute.xlu1 %4939 }
0x103e   :  { %v4931_v42 = vrot.slane %v4930_v29, 6  ;;  %v4941_v39 = vrot.slane %v4940_v59, 6 }
0x103f   :  { %v4884_v63 = vadd.f32 %v4882_v15, %v4874_v8 }
0x1040   :  { %v4932_v3 = vsel %vm524_vm9, %v4931_v42, %v4930_v29  ;;  %v4942_v14 = vsel %vm322_vm6, %v4941_v39, %v4940_v59 }
0x1041   :  { %v4894_v50 = vadd.f32 %v4892_v2, %v4884_v63  ;;  %v4950_v5 = vpop.permute.xlu0 %4949 }
0x1042   :  { %v4951_v37 = vrot.slane %v4950_v5, 6 }
0x1043   :  { %v4904_v1 = vadd.f32 %v4902_v9, %v4894_v50 }
0x1045   :  { %v4914_v47 = vadd.f32 %v4912_v57, %v4904_v1 }
0x1047   :  { %s6785_s22 = spop %6784  ;;  %v4924_v30 = vadd.f32 %v4922_v62, %v4914_v47 }
0x1048   :  { %s4185_s23 = smul.f32 0.0025510204, %s6785_s22  ;;  %s6477_s22 = sld [smem:[#allocation9 + $0x28c]] }
0x1049   :  { %v4934_v31 = vadd.f32 %v4932_v3, %v4924_v30  ;;  %v5137_v30 = vstv %s6466_s16  ;;  %v5157_v3 = vstv %s6468_s0  ;;  %s6478_s16 = sld [smem:[#allocation9 + $0x28d]]  ;;  %s6484_s0 = sld [smem:[#allocation9 + $0x293]] }
0x104a   :  { %s4186_s18 = sadd.f32 1e-05, %s4185_s23  ;;  %v5138_v59 = vmul.f32 %v9460_v61, %v5137_v30  ;;  %v5158_v39 = vmul.f32 %v5157_v3, %v8786_v53  ;;  %v5177_v61 = vstv %s6470_s25  ;;  %s6473_s23 = sld [smem:[#allocation9 + $0x288]] }
0x104b   :  { %s6488_s25 = sld [smem:[#allocation9 + $0x297]] }
0x104c   :  { %v4187_v60 = vstv %s4186_s18  ;;  %s6479_s18 = sld [smem:[#allocation9 + $0x28e]] }
0x104d   :  { %7036 = vrsqrt.f32 %v4187_v60  ;;  %v4944_v60 = vadd.f32 %v4942_v14, %v4934_v31  ;;  %v5167_v31 = vstv %s6469_s30  ;;  %v5197_v14 = vstv %s6472_s9  ;;  %s6486_s30 = sld [smem:[#allocation9 + $0x295]]  ;;  %s6482_s9 = sld [smem:[#allocation9 + $0x291]] }
0x104e   :  { %v5198_v53 = vmul.f32 %v9467_v33, %v5197_v14 }
0x1057   :  { %v7037_v18 = vpop.eup %7036 }
0x1058   :  { %6786 = vpush %v7037_v18 }
0x1059   :  { %6788 = vpush %v4565_v17  ;;  %v4952_v17 = vsel %vm562_vm10, %v4951_v37, %v4950_v5  ;;  %v5178_v37 = vmul.f32 %v5177_v61, %v8851_v19 }
0x105a   :  { %v9552_v45 = vadd.f32 %v4952_v17, %v4944_v60  ;;  %v5221_v60 = vstv %s6475_s5  ;;  %v5241_v17 = vstv %s6477_s22  ;;  %s6485_s5 = sld [smem:[#allocation9 + $0x294]]  ;;  %s6487_s22 = sld [smem:[#allocation9 + $0x296]] }
0x105b   :  { %v5242_v19 = vmul.f32 %v5241_v17, %v9006_v6 }
0x105c   :  { %v4965_v0 = vrot.slane %v9552_v45, %v10371_v32  ;;  %v4958_v41 = vcombine.high %v9552_v45, %v9552_v45 }
0x105e   :  { %v4973_v15 = vcombine.high %v4965_v0, %v4965_v0  ;;  %v4972_v4 = vrot.slane %v4958_v41, %v10371_v32 }
0x1089   :  { %s9540_s17 = spop %6786 }
0x108a   :  { %s6789_s8 = spop %6788 }
0x108b   :  { %s4569_s3 = smul.f32 0.0025510204, %s6789_s8  ;;  %s6476_s8 = sld [smem:[#allocation9 + $0x28b]] }
0x108d   :  { %v4570_v55 = vstv %s4569_s3  ;;  %s6481_s3 = sld [smem:[#allocation9 + $0x290]] }
0x108e   :  { %v9544_v8 = vsub.f32 %v9439_v16, %v4570_v55  ;;  %v5147_v55 = vstv %s6467_s28  ;;  %s6480_s28 = sld [smem:[#allocation9 + $0x28f]] }
0x108f   :  { %v5148_v5 = vmul.f32 %v5147_v55, %v8829_v21  ;;  %v7059_v21 = vld [vmem:[#allocation2 + $0x6] sm:$0x3f] }
0x1090   :  { %v4572_v28 = vmul.f32 %v9544_v8, %v9544_v8 }
0x1091   :  { %v5231_v41 = vstv %s6476_s8 }
0x1092   :  { %v4574_v40 = vcombine.high %v4572_v28, %v4572_v28  ;;  %v4581_v24 = vrot.slane %v4572_v28, %v10371_v32  ;;  %v5168_v28 = vmul.f32 %v9467_v33, %v5167_v31 }
0x1094   :  { %4590 = vrot.lane.b32.xlu1 %v4581_v24, %s7191_s4  ;;  %v4589_v18 = vcombine.high %v4581_v24, %v4581_v24  ;;  %v4588_v16 = vrot.slane %v4574_v40, %v10371_v32  ;;  %v5187_v40 = vstv %s6471_s2  ;;  %v5222_v24 = vmul.f32 %v7059_v21, %v5221_v60  ;;  %s6490_s2 = sld [smem:[#allocation9 + $0x299]] }
0x1096   :  { %4592 = vrot.lane.b32.xlu0 %v4589_v18, %s7191_s4  ;;  %v5188_v18 = vmul.f32 %v5187_v40, %v8859_v49 }
0x1098   :  { %4594 = vrot.lane.b32.xlu1 %v4588_v16, %s7191_s4  ;;  %v5207_v16 = vstv %s6473_s23  ;;  %s6489_s23 = sld [smem:[#allocation9 + $0x298]] }
0x1099   :  { %v5208_v33 = vmul.f32 %v5207_v16, %v8875_v51  ;;  %v7060_v51 = vld [vmem:[#allocation2 + $0x8] sm:$0xf] }
0x109c   :  { %4974 = vrot.lane.b32.xlu1 %v4965_v0, %s7191_s4  ;;  %v5261_v0 = vstv %s6479_s18 }
0x109d   :  { %v5262_v49 = vmul.f32 %v5261_v0, %v9022_v56 }
0x10a0   :  { %4976 = vrot.lane.b32.xlu1 %v4973_v15, %s7191_s4  ;;  %v5232_v15 = vmul.f32 %v5231_v41, %v9002_v25  ;;  %v7061_v25 = vld [vmem:[#allocation2 + $0xc] sm:$0x3f] }
0x10a4   :  { %4978 = vrot.lane.b32.xlu1 %v4972_v4, %s7191_s4  ;;  %v5281_v4 = vstv %s6481_s3 }
0x10a5   :  { %v5282_v6 = vmul.f32 %v7060_v51, %v5281_v4 }
0x1106   :  { %v4591_v63 = vpop.permute.xlu1 %4590 }
0x1108   :  { %v4593_v23 = vpop.permute.xlu0 %4592 }
0x1109   :  { %v4596_v2 = vsel %vm2885_vm12, %v4591_v63, %v4593_v23  ;;  %v5251_v63 = vstv %s6478_s16  ;;  %s3158_s16 = sld [smem:[#allocation11]] }
0x110a   :  { %v4595_v12 = vpop.permute.xlu1 %4594  ;;  %v4600_v11 = vsel %vm324_vm2, %v4596_v2, 0.0  ;;  %v5305_v2 = vstv %s6484_s0 }
0x110b   :  { %v4597_v50 = vsel %vm2885_vm12, %v4593_v23, %v4595_v12  ;;  %v5252_v23 = vmul.f32 %v7060_v51, %v5251_v63  ;;  %v5271_v12 = vstv %s6480_s28  ;;  %v5306_v56 = vmul.f32 %v7061_v25, %v5305_v2 }
0x110c   :  { %v4601_v9 = vsel %vm3188_vm14, %v4597_v50, 0.0  ;;  %v5272_v50 = vmul.f32 %v5271_v12, %v9030_v27 }
0x110d   :  { %v4602_v54 = vadd.f32 %v4601_v9, %v4600_v11  ;;  %v5325_v11 = vstv %s6486_s30  ;;  %v5291_v9 = vstv %s6482_s9 }
0x110e   :  { %v4975_v1 = vpop.permute.xlu1 %4974 }
0x110f   :  { %4603 = vadd.xlane.f32.xlu0 %v4602_v54  ;;  %v5326_v54 = vmul.f32 %v5325_v11, %v9060_v58  ;;  %v7062_v58 = vld [vmem:[#allocation2 + $0xe] sm:$0xf] }
0x1112   :  { %v4977_v35 = vpop.permute.xlu1 %4976 }
0x1113   :  { %v4980_v57 = vsel %vm2885_vm12, %v4975_v1, %v4977_v35  ;;  %v5292_v1 = vmul.f32 %v5291_v9, %v9041_v46 }
0x1114   :  { %v4984_v29 = vsel %vm324_vm2, %v4980_v57, 0.0  ;;  %v5315_v57 = vstv %s6485_s5 }
0x1116   :  { %v4979_v7 = vpop.permute.xlu1 %4978 }
0x1117   :  { %v4981_v47 = vsel %vm2885_vm12, %v4977_v35, %v4979_v7  ;;  %v5345_v35 = vstv %s6488_s25  ;;  %v5316_v7 = vmul.f32 %v5315_v57, %v9056_v43 }
0x1118   :  { %v4985_v62 = vsel %vm3188_vm14, %v4981_v47, 0.0  ;;  %v5346_v27 = vmul.f32 %v5345_v35, %v9070_v36  ;;  %v5365_v47 = vstv %s6490_s2 }
0x1119   :  { %v4986_v42 = vadd.f32 %v4985_v62, %v4984_v29  ;;  %v5335_v29 = vstv %s6487_s22  ;;  %v5366_v46 = vmul.f32 %v7062_v58, %v5365_v47  ;;  %s9774_s22 = sld [smem:[#allocation11 + $0x2]] }
0x111a   :  { %v5336_v62 = vmul.f32 %v7062_v58, %v5335_v29 }
0x111b   :  { %4987 = vadd.xlane.f32.xlu1 %v4986_v42  ;;  %v5355_v42 = vstv %s6489_s23 }
0x111c   :  { %v5356_v30 = vmul.f32 %v5355_v42, %v9076_v38 }
0x1125   :  { %5140 = vrot.lane.b32.xlu0 %v5138_v59, %s7175_s29 }
0x1129   :  { %5160 = vrot.lane.b32.xlu0 %v5158_v39, %s7192_s6 }
0x112c   :  { %5150 = vrot.lane.b32.xlu1 %v5148_v5, %s7180_s7 }
0x112d   :  { %5170 = vrot.lane.b32.xlu0 %v5168_v28, %s7189_s1 }
0x1130   :  { %5200 = vrot.lane.b32.xlu1 %v5198_v53, %s7179_s24 }
0x1131   :  { %5180 = vrot.lane.b32.xlu0 %v5178_v37, %s7193_s27 }
0x1134   :  { %5224 = vrot.lane.b32.xlu1 %v5222_v24, %s7175_s29 }
0x1135   :  { %5190 = vrot.lane.b32.xlu0 %v5188_v18, %s7181_s19 }
0x1138   :  { %5244 = vrot.lane.b32.xlu1 %v5242_v19, %s7192_s6 }
0x1139   :  { %5210 = vrot.lane.b32.xlu0 %v5208_v33, %s7182_s21 }
0x113c   :  { %5264 = vrot.lane.b32.xlu1 %v5262_v49, %s7193_s27 }
0x113d   :  { %5234 = vrot.lane.b32.xlu0 %v5232_v15, %s7180_s7 }
0x1140   :  { %5284 = vrot.lane.b32.xlu1 %v5282_v6, %s7179_s24 }
0x1141   :  { %5254 = vrot.lane.b32.xlu0 %v5252_v23, %s7189_s1 }
0x1144   :  { %5308 = vrot.lane.b32.xlu1 %v5306_v56, %s7175_s29  ;;  %s6491_s29 = sld [smem:[#allocation9 + $0x29a]] }
0x1145   :  { %5274 = vrot.lane.b32.xlu0 %v5272_v50, %s7181_s19 }
0x1148   :  { %5328 = vrot.lane.b32.xlu1 %v5326_v54, %s7192_s6 }
0x1149   :  { %5294 = vrot.lane.b32.xlu0 %v5292_v1, %s7182_s21 }
0x114a   :  { %v5375_v36 = vstv %s6491_s29 }
0x114b   :  { %v5376_v43 = vmul.f32 %v5375_v36, %v9084_v44 }
0x114c   :  { %5348 = vrot.lane.b32.xlu1 %v5346_v27, %s7193_s27 }
0x114d   :  { %5318 = vrot.lane.b32.xlu0 %v5316_v7, %s7180_s7  ;;  %s6465_s7 = sld [smem:[#allocation9 + $0x280]] }
0x1150   :  { %5368 = vrot.lane.b32.xlu1 %v5366_v46, %s7179_s24  ;;  %s6474_s24 = sld [smem:[#allocation9 + $0x289]] }
0x1151   :  { %5338 = vrot.lane.b32.xlu0 %v5336_v62, %s7189_s1 }
0x1153   :  { %v5134_v60 = vstv %s6465_s7 }
0x1154   :  { %v5135_v40 = vmul.f32 %v5134_v60, %v8978_v13 }
0x1155   :  { %5358 = vrot.lane.b32.xlu0 %v5356_v30, %s7181_s19  ;;  %s6483_s19 = sld [smem:[#allocation9 + $0x292]] }
0x1156   :  { %v5217_v57 = vstv %s6474_s24  ;;  %s9797_s24 = sld [smem:[#allocation12 + $0x2]] }
0x1157   :  { %v5218_v58 = vmul.f32 %v5217_v57, %v9015_v10 }
0x1159   :  { %5378 = vrot.lane.b32.xlu0 %v5376_v43, %s7182_s21 }
0x119c   :  { %v4604_v59 = vpop.xlane.xlu0 %4603 }
0x119d   :  { %v4605_v3 = vrot.slane %v4604_v59, 4 }
0x119f   :  { %v4606_v39 = vadd.f32 %v4605_v3, %v4604_v59 }
0x11a0   :  { %v5141_v55 = vpop.permute.xlu0 %5140 }
0x11a1   :  { %v4607_v31 = vrot.slane %v4606_v39, 2  ;;  %v5142_v61 = vrot.slane %v5141_v55, 2 }
0x11a3   :  { %v4608_v5 = vadd.f32 %v4607_v31, %v4606_v39  ;;  %v5143_v44 = vsel %vm415_vm1, %v5141_v55, %v5142_v61 }
0x11a4   :  { %v5161_v28 = vpop.permute.xlu0 %5160  ;;  %v5145_v16 = vadd.f32 %v5143_v44, %v5135_v40 }
0x11a5   :  { %v4609_v14 = vrot.slane %v4608_v5, 1  ;;  %v5162_v18 = vrot.slane %v5161_v28, 2 }
0x11a7   :  { %v4610_v53 = vadd.f32 %v4609_v14, %v4608_v5  ;;  %v5163_v15 = vsel %vm2935_vm5, %v5161_v28, %v5162_v18 }
0x11a8   :  { %v5171_v37 = vpop.permute.xlu0 %5170  ;;  %v9615_v38 = vpop.xlane.xlu1 %4987 }
0x11a9   :  { %6790 = vpush %v4610_v53  ;;  %v5172_v19 = vrot.slane %v5171_v37, 6 }
0x11ab   :  { %v5173_v51 = vsel %vm2834_vm3, %v5172_v19, %v5171_v37  ;;  %v5301_v19 = vstv %s6483_s19 }
0x11ac   :  { %v5181_v21 = vpop.permute.xlu0 %5180  ;;  %v5151_v24 = vpop.permute.xlu1 %5150 }
0x11ad   :  { %v5152_v17 = vrot.slane %v5151_v24, 2  ;;  %v5182_v4 = vrot.slane %v5181_v21, 6 }
0x11af   :  { %v5153_v33 = vsel %vm504_vm8, %v5151_v24, %v5152_v17  ;;  %v5183_v12 = vsel %vm2956_vm13, %v5182_v4, %v5181_v21  ;;  %v4989_v4 = vrot.slane %v9615_v38, 4 }
0x11b0   :  { %v5155_v0 = vadd.f32 %v5153_v33, %v5145_v16  ;;  %v5191_v41 = vpop.permute.xlu0 %5190  ;;  %v5201_v49 = vpop.permute.xlu1 %5200 }
0x11b1   :  { %v5192_v6 = vrot.slane %v5191_v41, 6  ;;  %v5202_v25 = vrot.slane %v5201_v49, 6 }
0x11b2   :  { %v5165_v63 = vadd.f32 %v5163_v15, %v5155_v0 }
0x11b3   :  { %v5193_v50 = vsel %vm524_vm9, %v5192_v6, %v5191_v41  ;;  %v5203_v35 = vsel %vm322_vm6, %v5202_v25, %v5201_v49  ;;  %v5302_v49 = vmul.f32 %v5301_v19, %v9100_v22 }
0x11b4   :  { %v5175_v13 = vadd.f32 %v5173_v51, %v5165_v63  ;;  %v5211_v23 = vpop.permute.xlu0 %5210  ;;  %v5225_v2 = vpop.permute.xlu1 %5224  ;;  %v4990_v63 = vadd.f32 %v4989_v4, %v9615_v38 }
0x11b5   :  { %v5212_v11 = vrot.slane %v5211_v23, 6  ;;  %v5226_v47 = vrot.slane %v5225_v2, 2 }
0x11b6   :  { %v5185_v56 = vadd.f32 %v5183_v12, %v5175_v13  ;;  %v4991_v51 = vrot.slane %v4990_v63, 2 }
0x11b7   :  { %v5213_v7 = vsel %vm562_vm10, %v5212_v11, %v5211_v23  ;;  %v5227_v36 = vsel %vm415_vm1, %v5225_v2, %v5226_v47 }
0x11b8   :  { %v5195_v9 = vadd.f32 %v5193_v50, %v5185_v56  ;;  %v5235_v54 = vpop.permute.xlu0 %5234  ;;  %v5245_v1 = vpop.permute.xlu1 %5244  ;;  %v4992_v13 = vadd.f32 %v4991_v51, %v4990_v63 }
0x11b9   :  { %v5236_v62 = vrot.slane %v5235_v54, 2  ;;  %v5246_v43 = vrot.slane %v5245_v1, 2 }
0x11ba   :  { %v5205_v27 = vadd.f32 %v5203_v35, %v5195_v9  ;;  %v4993_v23 = vrot.slane %v4992_v13, 1 }
0x11bb   :  { %v5237_v39 = vsel %vm504_vm8, %v5235_v54, %v5236_v62  ;;  %v5247_v5 = vsel %vm2935_vm5, %v5245_v1, %v5246_v43 }
0x11bc   :  { %v5215_v29 = vadd.f32 %v5213_v7, %v5205_v27  ;;  %v5255_v46 = vpop.permute.xlu0 %5254  ;;  %v5265_v30 = vpop.permute.xlu1 %5264  ;;  %v4994_v12 = vadd.f32 %v4993_v23, %v4992_v13 }
0x11bd   :  { %v5256_v55 = vrot.slane %v5255_v46, 6  ;;  %v5266_v28 = vrot.slane %v5265_v30, 6 }
0x11be   :  { %v5219_v42 = vadd.f32 %v5218_v58, %v5215_v29 }
0x11bf   :  { %v5257_v10 = vsel %vm2834_vm3, %v5256_v55, %v5255_v46  ;;  %v5267_v44 = vsel %vm2956_vm13, %v5266_v28, %v5265_v30 }
0x11c0   :  { %v5229_v59 = vadd.f32 %v5227_v36, %v5219_v42  ;;  %v5275_v3 = vpop.permute.xlu0 %5274  ;;  %v5285_v61 = vpop.permute.xlu1 %5284 }
0x11c1   :  { %v5276_v53 = vrot.slane %v5275_v3, 6  ;;  %v5286_v40 = vrot.slane %v5285_v61, 6 }
0x11c2   :  { %v5239_v31 = vadd.f32 %v5237_v39, %v5229_v59 }
0x11c3   :  { %v5277_v24 = vsel %vm524_vm9, %v5276_v53, %v5275_v3  ;;  %v5287_v16 = vsel %vm322_vm6, %v5286_v40, %v5285_v61 }
0x11c4   :  { %v5249_v14 = vadd.f32 %v5247_v5, %v5239_v31  ;;  %v5295_v60 = vpop.permute.xlu0 %5294  ;;  %v5309_v25 = vpop.permute.xlu1 %5308 }
0x11c5   :  { %v5296_v18 = vrot.slane %v5295_v60, 6  ;;  %v5310_v56 = vrot.slane %v5309_v25, 2 }
0x11c6   :  { %v5259_v37 = vadd.f32 %v5257_v10, %v5249_v14 }
0x11c7   :  { %v5297_v0 = vsel %vm562_vm10, %v5296_v18, %v5295_v60  ;;  %v5311_v50 = vsel %vm415_vm1, %v5309_v25, %v5310_v56  ;;  %vm3370_vm1 = vcmask 556032  }
0x11c8   :  { %v5269_v21 = vadd.f32 %v5267_v44, %v5259_v37  ;;  %v5319_v22 = vpop.permute.xlu0 %5318  ;;  %v5329_v38 = vpop.permute.xlu1 %5328 }
0x11c9   :  { %v5320_v11 = vrot.slane %v5319_v22, 2  ;;  %v5330_v1 = vrot.slane %v5329_v38, 2 }
0x11ca   :  { %v5279_v17 = vadd.f32 %v5277_v24, %v5269_v21 }
0x11cb   :  { %v5321_v54 = vsel %vm504_vm8, %v5319_v22, %v5320_v11  ;;  %v5331_v27 = vsel %vm2935_vm5, %v5329_v38, %v5330_v1  ;;  %vm7194_vm8 = vmmov 0  }
0x11cc   :  { %v5289_v33 = vadd.f32 %v5287_v16, %v5279_v17  ;;  %v5339_v57 = vpop.permute.xlu0 %5338  ;;  %v5349_v29 = vpop.permute.xlu1 %5348 }
0x11cd   :  { %v5340_v7 = vrot.slane %v5339_v57, 6  ;;  %v5350_v46 = vrot.slane %v5349_v29, 6 }
0x11ce   :  { %v5299_v41 = vadd.f32 %v5297_v0, %v5289_v33 }
0x11cf   :  { %v5341_v58 = vsel %vm2834_vm3, %v5340_v7, %v5339_v57  ;;  %v5351_v30 = vsel %vm2956_vm13, %v5350_v46, %v5349_v29  ;;  %v9694_v46 = vld [vmem:[%s10197_s10 + $0x10] sm:$0xff]  }
0x11d0   :  { %v5303_v15 = vadd.f32 %v5302_v49, %v5299_v41  ;;  %v5359_v42 = vpop.permute.xlu0 %5358  ;;  %v5369_v59 = vpop.permute.xlu1 %5368 }
0x11d1   :  { %v5360_v36 = vrot.slane %v5359_v42, 6  ;;  %v5370_v39 = vrot.slane %v5369_v59, 6 }
0x11d2   :  { %v5313_v9 = vadd.f32 %v5311_v50, %v5303_v15 }
0x11d3   :  { %v5361_v3 = vsel %vm524_vm9, %v5360_v36, %v5359_v42  ;;  %v5371_v61 = vsel %vm322_vm6, %v5370_v39, %v5369_v59  ;;  %v9703_v42 = vld [vmem:[%s10197_s10 + $0x18] sm:$0xff]   ;;  %v9712_v36 = vld [vmem:[%s10197_s10 + $0x20] sm:$0xff]   ;;  %v9730_v39 = vld [vmem:[%s10197_s10 + $0x30] sm:$0xff]   ;;  %vm5596_vm6 = vcmask 1040384  }
0x11d4   :  { %v5323_v35 = vadd.f32 %v5321_v54, %v5313_v9  ;;  %v5379_v5 = vpop.permute.xlu0 %5378 }
0x11d5   :  { %v5380_v10 = vrot.slane %v5379_v5, 6 }
0x11d6   :  { %v5333_v47 = vadd.f32 %v5331_v27, %v5323_v35  ;;  %v9679_v27 = vld [vmem:[%s10197_s10] sm:$0xff]  }
0x11d7   :  { %v5381_v40 = vsel %vm562_vm10, %v5380_v10, %v5379_v5  ;;  %3378 = vmatpush1.bf16.msra.mxu1 %v9679_v27  ;;  %5094 = vmatpush1.bf16.msra.mxu0 %v9679_v27  ;;  %v3252_v5 = vstv %s9310_s20  ;;  %vm5592_vm10 = vcmask 400384  }
0x11d8   :  { %v5343_v62 = vadd.f32 %v5341_v58, %v5333_v47  ;;  %v9685_v47 = vld [vmem:[%s10197_s10 + $0x8] sm:$0xff]   ;;  %3379 = vmatprep.subr.bf16.mxu1 %v7186_v52  ;;  %5095 = vmatprep.subr.bf16.mxu0 %v7186_v52 }
0x11da   :  { %s6791_s21 = spop %6790  ;;  %v5353_v43 = vadd.f32 %v5351_v30, %v5343_v62 }
0x11db   :  { %s4614_s1 = smul.f32 0.0025510204, %s6791_s21  ;;  %3380 = vmatpush1.bf16.msra.mxu1 %v9685_v47  ;;  %5096 = vmatpush1.bf16.msra.mxu0 %v9685_v47 }
0x11dc   :  { %v5363_v31 = vadd.f32 %v5361_v3, %v5353_v43  ;;  %3381 = vmatprep.subr.bf16.mxu1 %v7186_v52  ;;  %5097 = vmatprep.subr.bf16.mxu0 %v7186_v52  ;;  %v9721_v3 = vld [vmem:[%s10197_s10 + $0x28] sm:$0xff]  }
0x11dd   :  { %s4615_s6 = sadd.f32 1e-05, %s4614_s1  ;;  %s6463_s1 = sld [smem:[#allocation12 + $0x4]] }
0x11de   :  { %v5373_v53 = vadd.f32 %v5371_v61, %v5363_v31  ;;  %v9748_v31 = vld [vmem:[%s10197_s10 + $0x40] sm:$0xff]   ;;  %v3254_v61 = vstv %s3158_s16 }
0x11df   :  { %v4616_v6 = vstv %s4615_s6  ;;  %3382 = vmatpush1.bf16.msra.mxu1 %v9694_v46  ;;  %5098 = vmatpush1.bf16.msra.mxu0 %v9694_v46 }
0x11e0   :  { %7038 = vrsqrt.f32 %v4616_v6  ;;  %v9655_v21 = vadd.f32 %v5381_v40, %v5373_v53  ;;  %3383 = vmatprep.subr.bf16.mxu1 %v7186_v52  ;;  %5099 = vmatprep.subr.bf16.mxu0 %v7186_v52 }
0x11e2   :  { %v5394_v24 = vrot.slane %v9655_v21, %v10371_v32  ;;  %v5387_v18 = vcombine.high %v9655_v21, %v9655_v21 }
0x11e3   :  { %3384 = vmatpush1.bf16.msra.mxu1 %v9703_v42  ;;  %5100 = vmatpush1.bf16.msra.mxu0 %v9703_v42 }
0x11e4   :  { %v5402_v17 = vcombine.high %v5394_v24, %v5394_v24  ;;  %v5401_v16 = vrot.slane %v5387_v18, %v10371_v32  ;;  %3385 = vmatprep.subr.bf16.mxu1 %v7186_v52  ;;  %5101 = vmatprep.subr.bf16.mxu0 %v7186_v52  ;;  %v9779_v18 = vld [vmem:[%s10197_s10 + $0x50] sm:$0xff]  }
0x11e7   :  { %3386 = vmatpush1.bf16.msra.mxu1 %v9712_v36  ;;  %5102 = vmatpush1.bf16.msra.mxu0 %v9712_v36 }
0x11e8   :  { %3387 = vmatprep.subr.bf16.mxu1 %v7186_v52  ;;  %5103 = vmatprep.subr.bf16.mxu0 %v7186_v52 }
0x11ea   :  { %v7039_v2 = vpop.eup %7038 }
0x11eb   :  { %6792 = vpush %v7039_v2  ;;  %3388 = vmatpush1.bf16.msra.mxu1 %v9721_v3  ;;  %5104 = vmatpush1.bf16.msra.mxu0 %v9721_v3 }
0x11ec   :  { %6794 = vpush %v4994_v12  ;;  %3389 = vmatprep.subr.bf16.mxu1 %v7186_v52  ;;  %5105 = vmatprep.subr.bf16.mxu0 %v7186_v52 }
0x11ef   :  { %3390 = vmatpush1.bf16.msra.mxu1 %v9730_v39  ;;  %5106 = vmatpush1.bf16.msra.mxu0 %v9730_v39 }
0x11f0   :  { %3391 = vmatprep.subr.bf16.mxu1 %v7186_v52  ;;  %5107 = vmatprep.subr.bf16.mxu0 %v7186_v52 }
0x121c   :  { %s9643_s27 = spop %6792 }
0x121d   :  { %s6795_s18 = spop %6794 }
0x121e   :  { %s4998_s8 = smul.f32 0.0025510204, %s6795_s18 }
0x1220   :  { %v4999_v55 = vstv %s4998_s8 }
0x1221   :  { %v9647_v28 = vsub.f32 %v9552_v45, %v4999_v55  ;;  %v9739_v55 = vld [vmem:[%s10197_s10 + $0x38] sm:$0xff]  }
0x1222   :  { %3392 = vmatpush1.bf16.msra.mxu1 %v9739_v55  ;;  %5108 = vmatpush1.bf16.msra.mxu0 %v9739_v55 }
0x1223   :  { %v5001_v14 = vmul.f32 %v9647_v28, %v9647_v28  ;;  %3393 = vmatprep.subr.bf16.mxu1 %v7186_v52  ;;  %5109 = vmatprep.subr.bf16.mxu0 %v7186_v52 }
0x1225   :  { %v5003_v37 = vcombine.high %v5001_v14, %v5001_v14  ;;  %v5010_v60 = vrot.slane %v5001_v14, %v10371_v32  ;;  %v3253_v14 = vmul.f32 %v3252_v5, %v9201_v20 }
0x1226   :  { %3394 = vmatpush1.bf16.msra.mxu1 %v9748_v31  ;;  %5110 = vmatpush1.bf16.msra.mxu0 %v9748_v31 }
0x1227   :  { %5019 = vrot.lane.b32.xlu1 %v5010_v60, %s7191_s4  ;;  %v5018_v44 = vcombine.high %v5010_v60, %v5010_v60  ;;  %v5017_v45 = vrot.slane %v5003_v37, %v10371_v32  ;;  %3395 = vmatprep.subr.bf16.mxu1 %v7186_v52  ;;  %v3255_v10 = vmul.f32 %v3254_v61, %v3253_v14  ;;  %v9762_v37 = vld [vmem:[%s10197_s10 + $0x48] sm:$0xff]  }
0x1228   :  { %5111 = vmatprep.subr.bf16.mxu0 %v7186_v52 }
0x1229   :  { %5021 = vrot.lane.b32.xlu0 %v5018_v44, %s7191_s4  ;;  %v3761_v44 = vstv %s9427_s26 }
0x122a   :  { %3396 = vmatpush1.bf16.msra.mxu1 %v9762_v37  ;;  %5112 = vmatpush1.bf16.msra.mxu0 %v9762_v37  ;;  %v3762_v40 = vmul.f32 %v3761_v44, %v9314_v48  ;;  %v9789_v48 = vld [vmem:[%s10197_s10 + $0x58] sm:$0xff]  }
0x122b   :  { %5023 = vrot.lane.b32.xlu1 %v5017_v45, %s7191_s4  ;;  %3397 = vmatprep.subr.bf16.mxu1 %v7186_v52 }
0x122c   :  { %5113 = vmatprep.subr.bf16.mxu0 %v7186_v52 }
0x122e   :  { %3398 = vmatpush1.bf16.msra.mxu1 %v9779_v18  ;;  %5114 = vmatpush1.bf16.msra.mxu0 %v9779_v18 }
0x122f   :  { %5403 = vrot.lane.b32.xlu1 %v5394_v24, %s7191_s4  ;;  %3399 = vmatprep.subr.bf16.mxu1 %v7186_v52 }
0x1230   :  { %5115 = vmatprep.subr.bf16.mxu0 %v7186_v52 }
0x1232   :  { %3400 = vmatpush1.bf16.msra.mxu1 %v9789_v48  ;;  %5116 = vmatpush1.bf16.msra.mxu0 %v9789_v48 }
0x1233   :  { %5405 = vrot.lane.b32.xlu1 %v5402_v17, %s7191_s4  ;;  %3401 = vmatprep.subr.bf16.mxu1 %v7186_v52 }
0x1234   :  { %5117 = vmatprep.subr.bf16.mxu0 %v7186_v52 }
0x1237   :  { %5407 = vrot.lane.b32.xlu1 %v5401_v16, %s7191_s4 }
0x1299   :  { %v5020_v19 = vpop.permute.xlu1 %5019 }
0x129b   :  { %v5022_v33 = vpop.permute.xlu0 %5021 }
0x129c   :  { %v5025_v0 = vsel %vm2885_vm12, %v5020_v19, %v5022_v33 }
0x129d   :  { %v5024_v41 = vpop.permute.xlu1 %5023  ;;  %v5029_v15 = vsel %vm324_vm2, %v5025_v0, 0.0  ;;  %v4190_v0 = vstv %s9540_s17  ;;  %s6433_s17 = sld [smem:[#allocation12 + $0x3]] }
0x129e   :  { %v5026_v49 = vsel %vm2885_vm12, %v5022_v33, %v5024_v41 }
0x129f   :  { %v5030_v4 = vsel %vm3188_vm14, %v5026_v49, 0.0 }
0x12a0   :  { %v5031_v63 = vadd.f32 %v5030_v4, %v5029_v15  ;;  %v6994_v15 = vld [vmem:[%s10197_s10 + $0x60] ss:$0 sps:$4 sm:$0x33]   ;;  %s6432_s10 = sld [smem:[#allocation11 + $0x3]] }
0x12a1   :  { %v5404_v51 = vpop.permute.xlu1 %5403 }
0x12a2   :  { %5032 = vadd.xlane.f32.xlu0 %v5031_v63 }
0x12a3   :  { %v4623_v5 = vstv %s6433_s17 }
0x12a5   :  { %v5406_v6 = vpop.permute.xlu1 %5405 }
0x12a6   :  { %v5409_v13 = vsel %vm2885_vm12, %v5404_v51, %v5406_v6 }
0x12a7   :  { %v5413_v12 = vsel %vm324_vm2, %v5409_v13, 0.0 }
0x12a9   :  { %v5408_v23 = vpop.permute.xlu1 %5407 }
0x12aa   :  { %v5410_v2 = vsel %vm2885_vm12, %v5406_v6, %v5408_v23  ;;  %v4191_v6 = vmul.f32 %v4190_v0, %v9431_v26  ;;  %v9810_v23 = vsel %vm324_vm2, %v6994_v15, 0 }
0x12ab   :  { %v5414_v25 = vsel %vm3188_vm14, %v5410_v2, 0.0  ;;  %v4192_v2 = vstv %s9774_s22  ;;  %3402 = vmatpush1.bf16.msra.mxu1 %v9810_v23  ;;  %5118 = vmatpush1.bf16.msra.mxu0 %v9810_v23 }
0x12ac   :  { %v5415_v56 = vadd.f32 %v5414_v25, %v5413_v12  ;;  %v4193_v25 = vmul.f32 %v4192_v2, %v4191_v6  ;;  %3806 = vmatprep.subr.bf16.mxu1 %v7186_v52  ;;  %6632 = vmatprep.subr.bf16.mxu0 %v7187_v34 }
0x12ae   :  { %5416 = vadd.xlane.f32.xlu1 %v5415_v56 }
0x132f   :  { %v5033_v22 = vpop.xlane.xlu0 %5032 }
0x1330   :  { %v5034_v50 = vrot.slane %v5033_v22, 4 }
0x1332   :  { %v5035_v11 = vadd.f32 %v5034_v50, %v5033_v22  ;;  %v4194_v50 = vstv %s9797_s24 }
0x1334   :  { %v5036_v9 = vrot.slane %v5035_v11, 2 }
0x1336   :  { %v5037_v38 = vadd.f32 %v5036_v9, %v5035_v11  ;;  %v4195_v9 = vadd.f32 %v4194_v50, %v4193_v25 }
0x1338   :  { %v5038_v54 = vrot.slane %v5037_v38, 1 }
0x133a   :  { %v5039_v1 = vadd.f32 %v5038_v54, %v5037_v38  ;;  %v4619_v54 = vstv %s9643_s27  ;;  %s6462_s27 = sld [smem:[#allocation11 + $0x4]] }
0x133b   :  { %v5417_v35 = vpop.xlane.xlu1 %5416 }
0x133c   :  { %6796 = vpush %v5039_v1  ;;  %v5418_v57 = vrot.slane %v5417_v35, 4 }
0x133e   :  { %v5419_v7 = vadd.f32 %v5418_v57, %v5417_v35  ;;  %v4196_v57 = vmax.f32 %v4195_v9, 0.0 }
0x1340   :  { %v5420_v29 = vrot.slane %v5419_v7, 2  ;;  %v4198_v14 = vcombine.high %v4196_v57, %v4196_v57 }
0x1342   :  { %v5421_v62 = vadd.f32 %v5420_v29, %v5419_v7  ;;  %v4620_v7 = vmul.f32 %v4619_v54, %v9544_v8 }
0x1344   :  { %v5422_v30 = vrot.slane %v5421_v62, 1 }
0x1346   :  { %v5423_v59 = vadd.f32 %v5422_v30, %v5421_v62  ;;  %v4205_v62 = vrot.slane %v4196_v57, %v10371_v32 }
0x136d   :  { %s6797_s0 = spop %6796 }
0x136e   :  { %s5043_s28 = smul.f32 0.0025510204, %s6797_s0  ;;  %s3159_s0 = sld [smem:[#allocation12]] }
0x1370   :  { %s5044_s25 = sadd.f32 1e-05, %s5043_s28  ;;  %s6372_s28 = sld [smem:[#allocation11 + $0x1]] }
0x1372   :  { %v5045_v58 = vstv %s5044_s25  ;;  %s9766_s25 = sld [smem:[#allocation12 + $0x1]] }
0x1373   :  { %7040 = vrsqrt.f32 %v5045_v58  ;;  %v4621_v58 = vstv %s6432_s10 }
0x1374   :  { %v3256_v53 = vstv %s3159_s0  ;;  %v4622_v30 = vmul.f32 %v4621_v58, %v4620_v7  ;;  %s6492_s0 = sld [smem:[#allocation11 + $0x5]] }
0x1375   :  { %v3257_v60 = vadd.f32 %v3256_v53, %v3255_v10  ;;  %v4213_v10 = vcombine.high %v4205_v62, %v4205_v62 }
0x1376   :  { %v3763_v45 = vstv %s6372_s28  ;;  %v4624_v61 = vadd.f32 %v4623_v5, %v4622_v30  ;;  %s6493_s28 = sld [smem:[#allocation12 + $0x5]] }
0x1377   :  { %v3258_v20 = vmax.f32 %v3257_v60, 0.0  ;;  %v3764_v19 = vmul.f32 %v3763_v45, %v3762_v40  ;;  %v4212_v40 = vrot.slane %v4198_v14, %v10371_v32  ;;  %v5050_v45 = vstv %s6462_s27 }
0x1378   :  { %v4625_v60 = vmax.f32 %v4624_v61, 0.0 }
0x1379   :  { %v3267_v16 = vrot.slane %v3258_v20, %v10371_v32  ;;  %v3260_v4 = vcombine.high %v3258_v20, %v3258_v20  ;;  %v4218_v20 = vpack.c.bf16 %v4213_v10, %v4213_v10 }
0x137b   :  { %v3275_v63 = vcombine.high %v3267_v16, %v3267_v16  ;;  %v3274_v22 = vrot.slane %v3260_v4, %v10371_v32  ;;  %v3279_v1 = vpack.c.bf16 %v3267_v16, %v3267_v16 }
0x137d   :  { %v7041_v43 = vpop.eup %7040  ;;  %v3280_v56 = vpack.c.bf16 %v3275_v63, %v3275_v63  ;;  %v3281_v38 = vpack.c.bf16 %v3274_v22, %v3274_v22 }
0x137e   :  { %6798 = vpush %v7041_v43 }
0x137f   :  { %6800 = vpush %v5423_v59 }
0x13af   :  { %s9769_s20 = spop %6798 }
0x13b0   :  { %s6801_s5 = spop %6800  ;;  %v5048_v53 = vstv %s9769_s20 }
0x13b1   :  { %s5427_s2 = smul.f32 0.0025510204, %s6801_s5  ;;  %v5049_v44 = vmul.f32 %v5048_v53, %v9647_v28 }
0x13b3   :  { %v5428_v24 = vstv %s5427_s2  ;;  %v5051_v16 = vmul.f32 %v5050_v45, %v5049_v44 }
0x13b4   :  { %v9782_v17 = vsub.f32 %v9655_v21, %v5428_v24  ;;  %v3765_v21 = vstv %s9766_s25  ;;  %v4634_v24 = vrot.slane %v4625_v60, %v10371_v32 }
0x13b5   :  { %v3766_v51 = vadd.f32 %v3765_v21, %v3764_v19  ;;  %v4219_v19 = vpack.c.bf16 %v4212_v40, %v4212_v40  ;;  %v4627_v21 = vcombine.high %v4625_v60, %v4625_v60 }
0x13b6   :  { %v5430_v33 = vmul.f32 %v9782_v17, %v9782_v17  ;;  %v4646_v6 = vpack.c.bf16 %v4634_v24, %v4634_v24 }
0x13b7   :  { %v3767_v26 = vmax.f32 %v3766_v51, 0.0  ;;  %v4641_v4 = vrot.slane %v4627_v21, %v10371_v32 }
0x13b8   :  { %v5432_v41 = vcombine.high %v5430_v33, %v5430_v33  ;;  %v5439_v49 = vrot.slane %v5430_v33, %v10371_v32  ;;  %v5052_v33 = vstv %s6463_s1 }
0x13b9   :  { %v9825_v11 = vrot.slane %v3767_v26, %v10371_v32  ;;  %v3769_v35 = vcombine.high %v3767_v26, %v3767_v26  ;;  %v5053_v0 = vadd.f32 %v5052_v33, %v5051_v16  ;;  %v4648_v51 = vpack.c.bf16 %v4641_v4, %v4641_v4 }
0x13ba   :  { %5448 = vrot.lane.b32.xlu0 %v5439_v49, %s7191_s4  ;;  %v5447_v13 = vcombine.high %v5439_v49, %v5439_v49  ;;  %v5446_v12 = vrot.slane %v5432_v41, %v10371_v32  ;;  %v4217_v41 = vpack.c.bf16 %v4205_v62, %v4205_v62  ;;  %v4642_v49 = vcombine.high %v4634_v24, %v4634_v24 }
0x13bb   :  { %v3784_v29 = vcombine.high %v9825_v11, %v9825_v11  ;;  %v3783_v59 = vrot.slane %v3769_v35, %v10371_v32  ;;  %v5054_v28 = vmax.f32 %v5053_v0, 0.0 }
0x13bc   :  { %5450 = vrot.lane.b32.xlu1 %v5447_v13, %s7191_s4  ;;  %v4647_v15 = vpack.c.bf16 %v4642_v49, %v4642_v49 }
0x13bd   :  { %v3789_v43 = vpack.c.bf16 %v3784_v29, %v3784_v29  ;;  %v3790_v8 = vpack.c.bf16 %v3783_v59, %v3783_v59  ;;  %v5056_v63 = vcombine.high %v5054_v28, %v5054_v28  ;;  %v5063_v30 = vrot.slane %v5054_v28, %v10371_v32 }
0x13be   :  { %5452 = vrot.lane.b32.xlu0 %v5446_v12, %s7191_s4  ;;  %v3788_v59 = vpack.c.bf16 %v9825_v11, %v9825_v11 }
0x13bf   :  { %v5070_v13 = vrot.slane %v5056_v63, %v10371_v32  ;;  %v5071_v5 = vcombine.high %v5063_v30, %v5063_v30  ;;  %v5075_v11 = vpack.c.bf16 %v5063_v30, %v5063_v30 }
0x13c0   :  { %3287 = vrot.lane.b32.xlu1 %v3280_v56, %s7191_s4 }
0x13c1   :  { %v5077_v2 = vpack.c.bf16 %v5070_v13, %v5070_v13  ;;  %v5076_v61 = vpack.c.bf16 %v5071_v5, %v5071_v5 }
0x13c4   :  { %3289 = vrot.lane.b32.xlu1 %v3281_v38, %s7191_s4 }
0x13c8   :  { %3285 = vrot.lane.b32.xlu1 %v3279_v1, %s7191_s4 }
0x13cc   :  { %3796 = vrot.lane.b32.xlu1 %v3789_v43, %s7191_s4 }
0x13d0   :  { %3798 = vrot.lane.b32.xlu1 %v3790_v8, %s7191_s4 }
0x13d4   :  { %4225 = vrot.lane.b32.xlu1 %v4218_v20, %s7191_s4 }
0x13d8   :  { %4227 = vrot.lane.b32.xlu1 %v4219_v19, %s7191_s4 }
0x13dc   :  { %4223 = vrot.lane.b32.xlu1 %v4217_v41, %s7191_s4 }
0x13e0   :  { %4654 = vrot.lane.b32.xlu1 %v4647_v15, %s7191_s4 }
0x13e4   :  { %4656 = vrot.lane.b32.xlu1 %v4648_v51, %s7191_s4 }
0x13e8   :  { %4652 = vrot.lane.b32.xlu1 %v4646_v6, %s7191_s4 }
0x13ec   :  { %5085 = vrot.lane.b32.xlu1 %v5077_v2, %s7191_s4 }
0x142c   :  { %v5449_v12 = vpop.permute.xlu0 %5448 }
0x142e   :  { %v5451_v26 = vpop.permute.xlu1 %5450 }
0x142f   :  { %v5454_v25 = vsel %vm2885_vm12, %v5449_v12, %v5451_v26 }
0x1430   :  { %v5453_v56 = vpop.permute.xlu0 %5452  ;;  %v5458_v50 = vsel %vm324_vm2, %v5454_v25, 0.0 }
0x1431   :  { %v5455_v22 = vsel %vm2885_vm12, %v5451_v26, %v5453_v56 }
0x1432   :  { %v5459_v9 = vsel %vm3188_vm14, %v5455_v22, 0.0  ;;  %v3288_v38 = vpop.permute.xlu1 %3287  ;;  %v6995_v22 = vld [vmem:[%s10198_s11 + $0x38] sm:$0xff]  }
0x1433   :  { %v5460_v54 = vadd.f32 %v5459_v9, %v5458_v50  ;;  %v5479_v50 = vstv %s6492_s0  ;;  %v5481_v9 = vstv %s6493_s28 }
0x1435   :  { %5461 = vadd.xlane.f32.xlu0 %v5460_v54 }
0x1436   :  { %v3290_v1 = vpop.permute.xlu1 %3289 }
0x1437   :  { %v3293_v35 = vsel %vm2885_vm12, %v3288_v38, %v3290_v1 }
0x1438   :  { %6344 = vmatprep.mubr.msk.bf16.mxu1 %vm3370_vm1, %v3293_v35 }
0x143a   :  { %v3286_v57 = vpop.permute.xlu1 %3285 }
0x143b   :  { %v3292_v7 = vsel %vm2885_vm12, %v3286_v57, %v3288_v38 }
0x143c   :  { %3410 = vmatmul.mubr.bf16.vlgmr.msra.gmra.mrb[4].mxu1 %v3292_v7  ;;  %v7000_v7 = vld [vmem:[%s10198_s11 + $0x50] ss:$0 sps:$4 sm:$0x11]  }
0x143d   :  { %3807 = vmatpush1.bf16.msra.mxu1 %v9679_v27 }
0x143e   :  { %v3797_v29 = vpop.permute.xlu1 %3796  ;;  %3808 = vmatprep.subr.bf16.mxu1 %v7186_v52 }
0x1441   :  { %3809 = vmatpush1.bf16.msra.mxu1 %v9685_v47 }
0x1442   :  { %v3799_v58 = vpop.permute.xlu1 %3798  ;;  %3810 = vmatprep.subr.bf16.mxu1 %v7186_v52 }
0x1443   :  { %v3801_v62 = vsel %vm2885_vm12, %v3797_v29, %v3799_v58 }
0x1444   :  { %6374 = vmatprep.mubr.msk.bf16.mxu1 %vm3370_vm1, %v3801_v62 }
0x1445   :  { %3811 = vmatpush1.bf16.msra.mxu1 %v9694_v46 }
0x1446   :  { %v4226_v43 = vpop.permute.xlu1 %4225  ;;  %3812 = vmatprep.subr.bf16.mxu1 %v7186_v52 }
0x1449   :  { %3813 = vmatpush1.bf16.msra.mxu1 %v9703_v42 }
0x144a   :  { %v4228_v14 = vpop.permute.xlu1 %4227  ;;  %3814 = vmatprep.subr.bf16.mxu1 %v7186_v52 }
0x144b   :  { %3794 = vrot.lane.b32.xlu0 %v3788_v59, %s7191_s4  ;;  %v4230_v21 = vsel %vm2885_vm12, %v4226_v43, %v4228_v14 }
0x144d   :  { %3815 = vmatpush1.bf16.msra.mxu1 %v9712_v36 }
0x144e   :  { %v4224_v8 = vpop.permute.xlu1 %4223  ;;  %3816 = vmatprep.subr.bf16.mxu1 %v7186_v52 }
0x144f   :  { %v9874_v10 = vsel %vm2885_vm12, %v4224_v8, %v4226_v43  ;;  %5083 = vrot.lane.b32.xlu0 %v5076_v61, %s7191_s4  ;;  %v6999_v8 = vld [vmem:[%s10198_s11 + $0x8] sm:$0xff]  }
0x1451   :  { %3817 = vmatpush1.bf16.msra.mxu1 %v9721_v3 }
0x1452   :  { %v9878_v53 = vpop.permute.xlu1 %4654  ;;  %3818 = vmatprep.subr.bf16.mxu1 %v7186_v52 }
0x1453   :  { %5081 = vrot.lane.b32.xlu0 %v5075_v11, %s7191_s4  ;;  %v7001_v11 = vld [vmem:[%s10198_s11 + $0x10] sm:$0xff]  }
0x1455   :  { %3819 = vmatpush1.bf16.msra.mxu1 %v9730_v39 }
0x1456   :  { %v9883_v60 = vpop.permute.xlu1 %4656  ;;  %3820 = vmatprep.subr.bf16.mxu1 %v7186_v52 }
0x1457   :  { %v4659_v6 = vsel %vm2885_vm12, %v9878_v53, %v9883_v60  ;;  %v7007_v60 = vld [vmem:[%s10198_s11 + $0x54] sm:$0xff]  }
0x1459   :  { %3821 = vmatpush1.bf16.msra.mxu1 %v9739_v55 }
0x145a   :  { %v4653_v44 = vpop.permute.xlu1 %4652  ;;  %3822 = vmatprep.subr.bf16.mxu1 %v7186_v52 }
0x145b   :  { %v9890_v20 = vsel %vm2885_vm12, %v4653_v44, %v9878_v53  ;;  %v7002_v53 = vld [vmem:[%s10198_s11 + $0x18] ss:$0 sps:$4 sm:$0x11]  }
0x145d   :  { %3823 = vmatpush1.bf16.msra.mxu1 %v9748_v31 }
0x145e   :  { %3824 = vmatprep.subr.bf16.mxu1 %v7186_v52  ;;  %v5086_v41 = vpop.permute.xlu1 %5085 }
0x1461   :  { %3825 = vmatpush1.bf16.msra.mxu1 %v9762_v37 }
0x1462   :  { %3826 = vmatprep.subr.bf16.mxu1 %v7186_v52 }
0x1465   :  { %3827 = vmatpush1.bf16.msra.mxu1 %v9779_v18 }
0x1466   :  { %3828 = vmatprep.subr.bf16.mxu1 %v7186_v52 }
0x1469   :  { %3829 = vmatpush1.bf16.msra.mxu1 %v9789_v48 }
0x146a   :  { %3830 = vmatprep.subr.bf16.mxu1 %v7186_v52 }
0x146d   :  { %3831 = vmatpush1.bf16.msra.mxu1 %v9810_v23 }
0x146e   :  { %4235 = vmatprep.subr.bf16.mxu1 %v7186_v52 }
0x14c2   :  { %v5462_v40 = vpop.xlane.xlu0 %5461 }
0x14c3   :  { %v5463_v45 = vrot.slane %v5462_v40, 4 }
0x14c5   :  { %v5464_v24 = vadd.f32 %v5463_v45, %v5462_v40 }
0x14c6   :  { %v3795_v16 = vpop.permute.xlu0 %3794 }
0x14c7   :  { %v5465_v19 = vrot.slane %v5464_v24, 2  ;;  %v3800_v33 = vsel %vm2885_vm12, %v3795_v16, %v3797_v29  ;;  %v10004_v29 = vsel %vm5596_vm6, 65535, %v7186_v52  ;;  %v7008_v16 = vld [vmem:[%s10198_s11 + $0x5c] sm:$0xff]  }
0x14c8   :  { %3839 = vmatmul.mubr.bf16.vlgmr.msra.gmra.mrb[8].mxu1 %v3800_v33 }
0x14c9   :  { %4236 = vmatpush1.bf16.msra.mxu1 %v9679_v27  ;;  %6404 = vmatprep.mubr.msk.bf16.mxu1 %vm3370_vm1, %v4230_v21  ;;  %v5466_v0 = vadd.f32 %v5465_v19, %v5464_v24  ;;  %v5600_v24 = vand.u32 %v7002_v53, %v10004_v29  ;;  %v7003_v19 = vld [vmem:[%s10198_s11 + $0x1c] sm:$0xff]   ;;  %v7009_v21 = vld [vmem:[%s10198_s11 + $0x64] sm:$0xff]  }
0x14ca   :  { %v5084_v49 = vpop.permute.xlu0 %5083  ;;  %4237 = vmatprep.subr.bf16.mxu1 %v7186_v52 }
0x14cb   :  { %v5088_v28 = vsel %vm2885_vm12, %v5084_v49, %v5086_v41  ;;  %v5467_v15 = vrot.slane %v5466_v0, 1  ;;  %v7004_v41 = vld [vmem:[%s10198_s11 + $0x24] sm:$0xff]  }
0x14cc   :  { %6464 = vmatprep.mubr.msk.bf16.mxu0 %vm3370_vm1, %v5088_v28  ;;  %v7005_v28 = vld [vmem:[%s10198_s11 + $0x2c] sm:$0xff]  }
0x14cd   :  { %4238 = vmatpush1.bf16.msra.mxu1 %v9685_v47  ;;  %v5468_v4 = vadd.f32 %v5467_v15, %v5466_v0  ;;  %v7010_v0 = vld [vmem:[%s10198_s11 + $0x6c] ss:$0 sps:$4 sm:$0x11]   ;;  %v7006_v15 = vld [vmem:[%s10198_s11 + $0x34] ss:$0 sps:$4 sm:$0x11]  }
0x14ce   :  { %v5082_v63 = vpop.permute.xlu0 %5081  ;;  %4239 = vmatprep.subr.bf16.mxu1 %v7186_v52 }
0x14cf   :  { %v5087_v51 = vsel %vm2885_vm12, %v5082_v63, %v5084_v49  ;;  %6802 = vpush %v5468_v4  ;;  %v5837_v49 = vand.u32 %v7010_v0, %v10004_v29  ;;  %v5683_v4 = vand.u32 %v7006_v15, %v10004_v29 }
0x14d0   :  { %5126 = vmatmul.mubr.bf16.vlgmr.msra.gmra.mrb[8].mxu0 %v5087_v51 }
0x14d1   :  { %4240 = vmatpush1.bf16.msra.mxu1 %v9694_v46  ;;  %6633 = vmatpush3.bf16.msra.mxu0 %v6995_v22  ;;  %v7014_v22 = vld [vmem:[%s10198_s11 + $0x88] ss:$0 sps:$4 sm:$0x11]  }
0x14d2   :  { %4241 = vmatprep.subr.bf16.mxu1 %v7186_v52  ;;  %6634 = vmatprep.subr.bf16.mxu0 %v7187_v34 }
0x14d3   :  { %6640 = vmatprep.mubr.msk.bf16.mxu0 %vm7194_vm8, %v7187_v34 }
0x14d5   :  { %4242 = vmatpush1.bf16.msra.mxu1 %v9703_v42 }
0x14d6   :  { %4243 = vmatprep.subr.bf16.mxu1 %v7186_v52 }
0x14d9   :  { %4244 = vmatpush1.bf16.msra.mxu1 %v9712_v36 }
0x14da   :  { %4245 = vmatprep.subr.bf16.mxu1 %v7186_v52 }
0x14dd   :  { %4246 = vmatpush1.bf16.msra.mxu1 %v9721_v3 }
0x14de   :  { %4247 = vmatprep.subr.bf16.mxu1 %v7186_v52 }
0x14e1   :  { %4248 = vmatpush1.bf16.msra.mxu1 %v9730_v39 }
0x14e2   :  { %4249 = vmatprep.subr.bf16.mxu1 %v7186_v52 }
0x14e5   :  { %4250 = vmatpush1.bf16.msra.mxu1 %v9739_v55 }
0x14e6   :  { %4251 = vmatprep.subr.bf16.mxu1 %v7186_v52 }
0x14e9   :  { %4252 = vmatpush1.bf16.msra.mxu1 %v9748_v31 }
0x14ea   :  { %4253 = vmatprep.subr.bf16.mxu1 %v7186_v52 }
0x14ed   :  { %4254 = vmatpush1.bf16.msra.mxu1 %v9762_v37 }
0x14ee   :  { %4255 = vmatprep.subr.bf16.mxu1 %v7186_v52 }
0x14f1   :  { %4256 = vmatpush1.bf16.msra.mxu1 %v9779_v18 }
0x14f2   :  { %4257 = vmatprep.subr.bf16.mxu1 %v7186_v52 }
0x14f5   :  { %4258 = vmatpush1.bf16.msra.mxu1 %v9789_v48 }
0x14f6   :  { %4259 = vmatprep.subr.bf16.mxu1 %v7186_v52 }
0x14f9   :  { %4260 = vmatpush1.bf16.msra.mxu1 %v9810_v23 }
0x14fa   :  { %4664 = vmatprep.subr.bf16.mxu1 %v7186_v52 }
0x14fc   :  { %4268 = vmatmul.mubr.bf16.vlgmr.msra.gmra.mrb[12].mxu1 %v9874_v10 }
0x14fd   :  { %4665 = vmatpush1.bf16.msra.mxu1 %v9679_v27  ;;  %6434 = vmatprep.mubr.msk.bf16.mxu1 %vm3370_vm1, %v4659_v6  ;;  %v7011_v6 = vld [vmem:[%s10198_s11 + $0x70] sm:$0xff]  }
0x14fe   :  { %4666 = vmatprep.subr.bf16.mxu1 %v7186_v52 }
0x1500   :  { %s6803_s6 = spop %6802 }
0x1501   :  { %4667 = vmatpush1.bf16.msra.mxu1 %v9685_v47  ;;  %s5472_s18 = smul.f32 0.0025510204, %s6803_s6 }
0x1502   :  { %4668 = vmatprep.subr.bf16.mxu1 %v7186_v52 }
0x1503   :  { %s5473_s8 = sadd.f32 1e-05, %s5472_s18 }
0x1505   :  { %v5474_v13 = vstv %s5473_s8  ;;  %4669 = vmatpush1.bf16.msra.mxu1 %v9694_v46 }
0x1506   :  { %7042 = vrsqrt.f32 %v5474_v13  ;;  %4670 = vmatprep.subr.bf16.mxu1 %v7186_v52 }
0x1509   :  { %4671 = vmatpush1.bf16.msra.mxu1 %v9703_v42 }
0x150a   :  { %4672 = vmatprep.subr.bf16.mxu1 %v7186_v52 }
0x150d   :  { %4673 = vmatpush1.bf16.msra.mxu1 %v9712_v36 }
0x150e   :  { %4674 = vmatprep.subr.bf16.mxu1 %v7186_v52 }
0x150f   :  { %v9949_v2 = vpop.f32.mrb[4].mxu1 }
0x1510   :  { %v7043_v12 = vpop.eup %7042  ;;  %v3413_v26 = vpop.f32.mrb[5].mxu1  ;;  %v5563_v33 = vpack.c.bf16 %v9949_v2, %v9949_v2 }
0x1511   :  { %4675 = vmatpush1.bf16.msra.mxu1 %v9721_v3  ;;  %v3414_v25 = vpop.f32.mrb[6].mxu1  ;;  %6804 = vpush %v7043_v12 }
0x1512   :  { %v3415_v56 = vpop.f32.mrb[7].mxu1  ;;  %4676 = vmatprep.subr.bf16.mxu1 %v7186_v52  ;;  %v7012_v25 = vld [vmem:[%s10198_s11 + $0x78] sm:$0xff]  }
0x1513   :  { %v7013_v56 = vld [vmem:[%s10198_s11 + $0x80] sm:$0xff]  }
0x1515   :  { %4677 = vmatpush1.bf16.msra.mxu1 %v9730_v39 }
0x1516   :  { %4678 = vmatprep.subr.bf16.mxu1 %v7186_v52 }
0x1519   :  { %4679 = vmatpush1.bf16.msra.mxu1 %v9739_v55 }
0x151a   :  { %4680 = vmatprep.subr.bf16.mxu1 %v7186_v52 }
0x151d   :  { %4681 = vmatpush1.bf16.msra.mxu1 %v9748_v31 }
0x151e   :  { %4682 = vmatprep.subr.bf16.mxu1 %v7186_v52 }
0x1521   :  { %4683 = vmatpush1.bf16.msra.mxu1 %v9762_v37 }
0x1522   :  { %4684 = vmatprep.subr.bf16.mxu1 %v7186_v52 }
0x1525   :  { %4685 = vmatpush1.bf16.msra.mxu1 %v9779_v18 }
0x1526   :  { %4686 = vmatprep.subr.bf16.mxu1 %v7186_v52 }
0x1529   :  { %4687 = vmatpush1.bf16.msra.mxu1 %v9789_v48 }
0x152a   :  { %4688 = vmatprep.subr.bf16.mxu1 %v7186_v52 }
0x152d   :  { %4689 = vmatpush1.bf16.msra.mxu1 %v9810_v23 }
0x152e   :  { %5522 = vmatprep.subr.bf16.mxu1 %v7186_v52 }
0x1530   :  { %4697 = vmatmul.mubr.bf16.vlgmr.msra.gmra.mrb[16].mxu1 %v9890_v20 }
0x1531   :  { %5523 = vmatpush1.bf16.msra.mxu1 %v9679_v27 }
0x1532   :  { %5524 = vmatprep.subr.bf16.mxu1 %v7186_v52 }
0x1535   :  { %5525 = vmatpush1.bf16.msra.mxu1 %v9685_v47 }
0x1536   :  { %5526 = vmatprep.subr.bf16.mxu1 %v7186_v52 }
0x1539   :  { %5527 = vmatpush1.bf16.msra.mxu1 %v9694_v46 }
0x153a   :  { %5528 = vmatprep.subr.bf16.mxu1 %v7186_v52 }
0x153d   :  { %5529 = vmatpush1.bf16.msra.mxu1 %v9703_v42  ;;  %v6996_v42 = vld [vmem:[%s10198_s11 + $0x40] sm:$0xff]  }
0x153e   :  { %5530 = vmatprep.subr.bf16.mxu1 %v7186_v52  ;;  %6635 = vmatpush3.bf16.msra.mxu0 %v6996_v42  ;;  %v7018_v42 = vld [vmem:[%s10198_s11 + $0xa4] ss:$0 sps:$4 sm:$0x11]  }
0x153f   :  { %6636 = vmatprep.subr.bf16.mxu0 %v7187_v34 }
0x1541   :  { %5531 = vmatpush1.bf16.msra.mxu1 %v9712_v36 }
0x1542   :  { %s6805_s30 = spop %6804  ;;  %5532 = vmatprep.subr.bf16.mxu1 %v7186_v52 }
0x1543   :  { %v5477_v27 = vstv %s6805_s30 }
0x1544   :  { %v5478_v47 = vmul.f32 %v5477_v27, %v9782_v17  ;;  %v5914_v27 = vand.u32 %v7014_v22, %v10004_v29 }
0x1545   :  { %5533 = vmatpush1.bf16.msra.mxu1 %v9721_v3  ;;  %v6998_v3 = vld [vmem:[%s10198_s11 + $0x48] sm:$0xff]  }
0x1546   :  { %v5480_v46 = vmul.f32 %v5479_v50, %v5478_v47  ;;  %5534 = vmatprep.subr.bf16.mxu1 %v7186_v52  ;;  %6637 = vmatpush3.bf16.msra.mxu0 %v6998_v3  ;;  %v7015_v50 = vld [vmem:[%s10198_s11 + $0x8c] sm:$0xff]  }
0x1547   :  { %6638 = vmatprep.subr.bf16.mxu0 %v7187_v34  ;;  %v7020_v3 = vld [vmem:[%s10200_s13 + $0x8] sm:$0xff]  }
0x1548   :  { %v5482_v38 = vadd.f32 %v5481_v9, %v5480_v46  ;;  %v7016_v9 = vld [vmem:[%s10198_s11 + $0x94] sm:$0xff]   ;;  %v7017_v46 = vld [vmem:[%s10198_s11 + $0x9c] sm:$0xff]  }
0x1549   :  { %5535 = vmatpush1.bf16.msra.mxu1 %v9730_v39 }
0x154a   :  { %v5483_v36 = vmax.f32 %v5482_v38, 0.0  ;;  %5536 = vmatprep.subr.bf16.mxu1 %v7186_v52  ;;  %v5991_v38 = vand.u32 %v7018_v42, %v10004_v29 }
0x154c   :  { %v5485_v17 = vcombine.high %v5483_v36, %v5483_v36  ;;  %v5492_v54 = vrot.slane %v5483_v36, %v10371_v32  ;;  %v7019_v36 = vld [vmem:[%s10200_s13] sm:$0xff]  }
0x154d   :  { %5537 = vmatpush1.bf16.msra.mxu1 %v9739_v55 }
0x154e   :  { %v5500_v1 = vcombine.high %v5492_v54, %v5492_v54  ;;  %v5499_v35 = vrot.slane %v5485_v17, %v10371_v32  ;;  %5538 = vmatprep.subr.bf16.mxu1 %v7186_v52  ;;  %v5760_v32 = vand.u32 %v7000_v7, %v10004_v29  ;;  %v5504_v55 = vpack.c.bf16 %v5492_v54, %v5492_v54  ;;  %v7021_v17 = vld [vmem:[%s10200_s13 + $0x10] sm:$0xff]   ;;  %v7022_v54 = vld [vmem:[%s10200_s13 + $0x18] sm:$0xff]  }
0x1550   :  { %v5505_v39 = vpack.c.bf16 %v5500_v1, %v5500_v1  ;;  %v5506_v57 = vpack.c.bf16 %v5499_v35, %v5499_v35  ;;  %6639 = vmatpush3.bf16.msra.mxu0 %v5760_v32  ;;  %v7023_v1 = vld [vmem:[%s10200_s13 + $0x20] sm:$0xff]   ;;  %v7024_v35 = vld [vmem:[%s10200_s13 + $0x28] sm:$0xff]  }
0x1551   :  { %5539 = vmatpush1.bf16.msra.mxu1 %v9748_v31  ;;  %6644 = vmatprep.subr.bf16.mxu0 %v7187_v34 }
0x1552   :  { %5512 = vrot.lane.b32.xlu1 %v5505_v39, %s7191_s4  ;;  %5514 = vrot.lane.b32.xlu0 %v5506_v57, %s7191_s4 }
0x1553   :  { %5540 = vmatprep.subr.bf16.mxu1 %v7186_v52 }
0x1555   :  { %5541 = vmatpush1.bf16.msra.mxu1 %v9762_v37 }
0x1556   :  { %5510 = vrot.lane.b32.xlu1 %v5504_v55, %s7191_s4  ;;  %5542 = vmatprep.subr.bf16.mxu1 %v7186_v52 }
0x1559   :  { %5543 = vmatpush1.bf16.msra.mxu1 %v9779_v18 }
0x155a   :  { %5544 = vmatprep.subr.bf16.mxu1 %v7186_v52 }
0x155d   :  { %5545 = vmatpush1.bf16.msra.mxu1 %v9789_v48 }
0x155e   :  { %5546 = vmatprep.subr.bf16.mxu1 %v7186_v52  ;;  %v6997_v52 = vld [vmem:[%s10198_s11] sm:$0xff]  }
0x1561   :  { %5547 = vmatpush1.bf16.msra.mxu1 %v9810_v23 }
0x1562   :  { %6608 = vmatprep.subr.bf16.mxu1 %v7187_v34 }
0x159b   :  { %v10022_v31 = vpop.f32.mrb[8].mxu1 }
0x159c   :  { %v3842_v37 = vpop.f32.mrb[9].mxu1  ;;  %v5649_v63 = vpack.c.bf16 %v10022_v31, %v10022_v31 }
0x159d   :  { %v3843_v58 = vpop.f32.mrb[10].mxu1 }
0x159e   :  { %v3844_v62 = vpop.f32.mrb[11].mxu1 }
0x159f   :  { %v7025_v62 = vld [vmem:[%s10200_s13 + $0x30] ss:$0 sps:$4 sm:$0x33]  }
0x15a3   :  { %v10024_v30 = vpop.f32.mrb[8].mxu0 }
0x15a4   :  { %v5129_v43 = vpop.f32.mrb[9].mxu0  ;;  %v5880_v47 = vpack.c.bf16 %v10024_v30, %v10024_v30  ;;  %v6098_v30 = vsel %vm324_vm2, %v7025_v62, 0  ;;  %vm6140_vm2 = vcmask 74752  }
0x15a5   :  { %v5130_v59 = vpop.f32.mrb[10].mxu0 }
0x15a6   :  { %v5131_v18 = vpop.f32.mrb[11].mxu0 }
0x15c4   :  { %v5513_v5 = vpop.permute.xlu1 %5512  ;;  %v5515_v14 = vpop.permute.xlu0 %5514 }
0x15c5   :  { %v5517_v48 = vsel %vm2885_vm12, %v5513_v5, %v5515_v14 }
0x15c6   :  { %6494 = vmatprep.mubr.msk.bf16.mxu1 %vm3370_vm1, %v5517_v48 }
0x15c8   :  { %v5511_v23 = vpop.permute.xlu1 %5510 }
0x15c9   :  { %v5516_v61 = vsel %vm2885_vm12, %v5511_v23, %v5513_v5  ;;  %v6561_v23 = vld [vmem:[%s10201_s14] ss:$0 sm:$0xff] }
0x15ca   :  { %5555 = vmatmul.mubr.bf16.vlgmr.msra.gmra.mrb[20].mxu1 %v5516_v61 }
0x15cb   :  { %6609 = vmatpush3.bf16.msra.mxu1 %v6997_v52  ;;  %6616 = vmatprep.mubr.msk.bf16.mxu1 %vm7194_vm8, %v7187_v34 }
0x15cc   :  { %6610 = vmatprep.subr.bf16.mxu1 %v7187_v34 }
0x15cf   :  { %v4269_v10 = vpop.f32.mrb[12].mxu1  ;;  %6611 = vmatpush3.bf16.msra.mxu1 %v6999_v8 }
0x15d0   :  { %v5726_v44 = vpack.c.bf16 %v4269_v10, %v4269_v10  ;;  %v4271_v20 = vpop.f32.mrb[13].mxu1  ;;  %6612 = vmatprep.subr.bf16.mxu1 %v7187_v34 }
0x15d1   :  { %v4272_v40 = vpop.f32.mrb[14].mxu1 }
0x15d2   :  { %v4273_v45 = vpop.f32.mrb[15].mxu1  ;;  %6641 = vmatmul.mubr.msk.bf16.vlgmr.msra.gmra.mrb[12].mxu0 %vm5592_vm10, %v5726_v44 }
0x15d3   :  { %6613 = vmatpush3.bf16.msra.mxu1 %v7001_v11  ;;  %6645 = vmatpush3.bf16.msra.mxu0 %v7007_v60 }
0x15d4   :  { %6614 = vmatprep.subr.bf16.mxu1 %v7187_v34  ;;  %6646 = vmatprep.subr.bf16.mxu0 %v7187_v34 }
0x15d5   :  { %6652 = vmatprep.mubr.msk.bf16.mxu0 %vm7194_vm8, %v7187_v34 }
0x15d7   :  { %6615 = vmatpush3.bf16.msra.mxu1 %v5600_v24  ;;  %6647 = vmatpush3.bf16.msra.mxu0 %v7008_v16 }
0x15d8   :  { %6620 = vmatprep.subr.bf16.mxu1 %v7187_v34  ;;  %6648 = vmatprep.subr.bf16.mxu0 %v7187_v34 }
0x15da   :  { %6617 = vmatmul.mubr.msk.bf16.vlgmr.msra.gmra.mrb[24].mxu1 %vm5592_vm10, %v5563_v33 }
0x15db   :  { %6621 = vmatpush3.bf16.msra.mxu1 %v7003_v19  ;;  %6628 = vmatprep.mubr.msk.bf16.mxu1 %vm7194_vm8, %v7187_v34 }
0x15dc   :  { %6622 = vmatprep.subr.bf16.mxu1 %v7187_v34  ;;  %6649 = vmatpush3.bf16.msra.mxu0 %v7009_v21 }
0x15dd   :  { %6650 = vmatprep.subr.bf16.mxu0 %v7187_v34 }
0x15df   :  { %6623 = vmatpush3.bf16.msra.mxu1 %v7004_v41 }
0x15e0   :  { %6624 = vmatprep.subr.bf16.mxu1 %v7187_v34  ;;  %6651 = vmatpush3.bf16.msra.mxu0 %v5837_v49 }
0x15e1   :  { %6656 = vmatprep.subr.bf16.mxu0 %v7187_v34 }
0x15e3   :  { %6625 = vmatpush3.bf16.msra.mxu1 %v7005_v28 }
0x15e4   :  { %6626 = vmatprep.subr.bf16.mxu1 %v7187_v34 }
0x15e7   :  { %6627 = vmatpush3.bf16.msra.mxu1 %v5683_v4 }
0x15e8   :  { %6680 = vmatprep.subr.bf16.mxu1 %v7187_v34 }
0x15ea   :  { %6629 = vmatmul.mubr.msk.bf16.vlgmr.msra.gmra.mrb[24].mxu1 %vm5592_vm10, %v5649_v63 }
0x15eb   :  { %6694 = vmatprep.mubr.msk.bf16.mxu1 %vm7194_vm8, %v7187_v34  ;;  %6681 = vmatpush3.bf16.msra.mxu1 %v7019_v36 }
0x15ec   :  { %6682 = vmatprep.subr.bf16.mxu1 %v7187_v34 }
0x15ef   :  { %6683 = vmatpush3.bf16.msra.mxu1 %v7020_v3 }
0x15f0   :  { %6684 = vmatprep.subr.bf16.mxu1 %v7187_v34 }
0x15f3   :  { %6685 = vmatpush3.bf16.msra.mxu1 %v7021_v17 }
0x15f4   :  { %6686 = vmatprep.subr.bf16.mxu1 %v7187_v34 }
0x15f7   :  { %6687 = vmatpush3.bf16.msra.mxu1 %v7022_v54 }
0x15f8   :  { %6688 = vmatprep.subr.bf16.mxu1 %v7187_v34 }
0x15fb   :  { %6689 = vmatpush3.bf16.msra.mxu1 %v7023_v1 }
0x15fc   :  { %6690 = vmatprep.subr.bf16.mxu1 %v7187_v34 }
0x15ff   :  { %6691 = vmatpush3.bf16.msra.mxu1 %v7024_v35 }
0x1600   :  { %6692 = vmatprep.subr.bf16.mxu1 %v7187_v34 }
0x1603   :  { %v4698_v51 = vpop.f32.mrb[16].mxu1  ;;  %6693 = vmatpush3.bf16.msra.mxu1 %v6098_v30 }
0x1604   :  { %v5803_v13 = vpack.c.bf16 %v4698_v51, %v4698_v51  ;;  %v4700_v2 = vpop.f32.mrb[17].mxu1 }
0x1605   :  { %v4701_v12 = vpop.f32.mrb[18].mxu1 }
0x1606   :  { %v4702_v26 = vpop.f32.mrb[19].mxu1  ;;  %6653 = vmatmul.mubr.msk.bf16.vlgmr.msra.gmra.mrb[12].mxu0 %vm5592_vm10, %v5803_v13 }
0x1607   :  { %6657 = vmatpush3.bf16.msra.mxu0 %v7011_v6  ;;  %6664 = vmatprep.mubr.msk.bf16.mxu0 %vm7194_vm8, %v7187_v34 }
0x1608   :  { %6658 = vmatprep.subr.bf16.mxu0 %v7187_v34 }
0x160b   :  { %6659 = vmatpush3.bf16.msra.mxu0 %v7012_v25 }
0x160c   :  { %6660 = vmatprep.subr.bf16.mxu0 %v7187_v34 }
0x160f   :  { %6661 = vmatpush3.bf16.msra.mxu0 %v7013_v56 }
0x1610   :  { %6662 = vmatprep.subr.bf16.mxu0 %v7187_v34 }
0x1613   :  { %6663 = vmatpush3.bf16.msra.mxu0 %v5914_v27 }
0x1614   :  { %6668 = vmatprep.subr.bf16.mxu0 %v7187_v34 }
0x1616   :  { %6665 = vmatmul.mubr.msk.bf16.vlgmr.msra.gmra.mrb[12].mxu0 %vm5592_vm10, %v5880_v47 }
0x1617   :  { %6669 = vmatpush3.bf16.msra.mxu0 %v7015_v50  ;;  %6676 = vmatprep.mubr.msk.bf16.mxu0 %vm7194_vm8, %v7187_v34 }
0x1618   :  { %6670 = vmatprep.subr.bf16.mxu0 %v7187_v34 }
0x161b   :  { %6671 = vmatpush3.bf16.msra.mxu0 %v7016_v9 }
0x161c   :  { %6672 = vmatprep.subr.bf16.mxu0 %v7187_v34 }
0x161f   :  { %6673 = vmatpush3.bf16.msra.mxu0 %v7017_v46 }
0x1620   :  { %6674 = vmatprep.subr.bf16.mxu0 %v7187_v34  ;;  %v6500_v34 = vld [vmem:[%s10199_s12] ss:$0 sm:$0xff]  ;;  %s7195_s12 = smov [#allocation14]  }
0x1621   :  { %s6160_s13 = sshll.u32 %s7195_s12, 4  ;;  %s6161_s13 = int_to_ptr.vmem [resolvable:$true] %s6160_s13 }
0x1622   :  { %s7135_s14 = scalar_lea.vmem %s6161_s13, 32  ;;  %p7140_p3 = scmp.lt.s32.totalorder %s6161_s13, %s6161_s13 }
0x1623   :  { %6675 = vmatpush3.bf16.msra.mxu0 %v5991_v38  ;;  %p7136_p2 = scmp.ne.s32.totalorder %s6161_s13, %s7135_s14  ;;  %p7141_p4 = scmp.lt.s32.totalorder %s7135_s14, %s7135_s14 }
0x1625   :  { %p7142_p5 = por %p7141_p4, %p7140_p3 }
0x1627   :  { %p7143_p6 = pnand %p7142_p5, %p7136_p2 }
0x169d   :  { %v5556_v39 = vpop.f32.mrb[20].mxu1 }
0x169e   :  { %v5957_v57 = vpack.c.bf16 %v5556_v39, %v5556_v39  ;;  %v5558_v7 = vpop.f32.mrb[21].mxu1 }
0x169f   :  { %v5559_v29 = vpop.f32.mrb[22].mxu1 }
0x16a0   :  { %v5560_v32 = vpop.f32.mrb[23].mxu1  ;;  %6677 = vmatmul.mubr.msk.bf16.vlgmr.msra.gmra.mrb[12].mxu0 %vm5592_vm10, %v5957_v57 }
0x16bd   :  { %v5719_v55 = vpop.f32.mrb[24].mxu1 }
0x16be   :  { %v6630_v31 = vpop.f32.mrb[25].mxu1  ;;  %v6698_v43 = vadd.f32 %v6500_v34, %v5719_v55 }
0x16bf   :  { %v5722_v37 = vpop.f32.mrb[26].mxu1 }
0x16c0   :  { %v6631_v58 = vpop.f32.mrb[27].mxu1 }
0x1773   :  { %v6027_v59 = vpop.f32.mrb[12].mxu0 }
0x1774   :  { %v6699_v18 = vadd.f32 %v6698_v43, %v6027_v59  ;;  %v6678_v5 = vpop.f32.mrb[13].mxu0 }
0x1775   :  { %v6030_v14 = vpop.f32.mrb[14].mxu0 }
0x1776   :  { %v6034_v48 = vpack.c.bf16 %v6699_v18, %v6699_v18  ;;  %v6679_v52 = vpop.f32.mrb[15].mxu0 }
0x1778   :  { %6695 = vmatmul.mubr.msk.bf16.vlgmr.msra.gmra.mrb[28].mxu1 %vm524_vm9, %v6034_v48 }
0x184b   :  { %v6134_v61 = vpop.f32.mrb[28].mxu1 }
0x184c   :  { %v6135_v8 = vadd.f32 %v6561_v23, %v6134_v61  ;;  %v6696_v10 = vpop.f32.mrb[29].mxu1 }
0x184d   :  { %v6137_v11 = vpop.f32.mrb[30].mxu1 }
0x184e   :  { %v6697_v53 = vpop.f32.mrb[31].mxu1  ;;  %v6141_v60 = vsel %vm6140_vm2, %v6135_v8, -inf }
0x184f   :  { %6142 = vmax.xlane.f32.xlu0 %v6141_v60 }
0x18dc   :  { %v6143_v44 = vpop.xlane.xlu0 %6142 }
0x18dd   :  { %v6144_v20 = vsub.f32 %v6135_v8, %v6143_v44 }
0x18df   :  { %v6145_v40 = vmul.f32 1.442695, %v6144_v20 }
0x18e1   :  { %7044 = vpow2.f32 %v6145_v40 }
0x18eb   :  { %v7045_v45 = vpop.eup %7044 }
0x18ec   :  { %v6147_v24 = vsel %vm6140_vm2, %v7045_v45, 0.0 }
0x18ed   :  { %6148 = vadd.xlane.f32.xlu1 %v6147_v24 }
0x197a   :  { %v6149_v16 = vpop.xlane.xlu1 %6148 }
0x197b   :  { %7046 = vlog2.f32 %v6149_v16 }
0x1985   :  { %v7047_v19 = vpop.eup %7046 }
0x1986   :  { %v6151_v33 = vmul.f32 0.6931472, %v7047_v19 }
0x1988   :  { %v6152_v21 = vsub.f32 %v6144_v20, %v6151_v33 }
0x198a   :  { %6153 = vst.msk [vmem:[#allocation14] sm:$0x3] %vm6140_vm2, %v6152_v21 }
0x198b   :  { %7146 = shalt.err (!%p7143_p6)
}
0x198c   :  { %s7147_s21 = scalar_lea.hbm %s10202_s15, 32 }
0x198d   :  { %p7148_p7 = scmp.ne.s32.totalorder %s10202_s15, %s7147_s21  ;;  %p7151_p8 = scmp.lt.u32.totalorder %s7147_s21, %s10202_s15 }
0x198f   :  { %p7153_p9 = pnand %p7151_p8, %p7148_p7 }
0x1991   :  { %7156 = shalt.err (!%p7153_p9)
}
0x1992   :  { %6163 = dma.vmem_to_hbm [thread:$0]  %s6161_s13, 32, %s10202_s15, [#allocation4]  }
0x1993   :  { %7165 = dma.done.wait [#allocation4], 32  }
0x1994   :  { %7166 = vsyncadd [#allocation4], 4294967264 }
0x1995   :  { %6167 = vsyncpa [#allocation4], 1 }
0x1996   :  { %6168 = vsyncpa [#allocation5], 1 }
0x1997   :  { %6169 = vsyncpa [#allocation7], 1 }
0x1998   :  { %6170 = vsyncpa [#allocation10], 1 }
0x1999   :  { %6171 = vsyncpa [#allocation13], 1 }

</bundles_post_ra>
